<compile_context>
chip_gen: v7x
topology: tpu7x:2x2x1
jax: 0.10.0
libtpu: 0.0.40
codegen_flags: <defaults>
</compile_context>

<pallas_src>
import functools
import math

import jax
import jax.numpy as jnp
from jax import lax
from jax.experimental import pallas as pl
from jax.experimental.pallas import tpu as pltpu

EPS = 1e-5


def _layer_norm(z, gamma, beta):
    mu = jnp.mean(z, axis=-1, keepdims=True)
    var = jnp.mean((z - mu) ** 2, axis=-1, keepdims=True)
    return (z - mu) * lax.rsqrt(var + EPS) * gamma + beta


def _encode_layer_kernel(
    x_ref,      # (1, T, D)  f32   full sequence for this batch index (revisited over qi)
    vec_ref,    # (8, D)     f32   rows: ln1_g, ln1_b, ln2_g, ln2_b, attn_out_b, ffn_out_b, 0, 0
    wqkv_ref,   # (D, 3D)    bf16  fused [Wq * 1/sqrt(dk) | Wk | Wv]
    bqkv_ref,   # (1, 3D)    f32   fused [bq * 1/sqrt(dk) | bk | bv] (lane-dense)
    wo_ref,     # (D, D)     bf16  output projection
    w1_ref,     # (D, Dff)   bf16
    b1_ref,     # (1, Dff)   f32
    w2_ref,     # (Dff, D)   bf16
    o_ref,      # (1, TQ, D) f32   query-row tile of the layer output
    qkv_scr,    # (T, 3D)    bf16  persistent VMEM scratch: Q|K|V for the whole sequence
    *,
    num_heads,
):
    f32 = jnp.float32
    bf16 = jnp.bfloat16

    qi = pl.program_id(1)
    T, D = x_ref.shape[1], x_ref.shape[2]
    TQ = o_ref.shape[1]
    H = num_heads
    dk = D // H

    # ---- once per batch index: LN1 + fused QKV projection for the whole sequence
    @pl.when(qi == 0)
    def _():
        ln1_g, ln1_b = vec_ref[0:1, :], vec_ref[1:2, :]
        ln1 = _layer_norm(x_ref[0].astype(f32), ln1_g, ln1_b)          # (T, D) f32
        qkv = jnp.dot(ln1.astype(bf16), wqkv_ref[...],
                      preferred_element_type=f32) + bqkv_ref[...]      # (T, 3D) f32
        qkv_scr[...] = qkv.astype(bf16)

    # ---- per query-row tile ------------------------------------------------
    row0 = pl.multiple_of(qi * TQ, TQ)
    xq = x_ref[0, pl.ds(row0, TQ), :].astype(f32)                      # (TQ, D) residual input

    q_all = qkv_scr[pl.ds(row0, TQ), 0:D]                              # (TQ, D) bf16 (pre-scaled)
    k_all = qkv_scr[:, D:2 * D]                                        # (T,  D) bf16
    v_all = qkv_scr[:, 2 * D:3 * D]                                    # (T,  D) bf16

    # Per-head scaled dot-product attention (no mask: encoder, do_mask=False).
    # The dk-deep score/context matmuls are inherent to MHA; everything else is
    # full lane width.
    ctx_parts = []
    for h in range(H):
        lo = h * dk
        q_h = q_all[:, lo:lo + dk]                                     # (TQ, dk)
        k_h = k_all[:, lo:lo + dk]                                     # (T,  dk)
        v_h = v_all[:, lo:lo + dk]                                     # (T,  dk)
        s = lax.dot_general(q_h, k_h, (((1,), (1,)), ((), ())),
                            preferred_element_type=f32)                # (TQ, T), scale pre-folded
        s = s - jnp.max(s, axis=-1, keepdims=True)
        p = jnp.exp(s)
        p = p * pl.reciprocal(jnp.sum(p, axis=-1, keepdims=True), approx=True)
        ctx_parts.append(jnp.dot(p.astype(bf16), v_h,
                                 preferred_element_type=f32))          # (TQ, dk)
    ctx = jnp.concatenate(ctx_parts, axis=-1)                          # (TQ, D)

    attn_ob, ffn_ob = vec_ref[4:5, :], vec_ref[5:6, :]
    att = jnp.dot(ctx.astype(bf16), wo_ref[...],
                  preferred_element_type=f32) + attn_ob                # (TQ, D)

    # Residual 1 (dropout == identity in eval mode).
    x1 = xq + att

    # ---- LayerNorm 2 -> position-wise feed forward -> residual 2 -----------
    ln2_g, ln2_b = vec_ref[2:3, :], vec_ref[3:4, :]
    ln2 = _layer_norm(x1, ln2_g, ln2_b)
    h1 = jnp.dot(ln2.astype(bf16), w1_ref[...],
                 preferred_element_type=f32) + b1_ref[...]
    h1 = jnp.maximum(h1, 0.0)                                          # ReLU
    ff = jnp.dot(h1.astype(bf16), w2_ref[...],
                 preferred_element_type=f32) + ffn_ob

    o_ref[0] = (x1 + ff).astype(o_ref.dtype)


def encode_layer(x, lp, *, num_heads, tq=128):
    """Run one fused EncodeLayer. x: (B, T, D) float32, lp: packed layer params."""
    B, T, D = x.shape
    assert D % num_heads == 0, "d_model must be divisible by num_heads"
    Dff = lp["w1"].shape[1]

    # Query-row tiling. TQ=128 keeps per-step VMEM bounded on all chips; on v6e it
    # can be raised (tq=256..512) to amortize per-step overhead.
    TQ = T if T <= tq else tq
    assert T % TQ == 0, "T must be a multiple of the query tile size"
    nq = T // TQ

    const2 = lambda shape: pl.BlockSpec(shape, lambda b, qi: (0, 0))

    in_specs = [
        pl.BlockSpec((1, T, D), lambda b, qi: (b, 0, 0)),  # x: full sequence, revisited over qi
        const2((8, D)),                                    # packed LN affine + output biases
        const2((D, 3 * D)),                                # fused QKV weights (bf16)
        const2((1, 3 * D)),                                # fused QKV biases (lane-dense)
        const2((D, D)),                                    # Wo (bf16)
        const2((D, Dff)),                                  # W1 (bf16)
        const2((1, Dff)),                                  # b1
        const2((Dff, D)),                                  # W2 (bf16)
    ]
    out_spec = pl.BlockSpec((1, TQ, D), lambda b, qi: (b, qi, 0))

    kernel = functools.partial(_encode_layer_kernel, num_heads=num_heads)

    return pl.pallas_call(
        kernel,
        out_shape=jax.ShapeDtypeStruct((B, T, D), x.dtype),
        grid=(B, nq),
        in_specs=in_specs,
        out_specs=out_spec,
        scratch_shapes=[pltpu.VMEM((T, 3 * D), jnp.bfloat16)],  # persistent Q|K|V per batch
        compiler_params=pltpu.CompilerParams(
            # b parallel (megacore), qi arbitrary (scratch reuse must stay per-core
            # sequential so @pl.when(qi == 0) initialization is correct).
            dimension_semantics=("parallel", "arbitrary"),
            vmem_limit_bytes=48 * 1024 * 1024,
        ),
    )(
        x,
        lp["vecs"], lp["wqkv"], lp["bqkv"], lp["wo"],
        lp["w1"], lp["b1"], lp["w2"],
    )


# ---------------------------------------------------------------------------
# Plain-JAX glue: parameters, packing, embedding, positional encoding
# ---------------------------------------------------------------------------

def init_raw_layer_params(key, d_model, d_ff):
    """PyTorch-style EncodeLayer parameters (f32, un-packed)."""
    ks = jax.random.split(key, 6)
    s = 0.02
    return {
        "ln1_g": jnp.ones((d_model,), jnp.float32),
        "ln1_b": jnp.zeros((d_model,), jnp.float32),
        "wq": jax.random.normal(ks[0], (d_model, d_model), jnp.float32) * s,
        "bq": jnp.zeros((d_model,), jnp.float32),
        "wk": jax.random.normal(ks[1], (d_model, d_model), jnp.float32) * s,
        "bk": jnp.zeros((d_model,), jnp.float32),
        "wv": jax.random.normal(ks[2], (d_model, d_model), jnp.float32) * s,
        "bv": jnp.zeros((d_model,), jnp.float32),
        "wo": jax.random.normal(ks[3], (d_model, d_model), jnp.float32) * s,
        "bo": jnp.zeros((d_model,), jnp.float32),
        "ln2_g": jnp.ones((d_model,), jnp.float32),
        "ln2_b": jnp.zeros((d_model,), jnp.float32),
        "w1": jax.random.normal(ks[4], (d_model, d_ff), jnp.float32) * s,
        "b1": jnp.zeros((d_ff,), jnp.float32),
        "w2": jax.random.normal(ks[5], (d_ff, d_model), jnp.float32) * s,
        "b2": jnp.zeros((d_model,), jnp.float32),
    }


def pack_layer_params(raw, num_heads):
    """Kernel layout: bf16 weights, fused+scaled QKV, lane-dense packed biases."""
    D = raw["wq"].shape[0]
    Dff = raw["w1"].shape[1]
    assert D % num_heads == 0
    dk = D // num_heads
    scale = 1.0 / math.sqrt(dk)

    vecs = jnp.stack(
        [raw["ln1_g"], raw["ln1_b"], raw["ln2_g"], raw["ln2_b"],
         raw["bo"], raw["b2"],
         jnp.zeros((D,), jnp.float32), jnp.zeros((D,), jnp.float32)],
        axis=0,
    ).astype(jnp.float32)                                                  # (8, D)

    # Fold the 1/sqrt(dk) attention scale into Wq / bq; fuse Q|K|V along lanes.
    wqkv = jnp.concatenate([raw["wq"] * scale, raw["wk"], raw["wv"]],
                           axis=1).astype(jnp.bfloat16)                     # (D, 3D)
    bqkv = jnp.concatenate([raw["bq"] * scale, raw["bk"], raw["bv"]],
                           axis=0).reshape(1, 3 * D).astype(jnp.float32)    # (1, 3D)

    return {
        "vecs": vecs,
        "wqkv": wqkv,
        "bqkv": bqkv,
        "wo": raw["wo"].astype(jnp.bfloat16),
        "w1": raw["w1"].astype(jnp.bfloat16),
        "b1": raw["b1"].reshape(1, Dff).astype(jnp.float32),
        "w2": raw["w2"].astype(jnp.bfloat16),
    }


def init_params(key, *, vocab, d_model, d_ff, num_layers, num_heads):
    keys = jax.random.split(key, 1 + num_layers)
    return {
        "embedding": jax.random.normal(keys[0], (vocab, d_model), jnp.float32) * 0.02,
        "layers": [
            pack_layer_params(init_raw_layer_params(keys[1 + li], d_model, d_ff), num_heads)
            for li in range(num_layers)
        ],
    }


def sinusoidal_pe(T, D):
    pos = jnp.arange(T, dtype=jnp.float32)[:, None]          # (T, 1)
    i = jnp.arange(D // 2, dtype=jnp.float32)[None, :]       # (1, D/2)
    angle = pos / jnp.power(10000.0, (2.0 * i) / D)
    pe = jnp.zeros((T, D), jnp.float32)
    pe = pe.at[:, 0::2].set(jnp.sin(angle))
    pe = pe.at[:, 1::2].set(jnp.cos(angle))
    return pe


def encoder_forward(indices, params, *, num_heads):
    """indices: (B, T) int32 token ids -> (B, T, D) float32."""
    B, T = indices.shape
    D = params["embedding"].shape[1]
    # InputEmbedding: lookup * sqrt(D); PositionalEncoding: + sinusoidal PE.
    x = params["embedding"][indices] * math.sqrt(D)           # (B, T, D)
    x = x + sinusoidal_pe(T, D)[None, :, :]
    # TODO(synk): dropout layers are identity here (inference/eval semantics).
    for lp in params["layers"]:
        x = encode_layer(x, lp, num_heads=num_heads)
    return x


if __name__ == "__main__":
    # Small but lane-dense config: D = 128 (full lane width), T = 256 so the
    # query-row grid has nq = 2 and exercises the K/V-scratch reuse path.
    B, T, D, H, DFF, V, L = 2, 256, 128, 4, 256, 50, 2
    key = jax.random.PRNGKey(0)
    k_param, k_tok = jax.random.split(key)
    params = init_params(k_param, vocab=V, d_model=D, d_ff=DFF, num_layers=L, num_heads=H)
    tokens = jax.random.randint(k_tok, (B, T), 0, V, dtype=jnp.int32)

    out = encoder_forward(tokens, params, num_heads=H)
    out = jax.block_until_ready(out)
    assert out.shape == (B, T, D), out.shape
    assert bool(jnp.all(jnp.isfinite(out)))
    print("KERNEL_OK")
</pallas_src>

<mosaic_0001>
module attributes {stable_mosaic.version = 11 : i64} {
  func.func @_encode_layer_kernel(%arg0: i32, %arg1: i32, %arg2: memref<1x256x128xf32, #tpu.memory_space<vmem>>, %arg3: memref<8x128xf32, #tpu.memory_space<vmem>>, %arg4: memref<128x384xbf16, #tpu.memory_space<vmem>>, %arg5: memref<1x384xf32, #tpu.memory_space<vmem>>, %arg6: memref<128x128xbf16, #tpu.memory_space<vmem>>, %arg7: memref<128x256xbf16, #tpu.memory_space<vmem>>, %arg8: memref<1x256xf32, #tpu.memory_space<vmem>>, %arg9: memref<256x128xbf16, #tpu.memory_space<vmem>>, %arg10: memref<1x128x128xf32, #tpu.memory_space<vmem>>, %arg11: memref<256x384xbf16, #tpu.memory_space<vmem>>) attributes {dimension_semantics = [#tpu.dimension_semantics<parallel>, #tpu.dimension_semantics<arbitrary>], iteration_bounds = array<i64: 2, 2>, scalar_prefetch = 0 : i64, scratch_operands = 1 : i64, tpu.core_type = #tpu.core_type<tc>, window_params = [{transform_indices = @transform_0, window_bounds = array<i64: 1, 256, 128>}, {pipeline_mode = #tpu.pipeline_mode<synchronous>, transform_indices = @transform_1, window_bounds = array<i64: 8, 128>}, {pipeline_mode = #tpu.pipeline_mode<synchronous>, transform_indices = @transform_2, window_bounds = array<i64: 128, 384>}, {pipeline_mode = #tpu.pipeline_mode<synchronous>, transform_indices = @transform_3, window_bounds = array<i64: 1, 384>}, {pipeline_mode = #tpu.pipeline_mode<synchronous>, transform_indices = @transform_4, window_bounds = array<i64: 128, 128>}, {pipeline_mode = #tpu.pipeline_mode<synchronous>, transform_indices = @transform_5, window_bounds = array<i64: 128, 256>}, {pipeline_mode = #tpu.pipeline_mode<synchronous>, transform_indices = @transform_6, window_bounds = array<i64: 1, 256>}, {pipeline_mode = #tpu.pipeline_mode<synchronous>, transform_indices = @transform_7, window_bounds = array<i64: 256, 128>}, {transform_indices = @transform_8, window_bounds = array<i64: 1, 128, 128>}]} {
    %c0_i32 = arith.constant 0 : i32
    %0 = arith.cmpi eq, %arg1, %c0_i32 : i32
    %1 = arith.extui %0 : i1 to i32
    %c0_i32_0 = arith.constant 0 : i32
    %2 = arith.cmpi ne, %1, %c0_i32_0 : i32
    scf.if %2 {
      %c0_44 = arith.constant 0 : index
      %c0_45 = arith.constant 0 : index
      %126 = vector.load %arg3[%c0_44, %c0_45] : memref<8x128xf32, #tpu.memory_space<vmem>>, vector<1x128xf32>
      %c1 = arith.constant 1 : index
      %c0_46 = arith.constant 0 : index
      %127 = vector.load %arg3[%c1, %c0_46] : memref<8x128xf32, #tpu.memory_space<vmem>>, vector<1x128xf32>
      %c0_47 = arith.constant 0 : index
      %c0_48 = arith.constant 0 : index
      %c0_49 = arith.constant 0 : index
      %128 = vector.load %arg2[%c0_47, %c0_48, %c0_49] : memref<1x256x128xf32, #tpu.memory_space<vmem>>, vector<1x256x128xf32>
      %129 = vector.shape_cast %128 : vector<1x256x128xf32> to vector<256x128xf32>
      %cst_50 = arith.constant dense<0.000000e+00> : vector<256xf32>
      %130 = vector.multi_reduction <add>, %129, %cst_50 [1] : vector<256x128xf32> to vector<256xf32>
      %131 = vector.shape_cast %130 : vector<256xf32> to vector<256x1xf32>
      %cst_51 = arith.constant 1.280000e+02 : f32
      %132 = vector.broadcast %cst_51 : f32 to vector<256x1xf32>
      %133 = arith.divf %131, %132 : vector<256x1xf32>
      %134 = vector.broadcast %133 : vector<256x1xf32> to vector<256x128xf32>
      %135 = arith.subf %129, %134 : vector<256x128xf32>
      %136 = arith.mulf %135, %135 : vector<256x128xf32>
      %cst_52 = arith.constant dense<0.000000e+00> : vector<256xf32>
      %137 = vector.multi_reduction <add>, %136, %cst_52 [1] : vector<256x128xf32> to vector<256xf32>
      %138 = vector.shape_cast %137 : vector<256xf32> to vector<256x1xf32>
      %cst_53 = arith.constant 1.280000e+02 : f32
      %139 = vector.broadcast %cst_53 : f32 to vector<256x1xf32>
      %140 = arith.divf %138, %139 : vector<256x1xf32>
      %141 = vector.broadcast %133 : vector<256x1xf32> to vector<256x128xf32>
      %142 = arith.subf %129, %141 : vector<256x128xf32>
      %cst_54 = arith.constant 9.99999974E-6 : f32
      %143 = vector.broadcast %cst_54 : f32 to vector<256x1xf32>
      %144 = arith.addf %140, %143 : vector<256x1xf32>
      %145 = math.rsqrt %144 : vector<256x1xf32>
      %146 = vector.broadcast %145 : vector<256x1xf32> to vector<256x128xf32>
      %147 = arith.mulf %142, %146 : vector<256x128xf32>
      %148 = vector.broadcast %126 : vector<1x128xf32> to vector<256x128xf32>
      %149 = arith.mulf %147, %148 : vector<256x128xf32>
      %150 = vector.broadcast %127 : vector<1x128xf32> to vector<256x128xf32>
      %151 = arith.addf %149, %150 : vector<256x128xf32>
      %152 = arith.truncf %151 : vector<256x128xf32> to vector<256x128xbf16>
      %c0_55 = arith.constant 0 : index
      %c0_56 = arith.constant 0 : index
      %153 = vector.load %arg4[%c0_55, %c0_56] : memref<128x384xbf16, #tpu.memory_space<vmem>>, vector<128x384xbf16>
      %cst_57 = arith.constant dense<0.000000e+00> : vector<256x384xf32>
      %154 = tpu.matmul %152, %153, %cst_57 {dimension_numbers = #tpu.dot_dimension_numbers<[1], [0], [0], [1], [0, 0, 1, 1], [], []>} : vector<256x128xbf16>, vector<128x384xbf16>, vector<256x384xf32> -> vector<256x384xf32>
      %c0_58 = arith.constant 0 : index
      %c0_59 = arith.constant 0 : index
      %155 = vector.load %arg5[%c0_58, %c0_59] : memref<1x384xf32, #tpu.memory_space<vmem>>, vector<1x384xf32>
      %156 = vector.broadcast %155 : vector<1x384xf32> to vector<256x384xf32>
      %157 = arith.addf %154, %156 : vector<256x384xf32>
      %158 = arith.truncf %157 : vector<256x384xf32> to vector<256x384xbf16>
      %c0_60 = arith.constant 0 : index
      %c0_61 = arith.constant 0 : index
      %159 = vector.load %arg11[%c0_60, %c0_61] : memref<256x384xbf16, #tpu.memory_space<vmem>>, vector<256x384xbf16>
      tpu.vector_store %arg11[%c0_60, %c0_61], %158 {strides = array<i32>} : memref<256x384xbf16, #tpu.memory_space<vmem>>, vector<256x384xbf16>,
    } else {
    }
    %c128_i32 = arith.constant 128 : i32
    %3 = arith.muli %arg1, %c128_i32 : i32
    %4 = tpu.assume_multiple %3, 128 : i32
    %c0 = arith.constant 0 : index
    %5 = arith.index_cast %4 : i32 to index
    %c0_1 = arith.constant 0 : index
    %6 = vector.load %arg2[%c0, %5, %c0_1] : memref<1x256x128xf32, #tpu.memory_space<vmem>>, vector<1x128x128xf32>
    %7 = vector.shape_cast %6 : vector<1x128x128xf32> to vector<128x128xf32>
    %8 = arith.index_cast %4 : i32 to index
    %c0_2 = arith.constant 0 : index
    %9 = vector.load %arg11[%8, %c0_2] : memref<256x384xbf16, #tpu.memory_space<vmem>>, vector<128x128xbf16>
    %c0_3 = arith.constant 0 : index
    %c128 = arith.constant 128 : index
    %10 = vector.load %arg11[%c0_3, %c128] : memref<256x384xbf16, #tpu.memory_space<vmem>>, vector<256x128xbf16>
    %c0_4 = arith.constant 0 : index
    %c256 = arith.constant 256 : index
    %11 = vector.load %arg11[%c0_4, %c256] : memref<256x384xbf16, #tpu.memory_space<vmem>>, vector<256x128xbf16>
    %12 = vector.extract_strided_slice %9 {offsets = [0, 0], sizes = [128, 32], strides = [1, 1]} : vector<128x128xbf16> to vector<128x32xbf16>
    %13 = vector.extract_strided_slice %10 {offsets = [0, 0], sizes = [256, 32], strides = [1, 1]} : vector<256x128xbf16> to vector<256x32xbf16>
    %14 = vector.extract_strided_slice %11 {offsets = [0, 0], sizes = [256, 32], strides = [1, 1]} : vector<256x128xbf16> to vector<256x32xbf16>
    %cst = arith.constant dense<0.000000e+00> : vector<128x256xf32>
    %15 = tpu.matmul %12, %13, %cst {dimension_numbers = #tpu.dot_dimension_numbers<[1], [1], [0], [0], [0, 0, 1, 0], [], []>} : vector<128x32xbf16>, vector<256x32xbf16>, vector<128x256xf32> -> vector<128x256xf32>
    %cst_5 = arith.constant dense<0xFF800000> : vector<128xf32>
    %16 = vector.multi_reduction <maximumf>, %15, %cst_5 [1] : vector<128x256xf32> to vector<128xf32>
    %17 = vector.shape_cast %16 : vector<128xf32> to vector<128x1xf32>
    %18 = vector.broadcast %17 : vector<128x1xf32> to vector<128x256xf32>
    %19 = arith.subf %15, %18 : vector<128x256xf32>
    %20 = math.exp %19 : vector<128x256xf32>
    %cst_6 = arith.constant dense<0.000000e+00> : vector<128xf32>
    %21 = vector.multi_reduction <add>, %20, %cst_6 [1] : vector<128x256xf32> to vector<128xf32>
    %22 = vector.shape_cast %21 : vector<128xf32> to vector<128x1xf32>
    %23 = tpu.reciprocal %22 {approx = true} : vector<128x1xf32> -> vector<128x1xf32>
    %24 = vector.broadcast %23 : vector<128x1xf32> to vector<128x256xf32>
    %25 = arith.mulf %20, %24 : vector<128x256xf32>
    %26 = arith.truncf %25 : vector<128x256xf32> to vector<128x256xbf16>
    %cst_7 = arith.constant dense<0.000000e+00> : vector<128x32xf32>
    %27 = tpu.matmul %26, %14, %cst_7 {dimension_numbers = #tpu.dot_dimension_numbers<[1], [0], [0], [1], [0, 0, 1, 1], [], []>} : vector<128x256xbf16>, vector<256x32xbf16>, vector<128x32xf32> -> vector<128x32xf32>
    %28 = vector.extract_strided_slice %9 {offsets = [0, 32], sizes = [128, 32], strides = [1, 1]} : vector<128x128xbf16> to vector<128x32xbf16>
    %29 = vector.extract_strided_slice %10 {offsets = [0, 32], sizes = [256, 32], strides = [1, 1]} : vector<256x128xbf16> to vector<256x32xbf16>
    %30 = vector.extract_strided_slice %11 {offsets = [0, 32], sizes = [256, 32], strides = [1, 1]} : vector<256x128xbf16> to vector<256x32xbf16>
    %cst_8 = arith.constant dense<0.000000e+00> : vector<128x256xf32>
    %31 = tpu.matmul %28, %29, %cst_8 {dimension_numbers = #tpu.dot_dimension_numbers<[1], [1], [0], [0], [0, 0, 1, 0], [], []>} : vector<128x32xbf16>, vector<256x32xbf16>, vector<128x256xf32> -> vector<128x256xf32>
    %cst_9 = arith.constant dense<0xFF800000> : vector<128xf32>
    %32 = vector.multi_reduction <maximumf>, %31, %cst_9 [1] : vector<128x256xf32> to vector<128xf32>
    %33 = vector.shape_cast %32 : vector<128xf32> to vector<128x1xf32>
    %34 = vector.broadcast %33 : vector<128x1xf32> to vector<128x256xf32>
    %35 = arith.subf %31, %34 : vector<128x256xf32>
    %36 = math.exp %35 : vector<128x256xf32>
    %cst_10 = arith.constant dense<0.000000e+00> : vector<128xf32>
    %37 = vector.multi_reduction <add>, %36, %cst_10 [1] : vector<128x256xf32> to vector<128xf32>
    %38 = vector.shape_cast %37 : vector<128xf32> to vector<128x1xf32>
    %39 = tpu.reciprocal %38 {approx = true} : vector<128x1xf32> -> vector<128x1xf32>
    %40 = vector.broadcast %39 : vector<128x1xf32> to vector<128x256xf32>
    %41 = arith.mulf %36, %40 : vector<128x256xf32>
    %42 = arith.truncf %41 : vector<128x256xf32> to vector<128x256xbf16>
    %cst_11 = arith.constant dense<0.000000e+00> : vector<128x32xf32>
    %43 = tpu.matmul %42, %30, %cst_11 {dimension_numbers = #tpu.dot_dimension_numbers<[1], [0], [0], [1], [0, 0, 1, 1], [], []>} : vector<128x256xbf16>, vector<256x32xbf16>, vector<128x32xf32> -> vector<128x32xf32>
    %44 = vector.extract_strided_slice %9 {offsets = [0, 64], sizes = [128, 32], strides = [1, 1]} : vector<128x128xbf16> to vector<128x32xbf16>
    %45 = vector.extract_strided_slice %10 {offsets = [0, 64], sizes = [256, 32], strides = [1, 1]} : vector<256x128xbf16> to vector<256x32xbf16>
    %46 = vector.extract_strided_slice %11 {offsets = [0, 64], sizes = [256, 32], strides = [1, 1]} : vector<256x128xbf16> to vector<256x32xbf16>
    %cst_12 = arith.constant dense<0.000000e+00> : vector<128x256xf32>
    %47 = tpu.matmul %44, %45, %cst_12 {dimension_numbers = #tpu.dot_dimension_numbers<[1], [1], [0], [0], [0, 0, 1, 0], [], []>} : vector<128x32xbf16>, vector<256x32xbf16>, vector<128x256xf32> -> vector<128x256xf32>
    %cst_13 = arith.constant dense<0xFF800000> : vector<128xf32>
    %48 = vector.multi_reduction <maximumf>, %47, %cst_13 [1] : vector<128x256xf32> to vector<128xf32>
    %49 = vector.shape_cast %48 : vector<128xf32> to vector<128x1xf32>
    %50 = vector.broadcast %49 : vector<128x1xf32> to vector<128x256xf32>
    %51 = arith.subf %47, %50 : vector<128x256xf32>
    %52 = math.exp %51 : vector<128x256xf32>
    %cst_14 = arith.constant dense<0.000000e+00> : vector<128xf32>
    %53 = vector.multi_reduction <add>, %52, %cst_14 [1] : vector<128x256xf32> to vector<128xf32>
    %54 = vector.shape_cast %53 : vector<128xf32> to vector<128x1xf32>
    %55 = tpu.reciprocal %54 {approx = true} : vector<128x1xf32> -> vector<128x1xf32>
    %56 = vector.broadcast %55 : vector<128x1xf32> to vector<128x256xf32>
    %57 = arith.mulf %52, %56 : vector<128x256xf32>
    %58 = arith.truncf %57 : vector<128x256xf32> to vector<128x256xbf16>
    %cst_15 = arith.constant dense<0.000000e+00> : vector<128x32xf32>
    %59 = tpu.matmul %58, %46, %cst_15 {dimension_numbers = #tpu.dot_dimension_numbers<[1], [0], [0], [1], [0, 0, 1, 1], [], []>} : vector<128x256xbf16>, vector<256x32xbf16>, vector<128x32xf32> -> vector<128x32xf32>
    %60 = vector.extract_strided_slice %9 {offsets = [0, 96], sizes = [128, 32], strides = [1, 1]} : vector<128x128xbf16> to vector<128x32xbf16>
    %61 = vector.extract_strided_slice %10 {offsets = [0, 96], sizes = [256, 32], strides = [1, 1]} : vector<256x128xbf16> to vector<256x32xbf16>
    %62 = vector.extract_strided_slice %11 {offsets = [0, 96], sizes = [256, 32], strides = [1, 1]} : vector<256x128xbf16> to vector<256x32xbf16>
    %cst_16 = arith.constant dense<0.000000e+00> : vector<128x256xf32>
    %63 = tpu.matmul %60, %61, %cst_16 {dimension_numbers = #tpu.dot_dimension_numbers<[1], [1], [0], [0], [0, 0, 1, 0], [], []>} : vector<128x32xbf16>, vector<256x32xbf16>, vector<128x256xf32> -> vector<128x256xf32>
    %cst_17 = arith.constant dense<0xFF800000> : vector<128xf32>
    %64 = vector.multi_reduction <maximumf>, %63, %cst_17 [1] : vector<128x256xf32> to vector<128xf32>
    %65 = vector.shape_cast %64 : vector<128xf32> to vector<128x1xf32>
    %66 = vector.broadcast %65 : vector<128x1xf32> to vector<128x256xf32>
    %67 = arith.subf %63, %66 : vector<128x256xf32>
    %68 = math.exp %67 : vector<128x256xf32>
    %cst_18 = arith.constant dense<0.000000e+00> : vector<128xf32>
    %69 = vector.multi_reduction <add>, %68, %cst_18 [1] : vector<128x256xf32> to vector<128xf32>
    %70 = vector.shape_cast %69 : vector<128xf32> to vector<128x1xf32>
    %71 = tpu.reciprocal %70 {approx = true} : vector<128x1xf32> -> vector<128x1xf32>
    %72 = vector.broadcast %71 : vector<128x1xf32> to vector<128x256xf32>
    %73 = arith.mulf %68, %72 : vector<128x256xf32>
    %74 = arith.truncf %73 : vector<128x256xf32> to vector<128x256xbf16>
    %cst_19 = arith.constant dense<0.000000e+00> : vector<128x32xf32>
    %75 = tpu.matmul %74, %62, %cst_19 {dimension_numbers = #tpu.dot_dimension_numbers<[1], [0], [0], [1], [0, 0, 1, 1], [], []>} : vector<128x256xbf16>, vector<256x32xbf16>, vector<128x32xf32> -> vector<128x32xf32>
    %76 = tpu.concatenate %27, %43, %59, %75 in 1 : vector<128x32xf32>, vector<128x32xf32>, vector<128x32xf32>, vector<128x32xf32> -> vector<128x128xf32>
    %c4 = arith.constant 4 : index
    %c0_20 = arith.constant 0 : index
    %77 = vector.load %arg3[%c4, %c0_20] : memref<8x128xf32, #tpu.memory_space<vmem>>, vector<1x128xf32>
    %c5 = arith.constant 5 : index
    %c0_21 = arith.constant 0 : index
    %78 = vector.load %arg3[%c5, %c0_21] : memref<8x128xf32, #tpu.memory_space<vmem>>, vector<1x128xf32>
    %79 = arith.truncf %76 : vector<128x128xf32> to vector<128x128xbf16>
    %c0_22 = arith.constant 0 : index
    %c0_23 = arith.constant 0 : index
    %80 = vector.load %arg6[%c0_22, %c0_23] : memref<128x128xbf16, #tpu.memory_space<vmem>>, vector<128x128xbf16>
    %cst_24 = arith.constant dense<0.000000e+00> : vector<128x128xf32>
    %81 = tpu.matmul %79, %80, %cst_24 {dimension_numbers = #tpu.dot_dimension_numbers<[1], [0], [0], [1], [0, 0, 1, 1], [], []>} : vector<128x128xbf16>, vector<128x128xbf16>, vector<128x128xf32> -> vector<128x128xf32>
    %82 = vector.broadcast %77 : vector<1x128xf32> to vector<128x128xf32>
    %83 = arith.addf %81, %82 : vector<128x128xf32>
    %84 = arith.addf %7, %83 : vector<128x128xf32>
    %c2 = arith.constant 2 : index
    %c0_25 = arith.constant 0 : index
    %85 = vector.load %arg3[%c2, %c0_25] : memref<8x128xf32, #tpu.memory_space<vmem>>, vector<1x128xf32>
    %c3 = arith.constant 3 : index
    %c0_26 = arith.constant 0 : index
    %86 = vector.load %arg3[%c3, %c0_26] : memref<8x128xf32, #tpu.memory_space<vmem>>, vector<1x128xf32>
    %cst_27 = arith.constant dense<0.000000e+00> : vector<128xf32>
    %87 = vector.multi_reduction <add>, %84, %cst_27 [1] : vector<128x128xf32> to vector<128xf32>
    %88 = vector.shape_cast %87 : vector<128xf32> to vector<128x1xf32>
    %cst_28 = arith.constant 1.280000e+02 : f32
    %89 = vector.broadcast %cst_28 : f32 to vector<128x1xf32>
    %90 = arith.divf %88, %89 : vector<128x1xf32>
    %91 = vector.broadcast %90 : vector<128x1xf32> to vector<128x128xf32>
    %92 = arith.subf %84, %91 : vector<128x128xf32>
    %93 = arith.mulf %92, %92 : vector<128x128xf32>
    %cst_29 = arith.constant dense<0.000000e+00> : vector<128xf32>
    %94 = vector.multi_reduction <add>, %93, %cst_29 [1] : vector<128x128xf32> to vector<128xf32>
    %95 = vector.shape_cast %94 : vector<128xf32> to vector<128x1xf32>
    %cst_30 = arith.constant 1.280000e+02 : f32
    %96 = vector.broadcast %cst_30 : f32 to vector<128x1xf32>
    %97 = arith.divf %95, %96 : vector<128x1xf32>
    %98 = vector.broadcast %90 : vector<128x1xf32> to vector<128x128xf32>
    %99 = arith.subf %84, %98 : vector<128x128xf32>
    %cst_31 = arith.constant 9.99999974E-6 : f32
    %100 = vector.broadcast %cst_31 : f32 to vector<128x1xf32>
    %101 = arith.addf %97, %100 : vector<128x1xf32>
    %102 = math.rsqrt %101 : vector<128x1xf32>
    %103 = vector.broadcast %102 : vector<128x1xf32> to vector<128x128xf32>
    %104 = arith.mulf %99, %103 : vector<128x128xf32>
    %105 = vector.broadcast %85 : vector<1x128xf32> to vector<128x128xf32>
    %106 = arith.mulf %104, %105 : vector<128x128xf32>
    %107 = vector.broadcast %86 : vector<1x128xf32> to vector<128x128xf32>
    %108 = arith.addf %106, %107 : vector<128x128xf32>
    %109 = arith.truncf %108 : vector<128x128xf32> to vector<128x128xbf16>
    %c0_32 = arith.constant 0 : index
    %c0_33 = arith.constant 0 : index
    %110 = vector.load %arg7[%c0_32, %c0_33] : memref<128x256xbf16, #tpu.memory_space<vmem>>, vector<128x256xbf16>
    %cst_34 = arith.constant dense<0.000000e+00> : vector<128x256xf32>
    %111 = tpu.matmul %109, %110, %cst_34 {dimension_numbers = #tpu.dot_dimension_numbers<[1], [0], [0], [1], [0, 0, 1, 1], [], []>} : vector<128x128xbf16>, vector<128x256xbf16>, vector<128x256xf32> -> vector<128x256xf32>
    %c0_35 = arith.constant 0 : index
    %c0_36 = arith.constant 0 : index
    %112 = vector.load %arg8[%c0_35, %c0_36] : memref<1x256xf32, #tpu.memory_space<vmem>>, vector<1x256xf32>
    %113 = vector.broadcast %112 : vector<1x256xf32> to vector<128x256xf32>
    %114 = arith.addf %111, %113 : vector<128x256xf32>
    %cst_37 = arith.constant 0.000000e+00 : f32
    %115 = vector.broadcast %cst_37 : f32 to vector<128x256xf32>
    %116 = arith.maximumf %114, %115 : vector<128x256xf32>
    %117 = arith.truncf %116 : vector<128x256xf32> to vector<128x256xbf16>
    %c0_38 = arith.constant 0 : index
    %c0_39 = arith.constant 0 : index
    %118 = vector.load %arg9[%c0_38, %c0_39] : memref<256x128xbf16, #tpu.memory_space<vmem>>, vector<256x128xbf16>
    %cst_40 = arith.constant dense<0.000000e+00> : vector<128x128xf32>
    %119 = tpu.matmul %117, %118, %cst_40 {dimension_numbers = #tpu.dot_dimension_numbers<[1], [0], [0], [1], [0, 0, 1, 1], [], []>} : vector<128x256xbf16>, vector<256x128xbf16>, vector<128x128xf32> -> vector<128x128xf32>
    %120 = vector.broadcast %78 : vector<1x128xf32> to vector<128x128xf32>
    %121 = arith.addf %119, %120 : vector<128x128xf32>
    %122 = arith.addf %84, %121 : vector<128x128xf32>
    %c0_41 = arith.constant 0 : index
    %c0_42 = arith.constant 0 : index
    %c0_43 = arith.constant 0 : index
    %123 = vector.load %arg10[%c0_41, %c0_42, %c0_43] : memref<1x128x128xf32, #tpu.memory_space<vmem>>, vector<1x128x128xf32>
    %124 = vector.shape_cast %123 : vector<1x128x128xf32> to vector<128x128xf32>
    %125 = vector.shape_cast %122 : vector<128x128xf32> to vector<1x128x128xf32>
    tpu.vector_store %arg10[%c0_41, %c0_42, %c0_43], %125 {strides = array<i32>} : memref<1x128x128xf32, #tpu.memory_space<vmem>>, vector<1x128x128xf32>,
    return
  }
  func.func @transform_0(%arg0: i32, %arg1: i32) -> (i32, i32, i32) {
    %c0_i32 = arith.constant 0 : i32
    %c0_i32_0 = arith.constant 0 : i32
    %c0_i32_1 = arith.constant 0 : i32
    return %arg0, %c0_i32, %c0_i32_0 : i32, i32, i32
  }
  func.func @transform_1(%arg0: i32, %arg1: i32) -> (i32, i32) {
    %c0_i32 = arith.constant 0 : i32
    %c0_i32_0 = arith.constant 0 : i32
    %c0_i32_1 = arith.constant 0 : i32
    return %c0_i32, %c0_i32_0 : i32, i32
  }
  func.func @transform_2(%arg0: i32, %arg1: i32) -> (i32, i32) {
    %c0_i32 = arith.constant 0 : i32
    %c0_i32_0 = arith.constant 0 : i32
    %c0_i32_1 = arith.constant 0 : i32
    return %c0_i32, %c0_i32_0 : i32, i32
  }
  func.func @transform_3(%arg0: i32, %arg1: i32) -> (i32, i32) {
    %c0_i32 = arith.constant 0 : i32
    %c0_i32_0 = arith.constant 0 : i32
    %c0_i32_1 = arith.constant 0 : i32
    return %c0_i32, %c0_i32_0 : i32, i32
  }
  func.func @transform_4(%arg0: i32, %arg1: i32) -> (i32, i32) {
    %c0_i32 = arith.constant 0 : i32
    %c0_i32_0 = arith.constant 0 : i32
    %c0_i32_1 = arith.constant 0 : i32
    return %c0_i32, %c0_i32_0 : i32, i32
  }
  func.func @transform_5(%arg0: i32, %arg1: i32) -> (i32, i32) {
    %c0_i32 = arith.constant 0 : i32
    %c0_i32_0 = arith.constant 0 : i32
    %c0_i32_1 = arith.constant 0 : i32
    return %c0_i32, %c0_i32_0 : i32, i32
  }
  func.func @transform_6(%arg0: i32, %arg1: i32) -> (i32, i32) {
    %c0_i32 = arith.constant 0 : i32
    %c0_i32_0 = arith.constant 0 : i32
    %c0_i32_1 = arith.constant 0 : i32
    return %c0_i32, %c0_i32_0 : i32, i32
  }
  func.func @transform_7(%arg0: i32, %arg1: i32) -> (i32, i32) {
    %c0_i32 = arith.constant 0 : i32
    %c0_i32_0 = arith.constant 0 : i32
    %c0_i32_1 = arith.constant 0 : i32
    return %c0_i32, %c0_i32_0 : i32, i32
  }
  func.func @transform_8(%arg0: i32, %arg1: i32) -> (i32, i32, i32) {
    %c0_i32 = arith.constant 0 : i32
    %c0_i32_0 = arith.constant 0 : i32
    return %arg0, %arg1, %c0_i32 : i32, i32, i32
  }
}

</mosaic_0001>

<bundles_post_ra>
// kernel: tpu_custom_call.1
= control target key start
LH: loop header
LB: loop body
LE: loop exit
PB: predicated region body
PF: predicated region fallthrough
CT: control target
= control target key end

     0   :  { %s10790_s0 = inlined_call_operand.hbm [shape: f32[2,256,128], index: 0, kind: input, shape index: {}]   ;;  %s10791_s1 = inlined_call_operand.hbm [shape: f32[8,128], index: 1, kind: input, shape index: {}]   ;;  %s10792_s2 = inlined_call_operand.hbm [shape: bf16[128,384], index: 2, kind: input, shape index: {}]   ;;  %s10793_s3 = inlined_call_operand.vmem [shape: f32[1,384], index: 3, kind: input, shape index: {}]   ;;  %s10794_s4 = inlined_call_operand.hbm [shape: bf16[128,128], index: 4, kind: input, shape index: {}]   ;;  %s10795_s5 = inlined_call_operand.hbm [shape: bf16[128,256], index: 5, kind: input, shape index: {}]   ;;  %s10796_s6 = inlined_call_operand.vmem [shape: f32[1,256], index: 6, kind: input, shape index: {}]   ;;  %s10797_s7 = inlined_call_operand.hbm [shape: bf16[256,128], index: 7, kind: input, shape index: {}]   ;;  %s10798_s8 = inlined_call_operand.hbm [shape: f32[2,256,128], index: 8, kind: output, shape index: {}]  }
   0x1   :  { %10899 = sst [smem:[#allocation107_spill]] %s10791_s1 }
   0x2   :  { %10900 = sst [smem:[#allocation108_spill]] %s10792_s2 }
   0x3   :  { %10901 = sst [smem:[#allocation109_spill]] %s10793_s3 }
   0x4   :  { %10902 = sst [smem:[#allocation110_spill]] %s10794_s4 }
   0x5   :  { %10903 = sst [smem:[#allocation111_spill]] %s10795_s5 }
   0x6   :  { %10904 = sst [smem:[#allocation112_spill]] %s10796_s6 }
   0x7   :  { %10905 = sst [smem:[#allocation113_spill]] %s10798_s8 }
   0x8   :  { %13 = vsyncpa [#allocation4], 0 }
   0x9   :  { %15 = vsyncpa [#allocation4 + $0x1], 0 }
   0xa   :  { %16 = vsyncpa [#allocation7], 0 }
   0xb   :  { %17 = vsyncpa [#allocation10], 0 }
   0xc   :  { %18 = vsyncpa [#allocation13], 0 }
   0xd   :  { %19 = vsyncpa [#allocation5], 0 }
   0xe   :  { %21 = vsyncpa [#allocation5 + $0x1], 0  ;;  %s7404_s27 = smov 0   ;;  %s7406_s28 = smov 0  }
   0xf   :  { %s7408_s29 = smov 0   ;;  %s7410_s30 = smov 0  }
  0x10   :  { %s7412_s9 = smov 0   ;;  %s7414_s10 = smov 0  }
  0x11   :  { %s7416_s11 = smov 0   ;;  %s7418_s12 = smov 0  }
  0x12   :  { %s7420_s13 = smov 0   ;;  %s7422_s14 = smov 0  }
  0x13   :  { %s7424_s15 = smov 0  }
  0x14 LB: > { %10906 = sst [smem:[#allocation20_spill]] %s7321_s11  ;;  %s5406_s16 = sadd.s32 4294967295, %s7337_s15   ;;  %s7337_s15 = sphi %s7424_s15, %s27_s15   ;;  %s7333_s14 = sphi %s7422_s14, %s11273_s14   ;;  %s7329_s13 = sphi %s7420_s13, %s11272_s13   ;;  %s7325_s12 = sphi %s7418_s12, %s11271_s12   ;;  %s7321_s11 = sphi %s7416_s11, %s11270_s11   ;;  %s7317_s10 = sphi %s7414_s10, %s11269_s10   ;;  %s7313_s9 = sphi %s7412_s9, %s11268_s9   ;;  %s7309_s30 = sphi %s7410_s30, %s11267_s30   ;;  %s7305_s29 = sphi %s7408_s29, %s11266_s29   ;;  %s7301_s28 = sphi %s7406_s28, %s11265_s28   ;;  %s7297_s27 = sphi %s7404_s27, %s11264_s27  }
  0x15   : > { %10907 = sst [smem:[#allocation21_spill]] %s7325_s12  ;;  %p5408_p0 = scmp.ge.s32.totalorder %s7337_s15, 1 }
  0x16   : > { %p7461_p1 = scmp.eq.s32.totalorder %s5406_s16, 0  ;;  %p7465_p2 = scmp.eq.s32.totalorder %s5406_s16, 3 }
  0x17   : > { %p245_p3 = scmp.lt.s32.totalorder %s7337_s15, 5  ;;  %s7339_s20 = smov [#allocation6]  }
  0x18   : > { %s10908_s17 = scalar_select %p7461_p1, 1, 0 }
  0x19   : > { %s10909_s18 = scalar_select %p7465_p2, 1, 0 }
  0x1a   : > { %p7470_p4 = pnand %p5408_p0, %p245_p3  ;;  %s258_s21 = sshll.u32 %s7339_s20, 4  ;;  %s259_s21 = int_to_ptr.vmem [resolvable:$true] %s258_s21 }
  0x1b   : > { %s7340_s22 = smov [#allocation9]   ;;  %s7341_s25 = smov [#allocation8]  }
  0x1c   : > { %s10910_s19 = scalar_select %p7470_p4, 1, 0 }
  0x1d   : > { %p6179_p5 = pneg %p7470_p4  ;;  %s284_s23 = sshll.u32 %s7340_s22, 4  ;;  %s7476_s23 = int_to_ptr.vmem [resolvable:$true] %s284_s23 }
  0x1e   : > { %10911 = sst [smem:[#allocation22_spill]] %s10910_s19  ;;  %s7484_s26 = sshll.u32 %s7341_s25, 4  ;;  %s269_s26 = int_to_ptr.vmem [resolvable:$true] %s7484_s26 }
  0x1f   : > { %p7480_p6 = pnand %p6179_p5, %p7461_p1  ;;  %s10913_s1 = sld [smem:[#allocation107_spill]] }
  0x21   : > { %p7494_p8 = pneg %p7480_p6 }
  0x25   : > { %s7033_s20 = scalar_lea.hbm %s10913_s1, 128 }
  0x26   : > { %p7034_p7 = scmp.ne.s32.totalorder %s10913_s1, %s7033_s20  ;;  %p7040_p11 = scmp.lt.u32.totalorder %s7033_s20, %s10913_s1 }
  0x28   : > { %p7036_p9 = pnand %p7494_p8, %p7034_p7 }
  0x2a   : > { %p7037_p10 = pneg %p7036_p9 }
  0x2c   : > { %p7042_p12 = pnand %p7040_p11, %p7037_p10 }
  0x2e   : > { %7045 = shalt.err (!%p7042_p12)
}
  0x2f   : > { %s7046_s8 = scalar_lea.vmem %s259_s21, 128  ;;  %p7054_p5 = scmp.lt.s32.totalorder %s259_s21, %s259_s21 }
  0x30   : > { %p7047_p13 = scmp.ne.s32.totalorder %s259_s21, %s7046_s8  ;;  %p7055_p4 = scmp.lt.s32.totalorder %s7046_s8, %s7046_s8 }
  0x32   : > { %p7049_p0 = pnand %p7047_p13, %p7494_p8  ;;  %p7056_p2 = por %p7055_p4, %p7054_p5 }
  0x34   : > { %p7050_p3 = pneg %p7049_p0 }
  0x36   : > { %p7057_p1 = pnand %p7056_p2, %p7050_p3 }
  0x38   : > { %7060 = shalt.err (!%p7057_p1)
}
  0x39   : > { %6182 = dma.hbm_to_vmem [thread:$0]  (!%p7480_p6), %s10913_s1, 128, %s259_s21, [#allocation7]  }
  0x3a   : > { %s10915_s4 = sld [smem:[#allocation110_spill]] }
  0x40   : > { %s7061_s20 = scalar_lea.hbm %s10915_s4, 1024 }
  0x41   : > { %p7062_p7 = scmp.ne.s32.totalorder %s10915_s4, %s7061_s20  ;;  %p7068_p1 = scmp.lt.u32.totalorder %s7061_s20, %s10915_s4 }
  0x43   : > { %p7064_p9 = pnand %p7062_p7, %p7494_p8 }
  0x45   : > { %p7065_p4 = pneg %p7064_p9 }
  0x47   : > { %p7070_p2 = pnand %p7068_p1, %p7065_p4 }
  0x49   : > { %7073 = shalt.err (!%p7070_p2)
}
  0x4a   : > { %s7074_s21 = scalar_lea.vmem %s7476_s23, 1024  ;;  %p7082_p13 = scmp.lt.s32.totalorder %s7476_s23, %s7476_s23 }
  0x4b   : > { %p7075_p10 = scmp.ne.s32.totalorder %s7476_s23, %s7074_s21  ;;  %p7083_p0 = scmp.lt.s32.totalorder %s7074_s21, %s7074_s21 }
  0x4d   : > { %p7077_p11 = pnand %p7075_p10, %p7494_p8  ;;  %p7084_p3 = por %p7083_p0, %p7082_p13 }
  0x4f   : > { %p7078_p12 = pneg %p7077_p11 }
  0x51   : > { %p7085_p5 = pnand %p7084_p3, %p7078_p12 }
  0x53   : > { %7088 = shalt.err (!%p7085_p5)
}
  0x54   : > { %s10805_s11 = smov 64   ;;  %s10806_s19 = smov 4  }
  0x55   : > { %6188 = dma.hbm_to_vmem [thread:$0]  (!%p7480_p6), %s10915_s4, 1024, %s7476_s23, [#allocation10], %s10805_s11, %s10805_s11, %s10806_s19  }
  0x56   : > { %s10916_s2 = sld [smem:[#allocation108_spill]] }
  0x5c   : > { %s7089_s20 = scalar_lea.hbm %s10916_s2, 3072 }
  0x5d   : > { %p7090_p7 = scmp.ne.s32.totalorder %s10916_s2, %s7089_s20  ;;  %p7096_p1 = scmp.lt.u32.totalorder %s7089_s20, %s10916_s2 }
  0x5f   : > { %p7092_p9 = pnand %p7090_p7, %p7494_p8 }
  0x61   : > { %p7093_p4 = pneg %p7092_p9 }
  0x63   : > { %p7098_p2 = pnand %p7096_p1, %p7093_p4 }
  0x65   : > { %7101 = shalt.err (!%p7098_p2)
}
  0x66   : > { %s7102_s6 = scalar_lea.vmem %s269_s26, 3072  ;;  %p7110_p13 = scmp.lt.s32.totalorder %s269_s26, %s269_s26 }
  0x67   : > { %p7103_p10 = scmp.ne.s32.totalorder %s269_s26, %s7102_s6  ;;  %p7111_p0 = scmp.lt.s32.totalorder %s7102_s6, %s7102_s6 }
  0x69   : > { %p7105_p11 = pnand %p7103_p10, %p7494_p8  ;;  %p7112_p3 = por %p7111_p0, %p7110_p13 }
  0x6b   : > { %p7106_p12 = pneg %p7105_p11 }
  0x6d   : > { %p7113_p5 = pnand %p7112_p3, %p7106_p12 }
  0x6f   : > { %7116 = shalt.err (!%p7113_p5)
}
  0x70   : > { %s7344_s23 = smov 192   ;;  %s7345_s12 = smov 12  }
  0x71   : > { %6185 = dma.hbm_to_vmem [thread:$0]  (!%p7480_p6), %s10916_s2, 3072, %s269_s26, [#allocation7], %s7344_s23, %s7344_s23, %s7345_s12  }
  0x72   : > { %s7346_s16 = smov [#allocation11]   ;;  %s10917_s5 = sld [smem:[#allocation111_spill]] }
  0x73   : > { %s297_s20 = sshll.u32 %s7346_s16, 4  ;;  %s298_s20 = int_to_ptr.vmem [resolvable:$true] %s297_s20 }
  0x78   : > { %s7117_s21 = scalar_lea.hbm %s10917_s5, 2048 }
  0x79   : > { %p7118_p7 = scmp.ne.s32.totalorder %s10917_s5, %s7117_s21  ;;  %p7124_p1 = scmp.lt.u32.totalorder %s7117_s21, %s10917_s5 }
  0x7b   : > { %p7120_p9 = pnand %p7118_p7, %p7494_p8 }
  0x7d   : > { %p7121_p4 = pneg %p7120_p9 }
  0x7f   : > { %p7126_p2 = pnand %p7124_p1, %p7121_p4 }
  0x81   : > { %7129 = shalt.err (!%p7126_p2)
}
  0x82   : > { %s7130_s26 = scalar_lea.vmem %s298_s20, 2048  ;;  %p7138_p13 = scmp.lt.s32.totalorder %s298_s20, %s298_s20 }
  0x83   : > { %p7131_p10 = scmp.ne.s32.totalorder %s298_s20, %s7130_s26  ;;  %p7139_p0 = scmp.lt.s32.totalorder %s7130_s26, %s7130_s26 }
  0x85   : > { %p7133_p11 = pnand %p7131_p10, %p7494_p8  ;;  %p7140_p3 = por %p7139_p0, %p7138_p13 }
  0x87   : > { %p7134_p12 = pneg %p7133_p11 }
  0x89   : > { %p7141_p5 = pnand %p7140_p3, %p7134_p12 }
  0x8b   : > { %7144 = shalt.err (!%p7141_p5)
}
  0x8c   : > { %s10807_s11 = smov 128   ;;  %s10808_s23 = smov 8  }
  0x8d   : > { %6191 = dma.hbm_to_vmem [thread:$0]  (!%p7480_p6), %s10917_s5, 2048, %s298_s20, [#allocation10], %s10807_s11, %s10807_s11, %s10808_s23  }
  0x8e   : > { %s7349_s12 = smov [#allocation12]   ;;  %s7145_s25 = scalar_lea.hbm %s10797_s7, 2048 }
  0x8f   : > { %s313_s1 = sshll.u32 %s7349_s12, 4  ;;  %p7146_p7 = scmp.ne.s32.totalorder %s10797_s7, %s7145_s25  ;;  %s314_s1 = int_to_ptr.vmem [resolvable:$true] %s313_s1 }
  0x90   : > { %p7152_p1 = scmp.lt.u32.totalorder %s7145_s25, %s10797_s7 }
  0x91   : > { %p7148_p9 = pnand %p7146_p7, %p7494_p8 }
  0x93   : > { %p7149_p4 = pneg %p7148_p9 }
  0x95   : > { %p7154_p2 = pnand %p7152_p1, %p7149_p4 }
  0x97   : > { %7157 = shalt.err (!%p7154_p2)
}
  0x98   : > { %s7158_s20 = scalar_lea.vmem %s314_s1, 2048  ;;  %p7166_p13 = scmp.lt.s32.totalorder %s314_s1, %s314_s1 }
  0x99   : > { %p7159_p10 = scmp.ne.s32.totalorder %s314_s1, %s7158_s20  ;;  %p7167_p0 = scmp.lt.s32.totalorder %s7158_s20, %s7158_s20 }
  0x9b   : > { %p7161_p11 = pnand %p7159_p10, %p7494_p8  ;;  %p7168_p3 = por %p7167_p0, %p7166_p13 }
  0x9d   : > { %p7162_p12 = pneg %p7161_p11 }
  0x9f   : > { %p7169_p5 = pnand %p7168_p3, %p7162_p12 }
  0xa1   : > { %7172 = shalt.err (!%p7169_p5)
}
  0xa2   : > { %s10918_s4 = smov 4   ;;  %s10919_s19 = smov 64  }
  0xa3   : > { %6194 = dma.hbm_to_vmem [thread:$0]  (!%p7480_p6), %s10797_s7, 2048, %s314_s1, [#allocation13], %s10919_s19, %s10919_s19, %s10918_s4  }
  0xa4   : > { %s5407_s24 = sadd.s32 4294967294, %s7337_s15   ;;  %s36_s22 = sadd.s32 1, %s7329_s13 }
  0xa5   : > { %p37_p8 = scmp.ge.s32.totalorder %s36_s22, 2  ;;  %s39_s16 = sadd.s32 1, %s7333_s14 }
  0xa6   : > { %s46_s25 = sadd.s32 1, %s7317_s10  ;;  %p53_p7 = scmp.ne.s32.totalorder %s7317_s10, %s7313_s9 }
  0xa7   : > { %s11275_s22 = smov (%p37_p8, %s36_s22), 0  ;;  %s11277_s16 = smov (!%p37_p8, %s39_s16), %s7333_s14 }
  0xa8   : > { %p54_p9 = scmp.eq.s32.totalorder %s7337_s15, 0  ;;  %p59_p6 = scmp.ne.s32.totalorder %s7313_s9, %s7309_s30 }
  0xa9   : > { %p41_p4 = scmp.ge.s32.totalorder %s11277_s16, 2  ;;  %s217_s1 = ssub.s32 %s7329_s13, %s11275_s22 }
  0xaa   : > { %p7611_p1 = por %p54_p9, %p53_p7  ;;  %p10921_p2 = scmp.ne.s32.totalorder %s10908_s17, 0 }
  0xab   : > { %s11279_s16 = smov (%p41_p4, %s11277_s16), 0  ;;  %s221_s6 = sadd.s32 1, %s7305_s29 }
  0xac   : > { %p7617_p10 = por %p10921_p2, %p59_p6  ;;  %p231_p11 = scmp.ne.s32.totalorder %s7305_s29, %s7301_s28 }
  0xad   : > { %s43_s30 = ssub.s32 %s7333_s14, %s11279_s16  ;;  %p237_p12 = scmp.ne.s32.totalorder %s7301_s28, %s7297_s27 }
  0xae   : > { %p44_p13 = scmp.eq.s32.totalorder %s43_s30, 0  ;;  %s218_s26 = sor.u32 %s217_s1, %s43_s30 }
  0xaf   : > { %p219_p0 = scmp.eq.s32.totalorder %s218_s26, 0  ;;  %p10923_p3 = scmp.ne.s32.totalorder %s10909_s18, 0 }
  0xb0   : > { %s7637_s4 = scalar_select %p44_p13, %s7317_s10, %s46_s25  }
  0xb1   : > { %p7632_p5 = por %p10923_p3, %p231_p11  ;;  %p238_p8 = scmp.eq.s32.totalorder %s5407_s24, 3 }
  0xb2   : > { %s7640_s19 = scalar_select %p219_p0, %s7305_s29, %s221_s6  }
  0xb3   : > { %s10924_s20 = scalar_select %p7632_p5, 1, 0 }
  0xb4   : > { %p6208_p7 = scmp.lt.s32.totalorder %s7337_s15, 4  ;;  %s327_s12 = sand.u32 1, %s7317_s10  }
  0xb5   : > { %s5537_s3 = sshll.u32 %s7333_s14, 12  ;;  %p7645_p9 = por %p238_p8, %p237_p12 }
  0xb6   : > { %s5415_s23 = sshll.u32 %s327_s12, 8  ;;  %s7652_s18 = scalar_lea.hbm %s10790_s0, %s5537_s3 }
  0xb7   : > { %s10925_s11 = scalar_select %p7645_p9, 1, 0 }
  0xb8   : > { %p7656_p6 = pnand %p6208_p7, %p7611_p1  ;;  %s331_s25 = scalar_lea.vmem [#allocation3], %s5415_s23 }
  0xb9   : > { %s338_s6 = sshll.u32 %s331_s25, 4  ;;  %s7662_s26 = scalar_lea.sflag [#allocation4], %s327_s12  ;;  %s7660_s6 = int_to_ptr.vmem [resolvable:$true] %s338_s6 }
  0xba   : > { %s7173_s1 = scalar_lea.hbm %s7652_s18, 4096  ;;  %p7175_p2 = pneg %p7656_p6 }
  0xbb   : > { %p7174_p4 = scmp.ne.s32.totalorder %s7652_s18, %s7173_s1  ;;  %s7178_s30 = scalar_lea.hbm %s10790_s0, 8192 }
  0xbc   : > { %p7179_p1 = scmp.lt.u32.totalorder %s7652_s18, %s10790_s0  ;;  %p7180_p13 = scmp.lt.u32.totalorder %s7178_s30, %s7173_s1 }
  0xbd   : > { %p7176_p11 = pnand %p7175_p2, %p7174_p4  ;;  %p7182_p3 = scmp.lt.u32.totalorder %s7173_s1, %s7652_s18 }
  0xbe   : > { %p7181_p0 = por %p7180_p13, %p7179_p1 }
  0xbf   : > { %p7177_p12 = pneg %p7176_p11 }
  0xc0   : > { %p7183_p8 = por %p7182_p3, %p7181_p0 }
  0xc2   : > { %p7184_p7 = pnand %p7183_p8, %p7177_p12 }
  0xc4   : > { %7187 = shalt.err (!%p7184_p7)
}
  0xc5   : > { %s7188_s23 = scalar_lea.vmem %s7660_s6, 4096  ;;  %s7350_s12 = smov [#allocation3]  }
  0xc6   : > { %p7189_p4 = scmp.ne.s32.totalorder %s7660_s6, %s7188_s23  ;;  %s7193_s25 = sshll.u32 %s7350_s12, 4  ;;  %s7194_s25 = int_to_ptr.vmem [resolvable:$false] %s7193_s25 }
  0xc7   : > { %s7195_s2 = scalar_lea.vmem %s7194_s25, 8192  ;;  %p7196_p5 = scmp.lt.s32.totalorder %s7660_s6, %s7194_s25 }
  0xc8   : > { %p7191_p11 = pnand %p7189_p4, %p7175_p2  ;;  %p7197_p1 = scmp.lt.s32.totalorder %s7195_s2, %s7188_s23 }
  0xca   : > { %p7192_p9 = pneg %p7191_p11  ;;  %p7198_p13 = por %p7197_p1, %p7196_p5 }
  0xcc   : > { %p7199_p0 = pnand %p7198_p13, %p7192_p9 }
  0xce   : > { %7202 = shalt.err (!%p7199_p0)
}
  0xcf   : > { %s10927_s5 = smov 8   ;;  %s10928_s1 = smov 128  }
  0xd0   : > { %6198 = dma.hbm_to_vmem [thread:$0]  (!%p7656_p6), %s7652_s18, 4096, %s7660_s6, %s7662_s26, %s10928_s1, %s10928_s1, %s10927_s5  }
  0xd1   : > { %s10929_s8 = sld [smem:[#allocation22_spill]] }
  0xd7   : > { %p10930_p2 = scmp.ne.s32.totalorder %s10929_s8, 0 }
  0xd9   : > { %350 = sbr.rel (%p10930_p2) target bundleno = 3849 (0xf09), region = 52 }
  0xe0   : > { %s352_s3 = sand.u32 1, %s7313_s9  }
  0xe1   : > { %s5419_s30 = sshll.u32 %s352_s3, 8  ;;  %s353_s23 = scalar_lea.sflag [#allocation4], %s352_s3 }
  0xe2   : > { %s7696_s12 = scalar_lea.vmem [#allocation3], %s5419_s30 }
  0xe3   : > { %7276 = dma.done.wait (%p7617_p10), %s353_s23, 4096  }
  0xe4   : > { %7278 = vsyncadd (%p7617_p10), %s353_s23, 4294963200  ;;  %p10931_p5 = scmp.ne.s32.totalorder %s10908_s17, 0 }
  0xe6   : > { %7280 = dma.done.wait (%p10931_p5), [#allocation7], 3200  }
  0xe7   : > { %7282 = vsyncadd (%p10931_p5), [#allocation7], 4294964096 }
  0xe8   : > { %7284 = dma.done.wait (%p10931_p5), [#allocation10], 3072  }
  0xe9   : > { %7286 = vsyncadd (%p10931_p5), [#allocation10], 4294964224 }
  0xea   : > { %7288 = dma.done.wait (%p10931_p5), [#allocation13], 2048  }
  0xeb   : > { %7290 = vsyncadd (%p10931_p5), [#allocation13], 4294965248  ;;  %s406_s21 = sand.u32 1, %s7301_s28   ;;  %s10932_s6 = sld [smem:[#allocation20_spill]] }
  0xec   : > { %s5425_s18 = sshll.u32 %s406_s21, 7 }
  0xed   : > { %s7717_s24 = scalar_lea.vmem [#allocation14], %s5425_s18 }
  0xf1   : > { %p5426_p10 = scmp.ne.s32.totalorder %s10932_s6, 0 }
  0xf2   : > { %v7721_v0 = vld [vmem:[%s7696_s12] sm:$0xff] (!%p5426_p10)  ;;  %v7729_v2 = vld [vmem:[%s7696_s12 + $0x8] sm:$0xff] (!%p5426_p10)  ;;  %v7737_v4 = vld [vmem:[%s7696_s12 + $0x10] sm:$0xff] (!%p5426_p10)  ;;  %s10933_s25 = sld [smem:[#allocation109_spill]] (!%p5426_p10) }
  0xf3   : > { %414 = sbr.rel (%p5426_p10) target bundleno = 872 (0x368), region = 80  ;;  %v7724_v1 = vld [vmem:[%s7696_s12 + $0xc0] sm:$0xff] (!%p5426_p10)  ;;  %449 = vadd.xlane.f32.xlu0 (!%p5426_p10), %v7721_v0  ;;  %v7732_v3 = vld [vmem:[%s7696_s12 + $0xc8] sm:$0xff] (!%p5426_p10)  ;;  %v7740_v5 = vld [vmem:[%s7696_s12 + $0x18] sm:$0xff] (!%p5426_p10) }
  0xf4   : > { %497 = vadd.xlane.f32.xlu1 (!%p5426_p10), %v7724_v1  ;;  %v7745_v6 = vld [vmem:[%s7696_s12 + $0xd0] sm:$0xff] (!%p5426_p10)  ;;  %v7748_v7 = vld [vmem:[%s7696_s12 + $0xd8] sm:$0xff] (!%p5426_p10)  ;;  %v7751_v8 = vld [vmem:[%s7696_s12 + $0x20] sm:$0xff] (!%p5426_p10) }
  0xf5   : > { %v7754_v9 = vld [vmem:[%s7696_s12 + $0x28] sm:$0xff] (!%p5426_p10)  ;;  %v7759_v10 = vld [vmem:[%s7696_s12 + $0xe0] sm:$0xff] (!%p5426_p10)  ;;  %v7769_v12 = vld [vmem:[%s7696_s12 + $0x30] sm:$0xff] (!%p5426_p10) }
  0xf6   : > { %v7762_v11 = vld [vmem:[%s7696_s12 + $0xe8] sm:$0xff] (!%p5426_p10)  ;;  %v7772_v13 = vld [vmem:[%s7696_s12 + $0x38] sm:$0xff] (!%p5426_p10)  ;;  %v7777_v14 = vld [vmem:[%s7696_s12 + $0xf0] sm:$0xff] (!%p5426_p10) }
  0xf7   : > { %451 = vadd.xlane.f32.xlu0 (!%p5426_p10), %v7729_v2  ;;  %v7780_v15 = vld [vmem:[%s7696_s12 + $0xf8] sm:$0xff] (!%p5426_p10)  ;;  %v7785_v16 = vld [vmem:[%s7696_s12 + $0x40] sm:$0xff] (!%p5426_p10)  ;;  %v7788_v17 = vld [vmem:[%s7696_s12 + $0x48] sm:$0xff] (!%p5426_p10) }
  0xf8   : > { %499 = vadd.xlane.f32.xlu1 (!%p5426_p10), %v7732_v3  ;;  %v7793_v18 = vld [vmem:[%s7696_s12 + $0x50] sm:$0xff] (!%p5426_p10)  ;;  %v7796_v19 = vld [vmem:[%s7696_s12 + $0x58] sm:$0xff] (!%p5426_p10)  ;;  %v7801_v20 = vld [vmem:[%s7696_s12 + $0x60] sm:$0xff] (!%p5426_p10) }
  0xf9   : > { %v7804_v21 = vld [vmem:[%s7696_s12 + $0x68] sm:$0xff] (!%p5426_p10)  ;;  %v7809_v22 = vld [vmem:[%s7696_s12 + $0x70] sm:$0xff] (!%p5426_p10)  ;;  %v7812_v23 = vld [vmem:[%s7696_s12 + $0x78] sm:$0xff] (!%p5426_p10) }
  0xfa   : > { %v7817_v24 = vld [vmem:[%s7696_s12 + $0x80] sm:$0xff]  ;;  %v7820_v25 = vld [vmem:[%s7696_s12 + $0x88] sm:$0xff]  ;;  %v7825_v26 = vld [vmem:[%s7696_s12 + $0x90] sm:$0xff] }
  0xfb   : > { %453 = vadd.xlane.f32.xlu0 %v7737_v4  ;;  %v7828_v27 = vld [vmem:[%s7696_s12 + $0x98] sm:$0xff]  ;;  %v7833_v28 = vld [vmem:[%s7696_s12 + $0xa0] sm:$0xff]  ;;  %v7836_v29 = vld [vmem:[%s7696_s12 + $0xa8] sm:$0xff] }
  0xfc   : > { %455 = vadd.xlane.f32.xlu1 %v7740_v5  ;;  %v7841_v30 = vld [vmem:[%s7696_s12 + $0xb0] sm:$0xff]  ;;  %v7844_v31 = vld [vmem:[%s7696_s12 + $0xb8] sm:$0xff] }
  0xfd   : > { %v6321_v32 = vld [vmem:[#allocation8 + $0x4] ss:$12 sps:$4 sm:$0xff]   ;;  %v6323_v33 = vld [vmem:[#allocation8] ss:$12 sps:$4 sm:$0xff]   ;;  %v6324_v34 = vld [vmem:[#allocation8 + $0x1c] ss:$12 sps:$4 sm:$0xff]  }
  0xfe   : > { %1067 = vmatprep.subr.bf16.mxu0 %v6321_v32  ;;  %6107 = vmatprep.subr.bf16.mxu1 %v6321_v32 }
  0xff   : > { %501 = vadd.xlane.f32.xlu0 %v7745_v6  ;;  %1068 = vmatpush1.bf16.msra.mxu0 %v6323_v33 }
 0x100   : > { %503 = vadd.xlane.f32.xlu1 %v7748_v7  ;;  %6115 = vmatpush1.bf16.msra.mxu1 %v6323_v33  ;;  %v6326_v33 = vld [vmem:[#allocation8 + $0x18] ss:$12 sps:$4 sm:$0xff]  }
 0x101   : > { %1069 = vmatprep.subr.bf16.mxu0 %v6324_v34  ;;  %6108 = vmatprep.subr.bf16.mxu1 %v6324_v34 }
 0x103   : > { %457 = vadd.xlane.f32.xlu0 %v7751_v8  ;;  %1070 = vmatpush1.bf16.msra.mxu0 %v6326_v33 }
 0x104   : > { %459 = vadd.xlane.f32.xlu1 %v7754_v9  ;;  %6116 = vmatpush1.bf16.msra.mxu1 %v6326_v33 }
 0x107   : > { %505 = vadd.xlane.f32.xlu0 %v7759_v10 }
 0x108   : > { %507 = vadd.xlane.f32.xlu1 %v7762_v11 }
 0x10b   : > { %461 = vadd.xlane.f32.xlu0 %v7769_v12 }
 0x10c   : > { %463 = vadd.xlane.f32.xlu1 %v7772_v13 }
 0x10f   : > { %509 = vadd.xlane.f32.xlu0 %v7777_v14 }
 0x110   : > { %511 = vadd.xlane.f32.xlu1 %v7780_v15 }
 0x113   : > { %465 = vadd.xlane.f32.xlu0 %v7785_v16 }
 0x114   : > { %467 = vadd.xlane.f32.xlu1 %v7788_v17 }
 0x117   : > { %469 = vadd.xlane.f32.xlu0 %v7793_v18 }
 0x118   : > { %471 = vadd.xlane.f32.xlu1 %v7796_v19 }
 0x11b   : > { %473 = vadd.xlane.f32.xlu0 %v7801_v20 }
 0x11c   : > { %475 = vadd.xlane.f32.xlu1 %v7804_v21 }
 0x11f   : > { %477 = vadd.xlane.f32.xlu0 %v7809_v22 }
 0x120   : > { %479 = vadd.xlane.f32.xlu1 %v7812_v23 }
 0x123   : > { %481 = vadd.xlane.f32.xlu0 %v7817_v24 }
 0x124   : > { %483 = vadd.xlane.f32.xlu1 %v7820_v25 }
 0x127   : > { %485 = vadd.xlane.f32.xlu0 %v7825_v26 }
 0x128   : > { %487 = vadd.xlane.f32.xlu1 %v7828_v27 }
 0x12b   : > { %489 = vadd.xlane.f32.xlu0 %v7833_v28 }
 0x12c   : > { %491 = vadd.xlane.f32.xlu1 %v7836_v29 }
 0x12f   : > { %493 = vadd.xlane.f32.xlu0 %v7841_v30 }
 0x130   : > { %495 = vadd.xlane.f32.xlu1 %v7844_v31 }
 0x180   : > { %v450_v35 = vpop.xlane.xlu0 %449 }
 0x181   : > { %v498_v36 = vpop.xlane.xlu1 %497  ;;  %v514_v37 = vmul.f32 0.0078125, %v450_v35 }
 0x182   : > { %v538_v38 = vmul.f32 0.0078125, %v498_v36 }
 0x183   : > { %v7849_v39 = vsub.f32 %v7721_v0, %v514_v37 }
 0x184   : > { %v7852_v40 = vsub.f32 %v7724_v1, %v538_v38  ;;  %v452_v41 = vpop.xlane.xlu0 %451 }
 0x185   : > { %v500_v42 = vpop.xlane.xlu1 %499  ;;  %v515_v43 = vmul.f32 0.0078125, %v452_v41  ;;  %v578_v44 = vmul.f32 %v7849_v39, %v7849_v39 }
 0x186   : > { %v539_v45 = vmul.f32 0.0078125, %v500_v42  ;;  %v602_v48 = vmul.f32 %v7852_v40, %v7852_v40 }
 0x187   : > { %v7857_v46 = vsub.f32 %v7729_v2, %v515_v43  ;;  %610 = vadd.xlane.f32.xlu0 %v578_v44 }
 0x188   : > { %v7860_v47 = vsub.f32 %v7732_v3, %v539_v45  ;;  %v454_v49 = vpop.xlane.xlu0 %453  ;;  %v6329_v45 = vld [vmem:[#allocation8 + $0x30] ss:$12 sps:$4 sm:$0xff]  }
 0x189   : > { %v456_v50 = vpop.xlane.xlu1 %455  ;;  %v516_v51 = vmul.f32 0.0078125, %v454_v49  ;;  %v579_v52 = vmul.f32 %v7857_v46, %v7857_v46 }
 0x18a   : > { %v517_v53 = vmul.f32 0.0078125, %v456_v50  ;;  %v603_v56 = vmul.f32 %v7860_v47, %v7860_v47 }
 0x18b   : > { %v7867_v54 = vsub.f32 %v7737_v4, %v516_v51  ;;  %658 = vadd.xlane.f32.xlu0 %v602_v48  ;;  %612 = vadd.xlane.f32.xlu1 %v579_v52  ;;  %v6330_v52 = vld [vmem:[#allocation8 + $0x4c] ss:$12 sps:$4 sm:$0xff]  }
 0x18c   : > { %v7870_v55 = vsub.f32 %v7740_v5, %v517_v53  ;;  %v502_v57 = vpop.xlane.xlu0 %501 }
 0x18d   : > { %v504_v58 = vpop.xlane.xlu1 %503  ;;  %v540_v59 = vmul.f32 0.0078125, %v502_v57  ;;  %v580_v60 = vmul.f32 %v7867_v54, %v7867_v54  ;;  %v6332_v57 = vld [vmem:[#allocation8 + $0x48] ss:$12 sps:$4 sm:$0xff]  }
 0x18e   : > { %v541_v61 = vmul.f32 0.0078125, %v504_v58  ;;  %v581_v0 = vmul.f32 %v7870_v55, %v7870_v55 }
 0x18f   : > { %v7877_v62 = vsub.f32 %v7745_v6, %v540_v59  ;;  %660 = vadd.xlane.f32.xlu1 %v603_v56  ;;  %614 = vadd.xlane.f32.xlu0 %v580_v60 }
 0x190   : > { %v7880_v63 = vsub.f32 %v7748_v7, %v541_v61  ;;  %v458_v1 = vpop.xlane.xlu0 %457 }
 0x191   : > { %v460_v2 = vpop.xlane.xlu1 %459  ;;  %v518_v3 = vmul.f32 0.0078125, %v458_v1  ;;  %v604_v4 = vmul.f32 %v7877_v62, %v7877_v62 }
 0x192   : > { %v519_v5 = vmul.f32 0.0078125, %v460_v2  ;;  %v605_v7 = vmul.f32 %v7880_v63, %v7880_v63 }
 0x193   : > { %v7887_v32 = vsub.f32 %v7751_v8, %v518_v3  ;;  %616 = vadd.xlane.f32.xlu1 %v581_v0  ;;  %662 = vadd.xlane.f32.xlu0 %v604_v4  ;;  %v6327_v8 = vld [vmem:[#allocation8 + $0x34] ss:$12 sps:$4 sm:$0xff]   ;;  %v6333_v0 = vld [vmem:[#allocation8 + $0x64] ss:$12 sps:$4 sm:$0xff]  }
 0x194   : > { %v7890_v6 = vsub.f32 %v7754_v9, %v519_v5  ;;  %v506_v34 = vpop.xlane.xlu0 %505  ;;  %1071 = vmatprep.subr.bf16.mxu0 %v6327_v8  ;;  %6109 = vmatprep.subr.bf16.mxu1 %v6327_v8  ;;  %v6335_v3 = vld [vmem:[#allocation8 + $0x60] ss:$12 sps:$4 sm:$0xff]  }
 0x195   : > { %v508_v35 = vpop.xlane.xlu1 %507  ;;  %v542_v36 = vmul.f32 0.0078125, %v506_v34  ;;  %v582_v37 = vmul.f32 %v7887_v32, %v7887_v32  ;;  %1072 = vmatpush1.bf16.msra.mxu0 %v6329_v45  ;;  %6117 = vmatpush1.bf16.msra.mxu1 %v6329_v45  ;;  %v6336_v34 = vld [vmem:[#allocation8 + $0x7c] ss:$12 sps:$4 sm:$0xff]  }
 0x196   : > { %v543_v38 = vmul.f32 0.0078125, %v508_v35  ;;  %v583_v42 = vmul.f32 %v7890_v6, %v7890_v6  ;;  %1073 = vmatprep.subr.bf16.mxu0 %v6330_v52  ;;  %6110 = vmatprep.subr.bf16.mxu1 %v6330_v52 }
 0x197   : > { %v7897_v41 = vsub.f32 %v7759_v10, %v542_v36  ;;  %664 = vadd.xlane.f32.xlu1 %v605_v7  ;;  %618 = vadd.xlane.f32.xlu0 %v582_v37  ;;  %v6338_v37 = vld [vmem:[#allocation8 + $0x78] ss:$12 sps:$4 sm:$0xff]  }
 0x198   : > { %v7900_v9 = vsub.f32 %v7762_v11, %v543_v38  ;;  %v462_v43 = vpop.xlane.xlu0 %461 }
 0x199   : > { %v464_v44 = vpop.xlane.xlu1 %463  ;;  %v520_v48 = vmul.f32 0.0078125, %v462_v43  ;;  %v606_v49 = vmul.f32 %v7897_v41, %v7897_v41  ;;  %1074 = vmatpush1.bf16.msra.mxu0 %v6332_v57  ;;  %6118 = vmatpush1.bf16.msra.mxu1 %v6332_v57 }
 0x19a   : > { %v521_v50 = vmul.f32 0.0078125, %v464_v44  ;;  %v607_v51 = vmul.f32 %v7900_v9, %v7900_v9  ;;  %1075 = vmatprep.subr.bf16.mxu0 %v6333_v0  ;;  %6111 = vmatprep.subr.bf16.mxu1 %v6333_v0  ;;  %v6339_v44 = vld [vmem:[#allocation8 + $0x94] ss:$12 sps:$4 sm:$0xff]  }
 0x19b   : > { %v7907_v10 = vsub.f32 %v7769_v12, %v520_v48  ;;  %620 = vadd.xlane.f32.xlu1 %v583_v42  ;;  %666 = vadd.xlane.f32.xlu0 %v606_v49  ;;  %v6341_v49 = vld [vmem:[#allocation8 + $0x90] ss:$12 sps:$4 sm:$0xff]  }
 0x19c   : > { %v7910_v11 = vsub.f32 %v7772_v13, %v521_v50  ;;  %v510_v53 = vpop.xlane.xlu0 %509 }
 0x19d   : > { %v512_v56 = vpop.xlane.xlu1 %511  ;;  %v544_v58 = vmul.f32 0.0078125, %v510_v53  ;;  %v584_v59 = vmul.f32 %v7907_v10, %v7907_v10  ;;  %1076 = vmatpush1.bf16.msra.mxu0 %v6335_v3  ;;  %6119 = vmatpush1.bf16.msra.mxu1 %v6335_v3 }
 0x19e   : > { %v545_v60 = vmul.f32 0.0078125, %v512_v56  ;;  %v585_v61 = vmul.f32 %v7910_v11, %v7910_v11  ;;  %1077 = vmatprep.subr.bf16.mxu0 %v6336_v34  ;;  %6112 = vmatprep.subr.bf16.mxu1 %v6336_v34  ;;  %v6342_v56 = vld [vmem:[#allocation8 + $0xac] ss:$12 sps:$4 sm:$0xff]  }
 0x19f   : > { %v7917_v12 = vsub.f32 %v7777_v14, %v544_v58  ;;  %668 = vadd.xlane.f32.xlu1 %v607_v51  ;;  %622 = vadd.xlane.f32.xlu0 %v584_v59  ;;  %v6344_v59 = vld [vmem:[#allocation8 + $0xa8] ss:$12 sps:$4 sm:$0xff]  }
 0x1a0   : > { %v7920_v13 = vsub.f32 %v7780_v15, %v545_v60  ;;  %v466_v1 = vpop.xlane.xlu0 %465 }
 0x1a1   : > { %v468_v2 = vpop.xlane.xlu1 %467  ;;  %v522_v4 = vmul.f32 0.0078125, %v466_v1  ;;  %v608_v5 = vmul.f32 %v7917_v12, %v7917_v12  ;;  %1078 = vmatpush1.bf16.msra.mxu0 %v6338_v37  ;;  %6120 = vmatpush1.bf16.msra.mxu1 %v6338_v37 }
 0x1a2   : > { %v523_v7 = vmul.f32 0.0078125, %v468_v2  ;;  %v609_v33 = vmul.f32 %v7920_v13, %v7920_v13  ;;  %1079 = vmatprep.subr.bf16.mxu0 %v6339_v44  ;;  %6113 = vmatprep.subr.bf16.mxu1 %v6339_v44 }
 0x1a3   : > { %v7927_v14 = vsub.f32 %v7785_v16, %v522_v4  ;;  %624 = vadd.xlane.f32.xlu1 %v585_v61  ;;  %670 = vadd.xlane.f32.xlu0 %v608_v5  ;;  %v7351_v4 = vmov 0  }
 0x1a4   : > { %v7930_v15 = vsub.f32 %v7788_v17, %v523_v7  ;;  %v470_v35 = vpop.xlane.xlu0 %469  ;;  %1099 = vmatprep.mubr.bf16.mxu0 %v7351_v4  ;;  %1219 = vmatprep.mubr.bf16.mxu1 %v7351_v4 }
 0x1a5   : > { %v472_v36 = vpop.xlane.xlu1 %471  ;;  %v524_v38 = vmul.f32 0.0078125, %v470_v35  ;;  %v586_v8 = vmul.f32 %v7927_v14, %v7927_v14  ;;  %1080 = vmatpush1.bf16.msra.mxu0 %v6341_v49  ;;  %6121 = vmatpush1.bf16.msra.mxu1 %v6341_v49  ;;  %v7976_v35 = vld [vmem:[#allocation8 + $0x8] ss:$12 sps:$4 sm:$0xff]  }
 0x1a6   : > { %v525_v42 = vmul.f32 0.0078125, %v472_v36  ;;  %v587_v43 = vmul.f32 %v7930_v15, %v7930_v15  ;;  %1081 = vmatprep.subr.bf16.mxu0 %v6342_v56  ;;  %6114 = vmatprep.subr.bf16.mxu1 %v6342_v56 }
 0x1a7   : > { %v7937_v16 = vsub.f32 %v7793_v18, %v524_v38  ;;  %672 = vadd.xlane.f32.xlu1 %v609_v33  ;;  %626 = vadd.xlane.f32.xlu0 %v586_v8 }
 0x1a8   : > { %v7940_v17 = vsub.f32 %v7796_v19, %v525_v42  ;;  %v474_v45 = vpop.xlane.xlu0 %473 }
 0x1a9   : > { %v476_v48 = vpop.xlane.xlu1 %475  ;;  %v526_v50 = vmul.f32 0.0078125, %v474_v45  ;;  %v588_v51 = vmul.f32 %v7937_v16, %v7937_v16  ;;  %1082 = vmatpush1.bf16.msra.mxu0 %v6344_v59  ;;  %6122 = vmatpush1.bf16.msra.mxu1 %v6344_v59 }
 0x1aa   : > { %v527_v52 = vmul.f32 0.0078125, %v476_v48  ;;  %v589_v53 = vmul.f32 %v7940_v17, %v7940_v17  ;;  %6027 = vmatprep.subr.bf16.mxu1 %v7976_v35 }
 0x1ab   : > { %v7947_v18 = vsub.f32 %v7801_v20, %v526_v50  ;;  %628 = vadd.xlane.f32.xlu1 %v587_v43  ;;  %630 = vadd.xlane.f32.xlu0 %v588_v51 }
 0x1ac   : > { %v7950_v19 = vsub.f32 %v7804_v21, %v527_v52  ;;  %v478_v57 = vpop.xlane.xlu0 %477 }
 0x1ad   : > { %v480_v58 = vpop.xlane.xlu1 %479  ;;  %v528_v60 = vmul.f32 0.0078125, %v478_v57  ;;  %v590_v61 = vmul.f32 %v7947_v18, %v7947_v18 }
 0x1ae   : > { %v529_v0 = vmul.f32 0.0078125, %v480_v58  ;;  %v591_v1 = vmul.f32 %v7950_v19, %v7950_v19 }
 0x1af   : > { %v7957_v20 = vsub.f32 %v7809_v22, %v528_v60  ;;  %632 = vadd.xlane.f32.xlu1 %v589_v53  ;;  %634 = vadd.xlane.f32.xlu0 %v590_v61 }
 0x1b0   : > { %v7960_v21 = vsub.f32 %v7812_v23, %v529_v0  ;;  %v482_v2 = vpop.xlane.xlu0 %481 }
 0x1b1   : > { %v484_v3 = vpop.xlane.xlu1 %483  ;;  %v530_v5 = vmul.f32 0.0078125, %v482_v2  ;;  %v592_v22 = vmul.f32 %v7957_v20, %v7957_v20 }
 0x1b2   : > { %v531_v7 = vmul.f32 0.0078125, %v484_v3  ;;  %v593_v34 = vmul.f32 %v7960_v21, %v7960_v21 }
 0x1b3   : > { %v7969_v33 = vsub.f32 %v7817_v24, %v530_v5  ;;  %636 = vadd.xlane.f32.xlu1 %v591_v1  ;;  %638 = vadd.xlane.f32.xlu0 %v592_v22 }
 0x1b4   : > { %v7972_v23 = vsub.f32 %v7820_v25, %v531_v7  ;;  %v486_v36 = vpop.xlane.xlu0 %485 }
 0x1b5   : > { %v488_v37 = vpop.xlane.xlu1 %487  ;;  %v532_v38 = vmul.f32 0.0078125, %v486_v36  ;;  %v594_v8 = vmul.f32 %v7969_v33, %v7969_v33 }
 0x1b6   : > { %v533_v42 = vmul.f32 0.0078125, %v488_v37  ;;  %v595_v43 = vmul.f32 %v7972_v23, %v7972_v23 }
 0x1b7   : > { %v7982_v24 = vsub.f32 %v7825_v26, %v532_v38  ;;  %640 = vadd.xlane.f32.xlu1 %v593_v34  ;;  %642 = vadd.xlane.f32.xlu0 %v594_v8 }
 0x1b8   : > { %v7985_v25 = vsub.f32 %v7828_v27, %v533_v42  ;;  %v490_v44 = vpop.xlane.xlu0 %489 }
 0x1b9   : > { %v492_v45 = vpop.xlane.xlu1 %491  ;;  %v534_v48 = vmul.f32 0.0078125, %v490_v44  ;;  %v596_v49 = vmul.f32 %v7982_v24, %v7982_v24 }
 0x1ba   : > { %v535_v50 = vmul.f32 0.0078125, %v492_v45  ;;  %v597_v27 = vmul.f32 %v7985_v25, %v7985_v25 }
 0x1bb   : > { %v7992_v51 = vsub.f32 %v7833_v28, %v534_v48  ;;  %644 = vadd.xlane.f32.xlu1 %v595_v43  ;;  %646 = vadd.xlane.f32.xlu0 %v596_v49 }
 0x1bc   : > { %v7995_v26 = vsub.f32 %v7836_v29, %v535_v50  ;;  %v494_v52 = vpop.xlane.xlu0 %493 }
 0x1bd   : > { %v496_v53 = vpop.xlane.xlu1 %495  ;;  %v536_v56 = vmul.f32 0.0078125, %v494_v52  ;;  %v598_v57 = vmul.f32 %v7992_v51, %v7992_v51 }
 0x1be   : > { %v537_v58 = vmul.f32 0.0078125, %v496_v53  ;;  %v599_v29 = vmul.f32 %v7995_v26, %v7995_v26 }
 0x1bf   : > { %v8002_v59 = vsub.f32 %v7841_v30, %v536_v56  ;;  %648 = vadd.xlane.f32.xlu1 %v597_v27  ;;  %650 = vadd.xlane.f32.xlu0 %v598_v57 }
 0x1c0   : > { %v8005_v28 = vsub.f32 %v7844_v31, %v537_v58 }
 0x1c1   : > { %v600_v60 = vmul.f32 %v8002_v59, %v8002_v59 }
 0x1c2   : > { %v601_v61 = vmul.f32 %v8005_v28, %v8005_v28 }
 0x1c3   : > { %652 = vadd.xlane.f32.xlu1 %v599_v29  ;;  %654 = vadd.xlane.f32.xlu0 %v600_v60  ;;  %v8014_v29 = vld [vmem:[#allocation6] ss:$0 sm:$0xff] }
 0x1c7   : > { %656 = vadd.xlane.f32.xlu1 %v601_v61 }
 0x214   : > { %v611_v0 = vpop.xlane.xlu0 %610 }
 0x215   : > { %v674_v30 = vmul.f32 0.0078125, %v611_v0 }
 0x217   : > { %v706_v1 = vadd.f32 1e-05, %v674_v30 }
 0x218   : > { %v613_v2 = vpop.xlane.xlu1 %612  ;;  %v659_v3 = vpop.xlane.xlu0 %658 }
 0x219   : > { %6353 = vrsqrt.f32 %v706_v1  ;;  %v675_v31 = vmul.f32 0.0078125, %v613_v2  ;;  %v698_v5 = vmul.f32 0.0078125, %v659_v3 }
 0x21b   : > { %v707_v22 = vadd.f32 1e-05, %v675_v31  ;;  %v730_v7 = vadd.f32 1e-05, %v698_v5 }
 0x21c   : > { %v661_v34 = vpop.xlane.xlu1 %660  ;;  %v615_v36 = vpop.xlane.xlu0 %614 }
 0x21d   : > { %6355 = vrsqrt.f32 %v707_v22  ;;  %v699_v37 = vmul.f32 0.0078125, %v661_v34  ;;  %v676_v38 = vmul.f32 0.0078125, %v615_v36 }
 0x21e   : > { %6357 = vrsqrt.f32 %v730_v7 }
 0x21f   : > { %v731_v8 = vadd.f32 1e-05, %v699_v37  ;;  %v708_v42 = vadd.f32 1e-05, %v676_v38 }
 0x220   : > { %v617_v43 = vpop.xlane.xlu1 %616  ;;  %v663_v44 = vpop.xlane.xlu0 %662 }
 0x221   : > { %6359 = vrsqrt.f32 %v731_v8  ;;  %v677_v45 = vmul.f32 0.0078125, %v617_v43  ;;  %v700_v48 = vmul.f32 0.0078125, %v663_v44 }
 0x222   : > { %6361 = vrsqrt.f32 %v708_v42 }
 0x223   : > { %v6354_v49 = vpop.eup %6353  ;;  %v709_v50 = vadd.f32 1e-05, %v677_v45  ;;  %v732_v27 = vadd.f32 1e-05, %v700_v48 }
 0x224   : > { %v665_v52 = vpop.xlane.xlu1 %664  ;;  %v619_v53 = vpop.xlane.xlu0 %618  ;;  %v770_v56 = vmul.f32 %v6354_v49, %v7849_v39  ;;  %v8018_v39 = vld [vmem:[#allocation6 + $0x1] ss:$0 sm:$0xff] }
 0x225   : > { %6363 = vrsqrt.f32 %v709_v50  ;;  %v701_v57 = vmul.f32 0.0078125, %v665_v52  ;;  %v678_v58 = vmul.f32 0.0078125, %v619_v53 }
 0x226   : > { %6365 = vrsqrt.f32 %v732_v27  ;;  %v806_v31 = vmul.f32 %v8014_v29, %v770_v56 }
 0x227   : > { %v6356_v60 = vpop.eup %6355  ;;  %v733_v61 = vadd.f32 1e-05, %v701_v57  ;;  %v710_v0 = vadd.f32 1e-05, %v678_v58 }
 0x228   : > { %v6358_v30 = vpop.eup %6357  ;;  %v621_v1 = vpop.xlane.xlu1 %620  ;;  %v771_v3 = vmul.f32 %v6356_v60, %v7857_v46  ;;  %v842_v46 = vadd.f32 %v8018_v39, %v806_v31 }
 0x229   : > { %v667_v2 = vpop.xlane.xlu0 %666  ;;  %6367 = vrsqrt.f32 %v733_v61  ;;  %v679_v5 = vmul.f32 0.0078125, %v621_v1  ;;  %v794_v7 = vmul.f32 %v6358_v30, %v7852_v40 }
 0x22a   : > { %v702_v22 = vmul.f32 0.0078125, %v667_v2  ;;  %6369 = vrsqrt.f32 %v710_v0  ;;  %v807_v34 = vmul.f32 %v8014_v29, %v771_v3 }
 0x22b   : > { %v6360_v36 = vpop.eup %6359  ;;  %v711_v37 = vadd.f32 1e-05, %v679_v5  ;;  %v830_v48 = vmul.f32 %v8014_v29, %v794_v7  ;;  %v6346_v5 = vld [vmem:[#allocation8 + $0x20] ss:$12 sps:$4 sm:$0xff]  }
 0x22c   : > { %v734_v38 = vadd.f32 1e-05, %v702_v22  ;;  %v6362_v8 = vpop.eup %6361  ;;  %v669_v42 = vpop.xlane.xlu1 %668  ;;  %v843_v44 = vadd.f32 %v8018_v39, %v807_v34  ;;  %v795_v45 = vmul.f32 %v6360_v36, %v7860_v47 }
 0x22d   : > { %v623_v43 = vpop.xlane.xlu0 %622  ;;  %6371 = vrsqrt.f32 %v711_v37  ;;  %v703_v49 = vmul.f32 0.0078125, %v669_v42  ;;  %v772_v52 = vmul.f32 %v6362_v8, %v7867_v54  ;;  %v866_v47 = vadd.f32 %v8018_v39, %v830_v48  ;;  %v6347_v48 = vld [vmem:[#allocation8 + $0x38] ss:$12 sps:$4 sm:$0xff]  }
 0x22e   : > { %v680_v40 = vmul.f32 0.0078125, %v623_v43  ;;  %6373 = vrsqrt.f32 %v734_v38  ;;  %v8026_v50 = vpack.c.bf16 %v843_v44, %v842_v46  ;;  %v831_v27 = vmul.f32 %v8014_v29, %v795_v45 }
 0x22f   : > { %v6364_v53 = vpop.eup %6363  ;;  %v735_v56 = vadd.f32 1e-05, %v703_v49  ;;  %v808_v1 = vmul.f32 %v8014_v29, %v772_v52 }
 0x230   : > { %v712_v57 = vadd.f32 1e-05, %v680_v40  ;;  %v6366_v58 = vpop.eup %6365  ;;  %v625_v60 = vpop.xlane.xlu1 %624  ;;  %1100 = vmatmul.mubr.bf16.vlgmr.msra.gmra.mrb[0].mxu0 %v8026_v50  ;;  %v867_v0 = vadd.f32 %v8018_v39, %v831_v27  ;;  %v773_v30 = vmul.f32 %v6364_v53, %v7870_v55 }
 0x231   : > { %v671_v61 = vpop.xlane.xlu0 %670  ;;  %6375 = vrsqrt.f32 %v735_v56  ;;  %v681_v2 = vmul.f32 0.0078125, %v625_v60  ;;  %1109 = vmatprep.mubr.bf16.mxu0 %v7351_v4  ;;  %v796_v54 = vmul.f32 %v6366_v58, %v7877_v62  ;;  %v844_v8 = vadd.f32 %v8018_v39, %v808_v1  ;;  %v6348_v1 = vld [vmem:[#allocation8 + $0x50] ss:$12 sps:$4 sm:$0xff]  }
 0x232   : > { %v704_v3 = vmul.f32 0.0078125, %v671_v61  ;;  %6377 = vrsqrt.f32 %v712_v57  ;;  %v8037_v31 = vpack.c.bf16 %v867_v0, %v866_v47  ;;  %v809_v22 = vmul.f32 %v8014_v29, %v773_v30 }
 0x233   : > { %v6368_v7 = vpop.eup %6367  ;;  %v713_v34 = vadd.f32 1e-05, %v681_v2  ;;  %v832_v43 = vmul.f32 %v8014_v29, %v796_v54 }
 0x234   : > { %v736_v36 = vadd.f32 1e-05, %v704_v3  ;;  %v6370_v37 = vpop.eup %6369  ;;  %v673_v55 = vpop.xlane.xlu1 %672  ;;  %1220 = vmatmul.mubr.bf16.vlgmr.msra.gmra.mrb[0].mxu1 %v8037_v31  ;;  %v845_v42 = vadd.f32 %v8018_v39, %v809_v22  ;;  %v797_v62 = vmul.f32 %v6368_v7, %v7880_v63 }
 0x235   : > { %v627_v38 = vpop.xlane.xlu0 %626  ;;  %6379 = vrsqrt.f32 %v713_v34  ;;  %v705_v46 = vmul.f32 0.0078125, %v673_v55  ;;  %6028 = vmatpush3.bf16.msra.mxu1 %v7976_v35  ;;  %1229 = vmatprep.mubr.bf16.mxu1 %v7351_v4  ;;  %v774_v40 = vmul.f32 %v6370_v37, %v7887_v32  ;;  %v868_v35 = vadd.f32 %v8018_v39, %v832_v43 }
 0x236   : > { %v682_v44 = vmul.f32 0.0078125, %v627_v38  ;;  %6381 = vrsqrt.f32 %v736_v36  ;;  %6029 = vmatprep.subr.bf16.mxu1 %v6346_v5  ;;  %v8047_v45 = vpack.c.bf16 %v845_v42, %v844_v8  ;;  %v833_v49 = vmul.f32 %v8014_v29, %v797_v62  ;;  %v6349_v8 = vld [vmem:[#allocation8 + $0x68] ss:$12 sps:$4 sm:$0xff]  }
 0x237   : > { %v6372_v27 = vpop.eup %6371  ;;  %v737_v63 = vadd.f32 1e-05, %v705_v46  ;;  %v810_v61 = vmul.f32 %v8014_v29, %v774_v40 }
 0x238   : > { %v714_v52 = vadd.f32 1e-05, %v682_v44  ;;  %v6374_v53 = vpop.eup %6373  ;;  %v629_v56 = vpop.xlane.xlu1 %628  ;;  %1110 = vmatmul.mubr.bf16.gmra.mrb[4].mxu0 %v8047_v45  ;;  %v869_v58 = vadd.f32 %v8018_v39, %v833_v49  ;;  %v775_v60 = vmul.f32 %v6372_v27, %v7890_v6 }
 0x239   : > { %v631_v57 = vpop.xlane.xlu0 %630  ;;  %6383 = vrsqrt.f32 %v737_v63  ;;  %v683_v47 = vmul.f32 0.0078125, %v629_v56  ;;  %6030 = vmatpush3.bf16.msra.mxu1 %v6346_v5  ;;  %1119 = vmatprep.mubr.bf16.mxu0 %v7351_v4  ;;  %v798_v32 = vmul.f32 %v6374_v53, %v7897_v41  ;;  %v846_v5 = vadd.f32 %v8018_v39, %v810_v61 }
 0x23a   : > { %v684_v0 = vmul.f32 0.0078125, %v631_v57  ;;  %6385 = vrsqrt.f32 %v714_v52  ;;  %6031 = vmatprep.subr.bf16.mxu1 %v6347_v48  ;;  %v8058_v30 = vpack.c.bf16 %v869_v58, %v868_v35  ;;  %v811_v2 = vmul.f32 %v8014_v29, %v775_v60  ;;  %v6350_v57 = vld [vmem:[#allocation8 + $0x80] ss:$12 sps:$4 sm:$0xff]  }
 0x23b   : > { %v6376_v3 = vpop.eup %6375  ;;  %v715_v54 = vadd.f32 1e-05, %v683_v47  ;;  %v834_v37 = vmul.f32 %v8014_v29, %v798_v32 }
 0x23c   : > { %v716_v6 = vadd.f32 1e-05, %v684_v0  ;;  %v6378_v22 = vpop.eup %6377  ;;  %v633_v7 = vpop.xlane.xlu1 %632  ;;  %1230 = vmatmul.mubr.bf16.gmra.mrb[4].mxu1 %v8058_v30  ;;  %v847_v36 = vadd.f32 %v8018_v39, %v811_v2  ;;  %v799_v41 = vmul.f32 %v6376_v3, %v7900_v9 }
 0x23d   : > { %v635_v34 = vpop.xlane.xlu0 %634  ;;  %6387 = vrsqrt.f32 %v715_v54  ;;  %v685_v55 = vmul.f32 0.0078125, %v633_v7  ;;  %6032 = vmatpush3.bf16.msra.mxu1 %v6347_v48  ;;  %1239 = vmatprep.mubr.bf16.mxu1 %v7351_v4  ;;  %v776_v62 = vmul.f32 %v6378_v22, %v7907_v10  ;;  %v870_v48 = vadd.f32 %v8018_v39, %v834_v37 }
 0x23e   : > { %6389 = vrsqrt.f32 %v716_v6  ;;  %6033 = vmatprep.subr.bf16.mxu1 %v6348_v1  ;;  %v8067_v38 = vpack.c.bf16 %v847_v36, %v846_v5  ;;  %v835_v42 = vmul.f32 %v8014_v29, %v799_v41  ;;  %v686_v44 = vmul.f32 0.0078125, %v635_v34  ;;  %v6351_v6 = vld [vmem:[#allocation8 + $0x98] ss:$12 sps:$4 sm:$0xff]  }
 0x23f   : > { %v6380_v43 = vpop.eup %6379  ;;  %v717_v46 = vadd.f32 1e-05, %v685_v55  ;;  %v812_v52 = vmul.f32 %v8014_v29, %v776_v62 }
 0x240   : > { %v6382_v9 = vpop.eup %6381  ;;  %v637_v49 = vpop.xlane.xlu1 %636  ;;  %1120 = vmatmul.mubr.bf16.gmra.mrb[8].mxu0 %v8067_v38  ;;  %v871_v27 = vadd.f32 %v8018_v39, %v835_v42  ;;  %v777_v63 = vmul.f32 %v6380_v43, %v7910_v11  ;;  %v718_v60 = vadd.f32 1e-05, %v686_v44  ;;  %v6352_v44 = vld [vmem:[#allocation8 + $0xb0] ss:$12 sps:$4 sm:$0xff]  }
 0x241   : > { %v639_v40 = vpop.xlane.xlu0 %638  ;;  %6391 = vrsqrt.f32 %v717_v46  ;;  %v687_v53 = vmul.f32 0.0078125, %v637_v49  ;;  %6034 = vmatpush3.bf16.msra.mxu1 %v6348_v1  ;;  %1129 = vmatprep.mubr.bf16.mxu0 %v7351_v4  ;;  %v800_v10 = vmul.f32 %v6382_v9, %v7917_v12  ;;  %v848_v32 = vadd.f32 %v8018_v39, %v812_v52 }
 0x242   : > { %6035 = vmatprep.subr.bf16.mxu1 %v6349_v8  ;;  %v8078_v56 = vpack.c.bf16 %v871_v27, %v870_v48  ;;  %v813_v35 = vmul.f32 %v8014_v29, %v777_v63  ;;  %v688_v5 = vmul.f32 0.0078125, %v639_v40 }
 0x243   : > { %v6384_v58 = vpop.eup %6383  ;;  %v719_v61 = vadd.f32 1e-05, %v687_v53  ;;  %v836_v2 = vmul.f32 %v8014_v29, %v800_v10 }
 0x244   : > { %v6386_v47 = vpop.eup %6385  ;;  %v641_v11 = vpop.xlane.xlu1 %640  ;;  %1240 = vmatmul.mubr.bf16.gmra.mrb[8].mxu1 %v8078_v56  ;;  %v849_v1 = vadd.f32 %v8018_v39, %v813_v35  ;;  %v801_v12 = vmul.f32 %v6384_v58, %v7920_v13  ;;  %v720_v40 = vadd.f32 1e-05, %v688_v5 }
 0x245   : > { %v643_v0 = vpop.xlane.xlu0 %642  ;;  %6393 = vrsqrt.f32 %v719_v61  ;;  %v689_v3 = vmul.f32 0.0078125, %v641_v11  ;;  %6036 = vmatpush3.bf16.msra.mxu1 %v6349_v8  ;;  %1249 = vmatprep.mubr.bf16.mxu1 %v7351_v4  ;;  %v778_v7 = vmul.f32 %v6386_v47, %v7927_v14  ;;  %v872_v37 = vadd.f32 %v8018_v39, %v836_v2 }
 0x246   : > { %6037 = vmatprep.subr.bf16.mxu1 %v6350_v57  ;;  %v8087_v54 = vpack.c.bf16 %v849_v1, %v848_v32  ;;  %v837_v22 = vmul.f32 %v8014_v29, %v801_v12  ;;  %6395 = vrsqrt.f32 %v718_v60  ;;  %v690_v48 = vmul.f32 0.0078125, %v643_v0 }
 0x247   : > { %v6388_v34 = vpop.eup %6387  ;;  %v814_v42 = vmul.f32 %v8014_v29, %v778_v7  ;;  %v721_v62 = vadd.f32 1e-05, %v689_v3 }
 0x248   : > { %v6390_v36 = vpop.eup %6389  ;;  %v645_v13 = vpop.xlane.xlu1 %644  ;;  %1130 = vmatmul.mubr.bf16.gmra.mrb[12].mxu0 %v8087_v54  ;;  %v873_v55 = vadd.f32 %v8018_v39, %v837_v22  ;;  %v779_v8 = vmul.f32 %v6388_v34, %v7930_v15  ;;  %v722_v32 = vadd.f32 1e-05, %v690_v48 }
 0x249   : > { %v647_v41 = vpop.xlane.xlu0 %646  ;;  %v691_v43 = vmul.f32 0.0078125, %v645_v13  ;;  %6038 = vmatpush3.bf16.msra.mxu1 %v6350_v57  ;;  %1139 = vmatprep.mubr.bf16.mxu0 %v7351_v4  ;;  %v780_v15 = vmul.f32 %v6390_v36, %v7937_v16  ;;  %v850_v10 = vadd.f32 %v8018_v39, %v814_v42  ;;  %6397 = vrsqrt.f32 %v721_v62 }
 0x24a   : > { %v692_v46 = vmul.f32 0.0078125, %v647_v41  ;;  %6039 = vmatprep.subr.bf16.mxu1 %v6351_v6  ;;  %v8097_v14 = vpack.c.bf16 %v873_v55, %v872_v37  ;;  %v815_v9 = vmul.f32 %v8014_v29, %v779_v8 }
 0x24b   : > { %v6392_v49 = vpop.eup %6391  ;;  %v723_v63 = vadd.f32 1e-05, %v691_v43 }
 0x24c   : > { %v724_v27 = vadd.f32 1e-05, %v692_v46  ;;  %v649_v52 = vpop.xlane.xlu1 %648  ;;  %1250 = vmatmul.mubr.bf16.gmra.mrb[12].mxu1 %v8097_v14  ;;  %v851_v57 = vadd.f32 %v8018_v39, %v815_v9  ;;  %v781_v35 = vmul.f32 %v6392_v49, %v7940_v17  ;;  %v816_v17 = vmul.f32 %v8014_v29, %v780_v15 }
 0x24d   : > { %v651_v53 = vpop.xlane.xlu0 %650  ;;  %v693_v58 = vmul.f32 0.0078125, %v649_v52  ;;  %6040 = vmatpush3.bf16.msra.mxu1 %v6351_v6  ;;  %6043 = vmatprep.mubr.bf16.mxu1 %v8026_v50 }
 0x24e   : > { %v694_v60 = vmul.f32 0.0078125, %v651_v53  ;;  %6399 = vrsqrt.f32 %v724_v27  ;;  %6041 = vmatprep.subr.bf16.mxu1 %v6352_v44  ;;  %v878_v16 = vpack.c.bf16 %v851_v57, %v850_v10  ;;  %v817_v61 = vmul.f32 %v8014_v29, %v781_v35 }
 0x24f   : > { %v6394_v47 = vpop.eup %6393  ;;  %6401 = vrsqrt.f32 %v720_v40  ;;  %v725_v11 = vadd.f32 1e-05, %v693_v58  ;;  %v852_v36 = vadd.f32 %v8018_v39, %v816_v17 }
 0x250   : > { %v726_v0 = vadd.f32 1e-05, %v694_v60  ;;  %6403 = vrsqrt.f32 %v723_v63  ;;  %v653_v1 = vpop.xlane.xlu1 %652  ;;  %1140 = vmatmul.mubr.bf16.gmra.mrb[16].mxu0 %v878_v16  ;;  %v6396_v2 = vpop.eup %6395  ;;  %v853_v6 = vadd.f32 %v8018_v39, %v817_v61  ;;  %v783_v22 = vmul.f32 %v6394_v47, %v7950_v19 }
 0x251   : > { %v655_v12 = vpop.xlane.xlu0 %654  ;;  %6405 = vrsqrt.f32 %v725_v11  ;;  %v695_v3 = vmul.f32 0.0078125, %v653_v1  ;;  %6042 = vmatpush3.bf16.msra.mxu1 %v6352_v44  ;;  %1149 = vmatprep.mubr.bf16.mxu0 %v7351_v4  ;;  %v782_v13 = vmul.f32 %v6396_v2, %v7947_v18 }
 0x252   : > { %v696_v50 = vmul.f32 0.0078125, %v655_v12  ;;  %6407 = vrsqrt.f32 %v726_v0  ;;  %v879_v37 = vpack.c.bf16 %v853_v6, %v852_v36  ;;  %v819_v55 = vmul.f32 %v8014_v29, %v783_v22 }
 0x253   : > { %v727_v7 = vadd.f32 1e-05, %v695_v3  ;;  %6409 = vrsqrt.f32 %v722_v32  ;;  %v6398_v8 = vpop.eup %6397  ;;  %v818_v62 = vmul.f32 %v8014_v29, %v782_v13 }
 0x254   : > { %v728_v34 = vadd.f32 1e-05, %v696_v50  ;;  %v657_v5 = vpop.xlane.xlu1 %656  ;;  %6044 = vmatmul.mubr.bf16.vlgmr.msra.gmra.mrb[16].mxu1 %v8047_v45  ;;  %v855_v46 = vadd.f32 %v8018_v39, %v819_v55 }
 0x255   : > { %6411 = vrsqrt.f32 %v727_v7  ;;  %v697_v41 = vmul.f32 0.0078125, %v657_v5  ;;  %6047 = vmatprep.mubr.bf16.mxu1 %v8067_v38  ;;  %v785_v38 = vmul.f32 %v6398_v8, %v7960_v21  ;;  %v854_v40 = vadd.f32 %v8018_v39, %v818_v62  ;;  %v8166_v5 = vld [vmem:[%s10933_s25] sm:$0x7] }
 0x256   : > { %6413 = vrsqrt.f32 %v728_v34 }
 0x257   : > { %v729_v19 = vadd.f32 1e-05, %v697_v41  ;;  %v880_v52 = vpack.c.bf16 %v855_v46, %v854_v40  ;;  %v821_v21 = vmul.f32 %v8014_v29, %v785_v38 }
 0x258   : > { %v6400_v42 = vpop.eup %6399  ;;  %1150 = vmatmul.mubr.bf16.gmra.mrb[20].mxu0 %v879_v37 }
 0x259   : > { %v6402_v43 = vpop.eup %6401  ;;  %6415 = vrsqrt.f32 %v729_v19  ;;  %1159 = vmatprep.mubr.bf16.mxu0 %v7351_v4  ;;  %v788_v18 = vmul.f32 %v6400_v42, %v7982_v24 }
 0x25a   : > { %v6404_v45 = vpop.eup %6403  ;;  %v784_v48 = vmul.f32 %v6402_v43, %v7957_v20 }
 0x25b   : > { %v6406_v44 = vpop.eup %6405  ;;  %v824_v9 = vmul.f32 %v8014_v29, %v788_v18 }
 0x25c   : > { %v6408_v49 = vpop.eup %6407  ;;  %6048 = vmatmul.mubr.bf16.gmra.mrb[20].mxu1 %v8087_v54  ;;  %v789_v27 = vmul.f32 %v6406_v44, %v7985_v25  ;;  %v787_v54 = vmul.f32 %v6404_v45, %v7972_v23  ;;  %v820_v20 = vmul.f32 %v8014_v29, %v784_v48  ;;  %v857_v23 = vadd.f32 %v8018_v39, %v821_v21 }
 0x25d   : > { %6051 = vmatprep.mubr.bf16.mxu1 %v878_v16  ;;  %v860_v24 = vadd.f32 %v8018_v39, %v824_v9  ;;  %v790_v15 = vmul.f32 %v6408_v49, %v7992_v51  ;;  %v6410_v63 = vpop.eup %6409 }
 0x25e   : > { %v825_v53 = vmul.f32 %v8014_v29, %v789_v27  ;;  %v786_v51 = vmul.f32 %v6410_v63, %v7969_v33  ;;  %v823_v0 = vmul.f32 %v8014_v29, %v787_v54 }
 0x25f   : > { %v6412_v10 = vpop.eup %6411  ;;  %v826_v57 = vmul.f32 %v8014_v29, %v790_v15 }
 0x260   : > { %v6414_v35 = vpop.eup %6413  ;;  %1160 = vmatmul.mubr.bf16.gmra.mrb[24].mxu0 %v880_v52  ;;  %v861_v25 = vadd.f32 %v8018_v39, %v825_v53  ;;  %v791_v58 = vmul.f32 %v6412_v10, %v7995_v26  ;;  %v856_v26 = vadd.f32 %v8018_v39, %v820_v20  ;;  %v859_v50 = vadd.f32 %v8018_v39, %v823_v0 }
 0x261   : > { %1169 = vmatprep.mubr.bf16.mxu0 %v7351_v4  ;;  %v862_v60 = vadd.f32 %v8018_v39, %v826_v57  ;;  %v792_v16 = vmul.f32 %v6414_v35, %v8002_v59  ;;  %v822_v59 = vmul.f32 %v8014_v29, %v786_v51 }
 0x262   : > { %v883_v61 = vpack.c.bf16 %v861_v25, %v860_v24  ;;  %v827_v47 = vmul.f32 %v8014_v29, %v791_v58  ;;  %v881_v17 = vpack.c.bf16 %v857_v23, %v856_v26 }
 0x263   : > { %v6416_v11 = vpop.eup %6415  ;;  %v828_v32 = vmul.f32 %v8014_v29, %v792_v16  ;;  %v858_v22 = vadd.f32 %v8018_v39, %v822_v59 }
 0x264   : > { %6052 = vmatmul.mubr.bf16.gmra.mrb[24].mxu1 %v879_v37  ;;  %v863_v1 = vadd.f32 %v8018_v39, %v827_v47  ;;  %v793_v33 = vmul.f32 %v6416_v11, %v8005_v28 }
 0x265   : > { %6055 = vmatprep.mubr.bf16.mxu1 %v880_v52  ;;  %v864_v12 = vadd.f32 %v8018_v39, %v828_v32  ;;  %v882_v28 = vpack.c.bf16 %v859_v50, %v858_v22 }
 0x266   : > { %v884_v2 = vpack.c.bf16 %v863_v1, %v862_v60  ;;  %v829_v3 = vmul.f32 %v8014_v29, %v793_v33  ;;  %v924_v29 = vlaneseq }
 0x268   : > { %1170 = vmatmul.mubr.bf16.gmra.mrb[28].mxu0 %v881_v17  ;;  %v865_v6 = vadd.f32 %v8018_v39, %v829_v3  ;;  %v8160_v39 = vshrl.u32 %v924_v29, 7 }
 0x269   : > { %1179 = vmatprep.mubr.bf16.mxu0 %v7351_v4 }
 0x26a   : > { %v885_v7 = vpack.c.bf16 %v865_v6, %v864_v12  ;;  %v926_v34 = vsub.s32 0, %v8160_v39 }
 0x26c   : > { %6056 = vmatmul.mubr.bf16.gmra.mrb[28].mxu1 %v881_v17 }
 0x26d   : > { %6059 = vmatprep.mubr.bf16.mxu1 %v882_v28 }
 0x270   : > { %1180 = vmatmul.mubr.bf16.gmra.mrb[32].mxu0 %v882_v28 }
 0x271   : > { %1189 = vmatprep.mubr.bf16.mxu0 %v7351_v4 }
 0x274   : > { %6060 = vmatmul.mubr.bf16.gmra.mrb[32].mxu1 %v883_v61 }
 0x275   : > { %6063 = vmatprep.mubr.bf16.mxu1 %v884_v2 }
 0x278   : > { %1190 = vmatmul.mubr.bf16.gmra.mrb[36].mxu0 %v883_v61 }
 0x279   : > { %1199 = vmatprep.mubr.bf16.mxu0 %v7351_v4 }
 0x27c   : > { %6064 = vmatmul.mubr.bf16.gmra.mrb[36].mxu1 %v885_v7 }
 0x27d   : > { %6067 = vmatprep.mubr.bf16.mxu1 %v8037_v31  ;;  %v930_v31 = vsub.s32 1, %v8160_v39 }
 0x280   : > { %1200 = vmatmul.mubr.bf16.gmra.mrb[40].mxu0 %v884_v2 }
 0x281   : > { %1209 = vmatprep.mubr.bf16.mxu0 %v7351_v4  ;;  %v8170_v4 = vrot.slane %v8166_v5, %v926_v34 }
 0x284   : > { %6068 = vmatmul.mubr.bf16.gmra.mrb[40].mxu1 %v8058_v30 }
 0x285   : > { %6071 = vmatprep.mubr.bf16.mxu1 %v8078_v56  ;;  %v8173_v56 = vrot.slane %v8166_v5, %v930_v31 }
 0x288   : > { %1210 = vmatmul.mubr.bf16.gmra.mrb[44].mxu0 %v885_v7 }
 0x28c   : > { %6072 = vmatmul.mubr.bf16.gmra.mrb[44].mxu1 %v8097_v14 }
 0x303   : > { %v1101_v30 = vpop.f32.mrb[0].mxu0 }
 0x304   : > { %v1103_v14 = vpop.f32.mrb[1].mxu0  ;;  %v1102_v13 = vadd.f32 %v1101_v30, %v8170_v4 }
 0x305   : > { %v1105_v36 = vpop.f32.mrb[2].mxu0  ;;  %v1104_v55 = vadd.f32 %v1103_v14, %v8173_v56 }
 0x306   : > { %v1106_v41 = vadd.f32 %v1105_v36, %v8170_v4  ;;  %v1107_v37 = vpop.f32.mrb[3].mxu0 }
 0x307   : > { %v1108_v8 = vadd.f32 %v1107_v37, %v8173_v56  ;;  %v1221_v19 = vpop.f32.mrb[0].mxu1 }
 0x308   : > { %v1421_v42 = vpack.c.bf16 %v1106_v41, %v1102_v13  ;;  %v1223_v62 = vpop.f32.mrb[1].mxu1  ;;  %v1222_v45 = vadd.f32 %v1221_v19, %v8170_v4 }
 0x309   : > { %v1422_v43 = vpack.c.bf16 %v1108_v8, %v1104_v55  ;;  %v1225_v18 = vpop.f32.mrb[2].mxu1  ;;  %v1224_v44 = vadd.f32 %v1223_v62, %v8173_v56 }
 0x30a   : > { %1469 = vst [vmem:[#allocation2] sm:$0xff] %v1421_v42  ;;  %v1226_v46 = vadd.f32 %v1225_v18, %v8170_v4  ;;  %v1227_v38 = vpop.f32.mrb[3].mxu1 }
 0x30b   : > { %1470 = vst [vmem:[#allocation2 + $0x8] sm:$0xff] %v1422_v43  ;;  %v1228_v9 = vadd.f32 %v1227_v38, %v8173_v56  ;;  %v1111_v49 = vpop.f32.mrb[4].mxu0 }
 0x30c   : > { %v1457_v40 = vpack.c.bf16 %v1226_v46, %v1222_v45  ;;  %v1113_v48 = vpop.f32.mrb[5].mxu0  ;;  %v1112_v15 = vadd.f32 %v1111_v49, %v8170_v4 }
 0x30d   : > { %v1458_v27 = vpack.c.bf16 %v1228_v9, %v1224_v44  ;;  %v1115_v24 = vpop.f32.mrb[6].mxu0  ;;  %v1114_v21 = vadd.f32 %v1113_v48, %v8173_v56  ;;  %v934_v44 = vsub.s32 2, %v8160_v39 }
 0x30e   : > { %1505 = vst [vmem:[#allocation2 + $0x120] sm:$0xff] %v1457_v40  ;;  %v1116_v63 = vadd.f32 %v1115_v24, %v8170_v4  ;;  %v1117_v52 = vpop.f32.mrb[7].mxu0 }
 0x30f   : > { %1506 = vst [vmem:[#allocation2 + $0x128] sm:$0xff] %v1458_v27  ;;  %v1118_v53 = vadd.f32 %v1117_v52, %v8173_v56  ;;  %v1231_v10 = vpop.f32.mrb[4].mxu1 }
 0x310   : > { %v1424_v54 = vpack.c.bf16 %v1116_v63, %v1112_v15  ;;  %v1233_v57 = vpop.f32.mrb[5].mxu1  ;;  %v1232_v25 = vadd.f32 %v1231_v10, %v8170_v4 }
 0x311   : > { %v1425_v35 = vpack.c.bf16 %v1118_v53, %v1114_v21  ;;  %v1235_v20 = vpop.f32.mrb[6].mxu1  ;;  %v1234_v60 = vadd.f32 %v1233_v57, %v8173_v56  ;;  %v8211_v53 = vrot.slane %v8166_v5, %v934_v44 }
 0x312   : > { %1472 = vst [vmem:[#allocation2 + $0x18] sm:$0xff] %v1424_v54  ;;  %v1236_v58 = vadd.f32 %v1235_v20, %v8170_v4  ;;  %v1237_v51 = vpop.f32.mrb[7].mxu1 }
 0x313   : > { %1473 = vst [vmem:[#allocation2 + $0x20] sm:$0xff] %v1425_v35  ;;  %v1238_v16 = vadd.f32 %v1237_v51, %v8173_v56  ;;  %v1121_v23 = vpop.f32.mrb[8].mxu0 }
 0x314   : > { %v1460_v61 = vpack.c.bf16 %v1236_v58, %v1232_v25  ;;  %v1123_v47 = vpop.f32.mrb[9].mxu0  ;;  %v1122_v32 = vadd.f32 %v1121_v23, %v8170_v4 }
 0x315   : > { %v1461_v11 = vpack.c.bf16 %v1238_v16, %v1234_v60  ;;  %v1125_v0 = vpop.f32.mrb[10].mxu0  ;;  %v1124_v33 = vadd.f32 %v1123_v47, %v8173_v56 }
 0x316   : > { %1508 = vst [vmem:[#allocation2 + $0x138] sm:$0xff] %v1460_v61  ;;  %v1126_v26 = vadd.f32 %v1125_v0, %v8170_v4  ;;  %v1127_v1 = vpop.f32.mrb[11].mxu0 }
 0x317   : > { %1509 = vst [vmem:[#allocation2 + $0x140] sm:$0xff] %v1461_v11  ;;  %v1128_v59 = vadd.f32 %v1127_v1, %v8173_v56  ;;  %v1241_v12 = vpop.f32.mrb[8].mxu1 }
 0x318   : > { %v1427_v17 = vpack.c.bf16 %v1126_v26, %v1122_v32  ;;  %v1243_v2 = vpop.f32.mrb[9].mxu1  ;;  %v1242_v6 = vadd.f32 %v1241_v12, %v8170_v4 }
 0x319   : > { %v1428_v3 = vpack.c.bf16 %v1128_v59, %v1124_v33  ;;  %v1245_v50 = vpop.f32.mrb[10].mxu1  ;;  %v1244_v28 = vadd.f32 %v1243_v2, %v8173_v56 }
 0x31a   : > { %1475 = vst [vmem:[#allocation2 + $0x30] sm:$0xff] %v1427_v17  ;;  %v1246_v22 = vadd.f32 %v1245_v50, %v8170_v4  ;;  %v1247_v7 = vpop.f32.mrb[11].mxu1 }
 0x31b   : > { %1476 = vst [vmem:[#allocation2 + $0x38] sm:$0xff] %v1428_v3  ;;  %v1248_v29 = vadd.f32 %v1247_v7, %v8173_v56  ;;  %v1131_v34 = vpop.f32.mrb[12].mxu0 }
 0x31c   : > { %v1463_v31 = vpack.c.bf16 %v1246_v22, %v1242_v6  ;;  %v1133_v30 = vpop.f32.mrb[13].mxu0  ;;  %v1132_v13 = vadd.f32 %v1131_v34, %v8170_v4 }
 0x31d   : > { %v1464_v14 = vpack.c.bf16 %v1248_v29, %v1244_v28  ;;  %v1135_v36 = vpop.f32.mrb[14].mxu0  ;;  %v1134_v55 = vadd.f32 %v1133_v30, %v8173_v56 }
 0x31e   : > { %1511 = vst [vmem:[#allocation2 + $0x150] sm:$0xff] %v1463_v31  ;;  %v1136_v41 = vadd.f32 %v1135_v36, %v8170_v4  ;;  %v1137_v37 = vpop.f32.mrb[15].mxu0 }
 0x31f   : > { %1512 = vst [vmem:[#allocation2 + $0x158] sm:$0xff] %v1464_v14  ;;  %v1138_v8 = vadd.f32 %v1137_v37, %v8173_v56  ;;  %v1251_v19 = vpop.f32.mrb[12].mxu1 }
 0x320   : > { %v1430_v42 = vpack.c.bf16 %v1136_v41, %v1132_v13  ;;  %v1253_v62 = vpop.f32.mrb[13].mxu1  ;;  %v1252_v45 = vadd.f32 %v1251_v19, %v8170_v4 }
 0x321   : > { %v1431_v43 = vpack.c.bf16 %v1138_v8, %v1134_v55  ;;  %v1255_v18 = vpop.f32.mrb[14].mxu1  ;;  %v1254_v9 = vadd.f32 %v1253_v62, %v8173_v56 }
 0x322   : > { %1478 = vst [vmem:[#allocation2 + $0x48] sm:$0xff] %v1430_v42  ;;  %v1256_v46 = vadd.f32 %v1255_v18, %v8170_v4  ;;  %v1257_v38 = vpop.f32.mrb[15].mxu1 }
 0x323   : > { %1479 = vst [vmem:[#allocation2 + $0x50] sm:$0xff] %v1431_v43  ;;  %v1258_v49 = vadd.f32 %v1257_v38, %v8173_v56  ;;  %v1141_v40 = vpop.f32.mrb[16].mxu0 }
 0x324   : > { %v1466_v48 = vpack.c.bf16 %v1256_v46, %v1252_v45  ;;  %v1143_v27 = vpop.f32.mrb[17].mxu0  ;;  %v1142_v63 = vadd.f32 %v1141_v40, %v8170_v4 }
 0x325   : > { %v1467_v24 = vpack.c.bf16 %v1258_v49, %v1254_v9  ;;  %v1145_v15 = vpop.f32.mrb[18].mxu0  ;;  %v1144_v39 = vadd.f32 %v1143_v27, %v8173_v56 }
 0x326   : > { %1514 = vst [vmem:[#allocation2 + $0x168] sm:$0xff] %v1466_v48  ;;  %v1146_v52 = vadd.f32 %v1145_v15, %v8170_v4  ;;  %v1147_v21 = vpop.f32.mrb[19].mxu0 }
 0x327   : > { %1515 = vst [vmem:[#allocation2 + $0x170] sm:$0xff] %v1467_v24  ;;  %v1148_v10 = vadd.f32 %v1147_v21, %v8173_v56  ;;  %v6045_v54 = vpop.f32.mrb[16].mxu1 }
 0x328   : > { %v1433_v57 = vpack.c.bf16 %v1146_v52, %v1142_v63  ;;  %v1294_v35 = vpop.f32.mrb[17].mxu1  ;;  %v1303_v58 = vadd.f32 %v6045_v54, %v8211_v53 }
 0x329   : > { %v1434_v20 = vpack.c.bf16 %v1148_v10, %v1144_v39  ;;  %v6046_v25 = vpop.f32.mrb[18].mxu1  ;;  %v1295_v5 = vadd.f32 %v1294_v35, %v8211_v53 }
 0x32a   : > { %1481 = vst [vmem:[#allocation2 + $0x60] sm:$0xff] %v1433_v57  ;;  %v1306_v51 = vadd.f32 %v6046_v25, %v8211_v53  ;;  %v1297_v60 = vpop.f32.mrb[19].mxu1 }
 0x32b   : > { %1482 = vst [vmem:[#allocation2 + $0x68] sm:$0xff] %v1434_v20  ;;  %v1298_v16 = vadd.f32 %v1297_v60, %v8211_v53  ;;  %v1151_v23 = vpop.f32.mrb[20].mxu0 }
 0x32c   : > { %v1426_v61 = vpack.c.bf16 %v1306_v51, %v1303_v58  ;;  %v1153_v47 = vpop.f32.mrb[21].mxu0  ;;  %v1152_v32 = vadd.f32 %v1151_v23, %v8170_v4 }
 0x32d   : > { %v1423_v11 = vpack.c.bf16 %v1298_v16, %v1295_v5  ;;  %v1155_v0 = vpop.f32.mrb[22].mxu0  ;;  %v1154_v33 = vadd.f32 %v1153_v47, %v8173_v56 }
 0x32e   : > { %1474 = vst [vmem:[#allocation2 + $0x28] sm:$0xff] %v1426_v61  ;;  %v1156_v26 = vadd.f32 %v1155_v0, %v8170_v4  ;;  %v1157_v1 = vpop.f32.mrb[23].mxu0 }
 0x32f   : > { %1471 = vst [vmem:[#allocation2 + $0x10] sm:$0xff] %v1423_v11  ;;  %v1158_v59 = vadd.f32 %v1157_v1, %v8173_v56  ;;  %v6049_v12 = vpop.f32.mrb[20].mxu1 }
 0x330   : > { %v1436_v17 = vpack.c.bf16 %v1156_v26, %v1152_v32  ;;  %v1310_v2 = vpop.f32.mrb[21].mxu1  ;;  %v1319_v6 = vadd.f32 %v6049_v12, %v8211_v53 }
 0x331   : > { %v1437_v3 = vpack.c.bf16 %v1158_v59, %v1154_v33  ;;  %v6050_v50 = vpop.f32.mrb[22].mxu1  ;;  %v1311_v28 = vadd.f32 %v1310_v2, %v8211_v53 }
 0x332   : > { %1484 = vst [vmem:[#allocation2 + $0x78] sm:$0xff] %v1436_v17  ;;  %v1322_v22 = vadd.f32 %v6050_v50, %v8211_v53  ;;  %v1313_v7 = vpop.f32.mrb[23].mxu1 }
 0x333   : > { %1485 = vst [vmem:[#allocation2 + $0x80] sm:$0xff] %v1437_v3  ;;  %v1314_v29 = vadd.f32 %v1313_v7, %v8211_v53  ;;  %v1161_v34 = vpop.f32.mrb[24].mxu0 }
 0x334   : > { %v1432_v31 = vpack.c.bf16 %v1322_v22, %v1319_v6  ;;  %v1163_v30 = vpop.f32.mrb[25].mxu0  ;;  %v1162_v13 = vadd.f32 %v1161_v34, %v8170_v4 }
 0x335   : > { %v1429_v14 = vpack.c.bf16 %v1314_v29, %v1311_v28  ;;  %v1165_v36 = vpop.f32.mrb[26].mxu0  ;;  %v1164_v55 = vadd.f32 %v1163_v30, %v8173_v56 }
 0x336   : > { %1480 = vst [vmem:[#allocation2 + $0x58] sm:$0xff] %v1432_v31  ;;  %v1166_v41 = vadd.f32 %v1165_v36, %v8170_v4  ;;  %v1167_v37 = vpop.f32.mrb[27].mxu0 }
 0x337   : > { %1477 = vst [vmem:[#allocation2 + $0x40] sm:$0xff] %v1429_v14  ;;  %v1168_v8 = vadd.f32 %v1167_v37, %v8173_v56  ;;  %v6053_v19 = vpop.f32.mrb[24].mxu1 }
 0x338   : > { %v1439_v42 = vpack.c.bf16 %v1166_v41, %v1162_v13  ;;  %v1326_v62 = vpop.f32.mrb[25].mxu1  ;;  %v1335_v45 = vadd.f32 %v6053_v19, %v8211_v53 }
 0x339   : > { %v1440_v43 = vpack.c.bf16 %v1168_v8, %v1164_v55  ;;  %v6054_v18 = vpop.f32.mrb[26].mxu1  ;;  %v1327_v44 = vadd.f32 %v1326_v62, %v8211_v53 }
 0x33a   : > { %1487 = vst [vmem:[#allocation2 + $0x90] sm:$0xff] %v1439_v42  ;;  %v1338_v46 = vadd.f32 %v6054_v18, %v8211_v53  ;;  %v1329_v38 = vpop.f32.mrb[27].mxu1 }
 0x33b   : > { %1488 = vst [vmem:[#allocation2 + $0x98] sm:$0xff] %v1440_v43  ;;  %v1330_v9 = vadd.f32 %v1329_v38, %v8211_v53  ;;  %v1171_v49 = vpop.f32.mrb[28].mxu0 }
 0x33c   : > { %v1438_v40 = vpack.c.bf16 %v1338_v46, %v1335_v45  ;;  %v1173_v48 = vpop.f32.mrb[29].mxu0  ;;  %v1172_v15 = vadd.f32 %v1171_v49, %v8170_v4 }
 0x33d   : > { %v1435_v27 = vpack.c.bf16 %v1330_v9, %v1327_v44  ;;  %v1175_v24 = vpop.f32.mrb[30].mxu0  ;;  %v1174_v21 = vadd.f32 %v1173_v48, %v8173_v56 }
 0x33e   : > { %1486 = vst [vmem:[#allocation2 + $0x88] sm:$0xff] %v1438_v40  ;;  %v1176_v63 = vadd.f32 %v1175_v24, %v8170_v4  ;;  %v1177_v52 = vpop.f32.mrb[31].mxu0 }
 0x33f   : > { %1483 = vst [vmem:[#allocation2 + $0x70] sm:$0xff] %v1435_v27  ;;  %v1178_v39 = vadd.f32 %v1177_v52, %v8173_v56  ;;  %v6057_v10 = vpop.f32.mrb[28].mxu1 }
 0x340   : > { %v1442_v54 = vpack.c.bf16 %v1176_v63, %v1172_v15  ;;  %v1342_v57 = vpop.f32.mrb[29].mxu1  ;;  %v1351_v25 = vadd.f32 %v6057_v10, %v8211_v53 }
 0x341   : > { %v1443_v35 = vpack.c.bf16 %v1178_v39, %v1174_v21  ;;  %v6058_v20 = vpop.f32.mrb[30].mxu1  ;;  %v1343_v60 = vadd.f32 %v1342_v57, %v8211_v53 }
 0x342   : > { %1490 = vst [vmem:[#allocation2 + $0xa8] sm:$0xff] %v1442_v54  ;;  %v1354_v58 = vadd.f32 %v6058_v20, %v8211_v53  ;;  %v1345_v51 = vpop.f32.mrb[31].mxu1 }
 0x343   : > { %1491 = vst [vmem:[#allocation2 + $0xb0] sm:$0xff] %v1443_v35  ;;  %v1346_v5 = vadd.f32 %v1345_v51, %v8211_v53  ;;  %v1181_v16 = vpop.f32.mrb[32].mxu0 }
 0x344   : > { %v1444_v23 = vpack.c.bf16 %v1354_v58, %v1351_v25  ;;  %v1183_v61 = vpop.f32.mrb[33].mxu0  ;;  %v1182_v0 = vadd.f32 %v1181_v16, %v8170_v4 }
 0x345   : > { %v1441_v47 = vpack.c.bf16 %v1346_v5, %v1343_v60  ;;  %v1185_v11 = vpop.f32.mrb[34].mxu0  ;;  %v1184_v1 = vadd.f32 %v1183_v61, %v8173_v56 }
 0x346   : > { %1492 = vst [vmem:[#allocation2 + $0xb8] sm:$0xff] %v1444_v23  ;;  %v1186_v32 = vadd.f32 %v1185_v11, %v8170_v4  ;;  %v1187_v26 = vpop.f32.mrb[35].mxu0 }
 0x347   : > { %1489 = vst [vmem:[#allocation2 + $0xa0] sm:$0xff] %v1441_v47  ;;  %v1188_v33 = vadd.f32 %v1187_v26, %v8173_v56  ;;  %v6061_v59 = vpop.f32.mrb[32].mxu1 }
 0x348   : > { %v1445_v12 = vpack.c.bf16 %v1186_v32, %v1182_v0  ;;  %v1358_v17 = vpop.f32.mrb[33].mxu1  ;;  %v1367_v50 = vadd.f32 %v6061_v59, %v8211_v53 }
 0x349   : > { %v1446_v2 = vpack.c.bf16 %v1188_v33, %v1184_v1  ;;  %v6062_v3 = vpop.f32.mrb[34].mxu1  ;;  %v1359_v7 = vadd.f32 %v1358_v17, %v8211_v53 }
 0x34a   : > { %1493 = vst [vmem:[#allocation2 + $0xc0] sm:$0xff] %v1445_v12  ;;  %v1370_v6 = vadd.f32 %v6062_v3, %v8211_v53  ;;  %v1361_v22 = vpop.f32.mrb[35].mxu1 }
 0x34b   : > { %1494 = vst [vmem:[#allocation2 + $0xc8] sm:$0xff] %v1446_v2  ;;  %v1362_v28 = vadd.f32 %v1361_v22, %v8211_v53  ;;  %v1191_v29 = vpop.f32.mrb[36].mxu0 }
 0x34c   : > { %v1450_v34 = vpack.c.bf16 %v1370_v6, %v1367_v50  ;;  %v1193_v31 = vpop.f32.mrb[37].mxu0  ;;  %v1192_v36 = vadd.f32 %v1191_v29, %v8170_v4 }
 0x34d   : > { %v1447_v30 = vpack.c.bf16 %v1362_v28, %v1359_v7  ;;  %v1195_v14 = vpop.f32.mrb[38].mxu0  ;;  %v1194_v37 = vadd.f32 %v1193_v31, %v8173_v56 }
 0x34e   : > { %1498 = vst [vmem:[#allocation2 + $0xe8] sm:$0xff] %v1450_v34  ;;  %v1196_v13 = vadd.f32 %v1195_v14, %v8170_v4  ;;  %v1197_v41 = vpop.f32.mrb[39].mxu0 }
 0x34f   : > { %1495 = vst [vmem:[#allocation2 + $0xd0] sm:$0xff] %v1447_v30  ;;  %v1198_v55 = vadd.f32 %v1197_v41, %v8173_v56  ;;  %v6065_v8 = vpop.f32.mrb[36].mxu1 }
 0x350   : > { %v1448_v19 = vpack.c.bf16 %v1196_v13, %v1192_v36  ;;  %v1374_v42 = vpop.f32.mrb[37].mxu1  ;;  %v1383_v18 = vadd.f32 %v6065_v8, %v8211_v53 }
 0x351   : > { %v1449_v62 = vpack.c.bf16 %v1198_v55, %v1194_v37  ;;  %v6066_v43 = vpop.f32.mrb[38].mxu1  ;;  %v1375_v38 = vadd.f32 %v1374_v42, %v8211_v53 }
 0x352   : > { %1496 = vst [vmem:[#allocation2 + $0xd8] sm:$0xff] %v1448_v19  ;;  %v1386_v45 = vadd.f32 %v6066_v43, %v8211_v53  ;;  %v1377_v46 = vpop.f32.mrb[39].mxu1 }
 0x353   : > { %1497 = vst [vmem:[#allocation2 + $0xe0] sm:$0xff] %v1449_v62  ;;  %v1378_v44 = vadd.f32 %v1377_v46, %v8211_v53  ;;  %v1201_v9 = vpop.f32.mrb[40].mxu0 }
 0x354   : > { %v1456_v49 = vpack.c.bf16 %v1386_v45, %v1383_v18  ;;  %v1203_v40 = vpop.f32.mrb[41].mxu0  ;;  %v1202_v24 = vadd.f32 %v1201_v9, %v8170_v4 }
 0x355   : > { %v1453_v48 = vpack.c.bf16 %v1378_v44, %v1375_v38  ;;  %v1205_v27 = vpop.f32.mrb[42].mxu0  ;;  %v1204_v52 = vadd.f32 %v1203_v40, %v8173_v56 }
 0x356   : > { %1504 = vst [vmem:[#allocation2 + $0x118] sm:$0xff] %v1456_v49  ;;  %v1206_v15 = vadd.f32 %v1205_v27, %v8170_v4  ;;  %v1207_v63 = vpop.f32.mrb[43].mxu0 }
 0x357   : > { %1501 = vst [vmem:[#allocation2 + $0x100] sm:$0xff] %v1453_v48  ;;  %v1208_v21 = vadd.f32 %v1207_v63, %v8173_v56  ;;  %v6069_v39 = vpop.f32.mrb[40].mxu1 }
 0x358   : > { %v1451_v10 = vpack.c.bf16 %v1206_v15, %v1202_v24  ;;  %v1390_v54 = vpop.f32.mrb[41].mxu1  ;;  %v1399_v20 = vadd.f32 %v6069_v39, %v8211_v53 }
 0x359   : > { %v1452_v57 = vpack.c.bf16 %v1208_v21, %v1204_v52  ;;  %v6070_v35 = vpop.f32.mrb[42].mxu1  ;;  %v1391_v51 = vadd.f32 %v1390_v54, %v8211_v53 }
 0x35a   : > { %1499 = vst [vmem:[#allocation2 + $0xf0] sm:$0xff] %v1451_v10  ;;  %v1402_v25 = vadd.f32 %v6070_v35, %v8211_v53  ;;  %v1393_v58 = vpop.f32.mrb[43].mxu1 }
 0x35b   : > { %1500 = vst [vmem:[#allocation2 + $0xf8] sm:$0xff] %v1452_v57  ;;  %v1394_v60 = vadd.f32 %v1393_v58, %v8211_v53  ;;  %v1211_v5 = vpop.f32.mrb[44].mxu0 }
 0x35c   : > { %v1462_v16 = vpack.c.bf16 %v1402_v25, %v1399_v20  ;;  %v1213_v23 = vpop.f32.mrb[45].mxu0  ;;  %v1212_v11 = vadd.f32 %v1211_v5, %v8170_v4 }
 0x35d   : > { %v1459_v61 = vpack.c.bf16 %v1394_v60, %v1391_v51  ;;  %v1215_v47 = vpop.f32.mrb[46].mxu0  ;;  %v1214_v26 = vadd.f32 %v1213_v23, %v8173_v56 }
 0x35e   : > { %1510 = vst [vmem:[#allocation2 + $0x148] sm:$0xff] %v1462_v16  ;;  %v1216_v0 = vadd.f32 %v1215_v47, %v8170_v4  ;;  %v1217_v32 = vpop.f32.mrb[47].mxu0 }
 0x35f   : > { %1507 = vst [vmem:[#allocation2 + $0x130] sm:$0xff] %v1459_v61  ;;  %v1218_v1 = vadd.f32 %v1217_v32, %v8173_v56  ;;  %v6073_v33 = vpop.f32.mrb[44].mxu1 }
 0x360   : > { %v1454_v59 = vpack.c.bf16 %v1216_v0, %v1212_v11  ;;  %v1406_v12 = vpop.f32.mrb[45].mxu1  ;;  %v1415_v3 = vadd.f32 %v6073_v33, %v8211_v53 }
 0x361   : > { %v1455_v17 = vpack.c.bf16 %v1218_v1, %v1214_v26  ;;  %v6074_v2 = vpop.f32.mrb[46].mxu1  ;;  %v1407_v4 = vadd.f32 %v1406_v12, %v8211_v53 }
 0x362   : > { %1502 = vst [vmem:[#allocation2 + $0x108] sm:$0xff] %v1454_v59  ;;  %v1418_v50 = vadd.f32 %v6074_v2, %v8211_v53  ;;  %v1409_v6 = vpop.f32.mrb[47].mxu1 }
 0x363   : > { %1503 = vst [vmem:[#allocation2 + $0x110] sm:$0xff] %v1455_v17  ;;  %v1410_v22 = vadd.f32 %v1409_v6, %v8211_v53 }
 0x364   : > { %v1468_v7 = vpack.c.bf16 %v1418_v50, %v1415_v3 }
 0x365   : > { %v1465_v28 = vpack.c.bf16 %v1410_v22, %v1407_v4 }
 0x366   : > { %1516 = vst [vmem:[#allocation2 + $0x178] sm:$0xff] %v1468_v7 }
 0x367   : > { %1513 = vst [vmem:[#allocation2 + $0x160] sm:$0xff] %v1465_v28 }
 0x368 PF: > { %v8275_v56 = vld [vmem:[#allocation2 + $0xc8] sm:$0xff]  ;;  %s10934_s2 = sld [smem:[#allocation20_spill]]  ;;  %vm1580_vm0 = vcmask 261120   ;;  %v8279_v34 = vld [vmem:[#allocation2 + $0xe0] sm:$0xff]  ;;  %s7352_s8 = smov 96   ;;  %v8309_v36 = vld [vmem:[#allocation2 + $0xf8] sm:$0xff] }
 0x369   : > { %v8277_v29 = vld [vmem:[#allocation2 + $0x8] sm:$0xff]  ;;  %6123 = vmatprep.subr.msk.bf16.mxu0 %vm1580_vm0, %v8275_v56  ;;  %2175 = vrot.lane.b32.xlu1 %v8275_v56, %s7352_s8  ;;  %v8294_v31 = vld [vmem:[#allocation2 + $0x20] sm:$0xff]  ;;  %v1572_v13 = vld [vmem:[#allocation2 + $0xd0] sm:$0xff]  ;;  %s7353_s23 = smov 64   ;;  %s7354_s18 = smov 32   ;;  %vm4269_vm1 = vcmask 523264  }
 0x36a   : > { %v1606_v53 = vsel %vm1580_vm0, %v8277_v29, 0  ;;  %2159 = vrot.lane.b32.xlu0 %v8277_v29, %s7352_s8  ;;  %v1609_v14 = vsel %vm1580_vm0, %v8294_v31, 0  ;;  %v1564_v41 = vld [vmem:[#allocation2 + $0x10] sm:$0xff]  ;;  %v8311_v37 = vld [vmem:[#allocation2 + $0x38] sm:$0xff]  ;;  %5595 = vmatprep.subr.bf16.mxu1 %v1572_v13  ;;  %v1573_v55 = vld [vmem:[#allocation2 + $0xe8] sm:$0xff]  ;;  %vm4286_vm2 = vcmask 785408  }
 0x36b   : > { %5564 = vmatpush3.bf16.xpose.msra.mxu0 %v1606_v53  ;;  %5596 = vmatpush3.bf16.msra.mxu1 %v1564_v41  ;;  %v8319_v8 = vld [vmem:[#allocation2 + $0x110] sm:$0xff]  ;;  %v8323_v42 = vld [vmem:[#allocation2 + $0x28] sm:$0xff]  ;;  %v1612_v62 = vsel %vm1580_vm0, %v8311_v37, 0  ;;  %v8329_v43 = vld [vmem:[#allocation2 + $0x100] sm:$0xff]  ;;  %s11259_s26 = sld [smem:[#allocation112_spill]]  ;;  %s11260_s25 = sld [smem:[#allocation21_spill]] }
 0x36c   : > { %6124 = vmatprep.subr.msk.bf16.mxu0 %vm1580_vm0, %v8279_v34  ;;  %v8321_v19 = vld [vmem:[#allocation2 + $0x50] sm:$0xff]  ;;  %5597 = vmatprep.subr.bf16.mxu1 %v1573_v55  ;;  %v8331_v18 = vld [vmem:[#allocation2 + $0x128] sm:$0xff]  ;;  %v8335_v45 = vld [vmem:[#allocation2 + $0x40] sm:$0xff]  ;;  %p11262_p6 = scmp.ne.s32.totalorder %s10924_s20, 0 }
 0x36d   : > { %2177 = vrot.lane.b32.xlu1 %v8279_v34, %s7352_s8  ;;  %v8337_v46 = vld [vmem:[#allocation2 + $0x68] sm:$0xff]  ;;  %v8340_v38 = vld [vmem:[#allocation2 + $0x118] sm:$0xff]  ;;  %v8345_v44 = vld [vmem:[#allocation2 + $0x80] sm:$0xff]  ;;  %v1615_v24 = vsel %vm1580_vm0, %v8321_v19, 0 }
 0x36e   : > { %s5453_s5 = sshll.u32 %s10934_s2, 7  ;;  %2161 = vrot.lane.b32.xlu0 %v8294_v31, %s7352_s8  ;;  %v8349_v9 = vld [vmem:[#allocation2 + $0x58] sm:$0xff]  ;;  %v8356_v40 = vld [vmem:[#allocation2 + $0x130] sm:$0xff]  ;;  %v8361_v48 = vld [vmem:[#allocation2 + $0x140] sm:$0xff]  ;;  %v1618_v15 = vsel %vm1580_vm0, %v8337_v46, 0  ;;  %v1621_v25 = vsel %vm1580_vm0, %v8345_v44, 0 }
 0x36f   : > { %s1535_s1 = sshra.s32 %s5453_s5, 4  ;;  %5598 = vmatpush3.bf16.msra.mxu1 %v8323_v42  ;;  %v8353_v49 = vld [vmem:[#allocation2 + $0x98] sm:$0xff]  ;;  %v8365_v27 = vld [vmem:[#allocation2 + $0x70] sm:$0xff]  ;;  %v8374_v52 = vld [vmem:[#allocation2 + $0x148] sm:$0xff]  ;;  %s10404_s6 = scalar_lea.vmem %s7696_s12, %s5453_s5 [#allocation3] }
 0x370   : > { %s5538_s3 = smul.u32 24, %s1535_s1  ;;  %5599 = vmatprep.subr.bf16.mxu1 %v8329_v43  ;;  %v8371_v63 = vld [vmem:[#allocation2 + $0xb0] sm:$0xff]  ;;  %v8379_v21 = vld [vmem:[#allocation2 + $0x158] sm:$0xff]  ;;  %v8383_v39 = vld [vmem:[#allocation2 + $0x88] sm:$0xff]  ;;  %v1624_v60 = vsel %vm1580_vm0, %v8353_v49, 0  ;;  %s5532_s5 = sshll.u32 %s10934_s2, 4 }
 0x371   : > { %2179 = vrot.lane.b32.xlu1 %v8309_v36, %s7352_s8  ;;  %10935 = vst [vmem:[#allocation23_spill] sm:$0xff] %v8383_v39  ;;  %v8388_v10 = vld [vmem:[#allocation2 + $0x160] sm:$0xff]  ;;  %v8393_v54 = vld [vmem:[#allocation2 + $0x170] sm:$0xff]  ;;  %v8400_v35 = vld [vmem:[#allocation2 + $0x178] sm:$0xff]  ;;  %v1627_v23 = vsel %vm1580_vm0, %v8371_v63, 0  ;;  %s5533_s1 = sshll.u32 %s11260_s25, 5 }
 0x372   : > { %s8296_s30 = scalar_lea.vmem [#allocation2], %s5538_s3  ;;  %2163 = vrot.lane.b32.xlu0 %v8311_v37, %s7352_s8  ;;  %10936 = vst [vmem:[#allocation24_spill] sm:$0xff] %v8388_v10  ;;  %v8397_v57 = vld [vmem:[#allocation2 + $0xa0] sm:$0xff]  ;;  %v8411_v20 = vld [vmem:[#allocation2 + $0xb8] sm:$0xff]  ;;  %s5267_s3 = sshll.u32 %s7717_s24, 4  ;;  %s10717_s3 = int_to_ptr.vmem [resolvable:$true] %s5267_s3 }
 0x373   : > { %v8299_v30 = vld [vmem:[%s8296_s30] sm:$0xff]  ;;  %5566 = vmatpush3.bf16.xpose.msra.mxu0 %v1609_v14  ;;  %5600 = vmatpush3.bf16.msra.mxu1 %v8335_v45  ;;  %10937 = vst [vmem:[#allocation25_spill] sm:$0xff] %v8397_v57  ;;  %10938 = vst [vmem:[#allocation26_spill] sm:$0xff] %v8411_v20  ;;  %v8421_v58 = vld [vmem:[%s8296_s30 + $0x18] sm:$0xff]  ;;  %s10729_s12 = scalar_lea.sflag [#allocation5], %s406_s21  ;;  %s7203_s17 = scalar_lea.vmem %s10717_s3, 2048 }
 0x374   : > { %5579 = vmatprep.mubr.msk.bf16.mxu0 %vm1580_vm0, %v8299_v30  ;;  %6125 = vmatprep.subr.msk.bf16.mxu0 %vm1580_vm0, %v8309_v36  ;;  %v8424_v51 = vld [vmem:[%s8296_s30 + $0x30] sm:$0xff]  ;;  %v8445_v5 = vld [vmem:[%s8296_s30 + $0x48] sm:$0xff]  ;;  %v8448_v16 = vld [vmem:[%s8296_s30 + $0x60] sm:$0xff]  ;;  %p7204_p9 = scmp.ne.s32.totalorder %s10717_s3, %s7203_s17 }
 0x375   : > { %2181 = vrot.lane.b32.xlu1 %v8319_v8, %s7352_s8  ;;  %5601 = vmatprep.subr.bf16.mxu1 %v8340_v38  ;;  %v8465_v61 = vld [vmem:[%s8296_s30 + $0x78] sm:$0xff]  ;;  %v8470_v47 = vld [vmem:[%s8296_s30 + $0x90] sm:$0xff]  ;;  %v8491_v11 = vld [vmem:[%s8296_s30 + $0xa8] sm:$0xff] }
 0x376   : > { %2165 = vrot.lane.b32.xlu0 %v8321_v19, %s7352_s8  ;;  %p7205_p12 = pnand %p7204_p9, %p11262_p6 }
 0x377   : > { %5602 = vmatpush3.bf16.msra.mxu1 %v8349_v9 }
 0x378   : > { %5603 = vmatprep.subr.bf16.mxu1 %v8356_v40  ;;  %p7206_p3 = pneg %p7205_p12 }
 0x379   : > { %2183 = vrot.lane.b32.xlu1 %v8331_v18, %s7352_s8 }
 0x37a   : > { %2167 = vrot.lane.b32.xlu0 %v8337_v46, %s7352_s8 }
 0x37b   : > { %5568 = vmatpush3.bf16.xpose.msra.mxu0 %v1612_v62  ;;  %5604 = vmatpush3.bf16.msra.mxu1 %v8365_v27 }
 0x37c   : > { %6126 = vmatprep.subr.msk.bf16.mxu0 %vm1580_vm0, %v8319_v8  ;;  %5605 = vmatprep.subr.bf16.mxu1 %v8374_v52 }
 0x37d   : > { %2169 = vrot.lane.b32.xlu1 %v8345_v44, %s7352_s8 }
 0x37e   : > { %2171 = vrot.lane.b32.xlu0 %v8353_v49, %s7352_s8 }
 0x37f   : > { %5606 = vmatpush3.bf16.msra.mxu1 %v8383_v39 }
 0x380   : > { %5607 = vmatprep.subr.bf16.mxu1 %v8388_v10 }
 0x381   : > { %2185 = vrot.lane.b32.xlu1 %v8361_v48, %s7352_s8 }
 0x382   : > { %2173 = vrot.lane.b32.xlu0 %v8371_v63, %s7352_s8 }
 0x383   : > { %5570 = vmatpush3.bf16.xpose.msra.mxu0 %v1615_v24  ;;  %5608 = vmatpush3.bf16.msra.mxu1 %v8397_v57 }
 0x384   : > { %6127 = vmatprep.subr.msk.bf16.mxu0 %vm1580_vm0, %v8331_v18  ;;  %5609 = vmatprep.subr.bf16.mxu1 %v8400_v35 }
 0x385   : > { %2187 = vrot.lane.b32.xlu1 %v8379_v21, %s7352_s8 }
 0x386   : > { %2127 = vrot.lane.b32.xlu0 %v8299_v30, %s7352_s8 }
 0x387   : > { %5610 = vmatpush3.bf16.msra.mxu1 %v8411_v20 }
 0x389   : > { %2189 = vrot.lane.b32.xlu1 %v8393_v54, %s7352_s8 }
 0x38a   : > { %2825 = vrot.lane.b32.xlu0 %v8275_v56, %s7353_s23 }
 0x38b   : > { %5572 = vmatpush3.bf16.xpose.msra.mxu0 %v1618_v15 }
 0x38c   : > { %6128 = vmatprep.subr.msk.bf16.mxu0 %vm1580_vm0, %v8361_v48 }
 0x38d   : > { %2809 = vrot.lane.b32.xlu1 %v8277_v29, %s7353_s23 }
 0x38e   : > { %2811 = vrot.lane.b32.xlu0 %v8294_v31, %s7353_s23 }
 0x391   : > { %2129 = vrot.lane.b32.xlu1 %v8421_v58, %s7352_s8 }
 0x392   : > { %2131 = vrot.lane.b32.xlu0 %v8424_v51, %s7352_s8 }
 0x393   : > { %5574 = vmatpush3.bf16.xpose.msra.mxu0 %v1621_v25 }
 0x394   : > { %6129 = vmatprep.subr.msk.bf16.mxu0 %vm1580_vm0, %v8379_v21 }
 0x395   : > { %2827 = vrot.lane.b32.xlu1 %v8279_v34, %s7353_s23 }
 0x396   : > { %2829 = vrot.lane.b32.xlu0 %v8309_v36, %s7353_s23 }
 0x399   : > { %2813 = vrot.lane.b32.xlu1 %v8311_v37, %s7353_s23 }
 0x39a   : > { %2815 = vrot.lane.b32.xlu0 %v8321_v19, %s7353_s23 }
 0x39b   : > { %5576 = vmatpush3.bf16.xpose.msra.mxu0 %v1624_v60 }
 0x39c   : > { %6130 = vmatprep.subr.msk.bf16.mxu0 %vm1580_vm0, %v8393_v54 }
 0x39d   : > { %2133 = vrot.lane.b32.xlu1 %v8445_v5, %s7352_s8 }
 0x39e   : > { %2135 = vrot.lane.b32.xlu0 %v8448_v16, %s7352_s8 }
 0x3a1   : > { %2831 = vrot.lane.b32.xlu1 %v8319_v8, %s7353_s23 }
 0x3a2   : > { %2833 = vrot.lane.b32.xlu0 %v8331_v18, %s7353_s23 }
 0x3a3   : > { %5578 = vmatpush3.bf16.xpose.msra.mxu0 %v1627_v23 }
 0x3a5   : > { %2817 = vrot.lane.b32.xlu1 %v8337_v46, %s7353_s23 }
 0x3a6   : > { %2819 = vrot.lane.b32.xlu0 %v8345_v44, %s7353_s23 }
 0x3a9   : > { %2137 = vrot.lane.b32.xlu1 %v8465_v61, %s7352_s8 }
 0x3aa   : > { %5580 = vmatmul.mubr.msk.bf16.vlgmr.msra.gmra.mrb[0].mxu0 %vm1580_vm0, %v8299_v30  ;;  %2139 = vrot.lane.b32.xlu0 %v8470_v47, %s7352_s8 }
 0x3ab   : > { %5581 = vmatprep.mubr.msk.bf16.mxu0 %vm1580_vm0, %v8421_v58 }
 0x3ad   : > { %2835 = vrot.lane.b32.xlu1 %v8361_v48, %s7353_s23 }
 0x3ae   : > { %2837 = vrot.lane.b32.xlu0 %v8379_v21, %s7353_s23 }
 0x3b1   : > { %2821 = vrot.lane.b32.xlu1 %v8353_v49, %s7353_s23 }
 0x3b2   : > { %5582 = vmatmul.mubr.msk.bf16.gmra.mrb[4].mxu0 %vm1580_vm0, %v8421_v58  ;;  %2823 = vrot.lane.b32.xlu0 %v8371_v63, %s7353_s23 }
 0x3b3   : > { %5583 = vmatprep.mubr.msk.bf16.mxu0 %vm1580_vm0, %v8424_v51 }
 0x3b5   : > { %2141 = vrot.lane.b32.xlu1 %v8491_v11, %s7352_s8 }
 0x3b6   : > { %2793 = vrot.lane.b32.xlu0 %v8299_v30, %s7353_s23 }
 0x3b9   : > { %2839 = vrot.lane.b32.xlu1 %v8393_v54, %s7353_s23 }
 0x3ba   : > { %5584 = vmatmul.mubr.msk.bf16.gmra.mrb[8].mxu0 %vm1580_vm0, %v8424_v51  ;;  %3459 = vrot.lane.b32.xlu0 %v8275_v56, %s7354_s18 }
 0x3bb   : > { %5585 = vmatprep.mubr.msk.bf16.mxu0 %vm1580_vm0, %v8445_v5 }
 0x3bd   : > { %3443 = vrot.lane.b32.xlu1 %v8277_v29, %s7354_s18 }
 0x3be   : > { %3445 = vrot.lane.b32.xlu0 %v8294_v31, %s7354_s18 }
 0x3c1   : > { %2795 = vrot.lane.b32.xlu1 %v8421_v58, %s7353_s23 }
 0x3c2   : > { %5586 = vmatmul.mubr.msk.bf16.gmra.mrb[12].mxu0 %vm1580_vm0, %v8445_v5  ;;  %2797 = vrot.lane.b32.xlu0 %v8424_v51, %s7353_s23 }
 0x3c3   : > { %5587 = vmatprep.mubr.msk.bf16.mxu0 %vm1580_vm0, %v8448_v16 }
 0x3c5   : > { %3461 = vrot.lane.b32.xlu1 %v8279_v34, %s7354_s18 }
 0x3c6   : > { %3463 = vrot.lane.b32.xlu0 %v8309_v36, %s7354_s18 }
 0x3c9   : > { %3447 = vrot.lane.b32.xlu1 %v8311_v37, %s7354_s18 }
 0x3ca   : > { %5588 = vmatmul.mubr.msk.bf16.gmra.mrb[16].mxu0 %vm1580_vm0, %v8448_v16  ;;  %3449 = vrot.lane.b32.xlu0 %v8321_v19, %s7354_s18 }
 0x3cb   : > { %5589 = vmatprep.mubr.msk.bf16.mxu0 %vm1580_vm0, %v8465_v61 }
 0x3cd   : > { %2799 = vrot.lane.b32.xlu1 %v8445_v5, %s7353_s23 }
 0x3ce   : > { %2801 = vrot.lane.b32.xlu0 %v8448_v16, %s7353_s23 }
 0x3d1   : > { %3465 = vrot.lane.b32.xlu1 %v8319_v8, %s7354_s18 }
 0x3d2   : > { %5590 = vmatmul.mubr.msk.bf16.gmra.mrb[20].mxu0 %vm1580_vm0, %v8465_v61  ;;  %3467 = vrot.lane.b32.xlu0 %v8331_v18, %s7354_s18 }
 0x3d3   : > { %5591 = vmatprep.mubr.msk.bf16.mxu0 %vm1580_vm0, %v8470_v47 }
 0x3d5   : > { %3451 = vrot.lane.b32.xlu1 %v8337_v46, %s7354_s18 }
 0x3d6   : > { %3453 = vrot.lane.b32.xlu0 %v8345_v44, %s7354_s18 }
 0x3d9   : > { %2803 = vrot.lane.b32.xlu1 %v8465_v61, %s7353_s23 }
 0x3da   : > { %5592 = vmatmul.mubr.msk.bf16.gmra.mrb[24].mxu0 %vm1580_vm0, %v8470_v47  ;;  %2805 = vrot.lane.b32.xlu0 %v8470_v47, %s7353_s23 }
 0x3db   : > { %5593 = vmatprep.mubr.msk.bf16.mxu0 %vm1580_vm0, %v8491_v11  ;;  %v2176_v0 = vpop.permute.xlu1 %2175 }
 0x3dc   : > { %6131 = vmatprep.subr.msk.bf16.mxu1 %vm1580_vm0, %v2176_v0  ;;  %v8560_v32 = vpop.permute.xlu0 %2159 }
 0x3dd   : > { %3469 = vrot.lane.b32.xlu1 %v8361_v48, %s7354_s18 }
 0x3df   : > { %v8562_v26 = vpop.permute.xlu1 %2177 }
 0x3e0   : > { %10939 = vst [vmem:[#allocation27_spill] sm:$0xff] %v8562_v26  ;;  %v8564_v1 = vpop.permute.xlu0 %2161 }
 0x3e1   : > { %3455 = vrot.lane.b32.xlu1 %v8353_v49, %s7354_s18  ;;  %10940 = vst [vmem:[#allocation28_spill] sm:$0xff] %v8564_v1 }
 0x3e2   : > { %5594 = vmatmul.mubr.msk.bf16.gmra.mrb[28].mxu0 %vm1580_vm0, %v8491_v11 }
 0x3e3   : > { %v8566_v33 = vpop.permute.xlu1 %2179 }
 0x3e4   : > { %10941 = vst [vmem:[#allocation29_spill] sm:$0xff] %v8566_v33  ;;  %v8568_v59 = vpop.permute.xlu0 %2163 }
 0x3e5   : > { %10942 = vst [vmem:[#allocation30_spill] sm:$0xff] %v8568_v59 }
 0x3e7   : > { %v8570_v12 = vpop.permute.xlu1 %2181 }
 0x3e8   : > { %10943 = vst [vmem:[#allocation31_spill] sm:$0xff] %v8570_v12  ;;  %v8572_v17 = vpop.permute.xlu0 %2165 }
 0x3e9   : > { %10944 = vst [vmem:[#allocation32_spill] sm:$0xff] %v8572_v17 }
 0x3eb   : > { %v8574_v2 = vpop.permute.xlu1 %2183 }
 0x3ec   : > { %10945 = vst [vmem:[#allocation33_spill] sm:$0xff] %v8574_v2  ;;  %v8576_v3 = vpop.permute.xlu0 %2167 }
 0x3ed   : > { %10946 = vst [vmem:[#allocation34_spill] sm:$0xff] %v8576_v3 }
 0x3ef   : > { %v8578_v50 = vpop.permute.xlu1 %2169 }
 0x3f0   : > { %10947 = vst [vmem:[#allocation35_spill] sm:$0xff] %v8578_v50  ;;  %v8590_v56 = vpop.permute.xlu0 %2171 }
 0x3f1   : > { %10948 = vst [vmem:[#allocation36_spill] sm:$0xff] %v8590_v56 }
 0x3f3   : > { %v8594_v34 = vpop.permute.xlu1 %2185 }
 0x3f4   : > { %10949 = vst [vmem:[#allocation37_spill] sm:$0xff] %v8594_v34  ;;  %v8600_v30 = vpop.permute.xlu0 %2173 }
 0x3f5   : > { %10950 = vst [vmem:[#allocation38_spill] sm:$0xff] %v8600_v30 }
 0x3f7   : > { %v8608_v41 = vpop.permute.xlu1 %2187 }
 0x3f8   : > { %10951 = vst [vmem:[#allocation39_spill] sm:$0xff] %v8608_v41  ;;  %v8612_v55 = vpop.permute.xlu0 %2127 }
 0x3f9   : > { %10952 = vst [vmem:[#allocation40_spill] sm:$0xff] %v8612_v55 }
 0x3fb   : > { %v8618_v62 = vpop.permute.xlu1 %2189 }
 0x3fc   : > { %10953 = vst [vmem:[#allocation41_spill] sm:$0xff] %v8618_v62  ;;  %v8628_v48 = vpop.permute.xlu0 %2825 }
 0x3fd   : > { %10954 = vst [vmem:[#allocation42_spill] sm:$0xff] %v8628_v48 }
 0x3ff   : > { %v8630_v24 = vpop.permute.xlu1 %2809 }
 0x400   : > { %10955 = vst [vmem:[#allocation43_spill] sm:$0xff] %v8630_v24 }
 0x47d   : > { %v8580_v6 = vpop.f32.mrb[0].mxu0 }
 0x47e   : > { %v8582_v4 = vpop.f32.mrb[1].mxu0 }
 0x47f   : > { %v8584_v22 = vpop.f32.mrb[2].mxu0  ;;  %v1766_v7 = vmax.f32 %v8580_v6, %v8582_v4 }
 0x480   : > { %v8588_v28 = vpop.f32.mrb[3].mxu0 }
 0x481   : > { %1767 = vmax.xlane.f32.xlu0 %v1766_v7  ;;  %v1769_v29 = vmax.f32 %v8584_v22, %v8588_v28  ;;  %v8642_v7 = vpop.permute.xlu0 %2811 }
 0x482   : > { %10956 = vst [vmem:[#allocation44_spill] sm:$0xff] %v8642_v7 }
 0x485   : > { %1770 = vmax.xlane.f32.xlu0 %v1769_v29  ;;  %v8596_v53 = vpop.f32.mrb[4].mxu0 }
 0x486   : > { %v8598_v31 = vpop.f32.mrb[5].mxu0 }
 0x487   : > { %v8602_v14 = vpop.f32.mrb[6].mxu0  ;;  %v1772_v36 = vmax.f32 %v8596_v53, %v8598_v31 }
 0x488   : > { %v8606_v13 = vpop.f32.mrb[7].mxu0 }
 0x489   : > { %1773 = vmax.xlane.f32.xlu1 %v1772_v36  ;;  %v1775_v37 = vmax.f32 %v8602_v14, %v8606_v13  ;;  %v8646_v36 = vpop.permute.xlu1 %2129 }
 0x48a   : > { %10957 = vst [vmem:[#allocation45_spill] sm:$0xff] %v8646_v36 }
 0x48d   : > { %1776 = vmax.xlane.f32.xlu1 %v1775_v37  ;;  %v8614_v8 = vpop.f32.mrb[8].mxu0  ;;  %v8658_v48 = vpop.permute.xlu1 %2827 }
 0x48e   : > { %v8616_v19 = vpop.f32.mrb[9].mxu0  ;;  %10959 = vst [vmem:[#allocation47_spill] sm:$0xff] %v8658_v48 }
 0x48f   : > { %v8620_v18 = vpop.f32.mrb[10].mxu0  ;;  %v1778_v46 = vmax.f32 %v8614_v8, %v8616_v19 }
 0x490   : > { %v8624_v44 = vpop.f32.mrb[11].mxu0 }
 0x491   : > { %1779 = vmax.xlane.f32.xlu0 %v1778_v46  ;;  %v1781_v49 = vmax.f32 %v8620_v18, %v8624_v44  ;;  %v8668_v30 = vpop.permute.xlu1 %2813 }
 0x492   : > { %10961 = vst [vmem:[#allocation49_spill] sm:$0xff] %v8668_v30 }
 0x493   : > { %1782 = vmax.xlane.f32.xlu1 %v1781_v49  ;;  %v8652_v49 = vpop.permute.xlu0 %2131 }
 0x494   : > { %10958 = vst [vmem:[#allocation46_spill] sm:$0xff] %v8652_v49 }
 0x495   : > { %v8632_v15 = vpop.f32.mrb[12].mxu0 }
 0x496   : > { %v8634_v25 = vpop.f32.mrb[13].mxu0 }
 0x497   : > { %v8636_v60 = vpop.f32.mrb[14].mxu0  ;;  %v1784_v23 = vmax.f32 %v8632_v15, %v8634_v25 }
 0x498   : > { %v8640_v0 = vpop.f32.mrb[15].mxu0 }
 0x499   : > { %1785 = vmax.xlane.f32.xlu0 %v1784_v23  ;;  %v1787_v29 = vmax.f32 %v8636_v60, %v8640_v0 }
 0x49b   : > { %1788 = vmax.xlane.f32.xlu1 %v1787_v29  ;;  %v8664_v29 = vpop.permute.xlu0 %2829 }
 0x49c   : > { %10960 = vst [vmem:[#allocation48_spill] sm:$0xff] %v8664_v29  ;;  %v8682_v29 = vpop.permute.xlu1 %2133 }
 0x49d   : > { %v8648_v37 = vpop.f32.mrb[16].mxu0  ;;  %10963 = vst [vmem:[#allocation51_spill] sm:$0xff] %v8682_v29 }
 0x49e   : > { %v8650_v46 = vpop.f32.mrb[17].mxu0 }
 0x49f   : > { %v8654_v24 = vpop.f32.mrb[18].mxu0  ;;  %v1790_v55 = vmax.f32 %v8648_v37, %v8650_v46 }
 0x4a0   : > { %v8660_v23 = vpop.f32.mrb[19].mxu0 }
 0x4a1   : > { %1791 = vmax.xlane.f32.xlu0 %v1790_v55  ;;  %v1793_v7 = vmax.f32 %v8654_v24, %v8660_v23 }
 0x4a3   : > { %1794 = vmax.xlane.f32.xlu1 %v1793_v7  ;;  %v8680_v7 = vpop.permute.xlu0 %2815 }
 0x4a4   : > { %10962 = vst [vmem:[#allocation50_spill] sm:$0xff] %v8680_v7 }
 0x4a5   : > { %v8666_v36 = vpop.f32.mrb[20].mxu0 }
 0x4a6   : > { %v8670_v49 = vpop.f32.mrb[21].mxu0 }
 0x4a7   : > { %v8672_v62 = vpop.f32.mrb[22].mxu0  ;;  %v1796_v48 = vmax.f32 %v8666_v36, %v8670_v49  ;;  %v8692_v3 = vpop.permute.xlu0 %2135 }
 0x4a8   : > { %v8676_v56 = vpop.f32.mrb[23].mxu0  ;;  %10964 = vst [vmem:[#allocation52_spill] sm:$0xff] %v8692_v3 }
 0x4a9   : > { %1797 = vmax.xlane.f32.xlu0 %v1796_v48  ;;  %v1799_v55 = vmax.f32 %v8672_v62, %v8676_v56 }
 0x4ab   : > { %1800 = vmax.xlane.f32.xlu1 %v1799_v55  ;;  %v8698_v55 = vpop.permute.xlu1 %2831  ;;  %v8702_v2 = vpop.permute.xlu0 %2833 }
 0x4ac   : > { %10965 = vst [vmem:[#allocation53_spill] sm:$0xff] %v8698_v55  ;;  %10966 = vst [vmem:[#allocation54_spill] sm:$0xff] %v8702_v2 }
 0x4ad   : > { %v8684_v41 = vpop.f32.mrb[24].mxu0 }
 0x4ae   : > { %v8686_v30 = vpop.f32.mrb[25].mxu0 }
 0x4af   : > { %v8688_v50 = vpop.f32.mrb[26].mxu0  ;;  %v1802_v34 = vmax.f32 %v8684_v41, %v8686_v30  ;;  %v8710_v59 = vpop.permute.xlu1 %2817 }
 0x4b0   : > { %v8694_v48 = vpop.f32.mrb[27].mxu0  ;;  %10967 = vst [vmem:[#allocation55_spill] sm:$0xff] %v8710_v59 }
 0x4b1   : > { %1803 = vmax.xlane.f32.xlu0 %v1802_v34  ;;  %v1805_v7 = vmax.f32 %v8688_v50, %v8694_v48 }
 0x4b3   : > { %1806 = vmax.xlane.f32.xlu1 %v1805_v7  ;;  %v8716_v7 = vpop.permute.xlu0 %2819  ;;  %v8718_v20 = vpop.permute.xlu1 %2137 }
 0x4b4   : > { %10968 = vst [vmem:[#allocation56_spill] sm:$0xff] %v8716_v7  ;;  %10969 = vst [vmem:[#allocation57_spill] sm:$0xff] %v8718_v20 }
 0x4b5   : > { %v8700_v29 = vpop.f32.mrb[28].mxu0 }
 0x4b6   : > { %v8704_v17 = vpop.f32.mrb[29].mxu0 }
 0x4b7   : > { %v8706_v12 = vpop.f32.mrb[30].mxu0  ;;  %v1808_v3 = vmax.f32 %v8700_v29, %v8704_v17  ;;  %v8720_v2 = vpop.permute.xlu0 %2139 }
 0x4b8   : > { %v8712_v34 = vpop.f32.mrb[31].mxu0  ;;  %10970 = vst [vmem:[#allocation58_spill] sm:$0xff] %v8720_v2  ;;  %v8722_v33 = vpop.permute.xlu1 %2835 }
 0x4b9   : > { %1809 = vmax.xlane.f32.xlu0 %v1808_v3  ;;  %v1811_v55 = vmax.f32 %v8706_v12, %v8712_v34  ;;  %10971 = vst [vmem:[#allocation59_spill] sm:$0xff] %v8722_v33 }
 0x4bb   : > { %1812 = vmax.xlane.f32.xlu1 %v1811_v55  ;;  %v8724_v57 = vpop.permute.xlu0 %2837 }
 0x4bc   : > { %10972 = vst [vmem:[#allocation60_spill] sm:$0xff] %v8724_v57  ;;  %v8726_v1 = vpop.permute.xlu1 %2821 }
 0x4bd   : > { %10973 = vst [vmem:[#allocation61_spill] sm:$0xff] %v8726_v1 }
 0x4bf   : > { %v8730_v3 = vpop.permute.xlu0 %2823 }
 0x4c0   : > { %10974 = vst [vmem:[#allocation62_spill] sm:$0xff] %v8730_v3  ;;  %v8734_v55 = vpop.permute.xlu1 %2141 }
 0x4c1   : > { %10975 = vst [vmem:[#allocation63_spill] sm:$0xff] %v8734_v55 }
 0x4c3   : > { %v8736_v7 = vpop.permute.xlu0 %2793 }
 0x4c4   : > { %10976 = vst [vmem:[#allocation64_spill] sm:$0xff] %v8736_v7  ;;  %v8738_v20 = vpop.permute.xlu1 %2839 }
 0x4c5   : > { %10977 = vst [vmem:[#allocation65_spill] sm:$0xff] %v8738_v20 }
 0x4c7   : > { %v8740_v2 = vpop.permute.xlu0 %3459 }
 0x4c8   : > { %10978 = vst [vmem:[#allocation66_spill] sm:$0xff] %v8740_v2  ;;  %v8742_v33 = vpop.permute.xlu1 %3443 }
 0x4c9   : > { %10979 = vst [vmem:[#allocation67_spill] sm:$0xff] %v8742_v33 }
 0x4cb   : > { %v8744_v57 = vpop.permute.xlu0 %3445 }
 0x4cc   : > { %2807 = vrot.lane.b32.xlu1 %v8491_v11, %s7353_s23  ;;  %10980 = vst [vmem:[#allocation68_spill] sm:$0xff] %v8744_v57  ;;  %v8746_v1 = vpop.permute.xlu1 %2795 }
 0x4cd   : > { %10981 = vst [vmem:[#allocation69_spill] sm:$0xff] %v8746_v1 }
 0x4cf   : > { %3471 = vrot.lane.b32.xlu0 %v8379_v21, %s7354_s18  ;;  %v8748_v59 = vpop.permute.xlu0 %2797 }
 0x4d0   : > { %10982 = vst [vmem:[#allocation70_spill] sm:$0xff] %v8748_v59  ;;  %v8750_v3 = vpop.permute.xlu1 %3461 }
 0x4d1   : > { %10983 = vst [vmem:[#allocation71_spill] sm:$0xff] %v8750_v3 }
 0x4d3   : > { %v8752_v10 = vpop.permute.xlu0 %3463 }
 0x4d4   : > { %10984 = vst [vmem:[#allocation72_spill] sm:$0xff] %v8752_v10  ;;  %v8754_v21 = vpop.permute.xlu1 %3447 }
 0x4d5   : > { %10985 = vst [vmem:[#allocation73_spill] sm:$0xff] %v8754_v21 }
 0x4d7   : > { %v8756_v55 = vpop.permute.xlu0 %3449 }
 0x4d8   : > { %10986 = vst [vmem:[#allocation74_spill] sm:$0xff] %v8756_v55  ;;  %v8758_v7 = vpop.permute.xlu1 %2799 }
 0x4d9   : > { %10987 = vst [vmem:[#allocation75_spill] sm:$0xff] %v8758_v7 }
 0x4db   : > { %v8760_v20 = vpop.permute.xlu0 %2801 }
 0x4dc   : > { %10988 = vst [vmem:[#allocation76_spill] sm:$0xff] %v8760_v20  ;;  %v8762_v2 = vpop.permute.xlu1 %3465 }
 0x4dd   : > { %10989 = vst [vmem:[#allocation77_spill] sm:$0xff] %v8762_v2 }
 0x4df   : > { %v8764_v33 = vpop.permute.xlu0 %3467 }
 0x4e0   : > { %10990 = vst [vmem:[#allocation78_spill] sm:$0xff] %v8764_v33  ;;  %v8766_v57 = vpop.permute.xlu1 %3451 }
 0x4e1   : > { %10991 = vst [vmem:[#allocation79_spill] sm:$0xff] %v8766_v57 }
 0x4e3   : > { %v8768_v1 = vpop.permute.xlu0 %3453 }
 0x4e4   : > { %10992 = vst [vmem:[#allocation80_spill] sm:$0xff] %v8768_v1  ;;  %v8770_v59 = vpop.permute.xlu1 %2803 }
 0x4e5   : > { %10993 = vst [vmem:[#allocation81_spill] sm:$0xff] %v8770_v59 }
 0x4e7   : > { %v8772_v3 = vpop.permute.xlu0 %2805 }
 0x4e8   : > { %10994 = vst [vmem:[#allocation82_spill] sm:$0xff] %v8772_v3  ;;  %v8774_v10 = vpop.permute.xlu1 %3469 }
 0x4e9   : > { %10995 = vst [vmem:[#allocation83_spill] sm:$0xff] %v8774_v10 }
 0x4ec   : > { %v8778_v2 = vpop.permute.xlu1 %3455 }
 0x50e   : > { %v1768_v21 = vpop.xlane.xlu0 %1767 }
 0x50f   : > { %v1814_v55 = vsub.f32 %v8580_v6, %v1768_v21  ;;  %v1815_v7 = vsub.f32 %v8582_v4, %v1768_v21 }
 0x511   : > { %v1846_v20 = vmul.f32 1.442695, %v1814_v55  ;;  %v1848_v26 = vmul.f32 1.442695, %v1815_v7 }
 0x512   : > { %v1771_v33 = vpop.xlane.xlu0 %1770 }
 0x513   : > { %6585 = vpow2.f32 %v1846_v20  ;;  %v1816_v57 = vsub.f32 %v8584_v22, %v1771_v33  ;;  %v1817_v1 = vsub.f32 %v8588_v28, %v1771_v33 }
 0x514   : > { %6587 = vpow2.f32 %v1848_v26 }
 0x515   : > { %v1850_v59 = vmul.f32 1.442695, %v1816_v57  ;;  %v1852_v3 = vmul.f32 1.442695, %v1817_v1 }
 0x516   : > { %v1774_v39 = vpop.xlane.xlu1 %1773 }
 0x517   : > { %6589 = vpow2.f32 %v1850_v59  ;;  %v1818_v10 = vsub.f32 %v8596_v53, %v1774_v39  ;;  %v1819_v6 = vsub.f32 %v8598_v31, %v1774_v39 }
 0x518   : > { %6591 = vpow2.f32 %v1852_v3 }
 0x519   : > { %v1854_v4 = vmul.f32 1.442695, %v1818_v10  ;;  %v1856_v7 = vmul.f32 1.442695, %v1819_v6 }
 0x51a   : > { %v1777_v55 = vpop.xlane.xlu1 %1776 }
 0x51b   : > { %6593 = vpow2.f32 %v1854_v4  ;;  %v1820_v20 = vsub.f32 %v8602_v14, %v1777_v55  ;;  %v1821_v22 = vsub.f32 %v8606_v13, %v1777_v55 }
 0x51c   : > { %6595 = vpow2.f32 %v1856_v7 }
 0x51d   : > { %v8786_v33 = vpop.eup %6585  ;;  %v1858_v57 = vmul.f32 1.442695, %v1820_v20  ;;  %v1860_v26 = vmul.f32 1.442695, %v1821_v22 }
 0x51e   : > { %v8788_v1 = vpop.eup %6587  ;;  %v1780_v59 = vpop.xlane.xlu0 %1779 }
 0x51f   : > { %6597 = vpow2.f32 %v1858_v57  ;;  %v1822_v39 = vsub.f32 %v8614_v8, %v1780_v59  ;;  %v1823_v10 = vsub.f32 %v8616_v19, %v1780_v59  ;;  %v1910_v28 = vadd.f32 %v8788_v1, %v8786_v33 }
 0x520   : > { %6599 = vpow2.f32 %v1860_v26  ;;  %v1783_v53 = vpop.xlane.xlu1 %1782 }
 0x521   : > { %v8794_v31 = vpop.eup %6589  ;;  %v1862_v14 = vmul.f32 1.442695, %v1822_v39  ;;  %v1864_v13 = vmul.f32 1.442695, %v1823_v10  ;;  %v1824_v3 = vsub.f32 %v8620_v18, %v1783_v53  ;;  %v1825_v21 = vsub.f32 %v8624_v44, %v1783_v53  ;;  %1911 = vadd.xlane.f32.xlu0 %v1910_v28 }
 0x522   : > { %v8798_v6 = vpop.eup %6591 }
 0x523   : > { %6601 = vpow2.f32 %v1862_v14  ;;  %v1866_v8 = vmul.f32 1.442695, %v1824_v3  ;;  %v1868_v4 = vmul.f32 1.442695, %v1825_v21  ;;  %v1913_v19 = vadd.f32 %v8798_v6, %v8794_v31 }
 0x524   : > { %6603 = vpow2.f32 %v1864_v13 }
 0x525   : > { %v8802_v7 = vpop.eup %6593  ;;  %6605 = vpow2.f32 %v1866_v8  ;;  %1914 = vadd.xlane.f32.xlu1 %v1913_v19 }
 0x526   : > { %v8804_v55 = vpop.eup %6595  ;;  %6607 = vpow2.f32 %v1868_v4  ;;  %v1786_v18 = vpop.xlane.xlu0 %1785 }
 0x527   : > { %v1826_v44 = vsub.f32 %v8632_v15, %v1786_v18  ;;  %v1827_v20 = vsub.f32 %v8634_v25, %v1786_v18  ;;  %v1916_v22 = vadd.f32 %v8804_v55, %v8802_v7 }
 0x528   : > { %v1789_v57 = vpop.xlane.xlu1 %1788 }
 0x529   : > { %v8810_v26 = vpop.eup %6597  ;;  %v1870_v59 = vmul.f32 1.442695, %v1826_v44  ;;  %v1872_v39 = vmul.f32 1.442695, %v1827_v20  ;;  %v1828_v10 = vsub.f32 %v8636_v60, %v1789_v57  ;;  %v1829_v28 = vsub.f32 %v8640_v0, %v1789_v57  ;;  %1917 = vadd.xlane.f32.xlu0 %v1916_v22 }
 0x52a   : > { %v8814_v53 = vpop.eup %6599 }
 0x52b   : > { %6609 = vpow2.f32 %v1870_v59  ;;  %v1874_v14 = vmul.f32 1.442695, %v1828_v10  ;;  %v1876_v15 = vmul.f32 1.442695, %v1829_v28  ;;  %v1919_v25 = vadd.f32 %v8814_v53, %v8810_v26 }
 0x52c   : > { %6611 = vpow2.f32 %v1872_v39 }
 0x52d   : > { %v8818_v13 = vpop.eup %6601  ;;  %6613 = vpow2.f32 %v1874_v14  ;;  %1920 = vadd.xlane.f32.xlu1 %v1919_v25 }
 0x52e   : > { %v8820_v3 = vpop.eup %6603  ;;  %6615 = vpow2.f32 %v1876_v15  ;;  %v1792_v60 = vpop.xlane.xlu0 %1791 }
 0x52f   : > { %v8822_v21 = vpop.eup %6605  ;;  %v1830_v0 = vsub.f32 %v8648_v37, %v1792_v60  ;;  %v1831_v8 = vsub.f32 %v8650_v46, %v1792_v60  ;;  %v1922_v4 = vadd.f32 %v8820_v3, %v8818_v13 }
 0x530   : > { %v8828_v19 = vpop.eup %6607  ;;  %v1795_v18 = vpop.xlane.xlu1 %1794 }
 0x531   : > { %v1878_v44 = vmul.f32 1.442695, %v1830_v0  ;;  %v1880_v20 = vmul.f32 1.442695, %v1831_v8  ;;  %v1832_v22 = vsub.f32 %v8654_v24, %v1795_v18  ;;  %v1833_v57 = vsub.f32 %v8660_v23, %v1795_v18  ;;  %1923 = vadd.xlane.f32.xlu0 %v1922_v4 }
 0x532   : > { %v1925_v59 = vadd.f32 %v8828_v19, %v8822_v21 }
 0x533   : > { %6617 = vpow2.f32 %v1878_v44  ;;  %v1882_v37 = vmul.f32 1.442695, %v1832_v22  ;;  %v1884_v39 = vmul.f32 1.442695, %v1833_v57 }
 0x534   : > { %6619 = vpow2.f32 %v1880_v20  ;;  %1926 = vadd.xlane.f32.xlu1 %v1925_v59 }
 0x535   : > { %v8834_v46 = vpop.eup %6609  ;;  %6621 = vpow2.f32 %v1882_v37 }
 0x536   : > { %v8836_v10 = vpop.eup %6611  ;;  %6623 = vpow2.f32 %v1884_v39  ;;  %v1798_v28 = vpop.xlane.xlu0 %1797 }
 0x537   : > { %v8838_v14 = vpop.eup %6613  ;;  %v1834_v24 = vsub.f32 %v8666_v36, %v1798_v28  ;;  %v1835_v23 = vsub.f32 %v8670_v49, %v1798_v28  ;;  %v1928_v15 = vadd.f32 %v8836_v10, %v8834_v46 }
 0x538   : > { %v8844_v25 = vpop.eup %6615  ;;  %v1801_v60 = vpop.xlane.xlu1 %1800 }
 0x539   : > { %v1886_v0 = vmul.f32 1.442695, %v1834_v24  ;;  %v1888_v8 = vmul.f32 1.442695, %v1835_v23  ;;  %v1836_v4 = vsub.f32 %v8672_v62, %v1801_v60  ;;  %v1837_v18 = vsub.f32 %v8676_v56, %v1801_v60  ;;  %1929 = vadd.xlane.f32.xlu0 %v1928_v15 }
 0x53a   : > { %v1931_v44 = vadd.f32 %v8844_v25, %v8838_v14 }
 0x53b   : > { %6625 = vpow2.f32 %v1886_v0  ;;  %v1890_v36 = vmul.f32 1.442695, %v1836_v4  ;;  %v1892_v20 = vmul.f32 1.442695, %v1837_v18 }
 0x53c   : > { %6627 = vpow2.f32 %v1888_v8  ;;  %1932 = vadd.xlane.f32.xlu1 %v1931_v44 }
 0x53d   : > { %v8850_v49 = vpop.eup %6617  ;;  %6629 = vpow2.f32 %v1890_v36 }
 0x53e   : > { %v8852_v22 = vpop.eup %6619  ;;  %6631 = vpow2.f32 %v1892_v20  ;;  %v1804_v57 = vpop.xlane.xlu0 %1803 }
 0x53f   : > { %v8854_v59 = vpop.eup %6621  ;;  %v1838_v56 = vsub.f32 %v8684_v41, %v1804_v57  ;;  %v1839_v62 = vsub.f32 %v8686_v30, %v1804_v57  ;;  %v1934_v37 = vadd.f32 %v8852_v22, %v8850_v49 }
 0x540   : > { %v8860_v39 = vpop.eup %6623  ;;  %v1807_v28 = vpop.xlane.xlu1 %1806 }
 0x541   : > { %v1894_v24 = vmul.f32 1.442695, %v1838_v56  ;;  %v1896_v23 = vmul.f32 1.442695, %v1839_v62  ;;  %v1840_v15 = vsub.f32 %v8688_v50, %v1807_v28  ;;  %v1841_v60 = vsub.f32 %v8694_v48, %v1807_v28  ;;  %1935 = vadd.xlane.f32.xlu1 %v1934_v37 }
 0x542   : > { %v1937_v0 = vadd.f32 %v8860_v39, %v8854_v59 }
 0x543   : > { %6633 = vpow2.f32 %v1894_v24  ;;  %v1898_v41 = vmul.f32 1.442695, %v1840_v15  ;;  %v1900_v8 = vmul.f32 1.442695, %v1841_v60 }
 0x544   : > { %6635 = vpow2.f32 %v1896_v23  ;;  %1938 = vadd.xlane.f32.xlu0 %v1937_v0 }
 0x545   : > { %v8866_v30 = vpop.eup %6625  ;;  %6637 = vpow2.f32 %v1898_v41 }
 0x546   : > { %v8868_v4 = vpop.eup %6627  ;;  %6639 = vpow2.f32 %v1900_v8  ;;  %v1810_v28 = vpop.xlane.xlu0 %1809 }
 0x547   : > { %v8870_v18 = vpop.eup %6629  ;;  %v1940_v50 = vadd.f32 %v8868_v4, %v8866_v30  ;;  %v1842_v23 = vsub.f32 %v8700_v29, %v1810_v28  ;;  %v1843_v15 = vsub.f32 %v8704_v17, %v1810_v28 }
 0x548   : > { %v8874_v48 = vpop.eup %6631  ;;  %v1813_v24 = vpop.xlane.xlu1 %1812 }
 0x549   : > { %1941 = vadd.xlane.f32.xlu1 %v1940_v50  ;;  %v1943_v44 = vadd.f32 %v8874_v48, %v8870_v18  ;;  %v1844_v60 = vsub.f32 %v8706_v12, %v1813_v24  ;;  %v1845_v0 = vsub.f32 %v8712_v34, %v1813_v24  ;;  %v1902_v41 = vmul.f32 1.442695, %v1842_v23 }
 0x54a   : > { %v1904_v8 = vmul.f32 1.442695, %v1843_v15 }
 0x54b   : > { %1944 = vadd.xlane.f32.xlu0 %v1943_v44  ;;  %v1906_v50 = vmul.f32 1.442695, %v1844_v60  ;;  %v1908_v44 = vmul.f32 1.442695, %v1845_v0  ;;  %6641 = vpow2.f32 %v1902_v41  ;;  %v10997_v60 = vld [vmem:[#allocation27_spill] sm:$0xff] }
 0x54c   : > { %6643 = vpow2.f32 %v1904_v8 }
 0x54d   : > { %v8878_v36 = vpop.eup %6633  ;;  %6645 = vpow2.f32 %v1906_v50 }
 0x54e   : > { %v8880_v20 = vpop.eup %6635  ;;  %6647 = vpow2.f32 %v1908_v44 }
 0x54f   : > { %v8882_v57 = vpop.eup %6637  ;;  %v1946_v56 = vadd.f32 %v8880_v20, %v8878_v36 }
 0x550   : > { %v8886_v62 = vpop.eup %6639 }
 0x551   : > { %1947 = vadd.xlane.f32.xlu1 %v1946_v56  ;;  %v1949_v37 = vadd.f32 %v8886_v62, %v8882_v57  ;;  %v7001_v56 = vld [vmem:[%s8296_s30] sm:$0xff] }
 0x553   : > { %1950 = vadd.xlane.f32.xlu0 %v1949_v37  ;;  %v8924_v37 = vld [vmem:[#allocation2 + $0x10] sm:$0xff] }
 0x562   : > { %3473 = vrot.lane.b32.xlu1 %v8393_v54, %s7354_s18 }
 0x569   : > { %3457 = vrot.lane.b32.xlu0 %v8371_v63, %s7354_s18  ;;  %v8898_v63 = vpop.eup %6641 }
 0x56a   : > { %v8900_v54 = vpop.eup %6643 }
 0x56b   : > { %v8902_v29 = vpop.eup %6645  ;;  %v1952_v12 = vadd.f32 %v8900_v54, %v8898_v63 }
 0x56c   : > { %v8904_v17 = vpop.eup %6647 }
 0x56d   : > { %v1955_v34 = vadd.f32 %v8904_v17, %v8902_v29 }
 0x586   : > { %1953 = vadd.xlane.f32.xlu1 %v1952_v12 }
 0x588   : > { %1956 = vadd.xlane.f32.xlu0 %v1955_v34 }
 0x597   : > { %3429 = vrot.lane.b32.xlu1 %v8421_v58, %s7354_s18  ;;  %v8928_v58 = vpop.permute.xlu0 %3471 }
 0x59b   : > { %3433 = vrot.lane.b32.xlu1 %v8445_v5, %s7354_s18 }
 0x59e   : > { %3427 = vrot.lane.b32.xlu0 %v7001_v56, %s7354_s18 }
 0x59f   : > { %3437 = vrot.lane.b32.xlu1 %v8465_v61, %s7354_s18  ;;  %v7003_v61 = vld [vmem:[#allocation2 + $0xd0] sm:$0xff] }
 0x5a2   : > { %3431 = vrot.lane.b32.xlu0 %v8424_v51, %s7354_s18  ;;  %v8934_v51 = vpop.permute.xlu1 %2807 }
 0x5a3   : > { %3441 = vrot.lane.b32.xlu1 %v8491_v11, %s7354_s18  ;;  %v7004_v11 = vld [vmem:[#allocation2 + $0xe8] sm:$0xff] }
 0x5a6   : > { %3435 = vrot.lane.b32.xlu0 %v8448_v16, %s7354_s18 }
 0x5a7   : > { %2648 = vrot.lane.b32.xlu1 %v8924_v37, %s7352_s8 }
 0x5aa   : > { %3439 = vrot.lane.b32.xlu0 %v8470_v47, %s7354_s18 }
 0x5ab   : > { %2650 = vrot.lane.b32.xlu1 %v8323_v42, %s7352_s8 }
 0x5ae   : > { %v1912_v5 = vpop.xlane.xlu0 %1911  ;;  %2664 = vrot.lane.b32.xlu0 %v7003_v61, %s7352_s8 }
 0x5af   : > { %2668 = vrot.lane.b32.xlu1 %v8329_v43, %s7352_s8  ;;  %6649 = vrcp.f32 %v1912_v5  ;;  %v7005_v5 = vld [vmem:[#allocation2 + $0x118] sm:$0xff] }
 0x5b2   : > { %v1915_v16 = vpop.xlane.xlu1 %1914  ;;  %2666 = vrot.lane.b32.xlu0 %v7004_v11, %s7352_s8 }
 0x5b3   : > { %6651 = vrcp.f32 %v1915_v16  ;;  %2652 = vrot.lane.b32.xlu1 %v8335_v45, %s7352_s8 }
 0x5b6   : > { %v1918_v47 = vpop.xlane.xlu0 %1917  ;;  %2670 = vrot.lane.b32.xlu0 %v8340_v38, %s7352_s8 }
 0x5b7   : > { %2654 = vrot.lane.b32.xlu1 %v8349_v9, %s7352_s8  ;;  %6653 = vrcp.f32 %v1918_v47 }
 0x5b9   : > { %v6650_v43 = vpop.eup %6649 }
 0x5ba   : > { %v1921_v42 = vpop.xlane.xlu1 %1920  ;;  %2674 = vrot.lane.b32.xlu0 %v8374_v52, %s7352_s8  ;;  %v1975_v45 = vmul.f32 %v6650_v43, %v8788_v1  ;;  %v1974_v38 = vmul.f32 %v6650_v43, %v8786_v33  ;;  %v2216_v33 = vsel %vm1580_vm0, %v8560_v32, 0  ;;  %v10998_v32 = vld [vmem:[#allocation24_spill] sm:$0xff]  ;;  %v7006_v43 = vld [vmem:[#allocation2 + $0x148] sm:$0xff] }
 0x5bb   : > { %6655 = vrcp.f32 %v1921_v42  ;;  %2672 = vrot.lane.b32.xlu1 %v8356_v40, %s7352_s8 }
 0x5bd   : > { %v6652_v28 = vpop.eup %6651 }
 0x5be   : > { %v1924_v24 = vpop.xlane.xlu0 %1923  ;;  %v1977_v23 = vmul.f32 %v6652_v28, %v8798_v6  ;;  %v1976_v9 = vmul.f32 %v6652_v28, %v8794_v31  ;;  %2678 = vrot.lane.b32.xlu0 %v8400_v35, %s7352_s8  ;;  %v10996_v31 = vld [vmem:[#allocation23_spill] sm:$0xff] }
 0x5bf   : > { %2656 = vrot.lane.b32.xlu1 %v8365_v27, %s7352_s8  ;;  %6657 = vrcp.f32 %v1924_v24 }
 0x5c0   : > { %v2007_v52 = vpack.c.bf16 %v1977_v23, %v1975_v45  ;;  %v2006_v15 = vpack.c.bf16 %v1976_v9, %v1974_v38  ;;  %v11002_v45 = vld [vmem:[#allocation26_spill] sm:$0xff] }
 0x5c1   : > { %v1927_v40 = vpop.xlane.xlu1 %1926  ;;  %v6654_v1 = vpop.eup %6653 }
 0x5c2   : > { %6659 = vrcp.f32 %v1927_v40  ;;  %2054 = vmatprep.mubr.bf16.mxu1 %v2007_v52  ;;  %3298 = vrot.lane.b32.xlu0 %v7003_v61, %s7353_s23  ;;  %v1979_v0 = vmul.f32 %v6654_v1, %v8804_v55  ;;  %v1978_v8 = vmul.f32 %v6654_v1, %v8802_v7  ;;  %v10999_v55 = vld [vmem:[#allocation28_spill] sm:$0xff]  ;;  %v11001_v61 = vld [vmem:[#allocation29_spill] sm:$0xff] }
 0x5c3   : > { %2055 = vmatmul.mubr.bf16.vlgmr.msra.gmra.mrb[0].mxu1 %v2006_v15  ;;  %2658 = vrot.lane.b32.xlu1 %v10996_v31, %s7352_s8  ;;  %v2219_v7 = vsel %vm1580_vm0, %v10999_v55, 0  ;;  %v7007_v31 = vld [vmem:[#allocation2 + $0x28] sm:$0xff]  ;;  %v11007_v55 = vld [vmem:[#allocation34_spill] sm:$0xff] }
 0x5c4   : > { %5660 = vmatpush3.bf16.xpose.msra.mxu1 %v2216_v33 }
 0x5c5   : > { %v6656_v6 = vpop.eup %6655  ;;  %6132 = vmatprep.subr.msk.bf16.mxu1 %vm1580_vm0, %v10997_v60 }
 0x5c6   : > { %v1930_v27 = vpop.xlane.xlu0 %1929  ;;  %v1981_v41 = vmul.f32 %v6656_v6, %v8814_v53  ;;  %v1980_v50 = vmul.f32 %v6656_v6, %v8810_v26  ;;  %3300 = vrot.lane.b32.xlu0 %v7004_v11, %s7353_s23  ;;  %v11000_v26 = vld [vmem:[#allocation25_spill] sm:$0xff] }
 0x5c7   : > { %2676 = vrot.lane.b32.xlu1 %v10998_v32, %s7352_s8  ;;  %6661 = vrcp.f32 %v1930_v27  ;;  %v11005_v27 = vld [vmem:[#allocation32_spill] sm:$0xff] }
 0x5c8   : > { %v2009_v44 = vpack.c.bf16 %v1981_v41, %v1979_v0  ;;  %v2008_v12 = vpack.c.bf16 %v1980_v50, %v1978_v8  ;;  %v11006_v0 = vld [vmem:[#allocation33_spill] sm:$0xff] }
 0x5c9   : > { %v1933_v34 = vpop.xlane.xlu1 %1932  ;;  %v6658_v56 = vpop.eup %6657 }
 0x5ca   : > { %6663 = vrcp.f32 %v1933_v34  ;;  %2062 = vmatprep.mubr.bf16.mxu1 %v2009_v44  ;;  %3304 = vrot.lane.b32.xlu0 %v7005_v5, %s7353_s23  ;;  %v1983_v16 = vmul.f32 %v6658_v56, %v8820_v3  ;;  %v1982_v24 = vmul.f32 %v6658_v56, %v8818_v13  ;;  %v11003_v3 = vld [vmem:[#allocation30_spill] sm:$0xff] }
 0x5cb   : > { %2063 = vmatmul.mubr.bf16.gmra.mrb[4].mxu1 %v2008_v12  ;;  %2660 = vrot.lane.b32.xlu1 %v11000_v26, %s7352_s8  ;;  %v7009_v12 = vld [vmem:[#allocation2 + $0x40] sm:$0xff] }
 0x5cc   : > { %v6660_v53 = vpop.eup %6659  ;;  %5662 = vmatpush3.bf16.xpose.msra.mxu1 %v2219_v7  ;;  %v11008_v7 = vld [vmem:[#allocation37_spill] sm:$0xff] }
 0x5cd   : > { %6133 = vmatprep.subr.msk.bf16.mxu1 %vm1580_vm0, %v11001_v61  ;;  %v1985_v11 = vmul.f32 %v6660_v53, %v8828_v19  ;;  %v1984_v47 = vmul.f32 %v6660_v53, %v8822_v21  ;;  %v2222_v21 = vsel %vm1580_vm0, %v11003_v3, 0  ;;  %v11004_v19 = vld [vmem:[#allocation31_spill] sm:$0xff] }
 0x5ce   : > { %v1936_v42 = vpop.xlane.xlu1 %1935  ;;  %3308 = vrot.lane.b32.xlu0 %v7006_v43, %s7353_s23 }
 0x5cf   : > { %v2011_v28 = vpack.c.bf16 %v1985_v11, %v1983_v16  ;;  %2662 = vrot.lane.b32.xlu1 %v11002_v45, %s7352_s8  ;;  %6665 = vrcp.f32 %v1936_v42  ;;  %v2010_v38 = vpack.c.bf16 %v1984_v47, %v1982_v24  ;;  %v7011_v11 = vld [vmem:[#allocation2 + $0x130] sm:$0xff] }
 0x5d0   : > { %v7012_v45 = vld [vmem:[#allocation2 + $0x70] sm:$0xff] }
 0x5d1   : > { %v1939_v23 = vpop.xlane.xlu0 %1938  ;;  %2070 = vmatprep.mubr.bf16.mxu1 %v2011_v28  ;;  %v6662_v9 = vpop.eup %6661  ;;  %v11009_v28 = vld [vmem:[#allocation35_spill] sm:$0xff] }
 0x5d2   : > { %6667 = vrcp.f32 %v1939_v23  ;;  %3312 = vrot.lane.b32.xlu0 %v8400_v35, %s7353_s23  ;;  %v1987_v52 = vmul.f32 %v6662_v9, %v8836_v10  ;;  %v1986_v33 = vmul.f32 %v6662_v9, %v8834_v46  ;;  %v2225_v10 = vsel %vm1580_vm0, %v11005_v27, 0  ;;  %v7013_v9 = vld [vmem:[#allocation2 + $0x88] sm:$0xff] }
 0x5d3   : > { %2071 = vmatmul.mubr.bf16.gmra.mrb[8].mxu1 %v2010_v38  ;;  %3282 = vrot.lane.b32.xlu1 %v8924_v37, %s7353_s23  ;;  %v2231_v24 = vsel %vm1580_vm0, %v11009_v28, 0  ;;  %v11037_v28 = vld [vmem:[#allocation62_spill] sm:$0xff] }
 0x5d4   : > { %v6664_v13 = vpop.eup %6663  ;;  %5664 = vmatpush3.bf16.xpose.msra.mxu1 %v2222_v21  ;;  %v11011_v21 = vld [vmem:[#allocation36_spill] sm:$0xff] }
 0x5d5   : > { %6134 = vmatprep.subr.msk.bf16.mxu1 %vm1580_vm0, %v11004_v19  ;;  %v1989_v15 = vmul.f32 %v6664_v13, %v8844_v25  ;;  %v1988_v40 = vmul.f32 %v6664_v13, %v8838_v14  ;;  %v7008_v25 = vld [vmem:[#allocation2 + $0x100] sm:$0xff]  ;;  %v2234_v13 = vsel %vm1580_vm0, %v11011_v21, 0  ;;  %v11045_v21 = vld [vmem:[#allocation72_spill] sm:$0xff] }
 0x5d6   : > { %v1942_v1 = vpop.xlane.xlu1 %1941 }
 0x5d7   : > { %v2013_v35 = vpack.c.bf16 %v1989_v15, %v1987_v52  ;;  %3284 = vrot.lane.b32.xlu1 %v7007_v31, %s7353_s23  ;;  %6669 = vrcp.f32 %v1942_v1  ;;  %v2012_v6 = vpack.c.bf16 %v1988_v40, %v1986_v33  ;;  %v7016_v52 = vld [vmem:[#allocation2 + $0xb8] sm:$0xff]  ;;  %v11014_v15 = vld [vmem:[#allocation42_spill] sm:$0xff] }
 0x5d8   : > { %v1945_v37 = vpop.xlane.xlu0 %1944 }
 0x5d9   : > { %2078 = vmatprep.mubr.bf16.mxu1 %v2013_v35  ;;  %v6666_v60 = vpop.eup %6665  ;;  %6671 = vrcp.f32 %v1945_v37 }
 0x5da   : > { %v1991_v46 = vmul.f32 %v6666_v60, %v8852_v22  ;;  %v1990_v44 = vmul.f32 %v6666_v60, %v8850_v49  ;;  %v2228_v22 = vsel %vm1580_vm0, %v11007_v55, 0  ;;  %v11026_v55 = vld [vmem:[#allocation52_spill] sm:$0xff] }
 0x5db   : > { %2079 = vmatmul.mubr.bf16.gmra.mrb[12].mxu1 %v2012_v6  ;;  %3302 = vrot.lane.b32.xlu1 %v7008_v25, %s7353_s23 }
 0x5dc   : > { %v6668_v14 = vpop.eup %6667  ;;  %5666 = vmatpush3.bf16.xpose.msra.mxu1 %v2225_v10 }
 0x5dd   : > { %6135 = vmatprep.subr.msk.bf16.mxu1 %vm1580_vm0, %v11006_v0  ;;  %v1993_v41 = vmul.f32 %v6668_v14, %v8860_v39  ;;  %v1992_v8 = vmul.f32 %v6668_v14, %v8854_v59  ;;  %v7010_v39 = vld [vmem:[#allocation2 + $0x58] sm:$0xff]  ;;  %v11015_v0 = vld [vmem:[#allocation40_spill] sm:$0xff] }
 0x5de   : > { %v1948_v50 = vpop.xlane.xlu1 %1947 }
 0x5df   : > { %6673 = vrcp.f32 %v1948_v50  ;;  %v2015_v32 = vpack.c.bf16 %v1993_v41, %v1991_v46  ;;  %3286 = vrot.lane.b32.xlu1 %v7009_v12, %s7353_s23  ;;  %v2014_v56 = vpack.c.bf16 %v1992_v8, %v1990_v44  ;;  %v11016_v46 = vld [vmem:[#allocation43_spill] sm:$0xff]  ;;  %v11020_v8 = vld [vmem:[#allocation46_spill] sm:$0xff]  ;;  %v11021_v50 = vld [vmem:[#allocation48_spill] sm:$0xff] }
 0x5e0   : > { %v1951_v34 = vpop.xlane.xlu0 %1950  ;;  %v2866_v41 = vsel %vm1580_vm0, %v11016_v46, 0  ;;  %v11023_v12 = vld [vmem:[#allocation51_spill] sm:$0xff] }
 0x5e1   : > { %6675 = vrcp.f32 %v1951_v34  ;;  %2086 = vmatprep.mubr.bf16.mxu1 %v2015_v32  ;;  %v6670_v5 = vpop.eup %6669  ;;  %v11022_v32 = vld [vmem:[#allocation49_spill] sm:$0xff] }
 0x5e2   : > { %v1995_v49 = vmul.f32 %v6670_v5, %v8868_v4  ;;  %v1994_v16 = vmul.f32 %v6670_v5, %v8866_v30  ;;  %v11010_v30 = vld [vmem:[#allocation39_spill] sm:$0xff]  ;;  %v9040_v40 = vpop.permute.xlu1 %3473  ;;  %v2872_v44 = vsel %vm1580_vm0, %v11022_v32, 0  ;;  %v11024_v34 = vld [vmem:[#allocation53_spill] sm:$0xff] }
 0x5e3   : > { %2087 = vmatmul.mubr.bf16.gmra.mrb[16].mxu1 %v2014_v56  ;;  %3288 = vrot.lane.b32.xlu1 %v7010_v39, %s7353_s23  ;;  %v6672_v59 = vpop.eup %6671  ;;  %v11025_v56 = vld [vmem:[#allocation50_spill] sm:$0xff]  ;;  %v11028_v39 = vld [vmem:[#allocation55_spill] sm:$0xff] }
 0x5e4   : > { %5668 = vmatpush3.bf16.xpose.msra.mxu1 %v2228_v22  ;;  %v1997_v26 = vmul.f32 %v6672_v59, %v8874_v48  ;;  %v1996_v53 = vmul.f32 %v6672_v59, %v8870_v18  ;;  %v9042_v1 = vpop.permute.xlu0 %3457  ;;  %v2875_v5 = vsel %vm1580_vm0, %v11025_v56, 0  ;;  %v11027_v22 = vld [vmem:[#allocation54_spill] sm:$0xff]  ;;  %v2878_v59 = vsel %vm1580_vm0, %v11028_v39, 0 }
 0x5e5   : > { %6136 = vmatprep.subr.msk.bf16.mxu1 %vm1580_vm0, %v11008_v7  ;;  %v11029_v7 = vld [vmem:[#allocation57_spill] sm:$0xff] }
 0x5e6   : > { %v2017_v61 = vpack.c.bf16 %v1997_v26, %v1995_v49  ;;  %v2016_v42 = vpack.c.bf16 %v1996_v53, %v1994_v16  ;;  %v11030_v49 = vld [vmem:[#allocation59_spill] sm:$0xff]  ;;  %v11031_v26 = vld [vmem:[#allocation56_spill] sm:$0xff] }
 0x5e7   : > { %3306 = vrot.lane.b32.xlu1 %v7011_v11, %s7353_s23  ;;  %v2881_v53 = vsel %vm1580_vm0, %v11031_v26, 0  ;;  %v11033_v16 = vld [vmem:[#allocation60_spill] sm:$0xff]  ;;  %v11034_v11 = vld [vmem:[#allocation61_spill] sm:$0xff] }
 0x5e8   : > { %2094 = vmatprep.mubr.bf16.mxu1 %v2017_v61  ;;  %v11032_v61 = vld [vmem:[#allocation58_spill] sm:$0xff] }
 0x5e9   : > { %v6674_v47 = vpop.eup %6673 }
 0x5ea   : > { %v1999_v4 = vmul.f32 %v6674_v47, %v8880_v20  ;;  %v1998_v38 = vmul.f32 %v6674_v47, %v8878_v36  ;;  %v7014_v20 = vld [vmem:[#allocation2 + $0x160] sm:$0xff]  ;;  %v2884_v47 = vsel %vm1580_vm0, %v11034_v11, 0 }
 0x5eb   : > { %v6676_v43 = vpop.eup %6675  ;;  %2095 = vmatmul.mubr.bf16.gmra.mrb[20].mxu1 %v2016_v42  ;;  %3290 = vrot.lane.b32.xlu1 %v7012_v45, %s7353_s23  ;;  %v11013_v36 = vld [vmem:[#allocation38_spill] sm:$0xff]  ;;  %v11035_v42 = vld [vmem:[#allocation63_spill] sm:$0xff]  ;;  %v11038_v45 = vld [vmem:[#allocation64_spill] sm:$0xff] }
 0x5ec   : > { %5670 = vmatpush3.bf16.xpose.msra.mxu1 %v2231_v24  ;;  %v2001_v18 = vmul.f32 %v6676_v43, %v8886_v62  ;;  %v2000_v48 = vmul.f32 %v6676_v43, %v8882_v57  ;;  %v11012_v62 = vld [vmem:[#allocation41_spill] sm:$0xff]  ;;  %v7015_v57 = vld [vmem:[#allocation2 + $0xa0] sm:$0xff]  ;;  %v2237_v19 = vsel %vm1580_vm0, %v11013_v36, 0  ;;  %v2887_v24 = vsel %vm1580_vm0, %v11037_v28, 0 }
 0x5ed   : > { %6137 = vmatprep.subr.msk.bf16.mxu1 %vm1580_vm0, %v11010_v30  ;;  %v11036_v43 = vld [vmem:[#allocation65_spill] sm:$0xff] }
 0x5ee   : > { %v2019_v23 = vpack.c.bf16 %v2001_v18, %v1999_v4  ;;  %v2018_v3 = vpack.c.bf16 %v2000_v48, %v1998_v38  ;;  %v11039_v4 = vld [vmem:[#allocation66_spill] sm:$0xff]  ;;  %v11040_v18 = vld [vmem:[#allocation67_spill] sm:$0xff]  ;;  %v11041_v48 = vld [vmem:[#allocation69_spill] sm:$0xff] }
 0x5ef   : > { %3292 = vrot.lane.b32.xlu1 %v7013_v9, %s7353_s23  ;;  %v3500_v30 = vsel %vm1580_vm0, %v11040_v18, 0  ;;  %v11043_v38 = vld [vmem:[#allocation68_spill] sm:$0xff] }
 0x5f0   : > { %2102 = vmatprep.mubr.bf16.mxu1 %v2019_v23  ;;  %v11042_v23 = vld [vmem:[#allocation71_spill] sm:$0xff]  ;;  %v3503_v9 = vsel %vm1580_vm0, %v11043_v38, 0 }
 0x5f3   : > { %2103 = vmatmul.mubr.bf16.gmra.mrb[24].mxu1 %v2018_v3  ;;  %3310 = vrot.lane.b32.xlu1 %v7014_v20, %s7353_s23  ;;  %v11044_v3 = vld [vmem:[#allocation70_spill] sm:$0xff] }
 0x5f4   : > { %5672 = vmatpush3.bf16.xpose.msra.mxu1 %v2234_v13  ;;  %v11046_v13 = vld [vmem:[#allocation73_spill] sm:$0xff] }
 0x5f5   : > { %6138 = vmatprep.subr.msk.bf16.mxu1 %vm1580_vm0, %v11012_v62  ;;  %v3506_v20 = vsel %vm1580_vm0, %v11046_v13, 0  ;;  %v11047_v62 = vld [vmem:[#allocation75_spill] sm:$0xff] }
 0x5f7   : > { %3294 = vrot.lane.b32.xlu1 %v7015_v57, %s7353_s23  ;;  %v11048_v57 = vld [vmem:[#allocation77_spill] sm:$0xff] }
 0x5fb   : > { %3296 = vrot.lane.b32.xlu1 %v7016_v52, %s7353_s23 }
 0x5fc   : > { %5674 = vmatpush3.bf16.xpose.msra.mxu1 %v2237_v19  ;;  %v11049_v19 = vld [vmem:[#allocation74_spill] sm:$0xff] }
 0x5fd   : > { %6139 = vmatprep.subr.msk.bf16.mxu1 %vm1580_vm0, %v11014_v15  ;;  %v3509_v52 = vsel %vm1580_vm0, %v11049_v19, 0  ;;  %v11050_v15 = vld [vmem:[#allocation76_spill] sm:$0xff] }
 0x613   : > { %v1954_v35 = vpop.xlane.xlu1 %1953 }
 0x614   : > { %6677 = vrcp.f32 %v1954_v35 }
 0x615   : > { %v1957_v33 = vpop.xlane.xlu0 %1956 }
 0x616   : > { %6679 = vrcp.f32 %v1957_v33  ;;  %v11051_v33 = vld [vmem:[#allocation78_spill] sm:$0xff] }
 0x617   : > { %v9146_v35 = vpop.permute.xlu1 %3429 }
 0x619   : > { %v9138_v36 = vpop.permute.xlu0 %3427 }
 0x61e   : > { %v6678_v31 = vpop.eup %6677 }
 0x61f   : > { %v2003_v6 = vmul.f32 %v6678_v31, %v8900_v54  ;;  %v2002_v27 = vmul.f32 %v6678_v31, %v8898_v63  ;;  %v11017_v54 = vld [vmem:[#allocation45_spill] sm:$0xff]  ;;  %v11018_v63 = vld [vmem:[#allocation47_spill] sm:$0xff]  ;;  %v9150_v31 = vpop.permute.xlu0 %3431 }
 0x620   : > { %v6680_v37 = vpop.eup %6679 }
 0x621   : > { %v2005_v60 = vmul.f32 %v6680_v37, %v8904_v17  ;;  %v2004_v10 = vmul.f32 %v6680_v37, %v8902_v29  ;;  %v11019_v29 = vld [vmem:[#allocation44_spill] sm:$0xff]  ;;  %v9152_v37 = vpop.permute.xlu1 %3433 }
 0x622   : > { %v2869_v17 = vsel %vm1580_vm0, %v11019_v29, 0 }
 0x623   : > { %v2021_v25 = vpack.c.bf16 %v2005_v60, %v2003_v6  ;;  %v2020_v14 = vpack.c.bf16 %v2004_v10, %v2002_v27  ;;  %v9154_v6 = vpop.permute.xlu0 %3435  ;;  %v11052_v60 = vld [vmem:[#allocation79_spill] sm:$0xff]  ;;  %v11053_v10 = vld [vmem:[#allocation81_spill] sm:$0xff] }
 0x624   : > { %v3512_v27 = vsel %vm1580_vm0, %v11052_v60, 0 }
 0x625   : > { %2110 = vmatprep.mubr.bf16.mxu1 %v2021_v25  ;;  %v9162_v25 = vpop.permute.xlu1 %3437 }
 0x626   : > { %2111 = vmatmul.mubr.bf16.gmra.mrb[28].mxu1 %v2020_v14  ;;  %v11054_v14 = vld [vmem:[#allocation83_spill] sm:$0xff] }
 0x627   : > { %5675 = vmatprep.mubr.msk.bf16.mxu1 %vm1580_vm0, %v11015_v0 }
 0x629   : > { %v9168_v46 = vpop.permute.xlu1 %3441 }
 0x62e   : > { %5676 = vmatmul.mubr.msk.bf16.vlgmr.msra.gmra.mrb[32].mxu1 %vm1580_vm0, %v11015_v0  ;;  %v9166_v0 = vpop.permute.xlu0 %3439 }
 0x62f   : > { %5756 = vmatpush3.bf16.xpose.msra.mxu1 %v2866_v41  ;;  %5677 = vmatprep.mubr.msk.bf16.mxu1 %vm1580_vm0, %v11017_v54 }
 0x630   : > { %6140 = vmatprep.subr.msk.bf16.mxu1 %vm1580_vm0, %v11018_v63 }
 0x632   : > { %v2665_v41 = vpop.permute.xlu0 %2664 }
 0x633   : > { %5691 = vmatprep.subr.bf16.mxu0 %v2665_v41 }
 0x636   : > { %5678 = vmatmul.mubr.msk.bf16.gmra.mrb[36].mxu1 %vm1580_vm0, %v11017_v54  ;;  %v11055_v54 = vld [vmem:[#allocation80_spill] sm:$0xff] }
 0x637   : > { %5758 = vmatpush3.bf16.xpose.msra.mxu1 %v2869_v17  ;;  %5679 = vmatprep.mubr.msk.bf16.mxu1 %vm1580_vm0, %v11020_v8  ;;  %v3515_v63 = vsel %vm1580_vm0, %v11055_v54, 0 }
 0x638   : > { %6141 = vmatprep.subr.msk.bf16.mxu1 %vm1580_vm0, %v11021_v50  ;;  %v2649_v50 = vpop.permute.xlu1 %2648 }
 0x639   : > { %5692 = vmatpush3.bf16.msra.mxu0 %v2649_v50 }
 0x63e   : > { %5680 = vmatmul.mubr.msk.bf16.gmra.mrb[40].mxu1 %vm1580_vm0, %v11020_v8  ;;  %v11056_v8 = vld [vmem:[#allocation82_spill] sm:$0xff] }
 0x63f   : > { %5760 = vmatpush3.bf16.xpose.msra.mxu1 %v2872_v44  ;;  %5681 = vmatprep.mubr.msk.bf16.mxu1 %vm1580_vm0, %v11023_v12 }
 0x640   : > { %6142 = vmatprep.subr.msk.bf16.mxu1 %vm1580_vm0, %v11024_v34  ;;  %v2667_v34 = vpop.permute.xlu0 %2666 }
 0x641   : > { %5693 = vmatprep.subr.bf16.mxu0 %v2667_v34 }
 0x646   : > { %5682 = vmatmul.mubr.msk.bf16.gmra.mrb[44].mxu1 %vm1580_vm0, %v11023_v12 }
 0x647   : > { %5762 = vmatpush3.bf16.xpose.msra.mxu1 %v2875_v5  ;;  %5683 = vmatprep.mubr.msk.bf16.mxu1 %vm1580_vm0, %v11026_v55  ;;  %v2651_v5 = vpop.permute.xlu1 %2650 }
 0x648   : > { %6143 = vmatprep.subr.msk.bf16.mxu1 %vm1580_vm0, %v11027_v22  ;;  %5694 = vmatpush3.bf16.msra.mxu0 %v2651_v5 }
 0x64e   : > { %5684 = vmatmul.mubr.msk.bf16.gmra.mrb[48].mxu1 %vm1580_vm0, %v11026_v55  ;;  %v3518_v55 = vsel %vm1580_vm0, %v8778_v2, 0 }
 0x64f   : > { %5764 = vmatpush3.bf16.xpose.msra.mxu1 %v2878_v59  ;;  %5685 = vmatprep.mubr.msk.bf16.mxu1 %vm1580_vm0, %v11029_v7 }
 0x650   : > { %6144 = vmatprep.subr.msk.bf16.mxu1 %vm1580_vm0, %v11030_v49 }
 0x656   : > { %5686 = vmatmul.mubr.msk.bf16.gmra.mrb[52].mxu1 %vm1580_vm0, %v11029_v7 }
 0x657   : > { %5766 = vmatpush3.bf16.xpose.msra.mxu1 %v2881_v53  ;;  %5687 = vmatprep.mubr.msk.bf16.mxu1 %vm1580_vm0, %v11032_v61  ;;  %v2671_v53 = vpop.permute.xlu0 %2670 }
 0x658   : > { %6145 = vmatprep.subr.msk.bf16.mxu1 %vm1580_vm0, %v11033_v16 }
 0x65e   : > { %5688 = vmatmul.mubr.msk.bf16.gmra.mrb[56].mxu1 %vm1580_vm0, %v11032_v61  ;;  %v3521_v61 = vsel %vm1580_vm0, %v9042_v1, 0 }
 0x65f   : > { %5768 = vmatpush3.bf16.xpose.msra.mxu1 %v2884_v47  ;;  %5689 = vmatprep.mubr.msk.bf16.mxu1 %vm1580_vm0, %v11035_v42 }
 0x660   : > { %6146 = vmatprep.subr.msk.bf16.mxu1 %vm1580_vm0, %v11036_v43 }
 0x666   : > { %5690 = vmatmul.mubr.msk.bf16.gmra.mrb[60].mxu1 %vm1580_vm0, %v11035_v42 }
 0x667   : > { %5770 = vmatpush3.bf16.xpose.msra.mxu1 %v2887_v24  ;;  %5771 = vmatprep.mubr.msk.bf16.mxu1 %vm1580_vm0, %v11038_v45 }
 0x668   : > { %6147 = vmatprep.subr.msk.bf16.mxu1 %vm1580_vm0, %v11039_v4 }
 0x66e   : > { %5772 = vmatmul.mubr.msk.bf16.vlgmr.msra.gmra.mrb[64].mxu1 %vm1580_vm0, %v11038_v45 }
 0x66f   : > { %5852 = vmatpush3.bf16.xpose.msra.mxu1 %v3500_v30  ;;  %5773 = vmatprep.mubr.msk.bf16.mxu1 %vm1580_vm0, %v11041_v48 }
 0x670   : > { %6148 = vmatprep.subr.msk.bf16.mxu1 %vm1580_vm0, %v11042_v23 }
 0x676   : > { %5774 = vmatmul.mubr.msk.bf16.gmra.mrb[68].mxu1 %vm1580_vm0, %v11041_v48  ;;  %v2675_v48 = vpop.permute.xlu0 %2674 }
 0x677   : > { %5854 = vmatpush3.bf16.xpose.msra.mxu1 %v3503_v9  ;;  %5775 = vmatprep.mubr.msk.bf16.mxu1 %vm1580_vm0, %v11044_v3 }
 0x678   : > { %6149 = vmatprep.subr.msk.bf16.mxu1 %vm1580_vm0, %v11045_v21 }
 0x67a   : > { %v2679_v19 = vpop.permute.xlu0 %2678 }
 0x67e   : > { %5776 = vmatmul.mubr.msk.bf16.gmra.mrb[72].mxu1 %vm1580_vm0, %v11044_v3 }
 0x67f   : > { %5856 = vmatpush3.bf16.xpose.msra.mxu1 %v3506_v20  ;;  %5777 = vmatprep.mubr.msk.bf16.mxu1 %vm1580_vm0, %v11047_v62 }
 0x680   : > { %6150 = vmatprep.subr.msk.bf16.mxu1 %vm1580_vm0, %v11048_v57 }
 0x686   : > { %5778 = vmatmul.mubr.msk.bf16.gmra.mrb[76].mxu1 %vm1580_vm0, %v11047_v62 }
 0x687   : > { %5858 = vmatpush3.bf16.xpose.msra.mxu1 %v3509_v52  ;;  %5779 = vmatprep.mubr.msk.bf16.mxu1 %vm1580_vm0, %v11050_v15 }
 0x688   : > { %6151 = vmatprep.subr.msk.bf16.mxu1 %vm1580_vm0, %v11051_v33 }
 0x68e   : > { %5780 = vmatmul.mubr.msk.bf16.gmra.mrb[80].mxu1 %vm1580_vm0, %v11050_v15 }
 0x68f   : > { %5860 = vmatpush3.bf16.xpose.msra.mxu1 %v3512_v27  ;;  %5781 = vmatprep.mubr.msk.bf16.mxu1 %vm1580_vm0, %v11053_v10 }
 0x690   : > { %6152 = vmatprep.subr.msk.bf16.mxu1 %vm1580_vm0, %v11054_v14 }
 0x696   : > { %v5611_v29 = vpop.f32.mrb[0].mxu1  ;;  %5782 = vmatmul.mubr.msk.bf16.gmra.mrb[84].mxu1 %vm1580_vm0, %v11053_v10 }
 0x697   : > { %5862 = vmatpush3.bf16.xpose.msra.mxu1 %v3515_v63  ;;  %v5612_v17 = vpop.f32.mrb[1].mxu1  ;;  %5783 = vmatprep.mubr.msk.bf16.mxu1 %vm1580_vm0, %v11056_v8  ;;  %v3299_v63 = vpop.permute.xlu0 %3298 }
 0x698   : > { %v9176_v32 = vadd.f32 %v5612_v17, %v5611_v29  ;;  %6153 = vmatprep.subr.msk.bf16.mxu1 %vm1580_vm0, %v8928_v58  ;;  %v5614_v44 = vpop.f32.mrb[2].mxu1  ;;  %v2669_v58 = vpop.permute.xlu1 %2668 }
 0x699   : > { %v5615_v12 = vpop.f32.mrb[3].mxu1  ;;  %5695 = vmatprep.subr.bf16.mxu0 %v2669_v58 }
 0x69a   : > { %11057 = vst [vmem:[#allocation23_spill] sm:$0xff] %v9176_v32  ;;  %v9180_v56 = vadd.f32 %v5615_v12, %v5614_v44 }
 0x69c   : > { %11058 = vst [vmem:[#allocation27_spill] sm:$0xff] %v9180_v56  ;;  %v2653_v2 = vpop.permute.xlu1 %2652 }
 0x69d   : > { %5696 = vmatpush3.bf16.msra.mxu0 %v2653_v2 }
 0x69e   : > { %v5617_v22 = vpop.f32.mrb[4].mxu1  ;;  %5784 = vmatmul.mubr.msk.bf16.gmra.mrb[88].mxu1 %vm1580_vm0, %v11056_v8  ;;  %5697 = vmatprep.subr.bf16.mxu0 %v2671_v53 }
 0x69f   : > { %5864 = vmatpush3.bf16.xpose.msra.mxu1 %v3518_v55  ;;  %v5618_v39 = vpop.f32.mrb[5].mxu1  ;;  %5785 = vmatprep.mubr.msk.bf16.mxu1 %vm1580_vm0, %v8934_v51 }
 0x6a0   : > { %v9188_v59 = vadd.f32 %v5618_v39, %v5617_v22  ;;  %6154 = vmatprep.subr.msk.bf16.mxu1 %vm1580_vm0, %v9040_v40  ;;  %v5620_v7 = vpop.f32.mrb[6].mxu1  ;;  %v2655_v40 = vpop.permute.xlu1 %2654 }
 0x6a1   : > { %v5621_v49 = vpop.f32.mrb[7].mxu1  ;;  %5698 = vmatpush3.bf16.msra.mxu0 %v2655_v40 }
 0x6a2   : > { %11059 = vst [vmem:[#allocation24_spill] sm:$0xff] %v9188_v59  ;;  %v9192_v26 = vadd.f32 %v5621_v49, %v5620_v7 }
 0x6a4   : > { %11060 = vst [vmem:[#allocation28_spill] sm:$0xff] %v9192_v26  ;;  %v2673_v24 = vpop.permute.xlu1 %2672 }
 0x6a5   : > { %5699 = vmatprep.subr.bf16.mxu0 %v2673_v24 }
 0x6a6   : > { %v5623_v16 = vpop.f32.mrb[8].mxu1  ;;  %5786 = vmatmul.mubr.msk.bf16.gmra.mrb[92].mxu1 %vm1580_vm0, %v8934_v51 }
 0x6a7   : > { %5866 = vmatpush3.bf16.xpose.msra.mxu1 %v3521_v61  ;;  %v5624_v11 = vpop.f32.mrb[9].mxu1  ;;  %5867 = vmatprep.mubr.msk.bf16.mxu1 %vm1580_vm0, %v9138_v36 }
 0x6a8   : > { %v9200_v47 = vadd.f32 %v5624_v11, %v5623_v16  ;;  %v5626_v42 = vpop.f32.mrb[10].mxu1  ;;  %v2657_v45 = vpop.permute.xlu1 %2656 }
 0x6a9   : > { %v5627_v43 = vpop.f32.mrb[11].mxu1  ;;  %5700 = vmatpush3.bf16.msra.mxu0 %v2657_v45 }
 0x6aa   : > { %11061 = vst [vmem:[#allocation25_spill] sm:$0xff] %v9200_v47  ;;  %v9202_v28 = vadd.f32 %v5627_v43, %v5626_v42  ;;  %5701 = vmatprep.subr.bf16.mxu0 %v2675_v48 }
 0x6ac   : > { %11062 = vst [vmem:[#allocation29_spill] sm:$0xff] %v9202_v28  ;;  %v2659_v38 = vpop.permute.xlu1 %2658 }
 0x6ad   : > { %5702 = vmatpush3.bf16.msra.mxu0 %v2659_v38 }
 0x6ae   : > { %v5629_v1 = vpop.f32.mrb[12].mxu1  ;;  %5868 = vmatmul.mubr.msk.bf16.vlgmr.msra.gmra.mrb[96].mxu1 %vm1580_vm0, %v9138_v36 }
 0x6af   : > { %v5630_v51 = vpop.f32.mrb[13].mxu1  ;;  %5869 = vmatprep.mubr.msk.bf16.mxu1 %vm1580_vm0, %v9146_v35 }
 0x6b0   : > { %v9208_v4 = vadd.f32 %v5630_v51, %v5629_v1  ;;  %v5632_v18 = vpop.f32.mrb[14].mxu1  ;;  %v2677_v21 = vpop.permute.xlu1 %2676 }
 0x6b1   : > { %v5633_v30 = vpop.f32.mrb[15].mxu1  ;;  %5703 = vmatprep.subr.bf16.mxu0 %v2677_v21 }
 0x6b2   : > { %11063 = vst [vmem:[#allocation26_spill] sm:$0xff] %v9208_v4  ;;  %v9210_v23 = vadd.f32 %v5633_v30, %v5632_v18 }
 0x6b4   : > { %11064 = vst [vmem:[#allocation30_spill] sm:$0xff] %v9210_v23  ;;  %v2661_v36 = vpop.permute.xlu1 %2660 }
 0x6b5   : > { %5704 = vmatpush3.bf16.msra.mxu0 %v2661_v36 }
 0x6b6   : > { %v5635_v9 = vpop.f32.mrb[16].mxu1  ;;  %5870 = vmatmul.mubr.msk.bf16.gmra.mrb[100].mxu1 %vm1580_vm0, %v9146_v35  ;;  %5705 = vmatprep.subr.bf16.mxu0 %v2679_v19 }
 0x6b7   : > { %v5636_v3 = vpop.f32.mrb[17].mxu1  ;;  %5871 = vmatprep.mubr.msk.bf16.mxu1 %vm1580_vm0, %v9150_v31 }
 0x6b8   : > { %v9216_v13 = vadd.f32 %v5636_v3, %v5635_v9  ;;  %v5638_v20 = vpop.f32.mrb[18].mxu1  ;;  %v2663_v35 = vpop.permute.xlu1 %2662 }
 0x6b9   : > { %v5639_v62 = vpop.f32.mrb[19].mxu1  ;;  %5706 = vmatpush3.bf16.msra.mxu0 %v2663_v35 }
 0x6ba   : > { %11065 = vst [vmem:[#allocation31_spill] sm:$0xff] %v9216_v13  ;;  %v9218_v57 = vadd.f32 %v5639_v62, %v5638_v20  ;;  %5787 = vmatprep.subr.bf16.mxu0 %v3299_v63 }
 0x6bc   : > { %11066 = vst [vmem:[#allocation32_spill] sm:$0xff] %v9218_v57 }
 0x6be   : > { %v5641_v52 = vpop.f32.mrb[20].mxu1  ;;  %5872 = vmatmul.mubr.msk.bf16.gmra.mrb[104].mxu1 %vm1580_vm0, %v9150_v31 }
 0x6bf   : > { %v5642_v15 = vpop.f32.mrb[21].mxu1  ;;  %5873 = vmatprep.mubr.msk.bf16.mxu1 %vm1580_vm0, %v9152_v37 }
 0x6c0   : > { %v9224_v33 = vadd.f32 %v5642_v15, %v5641_v52  ;;  %v5644_v60 = vpop.f32.mrb[22].mxu1 }
 0x6c1   : > { %v5645_v27 = vpop.f32.mrb[23].mxu1 }
 0x6c2   : > { %11067 = vst [vmem:[#allocation33_spill] sm:$0xff] %v9224_v33  ;;  %v9226_v10 = vadd.f32 %v5645_v27, %v5644_v60 }
 0x6c4   : > { %11068 = vst [vmem:[#allocation34_spill] sm:$0xff] %v9226_v10 }
 0x6c6   : > { %v5647_v14 = vpop.f32.mrb[24].mxu1  ;;  %5874 = vmatmul.mubr.msk.bf16.gmra.mrb[108].mxu1 %vm1580_vm0, %v9152_v37 }
 0x6c7   : > { %v5648_v41 = vpop.f32.mrb[25].mxu1  ;;  %5875 = vmatprep.mubr.msk.bf16.mxu1 %vm1580_vm0, %v9154_v6 }
 0x6c8   : > { %v9232_v31 = vadd.f32 %v5648_v41, %v5647_v14  ;;  %v5650_v54 = vpop.f32.mrb[26].mxu1 }
 0x6c9   : > { %v5651_v29 = vpop.f32.mrb[27].mxu1 }
 0x6ca   : > { %11069 = vst [vmem:[#allocation37_spill] sm:$0xff] %v9232_v31  ;;  %v9234_v17 = vadd.f32 %v5651_v29, %v5650_v54 }
 0x6cc   : > { %11070 = vst [vmem:[#allocation35_spill] sm:$0xff] %v9234_v17 }
 0x6ce   : > { %5876 = vmatmul.mubr.msk.bf16.gmra.mrb[112].mxu1 %vm1580_vm0, %v9154_v6 }
 0x6cf   : > { %5877 = vmatprep.mubr.msk.bf16.mxu1 %vm1580_vm0, %v9162_v25 }
 0x6d6   : > { %5878 = vmatmul.mubr.msk.bf16.gmra.mrb[116].mxu1 %vm1580_vm0, %v9162_v25 }
 0x6d7   : > { %5879 = vmatprep.mubr.msk.bf16.mxu1 %vm1580_vm0, %v9166_v0 }
 0x6de   : > { %5880 = vmatmul.mubr.msk.bf16.gmra.mrb[120].mxu1 %vm1580_vm0, %v9166_v0 }
 0x6df   : > { %5881 = vmatprep.mubr.msk.bf16.mxu1 %vm1580_vm0, %v9168_v46 }
 0x6e6   : > { %5882 = vmatmul.mubr.msk.bf16.gmra.mrb[124].mxu1 %vm1580_vm0, %v9168_v46 }
 0x6f9   : > { %v5653_v37 = vpop.f32.mrb[28].mxu1 }
 0x6fa   : > { %v5654_v6 = vpop.f32.mrb[29].mxu1 }
 0x6fb   : > { %v9250_v8 = vadd.f32 %v5654_v6, %v5653_v37  ;;  %v5656_v50 = vpop.f32.mrb[30].mxu1 }
 0x6fc   : > { %v5657_v44 = vpop.f32.mrb[31].mxu1 }
 0x6fd   : > { %11071 = vst [vmem:[#allocation39_spill] sm:$0xff] %v9250_v8  ;;  %v9252_v12 = vadd.f32 %v5657_v44, %v5656_v50 }
 0x6ff   : > { %11072 = vst [vmem:[#allocation36_spill] sm:$0xff] %v9252_v12 }
 0x701   : > { %v9254_v25 = vpop.f32.mrb[32].mxu1 }
 0x702   : > { %v9256_v34 = vpop.f32.mrb[33].mxu1 }
 0x703   : > { %v2376_v0 = vmax.f32 %v9254_v25, %v9256_v34  ;;  %v9260_v5 = vpop.f32.mrb[34].mxu1 }
 0x704   : > { %v9262_v55 = vpop.f32.mrb[35].mxu1 }
 0x705   : > { %v2379_v46 = vmax.f32 %v9260_v5, %v9262_v55  ;;  %2377 = vmax.xlane.f32.xlu0 %v2376_v0 }
 0x707   : > { %2380 = vmax.xlane.f32.xlu1 %v2379_v46 }
 0x709   : > { %v9266_v22 = vpop.f32.mrb[36].mxu1 }
 0x70a   : > { %v9268_v39 = vpop.f32.mrb[37].mxu1 }
 0x70b   : > { %v2382_v58 = vmax.f32 %v9266_v22, %v9268_v39  ;;  %v9272_v7 = vpop.f32.mrb[38].mxu1 }
 0x70c   : > { %v9274_v49 = vpop.f32.mrb[39].mxu1 }
 0x70d   : > { %v2385_v2 = vmax.f32 %v9272_v7, %v9274_v49  ;;  %2383 = vmax.xlane.f32.xlu0 %v2382_v58 }
 0x711   : > { %2386 = vmax.xlane.f32.xlu0 %v2385_v2  ;;  %v9278_v53 = vpop.f32.mrb[40].mxu1 }
 0x712   : > { %v9280_v61 = vpop.f32.mrb[41].mxu1 }
 0x713   : > { %v2388_v16 = vmax.f32 %v9278_v53, %v9280_v61  ;;  %v9284_v11 = vpop.f32.mrb[42].mxu1 }
 0x714   : > { %v9286_v40 = vpop.f32.mrb[43].mxu1 }
 0x715   : > { %v2391_v42 = vmax.f32 %v9284_v11, %v9286_v40  ;;  %2389 = vmax.xlane.f32.xlu0 %v2388_v16 }
 0x717   : > { %2392 = vmax.xlane.f32.xlu1 %v2391_v42 }
 0x719   : > { %v9290_v43 = vpop.f32.mrb[44].mxu1 }
 0x71a   : > { %v9292_v24 = vpop.f32.mrb[45].mxu1 }
 0x71b   : > { %v2394_v1 = vmax.f32 %v9290_v43, %v9292_v24  ;;  %v9296_v51 = vpop.f32.mrb[46].mxu1 }
 0x71c   : > { %v9298_v45 = vpop.f32.mrb[47].mxu1 }
 0x71d   : > { %v2397_v18 = vmax.f32 %v9296_v51, %v9298_v45  ;;  %2395 = vmax.xlane.f32.xlu0 %v2394_v1 }
 0x71f   : > { %2398 = vmax.xlane.f32.xlu1 %v2397_v18 }
 0x721   : > { %v9302_v30 = vpop.f32.mrb[48].mxu1 }
 0x722   : > { %v9304_v48 = vpop.f32.mrb[49].mxu1 }
 0x723   : > { %v2400_v38 = vmax.f32 %v9302_v30, %v9304_v48  ;;  %v9308_v9 = vpop.f32.mrb[50].mxu1 }
 0x724   : > { %v9310_v3 = vpop.f32.mrb[51].mxu1 }
 0x725   : > { %v2403_v21 = vmax.f32 %v9308_v9, %v9310_v3  ;;  %2401 = vmax.xlane.f32.xlu0 %v2400_v38 }
 0x727   : > { %2404 = vmax.xlane.f32.xlu1 %v2403_v21 }
 0x729   : > { %v9314_v20 = vpop.f32.mrb[52].mxu1 }
 0x72a   : > { %v9316_v62 = vpop.f32.mrb[53].mxu1 }
 0x72b   : > { %v2406_v36 = vmax.f32 %v9314_v20, %v9316_v62  ;;  %v9320_v19 = vpop.f32.mrb[54].mxu1 }
 0x72c   : > { %v9322_v52 = vpop.f32.mrb[55].mxu1 }
 0x72d   : > { %v2409_v15 = vmax.f32 %v9320_v19, %v9322_v52  ;;  %2407 = vmax.xlane.f32.xlu0 %v2406_v36 }
 0x72f   : > { %2410 = vmax.xlane.f32.xlu1 %v2409_v15 }
 0x731   : > { %v9326_v35 = vpop.f32.mrb[56].mxu1 }
 0x732   : > { %v9328_v60 = vpop.f32.mrb[57].mxu1 }
 0x733   : > { %v2412_v27 = vmax.f32 %v9326_v35, %v9328_v60  ;;  %v9332_v14 = vpop.f32.mrb[58].mxu1 }
 0x734   : > { %v9334_v41 = vpop.f32.mrb[59].mxu1 }
 0x735   : > { %v2415_v54 = vmax.f32 %v9332_v14, %v9334_v41  ;;  %2413 = vmax.xlane.f32.xlu0 %v2412_v27 }
 0x737   : > { %2416 = vmax.xlane.f32.xlu1 %v2415_v54 }
 0x739   : > { %v9338_v63 = vpop.f32.mrb[60].mxu1 }
 0x73a   : > { %v9340_v29 = vpop.f32.mrb[61].mxu1 }
 0x73b   : > { %v2418_v37 = vmax.f32 %v9338_v63, %v9340_v29  ;;  %v9344_v6 = vpop.f32.mrb[62].mxu1 }
 0x73c   : > { %v9346_v50 = vpop.f32.mrb[63].mxu1 }
 0x73d   : > { %v2421_v44 = vmax.f32 %v9344_v6, %v9346_v50  ;;  %2419 = vmax.xlane.f32.xlu0 %v2418_v37 }
 0x73f   : > { %2422 = vmax.xlane.f32.xlu1 %v2421_v44 }
 0x741   : > { %v9350_v0 = vpop.f32.mrb[64].mxu1 }
 0x742   : > { %v9352_v46 = vpop.f32.mrb[65].mxu1 }
 0x743   : > { %v3026_v58 = vmax.f32 %v9350_v0, %v9352_v46  ;;  %v9356_v2 = vpop.f32.mrb[66].mxu1 }
 0x744   : > { %v9358_v16 = vpop.f32.mrb[67].mxu1 }
 0x745   : > { %v3029_v42 = vmax.f32 %v9356_v2, %v9358_v16  ;;  %3027 = vmax.xlane.f32.xlu0 %v3026_v58  ;;  %v9382_v58 = vpop.permute.xlu1 %3282 }
 0x746   : > { %11073 = vst [vmem:[#allocation41_spill] sm:$0xff] %v9382_v58 }
 0x747   : > { %3030 = vmax.xlane.f32.xlu1 %v3029_v42 }
 0x749   : > { %v9362_v1 = vpop.f32.mrb[68].mxu1 }
 0x74a   : > { %v9364_v18 = vpop.f32.mrb[69].mxu1 }
 0x74b   : > { %v3032_v38 = vmax.f32 %v9362_v1, %v9364_v18  ;;  %v9368_v21 = vpop.f32.mrb[70].mxu1 }
 0x74c   : > { %v9370_v36 = vpop.f32.mrb[71].mxu1 }
 0x74d   : > { %v3035_v15 = vmax.f32 %v9368_v21, %v9370_v36  ;;  %3033 = vmax.xlane.f32.xlu0 %v3032_v38 }
 0x74f   : > { %3036 = vmax.xlane.f32.xlu1 %v3035_v15  ;;  %v9390_v15 = vpop.permute.xlu1 %3284 }
 0x750   : > { %11074 = vst [vmem:[#allocation38_spill] sm:$0xff] %v9390_v15 }
 0x751   : > { %v9374_v27 = vpop.f32.mrb[72].mxu1 }
 0x752   : > { %v9376_v54 = vpop.f32.mrb[73].mxu1 }
 0x753   : > { %v3038_v37 = vmax.f32 %v9374_v27, %v9376_v54  ;;  %v9380_v44 = vpop.f32.mrb[74].mxu1 }
 0x754   : > { %v9384_v42 = vpop.f32.mrb[75].mxu1 }
 0x755   : > { %v3041_v8 = vmax.f32 %v9380_v44, %v9384_v42  ;;  %3039 = vmax.xlane.f32.xlu0 %v3038_v37  ;;  %v9402_v37 = vpop.permute.xlu1 %3302 }
 0x756   : > { %11078 = vst [vmem:[#allocation45_spill] sm:$0xff] %v9402_v37 }
 0x757   : > { %3042 = vmax.xlane.f32.xlu1 %v3041_v8 }
 0x759   : > { %v9388_v38 = vpop.f32.mrb[76].mxu1  ;;  %v9416_v28 = vpop.permute.xlu1 %3286 }
 0x75a   : > { %v9392_v12 = vpop.f32.mrb[77].mxu1  ;;  %11081 = vst [vmem:[#allocation46_spill] sm:$0xff] %v9416_v28 }
 0x75b   : > { %11075 = vst [vmem:[#allocation42_spill] sm:$0xff] %v9392_v12  ;;  %v3044_v31 = vmax.f32 %v9388_v38, %v9392_v12  ;;  %v9396_v17 = vpop.f32.mrb[78].mxu1 }
 0x75c   : > { %11076 = vst [vmem:[#allocation40_spill] sm:$0xff] %v9396_v17  ;;  %v9398_v33 = vpop.f32.mrb[79].mxu1 }
 0x75d   : > { %11077 = vst [vmem:[#allocation43_spill] sm:$0xff] %v9398_v33  ;;  %v3047_v10 = vmax.f32 %v9396_v17, %v9398_v33  ;;  %3045 = vmax.xlane.f32.xlu1 %v3044_v31  ;;  %v9426_v32 = vpop.permute.xlu1 %3288 }
 0x75e   : > { %11084 = vst [vmem:[#allocation51_spill] sm:$0xff] %v9426_v32 }
 0x75f   : > { %3048 = vmax.xlane.f32.xlu0 %v3047_v10 }
 0x761   : > { %v9404_v8 = vpop.f32.mrb[80].mxu1 }
 0x762   : > { %11079 = vst [vmem:[#allocation47_spill] sm:$0xff] %v9404_v8  ;;  %v9406_v13 = vpop.f32.mrb[81].mxu1 }
 0x763   : > { %11080 = vst [vmem:[#allocation44_spill] sm:$0xff] %v9406_v13  ;;  %v3050_v57 = vmax.f32 %v9404_v8, %v9406_v13  ;;  %v9410_v4 = vpop.f32.mrb[82].mxu1 }
 0x764   : > { %v9412_v23 = vpop.f32.mrb[83].mxu1 }
 0x765   : > { %v3053_v47 = vmax.f32 %v9410_v4, %v9412_v23  ;;  %3051 = vmax.xlane.f32.xlu0 %v3050_v57 }
 0x767   : > { %3054 = vmax.xlane.f32.xlu1 %v3053_v47  ;;  %v9434_v47 = vpop.permute.xlu1 %3306 }
 0x768   : > { %11086 = vst [vmem:[#allocation50_spill] sm:$0xff] %v9434_v47 }
 0x769   : > { %v9418_v10 = vpop.f32.mrb[84].mxu1 }
 0x76a   : > { %11082 = vst [vmem:[#allocation48_spill] sm:$0xff] %v9418_v10  ;;  %v9420_v31 = vpop.f32.mrb[85].mxu1 }
 0x76b   : > { %11083 = vst [vmem:[#allocation49_spill] sm:$0xff] %v9420_v31  ;;  %v3056_v59 = vmax.f32 %v9418_v10, %v9420_v31  ;;  %v9424_v26 = vpop.f32.mrb[86].mxu1 }
 0x76c   : > { %v9428_v56 = vpop.f32.mrb[87].mxu1 }
 0x76d   : > { %v3059_v37 = vmax.f32 %v9424_v26, %v9428_v56  ;;  %3057 = vmax.xlane.f32.xlu0 %v3056_v59  ;;  %v9446_v59 = vpop.permute.xlu1 %3290 }
 0x76e   : > { %11088 = vst [vmem:[#allocation54_spill] sm:$0xff] %v9446_v59 }
 0x76f   : > { %3060 = vmax.xlane.f32.xlu1 %v3059_v37 }
 0x771   : > { %v9432_v57 = vpop.f32.mrb[88].mxu1 }
 0x772   : > { %11085 = vst [vmem:[#allocation53_spill] sm:$0xff] %v9432_v57  ;;  %v9436_v28 = vpop.f32.mrb[89].mxu1 }
 0x773   : > { %11087 = vst [vmem:[#allocation52_spill] sm:$0xff] %v9436_v28  ;;  %v3062_v15 = vmax.f32 %v9432_v57, %v9436_v28  ;;  %v9440_v58 = vpop.f32.mrb[90].mxu1  ;;  %v9456_v28 = vpop.permute.xlu0 %3300 }
 0x774   : > { %v9442_v31 = vpop.f32.mrb[91].mxu1  ;;  %11092 = vst [vmem:[#allocation56_spill] sm:$0xff] %v9456_v28 }
 0x775   : > { %v3065_v32 = vmax.f32 %v9440_v58, %v9442_v31  ;;  %3063 = vmax.xlane.f32.xlu0 %v3062_v15 }
 0x777   : > { %3066 = vmax.xlane.f32.xlu1 %v3065_v32  ;;  %v9462_v32 = vpop.permute.xlu1 %3292  ;;  %v9466_v59 = vpop.permute.xlu0 %3304 }
 0x778   : > { %11094 = vst [vmem:[#allocation60_spill] sm:$0xff] %v9462_v32  ;;  %11096 = vst [vmem:[#allocation63_spill] sm:$0xff] %v9466_v59 }
 0x779   : > { %v9448_v37 = vpop.f32.mrb[92].mxu1 }
 0x77a   : > { %11089 = vst [vmem:[#allocation55_spill] sm:$0xff] %v9448_v37  ;;  %v9450_v10 = vpop.f32.mrb[93].mxu1 }
 0x77b   : > { %11090 = vst [vmem:[#allocation57_spill] sm:$0xff] %v9450_v10  ;;  %v3068_v47 = vmax.f32 %v9448_v37, %v9450_v10  ;;  %v9454_v13 = vpop.f32.mrb[94].mxu1  ;;  %v9474_v28 = vpop.permute.xlu1 %3310 }
 0x77c   : > { %11091 = vst [vmem:[#allocation59_spill] sm:$0xff] %v9454_v13  ;;  %v9458_v57 = vpop.f32.mrb[95].mxu1  ;;  %11099 = vst [vmem:[#allocation64_spill] sm:$0xff] %v9474_v28 }
 0x77d   : > { %11093 = vst [vmem:[#allocation58_spill] sm:$0xff] %v9458_v57  ;;  %v3071_v8 = vmax.f32 %v9454_v13, %v9458_v57  ;;  %3069 = vmax.xlane.f32.xlu1 %v3068_v47 }
 0x77f   : > { %3072 = vmax.xlane.f32.xlu0 %v3071_v8  ;;  %v9480_v8 = vpop.permute.xlu0 %3308  ;;  %v9484_v59 = vpop.permute.xlu1 %3294 }
 0x780   : > { %11101 = vst [vmem:[#allocation67_spill] sm:$0xff] %v9480_v8  ;;  %11103 = vst [vmem:[#allocation71_spill] sm:$0xff] %v9484_v59 }
 0x781   : > { %v9464_v15 = vpop.f32.mrb[96].mxu1 }
 0x782   : > { %11095 = vst [vmem:[#allocation61_spill] sm:$0xff] %v9464_v15  ;;  %v9468_v33 = vpop.f32.mrb[97].mxu1 }
 0x783   : > { %11097 = vst [vmem:[#allocation65_spill] sm:$0xff] %v9468_v33  ;;  %v3660_v10 = vmax.f32 %v9464_v15, %v9468_v33  ;;  %v9472_v37 = vpop.f32.mrb[98].mxu1 }
 0x784   : > { %11098 = vst [vmem:[#allocation62_spill] sm:$0xff] %v9472_v37  ;;  %v9476_v17 = vpop.f32.mrb[99].mxu1 }
 0x785   : > { %11100 = vst [vmem:[#allocation66_spill] sm:$0xff] %v9476_v17  ;;  %v3663_v47 = vmax.f32 %v9472_v37, %v9476_v17  ;;  %3661 = vmax.xlane.f32.xlu0 %v3660_v10  ;;  %v9496_v10 = vpop.permute.xlu0 %3312 }
 0x786   : > { %11107 = vst [vmem:[#allocation73_spill] sm:$0xff] %v9496_v10 }
 0x787   : > { %3664 = vmax.xlane.f32.xlu1 %v3663_v47  ;;  %v9498_v47 = vpop.permute.xlu1 %3296 }
 0x788   : > { %11108 = vst [vmem:[#allocation75_spill] sm:$0xff] %v9498_v47 }
 0x789   : > { %v9482_v32 = vpop.f32.mrb[100].mxu1 }
 0x78a   : > { %11102 = vst [vmem:[#allocation69_spill] sm:$0xff] %v9482_v32  ;;  %v9486_v57 = vpop.f32.mrb[101].mxu1 }
 0x78b   : > { %11104 = vst [vmem:[#allocation68_spill] sm:$0xff] %v9486_v57  ;;  %v3666_v33 = vmax.f32 %v9482_v32, %v9486_v57  ;;  %v9490_v15 = vpop.f32.mrb[102].mxu1 }
 0x78c   : > { %11105 = vst [vmem:[#allocation70_spill] sm:$0xff] %v9490_v15  ;;  %v9492_v28 = vpop.f32.mrb[103].mxu1 }
 0x78d   : > { %11106 = vst [vmem:[#allocation72_spill] sm:$0xff] %v9492_v28  ;;  %v3669_v17 = vmax.f32 %v9490_v15, %v9492_v28  ;;  %3667 = vmax.xlane.f32.xlu0 %v3666_v33 }
 0x78f   : > { %3670 = vmax.xlane.f32.xlu1 %v3669_v17 }
 0x791   : > { %v9500_v8 = vpop.f32.mrb[104].mxu1 }
 0x792   : > { %11109 = vst [vmem:[#allocation77_spill] sm:$0xff] %v9500_v8  ;;  %v2378_v59 = vpop.xlane.xlu0 %2377  ;;  %v9502_v37 = vpop.f32.mrb[105].mxu1 }
 0x793   : > { %11110 = vst [vmem:[#allocation74_spill] sm:$0xff] %v9502_v37  ;;  %v2424_v57 = vsub.f32 %v9254_v25, %v2378_v59  ;;  %v2425_v32 = vsub.f32 %v9256_v34, %v2378_v59  ;;  %v3672_v13 = vmax.f32 %v9500_v8, %v9502_v37  ;;  %v9508_v12 = vpop.f32.mrb[106].mxu1 }
 0x794   : > { %v9510_v33 = vpop.f32.mrb[107].mxu1  ;;  %v2381_v10 = vpop.xlane.xlu1 %2380 }
 0x795   : > { %11111 = vst [vmem:[#allocation76_spill] sm:$0xff] %v9510_v33  ;;  %v2456_v17 = vmul.f32 1.442695, %v2424_v57  ;;  %v2458_v28 = vmul.f32 1.442695, %v2425_v32  ;;  %v3675_v47 = vmax.f32 %v9508_v12, %v9510_v33  ;;  %v2426_v15 = vsub.f32 %v9260_v5, %v2381_v10  ;;  %3673 = vmax.xlane.f32.xlu0 %v3672_v13 }
 0x796   : > { %v2427_v25 = vsub.f32 %v9262_v55, %v2381_v10 }
 0x797   : > { %6681 = vpow2.f32 %v2456_v17  ;;  %v2460_v34 = vmul.f32 1.442695, %v2426_v15  ;;  %3676 = vmax.xlane.f32.xlu1 %v3675_v47 }
 0x798   : > { %6683 = vpow2.f32 %v2458_v28  ;;  %v2462_v59 = vmul.f32 1.442695, %v2427_v25 }
 0x799   : > { %6685 = vpow2.f32 %v2460_v34  ;;  %v9516_v37 = vpop.f32.mrb[108].mxu1 }
 0x79a   : > { %11112 = vst [vmem:[#allocation78_spill] sm:$0xff] %v9516_v37  ;;  %6687 = vpow2.f32 %v2462_v59  ;;  %v2384_v8 = vpop.xlane.xlu0 %2383  ;;  %v9518_v57 = vpop.f32.mrb[109].mxu1 }
 0x79b   : > { %11113 = vst [vmem:[#allocation79_spill] sm:$0xff] %v9518_v57  ;;  %v2428_v32 = vsub.f32 %v9266_v22, %v2384_v8  ;;  %v2429_v33 = vsub.f32 %v9268_v39, %v2384_v8  ;;  %v3678_v13 = vmax.f32 %v9516_v37, %v9518_v57  ;;  %v9524_v5 = vpop.f32.mrb[110].mxu1 }
 0x79c   : > { %11114 = vst [vmem:[#allocation81_spill] sm:$0xff] %v9524_v5  ;;  %v9526_v55 = vpop.f32.mrb[111].mxu1 }
 0x79d   : > { %11115 = vst [vmem:[#allocation83_spill] sm:$0xff] %v9526_v55  ;;  %v2464_v28 = vmul.f32 1.442695, %v2428_v32  ;;  %v2466_v15 = vmul.f32 1.442695, %v2429_v33  ;;  %v3681_v10 = vmax.f32 %v9524_v5, %v9526_v55  ;;  %3679 = vmax.xlane.f32.xlu1 %v3678_v13 }
 0x79e   : > { %v2387_v47 = vpop.xlane.xlu0 %2386 }
 0x79f   : > { %6689 = vpow2.f32 %v2464_v28  ;;  %v2430_v17 = vsub.f32 %v9272_v7, %v2387_v47  ;;  %v2431_v22 = vsub.f32 %v9274_v49, %v2387_v47  ;;  %3682 = vmax.xlane.f32.xlu0 %v3681_v10 }
 0x7a0   : > { %6691 = vpow2.f32 %v2466_v15 }
 0x7a1   : > { %v9532_v39 = vpop.eup %6681  ;;  %v9534_v8 = vpop.f32.mrb[112].mxu1  ;;  %v2468_v34 = vmul.f32 1.442695, %v2430_v17  ;;  %v2470_v13 = vmul.f32 1.442695, %v2431_v22 }
 0x7a2   : > { %11116 = vst [vmem:[#allocation80_spill] sm:$0xff] %v9534_v8  ;;  %v9536_v25 = vpop.eup %6683  ;;  %v2390_v33 = vpop.xlane.xlu0 %2389 }
 0x7a3   : > { %v9538_v59 = vpop.f32.mrb[113].mxu1  ;;  %v9540_v32 = vpop.eup %6685  ;;  %v2432_v28 = vsub.f32 %v9278_v53, %v2390_v33  ;;  %v2433_v7 = vsub.f32 %v9280_v61, %v2390_v33  ;;  %v2520_v47 = vadd.f32 %v9536_v25, %v9532_v39  ;;  %6693 = vpow2.f32 %v2468_v34 }
 0x7a4   : > { %11117 = vst [vmem:[#allocation82_spill] sm:$0xff] %v9538_v59  ;;  %v3684_v49 = vmax.f32 %v9534_v8, %v9538_v59  ;;  %v9546_v15 = vpop.f32.mrb[114].mxu1  ;;  %v9548_v10 = vpop.eup %6687  ;;  %6695 = vpow2.f32 %v2470_v13 }
 0x7a5   : > { %11118 = vst [vmem:[#allocation84_spill] sm:$0xff] %v9546_v15  ;;  %v9552_v17 = vpop.f32.mrb[115].mxu1  ;;  %v2472_v22 = vmul.f32 1.442695, %v2432_v28  ;;  %2521 = vadd.xlane.f32.xlu0 %v2520_v47  ;;  %v2523_v53 = vadd.f32 %v9548_v10, %v9540_v32  ;;  %v2474_v61 = vmul.f32 1.442695, %v2433_v7  ;;  %v2393_v33 = vpop.xlane.xlu1 %2392 }
 0x7a6   : > { %11119 = vst [vmem:[#allocation85_spill] sm:$0xff] %v9552_v17  ;;  %v3687_v57 = vmax.f32 %v9546_v15, %v9552_v17  ;;  %v2434_v55 = vsub.f32 %v9284_v11, %v2393_v33  ;;  %v2435_v28 = vsub.f32 %v9286_v40, %v2393_v33 }
 0x7a7   : > { %2524 = vadd.xlane.f32.xlu1 %v2523_v53  ;;  %6697 = vpow2.f32 %v2472_v22 }
 0x7a8   : > { %6699 = vpow2.f32 %v2474_v61  ;;  %v2476_v22 = vmul.f32 1.442695, %v2434_v55  ;;  %v2478_v40 = vmul.f32 1.442695, %v2435_v28 }
 0x7a9   : > { %v9558_v59 = vpop.eup %6689  ;;  %v9560_v8 = vpop.f32.mrb[116].mxu1  ;;  %3685 = vmax.xlane.f32.xlu0 %v3684_v49 }
 0x7aa   : > { %11120 = vst [vmem:[#allocation86_spill] sm:$0xff] %v9560_v8  ;;  %v9562_v37 = vpop.eup %6691  ;;  %v9565_v34 = vpop.f32.mrb[117].mxu1  ;;  %6701 = vpow2.f32 %v2476_v22 }
 0x7ab   : > { %11121 = vst [vmem:[#allocation87_spill] sm:$0xff] %v9565_v34  ;;  %v2396_v47 = vpop.xlane.xlu0 %2395  ;;  %v3690_v13 = vmax.f32 %v9560_v8, %v9565_v34  ;;  %v9570_v7 = vpop.f32.mrb[118].mxu1  ;;  %v2526_v53 = vadd.f32 %v9562_v37, %v9558_v59  ;;  %3688 = vmax.xlane.f32.xlu1 %v3687_v57  ;;  %6703 = vpow2.f32 %v2478_v40 }
 0x7ac   : > { %11122 = vst [vmem:[#allocation88_spill] sm:$0xff] %v9570_v7  ;;  %v9574_v17 = vpop.f32.mrb[119].mxu1  ;;  %v2399_v49 = vpop.xlane.xlu1 %2398  ;;  %v2436_v61 = vsub.f32 %v9290_v43, %v2396_v47  ;;  %v2437_v33 = vsub.f32 %v9292_v24, %v2396_v47 }
 0x7ad   : > { %11123 = vst [vmem:[#allocation89_spill] sm:$0xff] %v9574_v17  ;;  %v3693_v11 = vmax.f32 %v9570_v7, %v9574_v17  ;;  %2527 = vadd.xlane.f32.xlu0 %v2526_v53  ;;  %v9580_v34 = vpop.eup %6693  ;;  %v2438_v8 = vsub.f32 %v9296_v51, %v2399_v49  ;;  %v2439_v55 = vsub.f32 %v9298_v45, %v2399_v49 }
 0x7ae   : > { %v9583_v15 = vpop.eup %6695  ;;  %v2480_v5 = vmul.f32 1.442695, %v2436_v61  ;;  %v2482_v43 = vmul.f32 1.442695, %v2437_v33 }
 0x7af   : > { %3694 = vmax.xlane.f32.xlu1 %v3693_v11  ;;  %v2484_v47 = vmul.f32 1.442695, %v2438_v8  ;;  %v2529_v53 = vadd.f32 %v9583_v15, %v9580_v34  ;;  %v2486_v40 = vmul.f32 1.442695, %v2439_v55 }
 0x7b0   : > { %6705 = vpow2.f32 %v2480_v5 }
 0x7b1   : > { %v9585_v57 = vpop.f32.mrb[120].mxu1  ;;  %3691 = vmax.xlane.f32.xlu0 %v3690_v13  ;;  %v9594_v51 = vpop.eup %6697  ;;  %6707 = vpow2.f32 %v2482_v43 }
 0x7b2   : > { %11124 = vst [vmem:[#allocation90_spill] sm:$0xff] %v9585_v57  ;;  %v9587_v17 = vpop.f32.mrb[121].mxu1  ;;  %v9600_v22 = vpop.eup %6699  ;;  %6709 = vpow2.f32 %v2484_v47 }
 0x7b3   : > { %11125 = vst [vmem:[#allocation91_spill] sm:$0xff] %v9587_v17  ;;  %v3696_v24 = vmax.f32 %v9585_v57, %v9587_v17  ;;  %v9592_v28 = vpop.f32.mrb[122].mxu1  ;;  %v2532_v17 = vadd.f32 %v9600_v22, %v9594_v51 }
 0x7b4   : > { %11126 = vst [vmem:[#allocation92_spill] sm:$0xff] %v9592_v28  ;;  %v9598_v11 = vpop.f32.mrb[123].mxu1  ;;  %v2405_v13 = vpop.xlane.xlu1 %2404 }
 0x7b5   : > { %11127 = vst [vmem:[#allocation93_spill] sm:$0xff] %v9598_v11  ;;  %v3699_v61 = vmax.f32 %v9592_v28, %v9598_v11  ;;  %v2442_v45 = vsub.f32 %v9308_v9, %v2405_v13  ;;  %2530 = vadd.xlane.f32.xlu0 %v2529_v53  ;;  %v2443_v49 = vsub.f32 %v9310_v3, %v2405_v13  ;;  %v9616_v5 = vpop.eup %6701 }
 0x7b6   : > { %v9620_v47 = vpop.eup %6703 }
 0x7b7   : > { %v2492_v8 = vmul.f32 1.442695, %v2442_v45  ;;  %3700 = vmax.xlane.f32.xlu1 %v3699_v61  ;;  %v2494_v33 = vmul.f32 1.442695, %v2443_v49 }
 0x7b9   : > { %6711 = vpow2.f32 %v2492_v8  ;;  %v9608_v57 = vpop.f32.mrb[124].mxu1  ;;  %2533 = vadd.xlane.f32.xlu0 %v2532_v17 }
 0x7ba   : > { %11128 = vst [vmem:[#allocation94_spill] sm:$0xff] %v9608_v57  ;;  %6713 = vpow2.f32 %v2494_v33  ;;  %v9610_v7 = vpop.f32.mrb[125].mxu1  ;;  %v9626_v49 = vpop.eup %6705 }
 0x7bb   : > { %11129 = vst [vmem:[#allocation95_spill] sm:$0xff] %v9610_v7  ;;  %6715 = vpow2.f32 %v2486_v40  ;;  %v3702_v9 = vmax.f32 %v9608_v57, %v9610_v7  ;;  %v9614_v3 = vpop.f32.mrb[126].mxu1  ;;  %v2535_v40 = vadd.f32 %v9620_v47, %v9616_v5  ;;  %v9630_v8 = vpop.eup %6707 }
 0x7bc   : > { %11130 = vst [vmem:[#allocation96_spill] sm:$0xff] %v9614_v3  ;;  %v2411_v43 = vpop.xlane.xlu1 %2410  ;;  %v9618_v55 = vpop.f32.mrb[127].mxu1 }
 0x7bd   : > { %11131 = vst [vmem:[#allocation97_spill] sm:$0xff] %v9618_v55  ;;  %v2446_v53 = vsub.f32 %v9320_v19, %v2411_v43  ;;  %v2447_v13 = vsub.f32 %v9322_v52, %v2411_v43  ;;  %3703 = vmax.xlane.f32.xlu1 %v3702_v9  ;;  %3697 = vmax.xlane.f32.xlu0 %v3696_v24  ;;  %v9632_v33 = vpop.eup %6709 }
 0x7be   : > { %v3705_v17 = vmax.f32 %v9614_v3, %v9618_v55  ;;  %v2538_v24 = vadd.f32 %v9630_v8, %v9626_v49 }
 0x7bf   : > { %v2500_v61 = vmul.f32 1.442695, %v2446_v53  ;;  %v2502_v45 = vmul.f32 1.442695, %v2447_v13 }
 0x7c1   : > { %6717 = vpow2.f32 %v2500_v61  ;;  %2536 = vadd.xlane.f32.xlu0 %v2535_v40 }
 0x7c2   : > { %6719 = vpow2.f32 %v2502_v45 }
 0x7c3   : > { %v9634_v19 = vpop.eup %6711 }
 0x7c4   : > { %v9636_v52 = vpop.eup %6713  ;;  %v2417_v9 = vpop.xlane.xlu1 %2416 }
 0x7c5   : > { %v9640_v43 = vpop.eup %6715  ;;  %v2450_v53 = vsub.f32 %v9332_v14, %v2417_v9  ;;  %v2451_v13 = vsub.f32 %v9334_v41, %v2417_v9  ;;  %2539 = vadd.xlane.f32.xlu0 %v2538_v24  ;;  %v2547_v61 = vadd.f32 %v9636_v52, %v9634_v19 }
 0x7c6   : > { %v2541_v7 = vadd.f32 %v9640_v43, %v9632_v33 }
 0x7c7   : > { %v2508_v45 = vmul.f32 1.442695, %v2450_v53  ;;  %v2510_v40 = vmul.f32 1.442695, %v2451_v13  ;;  %2548 = vadd.xlane.f32.xlu1 %v2547_v61 }
 0x7c9   : > { %6721 = vpow2.f32 %v2508_v45  ;;  %2542 = vadd.xlane.f32.xlu0 %v2541_v7 }
 0x7ca   : > { %6723 = vpow2.f32 %v2510_v40 }
 0x7cb   : > { %v9648_v57 = vpop.eup %6717 }
 0x7cc   : > { %v9650_v55 = vpop.eup %6719  ;;  %v2423_v14 = vpop.xlane.xlu1 %2422 }
 0x7cd   : > { %v2454_v41 = vsub.f32 %v9344_v6, %v2423_v14  ;;  %v2455_v24 = vsub.f32 %v9346_v50, %v2423_v14  ;;  %3706 = vmax.xlane.f32.xlu0 %v3705_v17  ;;  %v2553_v9 = vadd.f32 %v9650_v55, %v9648_v57 }
 0x7cf   : > { %v2516_v53 = vmul.f32 1.442695, %v2454_v41  ;;  %v2518_v13 = vmul.f32 1.442695, %v2455_v24  ;;  %2554 = vadd.xlane.f32.xlu1 %v2553_v9 }
 0x7d1   : > { %6725 = vpow2.f32 %v2516_v53  ;;  %v2402_v53 = vpop.xlane.xlu0 %2401 }
 0x7d2   : > { %6727 = vpow2.f32 %v2518_v13  ;;  %v7017_v13 = vld [vmem:[#allocation2 + $0xd0] sm:$0xff] }
 0x7d3   : > { %v9656_v61 = vpop.eup %6721 }
 0x7d4   : > { %v9658_v7 = vpop.eup %6723  ;;  %v3031_v45 = vpop.xlane.xlu1 %3030 }
 0x7d5   : > { %v3076_v40 = vsub.f32 %v9356_v2, %v3031_v45  ;;  %v3077_v6 = vsub.f32 %v9358_v16, %v3031_v45  ;;  %v2559_v50 = vadd.f32 %v9658_v7, %v9656_v61  ;;  %v2408_v45 = vpop.xlane.xlu0 %2407 }
 0x7d6   : > { %v2444_v3 = vsub.f32 %v9314_v20, %v2408_v45  ;;  %v2445_v28 = vsub.f32 %v9316_v62, %v2408_v45  ;;  %v7018_v62 = vld [vmem:[#allocation2 + $0x10] sm:$0xff] }
 0x7d7   : > { %v3110_v17 = vmul.f32 1.442695, %v3076_v40  ;;  %v3112_v14 = vmul.f32 1.442695, %v3077_v6  ;;  %2560 = vadd.xlane.f32.xlu1 %v2559_v50  ;;  %v2440_v50 = vsub.f32 %v9302_v30, %v2402_v53 }
 0x7d9   : > { %6729 = vpow2.f32 %v3110_v17  ;;  %v2414_v6 = vpop.xlane.xlu0 %2413  ;;  %v2441_v17 = vsub.f32 %v9304_v48, %v2402_v53 }
 0x7da   : > { %6731 = vpow2.f32 %v3112_v14 }
 0x7db   : > { %v9664_v41 = vpop.eup %6725  ;;  %v2490_v11 = vmul.f32 1.442695, %v2441_v17 }
 0x7dc   : > { %11132 = vst [vmem:[#allocation98_spill] sm:$0xff] %v9664_v41  ;;  %v9666_v24 = vpop.eup %6727  ;;  %v3037_v30 = vpop.xlane.xlu1 %3036 }
 0x7dd   : > { %11133 = vst [vmem:[#allocation99_spill] sm:$0xff] %v9666_v24  ;;  %v2565_v9 = vadd.f32 %v9666_v24, %v9664_v41  ;;  %v2420_v14 = vpop.xlane.xlu0 %2419  ;;  %v2448_v24 = vsub.f32 %v9326_v35, %v2414_v6 }
 0x7de   : > { %v2452_v53 = vsub.f32 %v9338_v63, %v2420_v14 }
 0x7df   : > { %2566 = vadd.xlane.f32.xlu1 %v2565_v9  ;;  %v2488_v9 = vmul.f32 1.442695, %v2440_v50  ;;  %v2504_v48 = vmul.f32 1.442695, %v2448_v24  ;;  %v2453_v50 = vsub.f32 %v9340_v29, %v2420_v14 }
 0x7e0   : > { %v2512_v35 = vmul.f32 1.442695, %v2452_v53  ;;  %v3080_v53 = vsub.f32 %v9368_v21, %v3037_v30 }
 0x7e1   : > { %v3028_v41 = vpop.xlane.xlu0 %3027  ;;  %6733 = vpow2.f32 %v2488_v9 }
 0x7e2   : > { %6735 = vpow2.f32 %v2490_v11  ;;  %v3075_v11 = vsub.f32 %v9352_v46, %v3028_v41  ;;  %v3118_v21 = vmul.f32 1.442695, %v3080_v53 }
 0x7e3   : > { %v9670_v2 = vpop.eup %6729  ;;  %3932 = vrot.lane.b32.xlu0 %v7017_v13, %s7354_s18  ;;  %v2496_v13 = vmul.f32 1.442695, %v2444_v3 }
 0x7e4   : > { %11134 = vst [vmem:[#allocation100_spill] sm:$0xff] %v9670_v2  ;;  %v9672_v16 = vpop.eup %6731  ;;  %v9686_v45 = vpop.xlane.xlu1 %3042  ;;  %v3108_v14 = vmul.f32 1.442695, %v3075_v11 }
 0x7e5   : > { %11135 = vst [vmem:[#allocation101_spill] sm:$0xff] %v9672_v16  ;;  %v3173_v40 = vadd.f32 %v9672_v16, %v9670_v2  ;;  %v2498_v2 = vmul.f32 1.442695, %v2445_v28  ;;  %v3034_v16 = vpop.xlane.xlu0 %3033  ;;  %6737 = vpow2.f32 %v2496_v13  ;;  %v2514_v28 = vmul.f32 1.442695, %v2453_v50 }
 0x7e6   : > { %v3078_v17 = vsub.f32 %v9362_v1, %v3034_v16 }
 0x7e7   : > { %3174 = vadd.xlane.f32.xlu1 %v3173_v40  ;;  %v2449_v40 = vsub.f32 %v9328_v60, %v2414_v6  ;;  %6739 = vpow2.f32 %v2498_v2  ;;  %v3074_v60 = vsub.f32 %v9350_v0, %v3028_v41  ;;  %v3079_v0 = vsub.f32 %v9364_v18, %v3034_v16 }
 0x7e8   : > { %6741 = vpow2.f32 %v2504_v48  ;;  %v3114_v48 = vmul.f32 1.442695, %v3078_v17 }
 0x7e9   : > { %v2506_v20 = vmul.f32 1.442695, %v2449_v40  ;;  %v3040_v3 = vpop.xlane.xlu0 %3039  ;;  %v3106_v6 = vmul.f32 1.442695, %v3074_v60  ;;  %v3116_v1 = vmul.f32 1.442695, %v3079_v0 }
 0x7ea   : > { %v9694_v2 = vpop.xlane.xlu1 %3045  ;;  %v3082_v11 = vsub.f32 %v9374_v27, %v3040_v3 }
 0x7eb   : > { %6743 = vpow2.f32 %v2506_v20  ;;  %v9690_v24 = vpop.eup %6733  ;;  %v3081_v20 = vsub.f32 %v9370_v36, %v3037_v30  ;;  %v3083_v30 = vsub.f32 %v9376_v54, %v3040_v3  ;;  %v3084_v54 = vsub.f32 %v9380_v44, %v9686_v45 }
 0x7ec   : > { %v9692_v63 = vpop.eup %6735  ;;  %6745 = vpow2.f32 %v2512_v35 }
 0x7ed   : > { %v9696_v29 = vpop.xlane.xlu0 %3048  ;;  %6747 = vpow2.f32 %v2514_v28  ;;  %v2544_v46 = vadd.f32 %v9692_v63, %v9690_v24  ;;  %v3120_v36 = vmul.f32 1.442695, %v3081_v20  ;;  %v3124_v3 = vmul.f32 1.442695, %v3083_v30  ;;  %v11137_v30 = vld [vmem:[#allocation59_spill] sm:$0xff] }
 0x7ee   : > { %6749 = vpow2.f32 %v3106_v6 }
 0x7ef   : > { %v9700_v9 = vpop.eup %6737  ;;  %6751 = vpow2.f32 %v3108_v14 }
 0x7f0   : > { %6753 = vpow2.f32 %v3114_v48  ;;  %v3122_v48 = vmul.f32 1.442695, %v3082_v11 }
 0x7f1   : > { %v9704_v41 = vpop.eup %6739  ;;  %6755 = vpow2.f32 %v3116_v1 }
 0x7f2   : > { %v9706_v13 = vpop.xlane.xlu0 %3051  ;;  %v9710_v18 = vpop.eup %6741  ;;  %v2550_v50 = vadd.f32 %v9704_v41, %v9700_v9  ;;  %6757 = vpow2.f32 %v3118_v21 }
 0x7f3   : > { %6759 = vpow2.f32 %v3120_v36 }
 0x7f4   : > { %v3055_v40 = vpop.xlane.xlu1 %3054 }
 0x7f5   : > { %v3092_v16 = vsub.f32 %v9410_v4, %v3055_v40  ;;  %v3093_v35 = vsub.f32 %v9412_v23, %v3055_v40 }
 0x7f7   : > { %v3142_v6 = vmul.f32 1.442695, %v3092_v16  ;;  %v3144_v0 = vmul.f32 1.442695, %v3093_v35 }
 0x7f8   : > { %3916 = vrot.lane.b32.xlu1 %v7018_v62, %s7354_s18  ;;  %v9715_v62 = vpop.eup %6743 }
 0x7f9   : > { %v9722_v4 = vpop.eup %6745  ;;  %v2556_v23 = vadd.f32 %v9715_v62, %v9710_v18  ;;  %6761 = vpow2.f32 %v3142_v6 }
 0x7fa   : > { %v9718_v60 = vpop.xlane.xlu0 %3057  ;;  %v9727_v14 = vpop.eup %6747  ;;  %6763 = vpow2.f32 %v3144_v0 }
 0x7fb   : > { %v9736_v53 = vpop.eup %6749  ;;  %v2562_v20 = vadd.f32 %v9727_v14, %v9722_v4  ;;  %6765 = vpow2.f32 %v3122_v48 }
 0x7fc   : > { %v3061_v28 = vpop.xlane.xlu1 %3060  ;;  %v9741_v16 = vpop.eup %6751  ;;  %6767 = vpow2.f32 %v3124_v3  ;;  %v11140_v3 = vld [vmem:[#allocation43_spill] sm:$0xff] }
 0x7fd   : > { %v3096_v17 = vsub.f32 %v9424_v26, %v3061_v28  ;;  %v3085_v26 = vsub.f32 %v9384_v42, %v9686_v45  ;;  %v3086_v42 = vsub.f32 %v9388_v38, %v9694_v2  ;;  %v9748_v11 = vpop.eup %6753  ;;  %v11138_v38 = vld [vmem:[#allocation58_spill] sm:$0xff] }
 0x7ff   : > { %v3150_v1 = vmul.f32 1.442695, %v3096_v17  ;;  %v3128_v45 = vmul.f32 1.442695, %v3085_v26  ;;  %v9753_v17 = vpop.eup %6755  ;;  %v3089_v26 = vsub.f32 %v11140_v3, %v9696_v29 }
 0x801   : > { %6769 = vpow2.f32 %v3150_v1  ;;  %v9760_v1 = vpop.eup %6757 }
 0x802   : > { %2545 = vadd.xlane.f32.xlu0 %v2544_v46  ;;  %v3097_v46 = vsub.f32 %v9428_v56, %v3061_v28  ;;  %v9730_v40 = vpop.xlane.xlu0 %3063  ;;  %v3126_v28 = vmul.f32 1.442695, %v3084_v54 }
 0x804   : > { %v3067_v27 = vpop.xlane.xlu1 %3066 }
 0x805   : > { %v3100_v56 = vsub.f32 %v9440_v58, %v3067_v27  ;;  %v3101_v44 = vsub.f32 %v9442_v31, %v3067_v27  ;;  %v11136_v58 = vld [vmem:[#allocation42_spill] sm:$0xff]  ;;  %v3170_v31 = vadd.f32 %v9741_v16, %v9736_v53  ;;  %v3130_v27 = vmul.f32 1.442695, %v3086_v42  ;;  %v11142_v42 = vld [vmem:[#allocation65_spill] sm:$0xff] }
 0x806   : > { %2551 = vadd.xlane.f32.xlu0 %v2550_v50  ;;  %v3152_v50 = vmul.f32 1.442695, %v3097_v46  ;;  %v3087_v21 = vsub.f32 %v11136_v58, %v9694_v2  ;;  %v11139_v2 = vld [vmem:[#allocation40_spill] sm:$0xff] }
 0x807   : > { %v3158_v36 = vmul.f32 1.442695, %v3100_v56  ;;  %v3088_v48 = vsub.f32 %v11139_v2, %v9696_v29  ;;  %v11144_v29 = vld [vmem:[#allocation47_spill] sm:$0xff] }
 0x808   : > { %6771 = vpow2.f32 %v3152_v50  ;;  %v3132_v54 = vmul.f32 1.442695, %v3087_v21 }
 0x809   : > { %6773 = vpow2.f32 %v3126_v28  ;;  %v3134_v21 = vmul.f32 1.442695, %v3088_v48 }
 0x80a   : > { %2557 = vadd.xlane.f32.xlu0 %v2556_v23  ;;  %v3160_v23 = vmul.f32 1.442695, %v3101_v44  ;;  %6775 = vpow2.f32 %v3128_v45  ;;  %v3176_v44 = vadd.f32 %v9753_v17, %v9748_v11 }
 0x80b   : > { %6777 = vpow2.f32 %v3158_v36 }
 0x80c   : > { %v3073_v35 = vpop.xlane.xlu0 %3072  ;;  %6779 = vpow2.f32 %v3160_v23 }
 0x80d   : > { %v3104_v6 = vsub.f32 %v11137_v30, %v3073_v35  ;;  %v3105_v0 = vsub.f32 %v11138_v38, %v3073_v35  ;;  %v9765_v35 = vpop.eup %6759  ;;  %6781 = vpow2.f32 %v3130_v27  ;;  %v3090_v30 = vsub.f32 %v11144_v29, %v9706_v13 }
 0x80e   : > { %2563 = vadd.xlane.f32.xlu0 %v2562_v20  ;;  %v11141_v20 = vld [vmem:[#allocation61_spill] sm:$0xff]  ;;  %v9768_v45 = vpop.eup %6761  ;;  %6783 = vpow2.f32 %v3132_v54  ;;  %v11148_v54 = vld [vmem:[#allocation48_spill] sm:$0xff] }
 0x80f   : > { %v3166_v56 = vmul.f32 1.442695, %v3104_v6  ;;  %v3168_v28 = vmul.f32 1.442695, %v3105_v0  ;;  %11143 = vst [vmem:[#allocation42_spill] sm:$0xff] %v9768_v45  ;;  %v9772_v36 = vpop.eup %6763  ;;  %v3179_v0 = vadd.f32 %v9765_v35, %v9760_v1 }
 0x810   : > { %11145 = vst [vmem:[#allocation59_spill] sm:$0xff] %v9772_v36  ;;  %v3136_v6 = vmul.f32 1.442695, %v3089_v26  ;;  %v9776_v2 = vpop.eup %6765  ;;  %v3138_v3 = vmul.f32 1.442695, %v3090_v30  ;;  %v3094_v26 = vsub.f32 %v11148_v54, %v9718_v60  ;;  %v11152_v30 = vld [vmem:[#allocation53_spill] sm:$0xff]  ;;  %v3070_v54 = vpop.xlane.xlu1 %3069 }
 0x811   : > { %6785 = vpow2.f32 %v3166_v56 }
 0x812   : > { %v3662_v46 = vpop.xlane.xlu0 %3661  ;;  %3171 = vadd.xlane.f32.xlu0 %v3170_v31  ;;  %v11146_v31 = vld [vmem:[#allocation44_spill] sm:$0xff]  ;;  %6787 = vpow2.f32 %v3168_v28  ;;  %v3146_v29 = vmul.f32 1.442695, %v3094_v26 }
 0x813   : > { %v3708_v50 = vsub.f32 %v11141_v20, %v3662_v46  ;;  %v3709_v58 = vsub.f32 %v11142_v42, %v3662_v46  ;;  %v3091_v38 = vsub.f32 %v11146_v31, %v9706_v13  ;;  %v9780_v46 = vpop.eup %6767  ;;  %6789 = vpow2.f32 %v3134_v21 }
 0x814   : > { %v9782_v48 = vpop.eup %6769  ;;  %v3197_v13 = vadd.f32 %v9772_v36, %v9768_v45  ;;  %6791 = vpow2.f32 %v3136_v6  ;;  %v3182_v42 = vadd.f32 %v9780_v46, %v9776_v2  ;;  %v3098_v6 = vsub.f32 %v11152_v30, %v9730_v40 }
 0x815   : > { %v3740_v23 = vmul.f32 1.442695, %v3708_v50  ;;  %v3742_v27 = vmul.f32 1.442695, %v3709_v58  ;;  %11147 = vst [vmem:[#allocation58_spill] sm:$0xff] %v9782_v48  ;;  %v9788_v56 = vpop.eup %6771  ;;  %v11150_v50 = vld [vmem:[#allocation49_spill] sm:$0xff] }
 0x816   : > { %3177 = vadd.xlane.f32.xlu0 %v3176_v44  ;;  %11149 = vst [vmem:[#allocation40_spill] sm:$0xff] %v9788_v56  ;;  %v3140_v20 = vmul.f32 1.442695, %v3091_v38  ;;  %v3095_v44 = vsub.f32 %v11150_v50, %v9718_v60  ;;  %v9792_v28 = vpop.eup %6773  ;;  %v3203_v60 = vadd.f32 %v9788_v56, %v9782_v48  ;;  %v3154_v50 = vmul.f32 1.442695, %v3098_v6  ;;  %v3665_v48 = vpop.xlane.xlu1 %3664 }
 0x817   : > { %6793 = vpow2.f32 %v3740_v23  ;;  %v9796_v58 = vpop.eup %6775  ;;  %v11154_v23 = vld [vmem:[#allocation52_spill] sm:$0xff] }
 0x818   : > { %6795 = vpow2.f32 %v3742_v27  ;;  %v9798_v21 = vpop.eup %6777  ;;  %v3148_v38 = vmul.f32 1.442695, %v3095_v44 }
 0x819   : > { %11151 = vst [vmem:[#allocation43_spill] sm:$0xff] %v9798_v21  ;;  %6797 = vpow2.f32 %v3138_v3  ;;  %v9804_v31 = vpop.eup %6779  ;;  %v3185_v3 = vadd.f32 %v9796_v58, %v9792_v28 }
 0x81a   : > { %3180 = vadd.xlane.f32.xlu0 %v3179_v0  ;;  %11153 = vst [vmem:[#allocation61_spill] sm:$0xff] %v9804_v31  ;;  %6799 = vpow2.f32 %v3140_v20  ;;  %v3099_v0 = vsub.f32 %v11154_v23, %v9730_v40  ;;  %v9808_v27 = vpop.eup %6781  ;;  %v3209_v20 = vadd.f32 %v9804_v31, %v9798_v21  ;;  %v9824_v45 = vpop.xlane.xlu0 %3667  ;;  %v11162_v21 = vld [vmem:[#allocation62_spill] sm:$0xff] }
 0x81b   : > { %11155 = vst [vmem:[#allocation65_spill] sm:$0xff] %v9808_v27  ;;  %v9812_v26 = vpop.eup %6783  ;;  %6801 = vpow2.f32 %v3146_v29 }
 0x81c   : > { %3198 = vadd.xlane.f32.xlu1 %v3197_v13  ;;  %11156 = vst [vmem:[#allocation47_spill] sm:$0xff] %v9812_v26  ;;  %v9814_v13 = vpop.eup %6785  ;;  %6803 = vpow2.f32 %v3148_v38  ;;  %v3156_v44 = vmul.f32 1.442695, %v3099_v0  ;;  %v3188_v29 = vadd.f32 %v9812_v26, %v9808_v27  ;;  %v3710_v38 = vsub.f32 %v11162_v21, %v3665_v48  ;;  %v9840_v27 = vpop.xlane.xlu1 %3670 }
 0x81d   : > { %11157 = vst [vmem:[#allocation44_spill] sm:$0xff] %v9814_v13  ;;  %v9819_v40 = vpop.eup %6787  ;;  %6805 = vpow2.f32 %v3154_v50 }
 0x81e   : > { %3183 = vadd.xlane.f32.xlu0 %v3182_v42  ;;  %v11158_v42 = vld [vmem:[#allocation55_spill] sm:$0xff]  ;;  %11159 = vst [vmem:[#allocation48_spill] sm:$0xff] %v9819_v40  ;;  %v9822_v56 = vpop.eup %6789  ;;  %v3215_v0 = vadd.f32 %v9819_v40, %v9814_v13  ;;  %6807 = vpow2.f32 %v3156_v44 }
 0x81f   : > { %v3102_v30 = vsub.f32 %v11158_v42, %v3070_v54  ;;  %v9828_v6 = vpop.eup %6791 }
 0x820   : > { %3204 = vadd.xlane.f32.xlu1 %v3203_v60  ;;  %v11160_v60 = vld [vmem:[#allocation57_spill] sm:$0xff]  ;;  %v3191_v21 = vadd.f32 %v9828_v6, %v9822_v56 }
 0x821   : > { %v3103_v23 = vsub.f32 %v11160_v60, %v3070_v54  ;;  %v3162_v42 = vmul.f32 1.442695, %v3102_v30  ;;  %v3744_v30 = vmul.f32 1.442695, %v3710_v38 }
 0x822   : > { %3186 = vadd.xlane.f32.xlu0 %v3185_v3  ;;  %v9830_v3 = vpop.eup %6793  ;;  %v9842_v26 = vpop.xlane.xlu0 %3673 }
 0x823   : > { %11161 = vst [vmem:[#allocation49_spill] sm:$0xff] %v9830_v3  ;;  %v9835_v54 = vpop.eup %6795  ;;  %v3164_v60 = vmul.f32 1.442695, %v3103_v23  ;;  %6809 = vpow2.f32 %v3162_v42 }
 0x824   : > { %3210 = vadd.xlane.f32.xlu1 %v3209_v20  ;;  %11163 = vst [vmem:[#allocation53_spill] sm:$0xff] %v9835_v54  ;;  %v11164_v20 = vld [vmem:[#allocation66_spill] sm:$0xff]  ;;  %v9838_v36 = vpop.eup %6797  ;;  %v3804_v44 = vadd.f32 %v9835_v54, %v9830_v3 }
 0x825   : > { %v3711_v31 = vsub.f32 %v11164_v20, %v3665_v48  ;;  %11165 = vst [vmem:[#allocation52_spill] sm:$0xff] %v9838_v36  ;;  %v9846_v50 = vpop.eup %6799  ;;  %6811 = vpow2.f32 %v3164_v60 }
 0x826   : > { %3189 = vadd.xlane.f32.xlu0 %v3188_v29  ;;  %v9850_v23 = vpop.eup %6801  ;;  %v9852_v29 = vpop.xlane.xlu1 %3676  ;;  %6813 = vpow2.f32 %v3744_v30 }
 0x827   : > { %v3746_v48 = vmul.f32 1.442695, %v3711_v31  ;;  %11166 = vst [vmem:[#allocation55_spill] sm:$0xff] %v9850_v23  ;;  %v9858_v13 = vpop.eup %6803 }
 0x828   : > { %3216 = vadd.xlane.f32.xlu1 %v3215_v0  ;;  %v3194_v0 = vadd.f32 %v9846_v50, %v9838_v36  ;;  %11167 = vst [vmem:[#allocation57_spill] sm:$0xff] %v9858_v13  ;;  %v9860_v42 = vpop.eup %6805  ;;  %v3200_v31 = vadd.f32 %v9858_v13, %v9850_v23 }
 0x829   : > { %6815 = vpow2.f32 %v3746_v48  ;;  %11168 = vst [vmem:[#allocation62_spill] sm:$0xff] %v9860_v42  ;;  %v9866_v60 = vpop.eup %6807 }
 0x82a   : > { %3192 = vadd.xlane.f32.xlu0 %v3191_v21  ;;  %v9862_v38 = vpop.xlane.xlu1 %3679  ;;  %11169 = vst [vmem:[#allocation66_spill] sm:$0xff] %v9866_v60  ;;  %v3206_v30 = vadd.f32 %v9866_v60, %v9860_v42  ;;  %v7019_v42 = vld [vmem:[#allocation2 + $0x28] sm:$0xff] }
 0x82c   : > { %3805 = vadd.xlane.f32.xlu1 %v3804_v44  ;;  %v9854_v20 = vpop.xlane.xlu0 %3682 }
 0x82d   : > { %v9868_v44 = vpop.eup %6809 }
 0x82e   : > { %3195 = vadd.xlane.f32.xlu0 %v3194_v0  ;;  %11170 = vst [vmem:[#allocation102_spill] sm:$0xff] %v9868_v44 }
 0x82f   : > { %v9872_v0 = vpop.eup %6811 }
 0x830   : > { %11171 = vst [vmem:[#allocation103_spill] sm:$0xff] %v9872_v0  ;;  %v9876_v40 = vpop.eup %6813  ;;  %v3212_v23 = vadd.f32 %v9872_v0, %v9868_v44 }
 0x831   : > { %11173 = vst [vmem:[#allocation105_spill] sm:$0xff] %v9876_v40 }
 0x832   : > { %v2522_v21 = vpop.xlane.xlu0 %2521  ;;  %3201 = vadd.xlane.f32.xlu0 %v3200_v31 }
 0x833   : > { %6817 = vrcp.f32 %v2522_v21  ;;  %v9880_v13 = vpop.eup %6815 }
 0x834   : > { %v2525_v54 = vpop.xlane.xlu1 %2524  ;;  %11174 = vst [vmem:[#allocation106_spill] sm:$0xff] %v9880_v13  ;;  %v3807_v21 = vadd.f32 %v9880_v13, %v9876_v40 }
 0x835   : > { %6819 = vrcp.f32 %v2525_v54 }
 0x836   : > { %v9874_v48 = vpop.xlane.xlu0 %3685  ;;  %3207 = vadd.xlane.f32.xlu0 %v3206_v30 }
 0x837   : > { %11172 = vst [vmem:[#allocation104_spill] sm:$0xff] %v9874_v48 }
 0x83a   : > { %v2528_v31 = vpop.xlane.xlu0 %2527  ;;  %3213 = vadd.xlane.f32.xlu0 %v3212_v23  ;;  %v7020_v23 = vld [vmem:[#allocation2 + $0x100] sm:$0xff] }
 0x83b   : > { %6821 = vrcp.f32 %v2528_v31 }
 0x83d   : > { %v6818_v36 = vpop.eup %6817  ;;  %3918 = vrot.lane.b32.xlu1 %v7019_v42, %s7354_s18  ;;  %v7021_v42 = vld [vmem:[#allocation2 + $0x40] sm:$0xff] }
 0x83e   : > { %v9885_v54 = vpop.xlane.xlu0 %3691  ;;  %3808 = vadd.xlane.f32.xlu0 %v3807_v21  ;;  %v2584_v48 = vmul.f32 %v6818_v36, %v9532_v39  ;;  %v2585_v44 = vmul.f32 %v6818_v36, %v9536_v25  ;;  %v11175_v39 = vld [vmem:[#allocation41_spill] sm:$0xff]  ;;  %v11176_v21 = vld [vmem:[#allocation56_spill] sm:$0xff]  ;;  %v11177_v25 = vld [vmem:[#allocation38_spill] sm:$0xff] }
 0x83f   : > { %v6820_v30 = vpop.eup %6819  ;;  %v11178_v36 = vld [vmem:[#allocation45_spill] sm:$0xff] }
 0x840   : > { %v2586_v60 = vmul.f32 %v6820_v30, %v9540_v32  ;;  %v2587_v0 = vmul.f32 %v6820_v30, %v9548_v10 }
 0x841   : > { %3936 = vrot.lane.b32.xlu1 %v7020_v23, %s7354_s18  ;;  %v11181_v23 = vld [vmem:[#allocation70_spill] sm:$0xff] }
 0x842   : > { %v2531_v13 = vpop.xlane.xlu0 %2530  ;;  %v2617_v40 = vpack.c.bf16 %v2587_v0, %v2585_v44  ;;  %v2616_v3 = vpack.c.bf16 %v2586_v60, %v2584_v48  ;;  %v11179_v60 = vld [vmem:[#allocation46_spill] sm:$0xff]  ;;  %v11180_v0 = vld [vmem:[#allocation63_spill] sm:$0xff] }
 0x843   : > { %6823 = vrcp.f32 %v2531_v13 }
 0x844   : > { %2728 = vmatprep.mubr.bf16.mxu0 %v2617_v40 }
 0x845   : > { %3920 = vrot.lane.b32.xlu1 %v7021_v42, %s7354_s18  ;;  %2729 = vmatmul.mubr.bf16.vlgmr.msra.gmra.mrb[32].mxu0 %v2616_v3  ;;  %v6822_v44 = vpop.eup %6821  ;;  %v3714_v42 = vsub.f32 %v11181_v23, %v9840_v27  ;;  %v11190_v23 = vld [vmem:[#allocation68_spill] sm:$0xff] }
 0x846   : > { %5788 = vmatpush3.bf16.msra.mxu0 %v11175_v39  ;;  %v2534_v32 = vpop.xlane.xlu0 %2533  ;;  %v2589_v3 = vmul.f32 %v6822_v44, %v9562_v37  ;;  %v2588_v31 = vmul.f32 %v6822_v44, %v9558_v59  ;;  %v11182_v39 = vld [vmem:[#allocation72_spill] sm:$0xff]  ;;  %v7022_v37 = vld [vmem:[#allocation2 + $0xe8] sm:$0xff] }
 0x847   : > { %5789 = vmatprep.subr.bf16.mxu0 %v11176_v21  ;;  %6825 = vrcp.f32 %v2534_v32  ;;  %v3715_v21 = vsub.f32 %v11182_v39, %v9840_v27  ;;  %v3752_v59 = vmul.f32 1.442695, %v3714_v42  ;;  %v11186_v27 = vld [vmem:[#allocation67_spill] sm:$0xff]  ;;  %v3713_v42 = vsub.f32 %v11190_v23, %v9824_v45  ;;  %v9945_v23 = vpop.xlane.xlu1 %3688 }
 0x84a   : > { %5790 = vmatpush3.bf16.msra.mxu0 %v11177_v25  ;;  %v9896_v10 = vpop.xlane.xlu0 %3697  ;;  %v11183_v25 = vld [vmem:[#allocation51_spill] sm:$0xff] }
 0x84b   : > { %5791 = vmatprep.subr.bf16.mxu0 %v11178_v36 }
 0x84d   : > { %v6824_v13 = vpop.eup %6823 }
 0x84e   : > { %5792 = vmatpush3.bf16.msra.mxu0 %v11179_v60  ;;  %v2537_v40 = vpop.xlane.xlu0 %2536  ;;  %v2591_v48 = vmul.f32 %v6824_v13, %v9583_v15  ;;  %v2590_v30 = vmul.f32 %v6824_v13, %v9580_v34  ;;  %v3754_v15 = vmul.f32 1.442695, %v3715_v21  ;;  %v11185_v34 = vld [vmem:[#allocation54_spill] sm:$0xff]  ;;  %v11187_v13 = vld [vmem:[#allocation60_spill] sm:$0xff] }
 0x84f   : > { %5793 = vmatprep.subr.bf16.mxu0 %v11180_v0  ;;  %6827 = vrcp.f32 %v2537_v40  ;;  %v11184_v0 = vld [vmem:[#allocation50_spill] sm:$0xff] }
 0x850   : > { %v2619_v36 = vpack.c.bf16 %v2591_v48, %v2589_v3  ;;  %v2618_v60 = vpack.c.bf16 %v2590_v30, %v2588_v31  ;;  %v11188_v3 = vld [vmem:[#allocation69_spill] sm:$0xff]  ;;  %v11189_v31 = vld [vmem:[#allocation64_spill] sm:$0xff] }
 0x851   : > { %v6826_v40 = vpop.eup %6825  ;;  %v3712_v48 = vsub.f32 %v11188_v3, %v9824_v45 }
 0x852   : > { %5794 = vmatpush3.bf16.msra.mxu0 %v11183_v25  ;;  %v2540_v32 = vpop.xlane.xlu0 %2539  ;;  %2736 = vmatprep.mubr.bf16.mxu0 %v2619_v36  ;;  %v2593_v21 = vmul.f32 %v6826_v40, %v9600_v22  ;;  %v2592_v36 = vmul.f32 %v6826_v40, %v9594_v51 }
 0x853   : > { %5795 = vmatprep.subr.bf16.mxu0 %v11184_v0  ;;  %6829 = vrcp.f32 %v2540_v32  ;;  %2737 = vmatmul.mubr.bf16.gmra.mrb[36].mxu0 %v2618_v60  ;;  %v11191_v32 = vld [vmem:[#allocation71_spill] sm:$0xff] }
 0x854   : > { %3934 = vrot.lane.b32.xlu0 %v7022_v37, %s7354_s18  ;;  %v3748_v37 = vmul.f32 1.442695, %v3712_v48 }
 0x856   : > { %5796 = vmatpush3.bf16.msra.mxu0 %v11185_v34  ;;  %v2543_v44 = vpop.xlane.xlu0 %2542  ;;  %v3750_v34 = vmul.f32 1.442695, %v3713_v42  ;;  %v7023_v42 = vld [vmem:[#allocation2 + $0x58] sm:$0xff] }
 0x857   : > { %6831 = vrcp.f32 %v2543_v44  ;;  %5797 = vmatprep.subr.bf16.mxu0 %v11186_v27 }
 0x858   : > { %6833 = vpow2.f32 %v3752_v59 }
 0x859   : > { %6835 = vpow2.f32 %v3754_v15  ;;  %v6828_v30 = vpop.eup %6827  ;;  %v11192_v15 = vld [vmem:[#allocation73_spill] sm:$0xff] }
 0x85a   : > { %5798 = vmatpush3.bf16.msra.mxu0 %v11187_v13  ;;  %v9920_v39 = vpop.xlane.xlu0 %3706  ;;  %v2595_v25 = vmul.f32 %v6828_v30, %v9620_v47  ;;  %v2594_v60 = vmul.f32 %v6828_v30, %v9616_v5  ;;  %6837 = vpow2.f32 %v3748_v37  ;;  %v11193_v5 = vld [vmem:[#allocation75_spill] sm:$0xff] }
 0x85b   : > { %5799 = vmatprep.subr.bf16.mxu0 %v11189_v31  ;;  %6839 = vpow2.f32 %v3750_v34  ;;  %v7026_v34 = vld [vmem:[#allocation2 + $0x130] sm:$0xff] }
 0x85c   : > { %v2621_v59 = vpack.c.bf16 %v2595_v25, %v2593_v21  ;;  %v2620_v44 = vpack.c.bf16 %v2594_v60, %v2592_v36  ;;  %v9949_v21 = vpop.xlane.xlu1 %3694  ;;  %v3718_v36 = vsub.f32 %v9508_v12, %v9852_v29  ;;  %v7025_v60 = vld [vmem:[#allocation2 + $0x118] sm:$0xff] }
 0x85d   : > { %v6830_v0 = vpop.eup %6829 }
 0x85e   : > { %5800 = vmatpush3.bf16.msra.mxu0 %v11191_v32  ;;  %2744 = vmatprep.mubr.bf16.mxu0 %v2621_v59  ;;  %v2597_v22 = vmul.f32 %v6830_v0, %v9630_v8  ;;  %v3933_v51 = vpop.permute.xlu0 %3932  ;;  %v2596_v48 = vmul.f32 %v6830_v0, %v9626_v49  ;;  %v7024_v49 = vld [vmem:[#allocation2 + $0x70] sm:$0xff] }
 0x85f   : > { %5801 = vmatprep.subr.bf16.mxu0 %v11192_v15  ;;  %2745 = vmatmul.mubr.bf16.gmra.mrb[40].mxu0 %v2620_v44  ;;  %v11194_v0 = vld [vmem:[#allocation76_spill] sm:$0xff]  ;;  %v3760_v15 = vmul.f32 1.442695, %v3718_v36 }
 0x860   : > { %v9951_v25 = vpop.xlane.xlu1 %3700  ;;  %v3719_v37 = vsub.f32 %v11194_v0, %v9852_v29  ;;  %v11196_v29 = vld [vmem:[#allocation74_spill] sm:$0xff] }
 0x861   : > { %v6832_v45 = vpop.eup %6831 }
 0x862   : > { %v2599_v47 = vmul.f32 %v6832_v45, %v9640_v43  ;;  %v2598_v27 = vmul.f32 %v6832_v45, %v9632_v33  ;;  %v9931_v13 = vpop.eup %6833  ;;  %5802 = vmatpush3.bf16.msra.mxu0 %v11193_v5  ;;  %v3762_v44 = vmul.f32 1.442695, %v3719_v37  ;;  %v3717_v5 = vsub.f32 %v11196_v29, %v9842_v26 }
 0x863   : > { %v9934_v40 = vpop.eup %6835  ;;  %5883 = vmatprep.subr.bf16.mxu0 %v3933_v51 }
 0x864   : > { %v2623_v3 = vpack.c.bf16 %v2599_v47, %v2597_v22  ;;  %v2622_v31 = vpack.c.bf16 %v2598_v27, %v2596_v48  ;;  %v3813_v8 = vadd.f32 %v9934_v40, %v9931_v13  ;;  %v9939_v33 = vpop.eup %6837  ;;  %v9953_v32 = vpop.xlane.xlu1 %3703  ;;  %v11195_v47 = vld [vmem:[#allocation77_spill] sm:$0xff] }
 0x865   : > { %v9941_v43 = vpop.eup %6839  ;;  %v3716_v27 = vsub.f32 %v11195_v47, %v9842_v26 }
 0x866   : > { %2752 = vmatprep.mubr.bf16.mxu0 %v2623_v3  ;;  %v3810_v30 = vadd.f32 %v9941_v43, %v9939_v33 }
 0x867   : > { %2753 = vmatmul.mubr.bf16.gmra.mrb[44].mxu0 %v2622_v31  ;;  %v3756_v31 = vmul.f32 1.442695, %v3716_v27 }
 0x868   : > { %v2549_v59 = vpop.xlane.xlu1 %2548 }
 0x869   : > { %3814 = vadd.xlane.f32.xlu1 %v3813_v8  ;;  %6841 = vrcp.f32 %v2549_v59  ;;  %v3758_v8 = vmul.f32 1.442695, %v3717_v5 }
 0x86c   : > { %v2555_v45 = vpop.xlane.xlu1 %2554 }
 0x870   : > { %v2561_v51 = vpop.xlane.xlu1 %2560 }
 0x873   : > { %3811 = vadd.xlane.f32.xlu0 %v3810_v30  ;;  %v6842_v48 = vpop.eup %6841 }
 0x874   : > { %v2602_v37 = vmul.f32 %v6842_v48, %v9634_v19  ;;  %v2567_v26 = vpop.xlane.xlu1 %2566 }
 0x87a   : > { %3922 = vrot.lane.b32.xlu1 %v7023_v42, %s7354_s18 }
 0x87e   : > { %3924 = vrot.lane.b32.xlu1 %v7024_v49, %s7354_s18 }
 0x889   : > { %3938 = vrot.lane.b32.xlu0 %v7025_v60, %s7354_s18  ;;  %v2603_v60 = vmul.f32 %v6842_v48, %v9636_v52 }
 0x88d   : > { %3940 = vrot.lane.b32.xlu0 %v7026_v34, %s7354_s18 }
 0x88f   : > { %v2546_v22 = vpop.xlane.xlu0 %2545 }
 0x890   : > { %6843 = vrcp.f32 %v2546_v22 }
 0x891   : > { %6845 = vpow2.f32 %v3760_v15 }
 0x892   : > { %6847 = vrcp.f32 %v2555_v45 }
 0x893   : > { %6849 = vpow2.f32 %v3762_v44  ;;  %v2552_v12 = vpop.xlane.xlu0 %2551 }
 0x894   : > { %6851 = vrcp.f32 %v2552_v12 }
 0x895   : > { %6853 = vrcp.f32 %v2561_v51 }
 0x897   : > { %v2558_v3 = vpop.xlane.xlu0 %2557 }
 0x898   : > { %6855 = vrcp.f32 %v2558_v3 }
 0x899   : > { %6857 = vpow2.f32 %v3756_v31 }
 0x89a   : > { %v6844_v30 = vpop.eup %6843  ;;  %6859 = vpow2.f32 %v3758_v8 }
 0x89b   : > { %v9965_v42 = vpop.eup %6845  ;;  %v2564_v49 = vpop.xlane.xlu0 %2563  ;;  %v2601_v36 = vmul.f32 %v6844_v30, %v9692_v63  ;;  %v2600_v0 = vmul.f32 %v6844_v30, %v9690_v24 }
 0x89c   : > { %v6848_v59 = vpop.eup %6847  ;;  %6861 = vrcp.f32 %v2564_v49  ;;  %v3175_v24 = vpop.xlane.xlu1 %3174 }
 0x89d   : > { %v9971_v15 = vpop.eup %6849  ;;  %v2625_v34 = vpack.c.bf16 %v2603_v60, %v2601_v36  ;;  %v2624_v44 = vpack.c.bf16 %v2602_v37, %v2600_v0  ;;  %v2607_v52 = vmul.f32 %v6848_v59, %v9650_v55  ;;  %6863 = vrcp.f32 %v2567_v26 }
 0x89e   : > { %v6852_v45 = vpop.eup %6851  ;;  %v3819_v19 = vadd.f32 %v9971_v15, %v9965_v42 }
 0x89f   : > { %v3172_v22 = vpop.xlane.xlu0 %3171  ;;  %2760 = vmatprep.mubr.bf16.mxu0 %v2625_v34  ;;  %v2605_v63 = vmul.f32 %v6852_v45, %v9704_v41  ;;  %v6854_v12 = vpop.eup %6853  ;;  %v2604_v51 = vmul.f32 %v6852_v45, %v9700_v9  ;;  %v2606_v41 = vmul.f32 %v6848_v59, %v9648_v57  ;;  %v11197_v59 = vld [vmem:[#allocation99_spill] sm:$0xff] }
 0x8a0   : > { %2761 = vmatmul.mubr.bf16.gmra.mrb[48].mxu0 %v2624_v44  ;;  %v2611_v55 = vmul.f32 %v6854_v12, %v9658_v7  ;;  %v3917_v48 = vpop.permute.xlu1 %3916  ;;  %6865 = vrcp.f32 %v3172_v22  ;;  %v2610_v37 = vmul.f32 %v6854_v12, %v9656_v61 }
 0x8a1   : > { %v2627_v47 = vpack.c.bf16 %v2607_v52, %v2605_v63  ;;  %v2626_v31 = vpack.c.bf16 %v2606_v41, %v2604_v51  ;;  %6867 = vrcp.f32 %v3175_v24  ;;  %v7028_v41 = vld [vmem:[#allocation2 + $0xa0] sm:$0xff] }
 0x8a2   : > { %v6856_v27 = vpop.eup %6855  ;;  %3820 = vadd.xlane.f32.xlu1 %v3819_v19  ;;  %v11198_v19 = vld [vmem:[#allocation98_spill] sm:$0xff] }
 0x8a3   : > { %v3178_v29 = vpop.xlane.xlu0 %3177  ;;  %2768 = vmatprep.mubr.bf16.mxu0 %v2627_v47  ;;  %v2609_v5 = vmul.f32 %v6856_v27, %v9715_v62  ;;  %v9981_v3 = vpop.eup %6857  ;;  %v2608_v7 = vmul.f32 %v6856_v27, %v9710_v18  ;;  %v11199_v47 = vld [vmem:[#allocation101_spill] sm:$0xff] }
 0x8a4   : > { %v9983_v8 = vpop.eup %6859 }
 0x8a5   : > { %v2629_v49 = vpack.c.bf16 %v2611_v55, %v2609_v5  ;;  %v3816_v57 = vadd.f32 %v9983_v8, %v9981_v3  ;;  %v2628_v34 = vpack.c.bf16 %v2610_v37, %v2608_v7 }
 0x8a6   : > { %v6862_v36 = vpop.eup %6861 }
 0x8a7   : > { %v3181_v30 = vpop.xlane.xlu0 %3180  ;;  %v6864_v9 = vpop.eup %6863  ;;  %v2613_v0 = vmul.f32 %v6862_v36, %v9727_v14  ;;  %v2612_v18 = vmul.f32 %v6862_v36, %v9722_v4  ;;  %v7027_v14 = vld [vmem:[#allocation2 + $0x88] sm:$0xff]  ;;  %v11200_v36 = vld [vmem:[#allocation100_spill] sm:$0xff] }
 0x8a8   : > { %2769 = vmatmul.mubr.bf16.gmra.mrb[52].mxu0 %v2626_v31  ;;  %v2615_v26 = vmul.f32 %v6864_v9, %v11197_v59  ;;  %6869 = vrcp.f32 %v3181_v30  ;;  %v2614_v12 = vmul.f32 %v6864_v9, %v11198_v19 }
 0x8a9   : > { %2776 = vmatprep.mubr.bf16.mxu0 %v2629_v49  ;;  %v9985_v60 = vpop.xlane.xlu1 %3198  ;;  %6871 = vrcp.f32 %v3178_v29 }
 0x8aa   : > { %v2631_v45 = vpack.c.bf16 %v2615_v26, %v2613_v0  ;;  %v6866_v22 = vpop.eup %6865  ;;  %v2630_v29 = vpack.c.bf16 %v2614_v12, %v2612_v18 }
 0x8ab   : > { %v3184_v62 = vpop.xlane.xlu0 %3183  ;;  %v6868_v52 = vpop.eup %6867  ;;  %v3235_v61 = vmul.f32 %v6866_v22, %v9741_v16  ;;  %v3234_v16 = vmul.f32 %v6866_v22, %v9736_v53 }
 0x8ac   : > { %3817 = vadd.xlane.f32.xlu0 %v3816_v57  ;;  %v3237_v27 = vmul.f32 %v6868_v52, %v11199_v47  ;;  %v3236_v9 = vmul.f32 %v6868_v52, %v11200_v36 }
 0x8ad   : > { %v9993_v63 = vpop.xlane.xlu1 %3204 }
 0x8ae   : > { %v3267_v55 = vpack.c.bf16 %v3237_v27, %v3235_v61  ;;  %v3266_v0 = vpack.c.bf16 %v3236_v9, %v3234_v16 }
 0x8af   : > { %v3187_v44 = vpop.xlane.xlu0 %3186 }
 0x8b0   : > { %2777 = vmatmul.mubr.bf16.gmra.mrb[56].mxu0 %v2628_v34  ;;  %6873 = vrcp.f32 %v3187_v44  ;;  %v7029_v44 = vld [vmem:[#allocation2 + $0x148] sm:$0xff] }
 0x8b1   : > { %2784 = vmatprep.mubr.bf16.mxu0 %v2631_v45  ;;  %v10000_v51 = vpop.xlane.xlu1 %3210  ;;  %6875 = vrcp.f32 %v3184_v62  ;;  %v11201_v62 = vld [vmem:[#allocation81_spill] sm:$0xff] }
 0x8b2   : > { %v6870_v4 = vpop.eup %6869  ;;  %v3722_v34 = vsub.f32 %v11201_v62, %v9854_v20  ;;  %v11206_v62 = vld [vmem:[#allocation65_spill] sm:$0xff] }
 0x8b3   : > { %v3190_v24 = vpop.xlane.xlu0 %3189  ;;  %3926 = vrot.lane.b32.xlu1 %v7027_v14, %s7354_s18  ;;  %v6872_v31 = vpop.eup %6871  ;;  %v3241_v49 = vmul.f32 %v6870_v4, %v9765_v35  ;;  %v3240_v45 = vmul.f32 %v6870_v4, %v9760_v1 }
 0x8b4   : > { %v3239_v7 = vmul.f32 %v6872_v31, %v9753_v17  ;;  %v11202_v17 = vld [vmem:[#allocation83_spill] sm:$0xff]  ;;  %v3768_v14 = vmul.f32 1.442695, %v3722_v34 }
 0x8b5   : > { %v10006_v57 = vpop.xlane.xlu1 %3216  ;;  %v3723_v22 = vsub.f32 %v11202_v17, %v9854_v20  ;;  %v11208_v17 = vld [vmem:[#allocation49_spill] sm:$0xff] }
 0x8b6   : > { %v3269_v59 = vpack.c.bf16 %v3241_v49, %v3239_v7 }
 0x8b7   : > { %v3193_v5 = vpop.xlane.xlu0 %3192  ;;  %3928 = vrot.lane.b32.xlu1 %v7028_v41, %s7354_s18  ;;  %v3770_v12 = vmul.f32 1.442695, %v3723_v22  ;;  %v11209_v22 = vld [vmem:[#allocation105_spill] sm:$0xff] }
 0x8b8   : > { %2785 = vmatmul.mubr.bf16.gmra.mrb[60].mxu0 %v2630_v29  ;;  %6877 = vrcp.f32 %v3193_v5  ;;  %v11203_v5 = vld [vmem:[#allocation78_spill] sm:$0xff] }
 0x8b9   : > { %3362 = vmatprep.mubr.bf16.mxu0 %v3267_v55  ;;  %6879 = vrcp.f32 %v3190_v24  ;;  %v3806_v35 = vpop.xlane.xlu1 %3805  ;;  %v3238_v24 = vmul.f32 %v6872_v31, %v9748_v11  ;;  %v3720_v41 = vsub.f32 %v11203_v5, %v9862_v38  ;;  %v11205_v31 = vld [vmem:[#allocation47_spill] sm:$0xff] }
 0x8ba   : > { %v6874_v26 = vpop.eup %6873 }
 0x8bb   : > { %v3196_v30 = vpop.xlane.xlu0 %3195  ;;  %v6876_v53 = vpop.eup %6875  ;;  %v3245_v18 = vmul.f32 %v6874_v26, %v9796_v58  ;;  %v3268_v19 = vpack.c.bf16 %v3240_v45, %v3238_v24  ;;  %v3764_v7 = vmul.f32 1.442695, %v3720_v41 }
 0x8bc   : > { %v3243_v61 = vmul.f32 %v6876_v53, %v9780_v46  ;;  %6881 = vrcp.f32 %v3196_v30  ;;  %v3244_v46 = vmul.f32 %v6874_v26, %v9792_v28  ;;  %v3242_v55 = vmul.f32 %v6876_v53, %v9776_v2 }
 0x8bd   : > { %6883 = vrcp.f32 %v9985_v60  ;;  %v3919_v20 = vpop.permute.xlu1 %3918  ;;  %v11204_v60 = vld [vmem:[#allocation79_spill] sm:$0xff] }
 0x8be   : > { %v3271_v1 = vpack.c.bf16 %v3245_v18, %v3243_v61  ;;  %6885 = vpow2.f32 %v3768_v14  ;;  %v3721_v4 = vsub.f32 %v11204_v60, %v9862_v38  ;;  %v3270_v49 = vpack.c.bf16 %v3244_v46, %v3242_v55  ;;  %v11214_v60 = vld [vmem:[#allocation55_spill] sm:$0xff] }
 0x8bf   : > { %v3202_v37 = vpop.xlane.xlu0 %3201  ;;  %6887 = vrcp.f32 %v3806_v35 }
 0x8c0   : > { %3363 = vmatmul.mubr.bf16.vlgmr.msra.gmra.mrb[64].mxu0 %v3266_v0  ;;  %6889 = vpow2.f32 %v3770_v12  ;;  %v11211_v12 = vld [vmem:[#allocation57_spill] sm:$0xff] }
 0x8c1   : > { %5884 = vmatpush3.bf16.msra.mxu0 %v3917_v48  ;;  %3370 = vmatprep.mubr.bf16.mxu0 %v3269_v59  ;;  %v7030_v48 = vld [vmem:[#allocation2 + $0x160] sm:$0xff]  ;;  %v3937_v30 = vpop.permute.xlu1 %3936 }
 0x8c2   : > { %3942 = vrot.lane.b32.xlu0 %v7029_v44, %s7354_s18  ;;  %v6878_v27 = vpop.eup %6877 }
 0x8c3   : > { %v3208_v52 = vpop.xlane.xlu0 %3207  ;;  %v6880_v11 = vpop.eup %6879  ;;  %v3249_v29 = vmul.f32 %v6878_v27, %v9828_v6  ;;  %v3766_v6 = vmul.f32 1.442695, %v3721_v4  ;;  %v3248_v38 = vmul.f32 %v6878_v27, %v9822_v56  ;;  %v11212_v27 = vld [vmem:[#allocation42_spill] sm:$0xff] }
 0x8c4   : > { %v3247_v16 = vmul.f32 %v6880_v11, %v11205_v31  ;;  %v3246_v34 = vmul.f32 %v6880_v11, %v11206_v62  ;;  %v11213_v11 = vld [vmem:[#allocation40_spill] sm:$0xff]  ;;  %v7031_v62 = vld [vmem:[#allocation2 + $0xb8] sm:$0xff] }
 0x8c5   : > { %v3921_v26 = vpop.permute.xlu1 %3920 }
 0x8c6   : > { %3944 = vrot.lane.b32.xlu0 %v7030_v48, %s7354_s18  ;;  %v3273_v28 = vpack.c.bf16 %v3249_v29, %v3247_v16  ;;  %v6882_v9 = vpop.eup %6881  ;;  %v3272_v45 = vpack.c.bf16 %v3248_v38, %v3246_v34  ;;  %v11210_v48 = vld [vmem:[#allocation52_spill] sm:$0xff]  ;;  %v11215_v16 = vld [vmem:[#allocation66_spill] sm:$0xff]  ;;  %v11220_v34 = vld [vmem:[#allocation43_spill] sm:$0xff] }
 0x8c7   : > { %v10019_v47 = vpop.xlane.xlu0 %3213  ;;  %v6884_v2 = vpop.eup %6883 }
 0x8c8   : > { %3371 = vmatmul.mubr.bf16.gmra.mrb[68].mxu0 %v3268_v19  ;;  %v10032_v0 = vpop.eup %6885  ;;  %v3250_v19 = vmul.f32 %v6882_v9, %v11210_v48  ;;  %v11224_v48 = vld [vmem:[#allocation44_spill] sm:$0xff] }
 0x8c9   : > { %3378 = vmatprep.mubr.bf16.mxu0 %v3271_v1  ;;  %v6888_v59 = vpop.eup %6887 }
 0x8ca   : > { %v10036_v53 = vpop.eup %6889  ;;  %v10040_v56 = vmul.f32 %v6888_v59, %v11208_v17 }
 0x8cb   : > { %v3809_v58 = vpop.xlane.xlu0 %3808  ;;  %v3825_v14 = vadd.f32 %v10036_v53, %v10032_v0 }
 0x8cc   : > { %6891 = vrcp.f32 %v3809_v58 }
 0x8cd   : > { %6893 = vrcp.f32 %v3202_v37  ;;  %v3251_v37 = vmul.f32 %v6882_v9, %v9846_v50 }
 0x8ce   : > { %6895 = vrcp.f32 %v9993_v63  ;;  %v11207_v63 = vld [vmem:[#allocation59_spill] sm:$0xff] }
 0x8cf   : > { %v3935_v36 = vpop.permute.xlu0 %3934  ;;  %6897 = vpow2.f32 %v3764_v7  ;;  %v3253_v35 = vmul.f32 %v6884_v2, %v11207_v63 }
 0x8d0   : > { %3379 = vmatmul.mubr.bf16.gmra.mrb[72].mxu0 %v3270_v49  ;;  %5885 = vmatprep.subr.bf16.mxu0 %v3935_v36  ;;  %6899 = vpow2.f32 %v3766_v6  ;;  %v11216_v49 = vld [vmem:[#allocation58_spill] sm:$0xff] }
 0x8d1   : > { %3386 = vmatprep.mubr.bf16.mxu0 %v3273_v28  ;;  %5886 = vmatpush3.bf16.msra.mxu0 %v3919_v20  ;;  %6901 = vrcp.f32 %v3208_v52  ;;  %v3275_v50 = vpack.c.bf16 %v3253_v35, %v3251_v37  ;;  %v3252_v20 = vmul.f32 %v6884_v2, %v11212_v27  ;;  %v11218_v2 = vld [vmem:[#allocation62_spill] sm:$0xff]  ;;  %v11219_v37 = vld [vmem:[#allocation103_spill] sm:$0xff]  ;;  %v11221_v35 = vld [vmem:[#allocation48_spill] sm:$0xff] }
 0x8d2   : > { %5887 = vmatprep.subr.bf16.mxu0 %v3937_v30  ;;  %6903 = vrcp.f32 %v10000_v51  ;;  %v11226_v27 = vld [vmem:[#allocation84_spill] sm:$0xff] }
 0x8d3   : > { %6905 = vrcp.f32 %v10019_v47  ;;  %v3274_v51 = vpack.c.bf16 %v3252_v20, %v3250_v19  ;;  %v11217_v47 = vld [vmem:[#allocation61_spill] sm:$0xff]  ;;  %v3726_v20 = vsub.f32 %v11226_v27, %v9945_v23 }
 0x8d4   : > { %6907 = vrcp.f32 %v10006_v57 }
 0x8d5   : > { %5888 = vmatpush3.bf16.msra.mxu0 %v3921_v26 }
 0x8d6   : > { %v6892_v44 = vpop.eup %6891 }
 0x8d7   : > { %v10043_v18 = vmul.f32 %v6892_v44, %v11209_v22  ;;  %v6894_v24 = vpop.eup %6893 }
 0x8d8   : > { %3387 = vmatmul.mubr.bf16.gmra.mrb[76].mxu0 %v3272_v45  ;;  %v6896_v52 = vpop.eup %6895  ;;  %v3255_v1 = vmul.f32 %v6894_v24, %v11211_v12  ;;  %v3254_v4 = vmul.f32 %v6894_v24, %v11214_v60  ;;  %v11225_v12 = vld [vmem:[#allocation53_spill] sm:$0xff] }
 0x8d9   : > { %3394 = vmatprep.mubr.bf16.mxu0 %v3275_v50  ;;  %v3900_v61 = vpack.c.bf16 %v10043_v18, %v10040_v56  ;;  %v3257_v46 = vmul.f32 %v6896_v52, %v11213_v11  ;;  %v10054_v58 = vpop.eup %6897  ;;  %v3256_v36 = vmul.f32 %v6896_v52, %v11216_v49  ;;  %v11222_v50 = vld [vmem:[#allocation102_spill] sm:$0xff] }
 0x8da   : > { %v10057_v29 = vpop.eup %6899 }
 0x8db   : > { %3826 = vadd.xlane.f32.xlu1 %v3825_v14  ;;  %v3277_v5 = vpack.c.bf16 %v3257_v46, %v3255_v1  ;;  %v6902_v41 = vpop.eup %6901  ;;  %v3822_v31 = vadd.f32 %v10057_v29, %v10054_v58  ;;  %v3276_v9 = vpack.c.bf16 %v3256_v36, %v3254_v4  ;;  %v11223_v14 = vld [vmem:[#allocation106_spill] sm:$0xff]  ;;  %v3869_v1 = vmul.f32 %v6888_v59, %v11225_v12  ;;  %v11229_v59 = vld [vmem:[#allocation93_spill] sm:$0xff] }
 0x8dc   : > { %v6904_v55 = vpop.eup %6903  ;;  %v3259_v30 = vmul.f32 %v6902_v41, %v11215_v16  ;;  %v3258_v38 = vmul.f32 %v6902_v41, %v11218_v2  ;;  %v3871_v52 = vmul.f32 %v6892_v44, %v11223_v14  ;;  %v3776_v41 = vmul.f32 1.442695, %v3726_v20  ;;  %v11228_v44 = vld [vmem:[#allocation92_spill] sm:$0xff]  ;;  %v11234_v2 = vld [vmem:[#allocation82_spill] sm:$0xff] }
 0x8dd   : > { %v3261_v28 = vmul.f32 %v6904_v55, %v11217_v47  ;;  %v6906_v6 = vpop.eup %6905  ;;  %v3260_v63 = vmul.f32 %v6904_v55, %v11220_v34  ;;  %v7032_v55 = vld [vmem:[#allocation2 + $0x178] sm:$0xff]  ;;  %v3734_v4 = vsub.f32 %v11228_v44, %v9951_v25  ;;  %v3735_v16 = vsub.f32 %v11229_v59, %v9951_v25  ;;  %v11237_v14 = vld [vmem:[#allocation88_spill] sm:$0xff] }
 0x8de   : > { %v6908_v57 = vpop.eup %6907  ;;  %v3263_v26 = vmul.f32 %v6906_v6, %v11219_v37  ;;  %v3262_v24 = vmul.f32 %v6906_v6, %v11222_v50  ;;  %v3901_v46 = vpack.c.bf16 %v3871_v52, %v3869_v1  ;;  %6909 = vpow2.f32 %v3776_v41  ;;  %v11233_v6 = vld [vmem:[#allocation80_spill] sm:$0xff] }
 0x8df   : > { %v3279_v7 = vpack.c.bf16 %v3261_v28, %v3259_v30  ;;  %v3265_v45 = vmul.f32 %v6908_v57, %v11221_v35  ;;  %v3278_v17 = vpack.c.bf16 %v3260_v63, %v3258_v38  ;;  %v3264_v19 = vmul.f32 %v6908_v57, %v11224_v48  ;;  %v11231_v28 = vld [vmem:[#allocation97_spill] sm:$0xff] }
 0x8e0   : > { %3395 = vmatmul.mubr.bf16.gmra.mrb[80].mxu0 %v3274_v51  ;;  %v11227_v51 = vld [vmem:[#allocation85_spill] sm:$0xff]  ;;  %v3792_v30 = vmul.f32 1.442695, %v3734_v4  ;;  %v3794_v47 = vmul.f32 1.442695, %v3735_v16  ;;  %v3730_v52 = vsub.f32 %v11237_v14, %v9949_v21  ;;  %v11240_v4 = vld [vmem:[#allocation91_spill] sm:$0xff] }
 0x8e1   : > { %3402 = vmatprep.mubr.bf16.mxu0 %v3277_v5  ;;  %v3281_v22 = vpack.c.bf16 %v3265_v45, %v3263_v26  ;;  %v3280_v11 = vpack.c.bf16 %v3264_v19, %v3262_v24  ;;  %v3727_v5 = vsub.f32 %v11227_v51, %v9945_v23  ;;  %v11230_v23 = vld [vmem:[#allocation96_spill] sm:$0xff]  ;;  %v11236_v45 = vld [vmem:[#allocation87_spill] sm:$0xff] }
 0x8e2   : > { %v3738_v49 = vsub.f32 %v11230_v23, %v9920_v39  ;;  %v3784_v41 = vmul.f32 1.442695, %v3730_v52 }
 0x8e3   : > { %v3778_v60 = vmul.f32 1.442695, %v3727_v5 }
 0x8e4   : > { %v3800_v37 = vmul.f32 1.442695, %v3738_v49 }
 0x8e5   : > { %3823 = vadd.xlane.f32.xlu0 %v3822_v31 }
 0x8e8   : > { %3403 = vmatmul.mubr.bf16.gmra.mrb[84].mxu0 %v3276_v9  ;;  %v3739_v9 = vsub.f32 %v11231_v28, %v9920_v39  ;;  %v11242_v28 = vld [vmem:[#allocation95_spill] sm:$0xff] }
 0x8e9   : > { %3410 = vmatprep.mubr.bf16.mxu0 %v3279_v7  ;;  %v11232_v7 = vld [vmem:[#allocation104_spill] sm:$0xff] }
 0x8ea   : > { %v3724_v57 = vsub.f32 %v11233_v6, %v11232_v7  ;;  %v3725_v38 = vsub.f32 %v11234_v2, %v11232_v7  ;;  %v3802_v63 = vmul.f32 1.442695, %v3739_v9  ;;  %v3737_v9 = vsub.f32 %v11242_v28, %v9953_v32 }
 0x8ec   : > { %3930 = vrot.lane.b32.xlu1 %v7031_v62, %s7354_s18  ;;  %v11235_v62 = vld [vmem:[#allocation86_spill] sm:$0xff]  ;;  %v3772_v35 = vmul.f32 1.442695, %v3724_v57  ;;  %v3774_v39 = vmul.f32 1.442695, %v3725_v38 }
 0x8ed   : > { %v3728_v34 = vsub.f32 %v11235_v62, %v9885_v54  ;;  %v3798_v38 = vmul.f32 1.442695, %v3737_v9 }
 0x8ef   : > { %v3780_v48 = vmul.f32 1.442695, %v3728_v34 }
 0x8f0   : > { %3411 = vmatmul.mubr.bf16.gmra.mrb[88].mxu0 %v3278_v17  ;;  %v3729_v17 = vsub.f32 %v11236_v45, %v9885_v54  ;;  %v11238_v54 = vld [vmem:[#allocation89_spill] sm:$0xff] }
 0x8f1   : > { %3418 = vmatprep.mubr.bf16.mxu0 %v3281_v22  ;;  %v10096_v22 = vpop.eup %6909  ;;  %v3731_v27 = vsub.f32 %v11238_v54, %v9949_v21 }
 0x8f2   : > { %v3782_v20 = vmul.f32 1.442695, %v3729_v17 }
 0x8f6   : > { %v3815_v31 = vpop.xlane.xlu1 %3814 }
 0x8f7   : > { %6911 = vrcp.f32 %v3815_v31  ;;  %v3733_v31 = vsub.f32 %v11240_v4, %v9896_v10 }
 0x8f8   : > { %3419 = vmatmul.mubr.bf16.gmra.mrb[92].mxu0 %v3280_v11  ;;  %6913 = vpow2.f32 %v3778_v60  ;;  %v11239_v60 = vld [vmem:[#allocation90_spill] sm:$0xff] }
 0x8f9   : > { %3996 = vmatprep.mubr.bf16.mxu0 %v3901_v46  ;;  %v3732_v21 = vsub.f32 %v11239_v60, %v9896_v10 }
 0x8fa   : > { %v3923_v25 = vpop.permute.xlu1 %3922 }
 0x8fb   : > { %3946 = vrot.lane.b32.xlu0 %v7032_v55, %s7354_s18  ;;  %v3788_v16 = vmul.f32 1.442695, %v3732_v21 }
 0x8fe   : > { %v3925_v19 = vpop.permute.xlu1 %3924 }
 0x900   : > { %v3812_v36 = vpop.xlane.xlu0 %3811 }
 0x901   : > { %6915 = vrcp.f32 %v3812_v36  ;;  %v6912_v24 = vpop.eup %6911 }
 0x902   : > { %6917 = vpow2.f32 %v3792_v30  ;;  %v10100_v12 = vpop.eup %6913  ;;  %v10108_v46 = vmul.f32 %v6912_v24, %v9934_v40  ;;  %v10114_v5 = vmul.f32 %v6912_v24, %v9931_v13  ;;  %v3786_v13 = vmul.f32 1.442695, %v3731_v27  ;;  %v11241_v30 = vld [vmem:[#allocation94_spill] sm:$0xff] }
 0x903   : > { %6919 = vpow2.f32 %v3794_v47  ;;  %v3736_v23 = vsub.f32 %v11241_v30, %v9953_v32  ;;  %v3790_v47 = vmul.f32 1.442695, %v3733_v31 }
 0x904   : > { %v3939_v26 = vpop.permute.xlu0 %3938  ;;  %6921 = vpow2.f32 %v3800_v37 }
 0x905   : > { %5889 = vmatprep.subr.bf16.mxu0 %v3939_v26  ;;  %6923 = vpow2.f32 %v3802_v63  ;;  %v3796_v6 = vmul.f32 1.442695, %v3736_v23 }
 0x906   : > { %5890 = vmatpush3.bf16.msra.mxu0 %v3923_v25  ;;  %6925 = vpow2.f32 %v3772_v35 }
 0x907   : > { %6927 = vpow2.f32 %v3774_v39 }
 0x908   : > { %v3941_v50 = vpop.permute.xlu0 %3940  ;;  %6929 = vpow2.f32 %v3780_v48 }
 0x909   : > { %5891 = vmatprep.subr.bf16.mxu0 %v3941_v50  ;;  %6931 = vpow2.f32 %v3782_v20 }
 0x90a   : > { %5892 = vmatpush3.bf16.msra.mxu0 %v3925_v19  ;;  %6933 = vpow2.f32 %v3784_v41 }
 0x90b   : > { %v6916_v1 = vpop.eup %6915  ;;  %6935 = vpow2.f32 %v3786_v13 }
 0x90c   : > { %v10105_v11 = vmul.f32 %v6916_v1, %v9941_v43  ;;  %v10111_v51 = vmul.f32 %v6916_v1, %v9939_v33  ;;  %v10116_v55 = vpop.eup %6917  ;;  %v3831_v43 = vadd.f32 %v10100_v12, %v10096_v22  ;;  %6937 = vpow2.f32 %v3788_v16 }
 0x90d   : > { %v10126_v44 = vpop.eup %6919  ;;  %6939 = vpow2.f32 %v3790_v47 }
 0x90e   : > { %v3903_v40 = vpack.c.bf16 %v10108_v46, %v10105_v11  ;;  %v3902_v33 = vpack.c.bf16 %v10114_v5, %v10111_v51  ;;  %v10130_v59 = vpop.eup %6921  ;;  %v3843_v49 = vadd.f32 %v10126_v44, %v10116_v55  ;;  %6941 = vpow2.f32 %v3796_v6 }
 0x90f   : > { %v10136_v36 = vpop.eup %6923  ;;  %6943 = vpow2.f32 %v3798_v38 }
 0x910   : > { %3832 = vadd.xlane.f32.xlu1 %v3831_v43  ;;  %v10140_v7 = vpop.eup %6925  ;;  %v3849_v57 = vadd.f32 %v10136_v36, %v10130_v59 }
 0x911   : > { %v10142_v10 = vpop.eup %6927 }
 0x912   : > { %v10146_v2 = vpop.eup %6929  ;;  %v3828_v37 = vadd.f32 %v10142_v10, %v10140_v7 }
 0x913   : > { %v10150_v32 = vpop.eup %6931 }
 0x914   : > { %3844 = vadd.xlane.f32.xlu1 %v3843_v49  ;;  %v10152_v35 = vpop.eup %6933  ;;  %v3834_v45 = vadd.f32 %v10150_v32, %v10146_v2 }
 0x915   : > { %v10156_v17 = vpop.eup %6935 }
 0x916   : > { %v10158_v24 = vpop.eup %6937  ;;  %v3837_v14 = vadd.f32 %v10156_v17, %v10152_v35 }
 0x917   : > { %v10162_v52 = vpop.eup %6939 }
 0x918   : > { %v5707_v25 = vpop.f32.mrb[32].mxu0  ;;  %3850 = vadd.xlane.f32.xlu1 %v3849_v57  ;;  %v10164_v48 = vpop.eup %6941  ;;  %v3840_v19 = vadd.f32 %v10162_v52, %v10158_v24 }
 0x919   : > { %v5708_v26 = vpop.f32.mrb[33].mxu0  ;;  %v10168_v1 = vpop.eup %6943 }
 0x91a   : > { %v5709_v62 = vadd.f32 %v5708_v26, %v5707_v25  ;;  %3829 = vadd.xlane.f32.xlu0 %v3828_v37  ;;  %v5710_v34 = vpop.f32.mrb[34].mxu0  ;;  %v3846_v27 = vadd.f32 %v10168_v1, %v10164_v48 }
 0x91b   : > { %v5711_v63 = vpop.f32.mrb[35].mxu0 }
 0x91c   : > { %v5712_v39 = vadd.f32 %v5711_v63, %v5710_v34 }
 0x91e   : > { %v6417_v50 = vpack.i.bf16 %v5712_v39, %v5709_v62  ;;  %3835 = vadd.xlane.f32.xlu0 %v3834_v45 }
 0x922   : > { %3838 = vadd.xlane.f32.xlu0 %v3837_v14 }
 0x926   : > { %3841 = vadd.xlane.f32.xlu0 %v3840_v19  ;;  %v5713_v54 = vpop.f32.mrb[36].mxu0 }
 0x927   : > { %v5714_v20 = vpop.f32.mrb[37].mxu0 }
 0x928   : > { %v5715_v41 = vadd.f32 %v5714_v20, %v5713_v54  ;;  %v5716_v60 = vpop.f32.mrb[38].mxu0 }
 0x929   : > { %v5717_v21 = vpop.f32.mrb[39].mxu0 }
 0x92a   : > { %3847 = vadd.xlane.f32.xlu0 %v3846_v27  ;;  %v5718_v43 = vadd.f32 %v5717_v21, %v5716_v60 }
 0x92c   : > { %v6422_v13 = vpack.i.bf16 %v5718_v43, %v5715_v41 }
 0x92e   : > { %6423 = vrot.lane.b32.xlu1 %v6422_v13, %s7354_s18 }
 0x92f   : > { %v3821_v31 = vpop.xlane.xlu1 %3820 }
 0x932   : > { %v5719_v4 = vpop.f32.mrb[40].mxu0 }
 0x933   : > { %v5720_v16 = vpop.f32.mrb[41].mxu0  ;;  %v3927_v6 = vpop.permute.xlu1 %3926 }
 0x934   : > { %v10173_v30 = vadd.f32 %v5720_v16, %v5719_v4  ;;  %v5722_v23 = vpop.f32.mrb[42].mxu0 }
 0x935   : > { %v5723_v49 = vpop.f32.mrb[43].mxu0 }
 0x936   : > { %v10175_v47 = vadd.f32 %v5723_v49, %v5722_v23 }
 0x937   : > { %v3929_v39 = vpop.permute.xlu1 %3928 }
 0x938   : > { %v6447_v9 = vpack.i.bf16 %v10175_v47, %v10173_v30 }
 0x939   : > { %v3818_v28 = vpop.xlane.xlu0 %3817 }
 0x93a   : > { %v5725_v57 = vpop.f32.mrb[44].mxu0  ;;  %6945 = vrcp.f32 %v3818_v28 }
 0x93b   : > { %v5726_v25 = vpop.f32.mrb[45].mxu0  ;;  %6947 = vrcp.f32 %v3821_v31 }
 0x93c   : > { %v10179_v37 = vadd.f32 %v5726_v25, %v5725_v57  ;;  %v5728_v26 = vpop.f32.mrb[46].mxu0 }
 0x93d   : > { %v3943_v38 = vpop.permute.xlu0 %3942  ;;  %v5729_v62 = vpop.f32.mrb[47].mxu0 }
 0x93e   : > { %5893 = vmatprep.subr.bf16.mxu0 %v3943_v38  ;;  %v10182_v34 = vadd.f32 %v5729_v62, %v5728_v26 }
 0x93f   : > { %5894 = vmatpush3.bf16.msra.mxu0 %v3927_v6 }
 0x940   : > { %6418 = vrot.lane.b32.xlu0 %v6417_v50, %s7354_s18  ;;  %v6452_v45 = vpack.i.bf16 %v10182_v34, %v10179_v37 }
 0x941   : > { %v3945_v63 = vpop.permute.xlu0 %3944 }
 0x942   : > { %5895 = vmatprep.subr.bf16.mxu0 %v3945_v63 }
 0x943   : > { %5896 = vmatpush3.bf16.msra.mxu0 %v3929_v39 }
 0x944   : > { %v6946_v4 = vpop.eup %6945 }
 0x945   : > { %v6948_v23 = vpop.eup %6947  ;;  %v3877_v57 = vmul.f32 %v6946_v4, %v9983_v8  ;;  %v3876_v62 = vmul.f32 %v6946_v4, %v9981_v3 }
 0x946   : > { %v3879_v25 = vmul.f32 %v6948_v23, %v9971_v15 }
 0x948   : > { %v3905_v18 = vpack.c.bf16 %v3879_v25, %v3877_v57 }
 0x968   : > { %v3827_v14 = vpop.xlane.xlu1 %3826 }
 0x96c   : > { %v3931_v21 = vpop.permute.xlu1 %3930 }
 0x972   : > { %v3824_v19 = vpop.xlane.xlu0 %3823 }
 0x973   : > { %v5731_v54 = vpop.f32.mrb[48].mxu0  ;;  %6949 = vrcp.f32 %v3824_v19 }
 0x974   : > { %v5732_v27 = vpop.f32.mrb[49].mxu0  ;;  %6951 = vrcp.f32 %v3827_v14  ;;  %v3878_v14 = vmul.f32 %v6948_v23, %v9965_v42 }
 0x975   : > { %v10186_v20 = vadd.f32 %v5732_v27, %v5731_v54  ;;  %v5734_v41 = vpop.f32.mrb[50].mxu0 }
 0x976   : > { %v3947_v60 = vpop.permute.xlu0 %3946  ;;  %v5735_v50 = vpop.f32.mrb[51].mxu0  ;;  %v3904_v5 = vpack.c.bf16 %v3878_v14, %v3876_v62 }
 0x977   : > { %v10188_v43 = vadd.f32 %v5735_v50, %v5734_v41  ;;  %5897 = vmatprep.subr.bf16.mxu0 %v3947_v60 }
 0x978   : > { %5898 = vmatpush3.bf16.msra.mxu0 %v3931_v21 }
 0x979   : > { %v6477_v13 = vpack.i.bf16 %v10188_v43, %v10186_v20 }
 0x97b   : > { %v5737_v16 = vpop.f32.mrb[52].mxu0  ;;  %3997 = vmatmul.mubr.bf16.vlgmr.msra.gmra.mrb[96].mxu0 %v3900_v61 }
 0x97c   : > { %v5738_v31 = vpop.f32.mrb[53].mxu0  ;;  %4004 = vmatprep.mubr.bf16.mxu0 %v3903_v40 }
 0x97d   : > { %v10198_v49 = vadd.f32 %v5738_v31, %v5737_v16  ;;  %v5740_v28 = vpop.f32.mrb[54].mxu0  ;;  %v6950_v61 = vpop.eup %6949 }
 0x97e   : > { %v5741_v6 = vpop.f32.mrb[55].mxu0  ;;  %v6952_v46 = vpop.eup %6951  ;;  %v3881_v15 = vmul.f32 %v6950_v61, %v10057_v29  ;;  %v3880_v29 = vmul.f32 %v6950_v61, %v10054_v58 }
 0x97f   : > { %v10201_v38 = vadd.f32 %v5741_v6, %v5740_v28  ;;  %v3883_v19 = vmul.f32 %v6952_v46, %v10036_v53  ;;  %v3882_v42 = vmul.f32 %v6952_v46, %v10032_v0 }
 0x981   : > { %v6482_v56 = vpack.i.bf16 %v10201_v38, %v10198_v49  ;;  %v3906_v21 = vpack.c.bf16 %v3882_v42, %v3880_v29 }
 0x983   : > { %v5743_v26 = vpop.f32.mrb[56].mxu0  ;;  %4005 = vmatmul.mubr.bf16.gmra.mrb[100].mxu0 %v3902_v33  ;;  %v3907_v33 = vpack.c.bf16 %v3883_v19, %v3881_v15 }
 0x984   : > { %v5744_v11 = vpop.f32.mrb[57].mxu0  ;;  %4012 = vmatprep.mubr.bf16.mxu0 %v3905_v18 }
 0x985   : > { %v10209_v40 = vadd.f32 %v5744_v11, %v5743_v26  ;;  %v5746_v8 = vpop.f32.mrb[58].mxu0 }
 0x986   : > { %v5747_v63 = vpop.f32.mrb[59].mxu0 }
 0x987   : > { %v10213_v39 = vadd.f32 %v5747_v63, %v5746_v8 }
 0x989   : > { %v6507_v51 = vpack.i.bf16 %v10213_v39, %v10209_v40 }
 0x98b   : > { %v5749_v54 = vpop.f32.mrb[60].mxu0  ;;  %4013 = vmatmul.mubr.bf16.gmra.mrb[104].mxu0 %v3904_v5 }
 0x98c   : > { %v5750_v27 = vpop.f32.mrb[61].mxu0  ;;  %4020 = vmatprep.mubr.bf16.mxu0 %v3907_v33 }
 0x98d   : > { %v10219_v41 = vadd.f32 %v5750_v27, %v5749_v54  ;;  %v5752_v3 = vpop.f32.mrb[62].mxu0 }
 0x98e   : > { %v5753_v60 = vpop.f32.mrb[63].mxu0 }
 0x98f   : > { %v10222_v50 = vadd.f32 %v5753_v60, %v5752_v3 }
 0x991   : > { %v6512_v53 = vpack.i.bf16 %v10222_v50, %v10219_v41 }
 0x993   : > { %v5803_v4 = vpop.f32.mrb[64].mxu0  ;;  %4021 = vmatmul.mubr.bf16.gmra.mrb[108].mxu0 %v3906_v21 }
 0x994   : > { %v5804_v16 = vpop.f32.mrb[65].mxu0 }
 0x995   : > { %v5805_v31 = vadd.f32 %v5804_v16, %v5803_v4  ;;  %v5806_v23 = vpop.f32.mrb[66].mxu0 }
 0x996   : > { %v5807_v28 = vpop.f32.mrb[67].mxu0 }
 0x997   : > { %v5808_v6 = vadd.f32 %v5807_v28, %v5806_v23 }
 0x999   : > { %v6427_v57 = vpack.i.bf16 %v5808_v6, %v5805_v31 }
 0x99b   : > { %v5809_v25 = vpop.f32.mrb[68].mxu0  ;;  %6428 = vrot.lane.b32.xlu1 %v6427_v57, %s7353_s23 }
 0x99c   : > { %v5810_v58 = vpop.f32.mrb[69].mxu0 }
 0x99d   : > { %v5811_v18 = vadd.f32 %v5810_v58, %v5809_v25  ;;  %v5812_v61 = vpop.f32.mrb[70].mxu0  ;;  %v3833_v46 = vpop.xlane.xlu1 %3832 }
 0x99e   : > { %v5813_v26 = vpop.f32.mrb[71].mxu0  ;;  %6953 = vrcp.f32 %v3833_v46 }
 0x99f   : > { %v5814_v0 = vadd.f32 %v5813_v26, %v5812_v61 }
 0x9a1   : > { %v6432_v11 = vpack.i.bf16 %v5814_v0, %v5811_v18  ;;  %v3845_v42 = vpop.xlane.xlu1 %3844 }
 0x9a3   : > { %v5815_v8 = vpop.f32.mrb[72].mxu0  ;;  %6433 = vrot.lane.b32.xlu1 %v6432_v11, %s7353_s23 }
 0x9a4   : > { %v5816_v62 = vpop.f32.mrb[73].mxu0 }
 0x9a5   : > { %v10229_v63 = vadd.f32 %v5816_v62, %v5815_v8  ;;  %v5818_v15 = vpop.f32.mrb[74].mxu0  ;;  %v3851_v26 = vpop.xlane.xlu1 %3850 }
 0x9a6   : > { %v5819_v14 = vpop.f32.mrb[75].mxu0 }
 0x9a7   : > { %v10231_v19 = vadd.f32 %v5819_v14, %v5818_v15  ;;  %v3830_v5 = vpop.xlane.xlu0 %3829 }
 0x9a8   : > { %6955 = vrcp.f32 %v3830_v5  ;;  %v6954_v31 = vpop.eup %6953 }
 0x9a9   : > { %v6457_v33 = vpack.i.bf16 %v10231_v19, %v10229_v63  ;;  %v3887_v58 = vmul.f32 %v6954_v31, %v10100_v12  ;;  %v3886_v61 = vmul.f32 %v6954_v31, %v10096_v22 }
 0x9ab   : > { %v3836_v54 = vpop.xlane.xlu0 %3835  ;;  %v5821_v27 = vpop.f32.mrb[76].mxu0 }
 0x9ac   : > { %v5822_v3 = vpop.f32.mrb[77].mxu0  ;;  %6957 = vrcp.f32 %v3836_v54 }
 0x9ad   : > { %v10235_v29 = vadd.f32 %v5822_v3, %v5821_v27  ;;  %v5824_v60 = vpop.f32.mrb[78].mxu0 }
 0x9ae   : > { %v5825_v21 = vpop.f32.mrb[79].mxu0 }
 0x9af   : > { %v10237_v4 = vadd.f32 %v5825_v21, %v5824_v60  ;;  %v3839_v16 = vpop.xlane.xlu0 %3838 }
 0x9b0   : > { %6959 = vrcp.f32 %v3839_v16 }
 0x9b1   : > { %v6462_v23 = vpack.i.bf16 %v10237_v4, %v10235_v29  ;;  %6961 = vrcp.f32 %v3845_v42 }
 0x9b2   : > { %v6956_v28 = vpop.eup %6955 }
 0x9b3   : > { %v3842_v6 = vpop.xlane.xlu0 %3841  ;;  %v5827_v57 = vpop.f32.mrb[80].mxu0  ;;  %v3885_v25 = vmul.f32 %v6956_v28, %v10142_v10  ;;  %v3884_v18 = vmul.f32 %v6956_v28, %v10140_v7 }
 0x9b4   : > { %6963 = vrcp.f32 %v3842_v6  ;;  %v5828_v0 = vpop.f32.mrb[81].mxu0 }
 0x9b5   : > { %v10245_v11 = vadd.f32 %v5828_v0, %v5827_v57  ;;  %v5830_v46 = vpop.f32.mrb[82].mxu0  ;;  %v3909_v8 = vpack.c.bf16 %v3887_v58, %v3885_v25  ;;  %v3908_v62 = vpack.c.bf16 %v3886_v61, %v3884_v18  ;;  %6965 = vrcp.f32 %v3851_v26 }
 0x9b6   : > { %v5831_v15 = vpop.f32.mrb[83].mxu0  ;;  %v6958_v10 = vpop.eup %6957 }
 0x9b7   : > { %v10247_v14 = vadd.f32 %v5831_v15, %v5830_v46  ;;  %v3848_v5 = vpop.xlane.xlu0 %3847  ;;  %4028 = vmatprep.mubr.bf16.mxu0 %v3909_v8  ;;  %v3889_v54 = vmul.f32 %v6958_v10, %v10150_v32  ;;  %v3888_v3 = vmul.f32 %v6958_v10, %v10146_v2 }
 0x9b8   : > { %6967 = vrcp.f32 %v3848_v5  ;;  %4029 = vmatmul.mubr.bf16.gmra.mrb[112].mxu0 %v3908_v62 }
 0x9b9   : > { %v6487_v22 = vpack.i.bf16 %v10247_v14, %v10245_v11 }
 0x9ba   : > { %v6960_v12 = vpop.eup %6959 }
 0x9bb   : > { %v5833_v7 = vpop.f32.mrb[84].mxu0  ;;  %v3891_v27 = vmul.f32 %v6960_v12, %v10156_v17  ;;  %v3890_v60 = vmul.f32 %v6960_v12, %v10152_v35  ;;  %v6962_v42 = vpop.eup %6961 }
 0x9bc   : > { %v5834_v21 = vpop.f32.mrb[85].mxu0  ;;  %v3895_v17 = vmul.f32 %v6962_v42, %v10126_v44  ;;  %v3894_v62 = vmul.f32 %v6962_v42, %v10116_v55  ;;  %v6419_v41 = vpop.permute.xlu0 %6418 }
 0x9bd   : > { %v10255_v16 = vadd.f32 %v5834_v21, %v5833_v7  ;;  %v5836_v31 = vpop.f32.mrb[86].mxu0  ;;  %v3911_v28 = vpack.c.bf16 %v3891_v27, %v3889_v54  ;;  %v3910_v6 = vpack.c.bf16 %v3890_v60, %v3888_v3 }
 0x9be   : > { %v6964_v57 = vpop.eup %6963  ;;  %v5837_v25 = vpop.f32.mrb[87].mxu0 }
 0x9bf   : > { %v10257_v58 = vadd.f32 %v5837_v25, %v5836_v31  ;;  %4036 = vmatprep.mubr.bf16.mxu0 %v3911_v28  ;;  %v3893_v32 = vmul.f32 %v6964_v57, %v10162_v52  ;;  %v6966_v2 = vpop.eup %6965  ;;  %v3892_v26 = vmul.f32 %v6964_v57, %v10158_v24  ;;  %v6537_v28 = vld [vmem:[#allocation9] sm:$0xff]   ;;  %v6542_v25 = vld [vmem:[#allocation9 + $0x28] sm:$0xff]  }
 0x9c0   : > { %4037 = vmatmul.mubr.bf16.gmra.mrb[116].mxu0 %v3910_v6  ;;  %v3899_v44 = vmul.f32 %v6966_v2, %v10136_v36  ;;  %v3898_v55 = vmul.f32 %v6966_v2, %v10130_v59  ;;  %v6538_v6 = vld [vmem:[#allocation9 + $0x8] sm:$0xff]   ;;  %6075 = vmatprep.subr.bf16.mxu1 %v6537_v28  ;;  %v6540_v59 = vld [vmem:[#allocation9 + $0x18] sm:$0xff]   ;;  %v6541_v57 = vld [vmem:[#allocation9 + $0x20] sm:$0xff]  }
 0x9c1   : > { %v6492_v35 = vpack.i.bf16 %v10257_v58, %v10255_v16  ;;  %v3913_v18 = vpack.c.bf16 %v3895_v17, %v3893_v32  ;;  %v3912_v10 = vpack.c.bf16 %v3894_v62, %v3892_v26  ;;  %6076 = vmatpush3.bf16.msra.mxu1 %v6537_v28  ;;  %v6543_v2 = vld [vmem:[#allocation9 + $0x30] sm:$0xff]  }
 0x9c2   : > { %v6968_v61 = vpop.eup %6967  ;;  %6077 = vmatprep.subr.bf16.mxu1 %v6538_v6 }
 0x9c3   : > { %v5839_v0 = vpop.f32.mrb[88].mxu0  ;;  %4044 = vmatprep.mubr.bf16.mxu0 %v3913_v18  ;;  %v3897_v46 = vmul.f32 %v6968_v61, %v10168_v1  ;;  %v3896_v1 = vmul.f32 %v6968_v61, %v10164_v48  ;;  %v6539_v48 = vld [vmem:[#allocation9 + $0x10] sm:$0xff]  }
 0x9c4   : > { %v5840_v8 = vpop.f32.mrb[89].mxu0 }
 0x9c5   : > { %v10266_v15 = vadd.f32 %v5840_v8, %v5839_v0  ;;  %v5842_v52 = vpop.f32.mrb[90].mxu0  ;;  %v3915_v7 = vpack.c.bf16 %v3899_v44, %v3897_v46  ;;  %v3914_v42 = vpack.c.bf16 %v3898_v55, %v3896_v1  ;;  %6078 = vmatpush3.bf16.msra.mxu1 %v6538_v6  ;;  %v6544_v8 = vld [vmem:[#allocation9 + $0x38] sm:$0xff]  }
 0x9c6   : > { %v5843_v5 = vpop.f32.mrb[91].mxu0  ;;  %6079 = vmatprep.subr.bf16.mxu1 %v6539_v48 }
 0x9c7   : > { %v10269_v12 = vadd.f32 %v5843_v5, %v5842_v52 }
 0x9c8   : > { %4045 = vmatmul.mubr.bf16.gmra.mrb[120].mxu0 %v3912_v10 }
 0x9c9   : > { %v6517_v24 = vpack.i.bf16 %v10269_v12, %v10266_v15  ;;  %4052 = vmatprep.mubr.bf16.mxu0 %v3915_v7  ;;  %6080 = vmatpush3.bf16.msra.mxu1 %v6539_v48 }
 0x9ca   : > { %6081 = vmatprep.subr.bf16.mxu1 %v6540_v59 }
 0x9cb   : > { %v5845_v54 = vpop.f32.mrb[92].mxu0 }
 0x9cc   : > { %v5846_v27 = vpop.f32.mrb[93].mxu0 }
 0x9cd   : > { %v10275_v3 = vadd.f32 %v5846_v27, %v5845_v54  ;;  %v5848_v60 = vpop.f32.mrb[94].mxu0  ;;  %6082 = vmatpush3.bf16.msra.mxu1 %v6540_v59 }
 0x9ce   : > { %v5849_v36 = vpop.f32.mrb[95].mxu0  ;;  %6083 = vmatprep.subr.bf16.mxu1 %v6541_v57 }
 0x9cf   : > { %v10277_v21 = vadd.f32 %v5849_v36, %v5848_v60 }
 0x9d0   : > { %4053 = vmatmul.mubr.bf16.gmra.mrb[124].mxu0 %v3914_v42 }
 0x9d1   : > { %v6522_v31 = vpack.i.bf16 %v10277_v21, %v10275_v3  ;;  %6084 = vmatpush3.bf16.msra.mxu1 %v6541_v57  ;;  %v11243_v21 = vld [vmem:[#allocation27_spill] sm:$0xff] }
 0x9d2   : > { %6085 = vmatprep.subr.bf16.mxu1 %v6542_v25 }
 0x9d5   : > { %6086 = vmatpush3.bf16.msra.mxu1 %v6542_v25 }
 0x9d6   : > { %6087 = vmatprep.subr.bf16.mxu1 %v6543_v2 }
 0x9d9   : > { %6088 = vmatpush3.bf16.msra.mxu1 %v6543_v2 }
 0x9da   : > { %6089 = vmatprep.subr.bf16.mxu1 %v6544_v8 }
 0x9dd   : > { %6090 = vmatpush3.bf16.msra.mxu1 %v6544_v8 }
 0xa4e   : > { %v5899_v32 = vpop.f32.mrb[96].mxu0 }
 0xa4f   : > { %v5900_v17 = vpop.f32.mrb[97].mxu0 }
 0xa50   : > { %v5901_v18 = vadd.f32 %v5900_v17, %v5899_v32  ;;  %v5902_v61 = vpop.f32.mrb[98].mxu0  ;;  %v6424_v32 = vpop.permute.xlu1 %6423  ;;  %v6420_v17 = vunpack.i.l.bf16 %v6419_v41 }
 0xa51   : > { %v5903_v26 = vpop.f32.mrb[99].mxu0 }
 0xa52   : > { %v5904_v0 = vadd.f32 %v5903_v26, %v5902_v61  ;;  %v11244_v61 = vld [vmem:[#allocation23_spill] sm:$0xff] }
 0xa53   : > { %v4253_v26 = vsel %vm1580_vm0, %v11244_v61, %v6420_v17 }
 0xa54   : > { %v6437_v46 = vpack.i.bf16 %v5904_v0, %v5901_v18  ;;  %v6429_v50 = vpop.permute.xlu1 %6428 }
 0xa55   : > { %v6431_v2 = vunpack.i.h.bf16 %v6429_v50  ;;  %v6430_v18 = vunpack.i.l.bf16 %v6429_v50 }
 0xa56   : > { %v5905_v62 = vpop.f32.mrb[100].mxu0  ;;  %6438 = vrot.lane.b32.xlu0 %v6437_v46, %s7352_s8 }
 0xa57   : > { %v5906_v52 = vpop.f32.mrb[101].mxu0 }
 0xa58   : > { %v5907_v44 = vadd.f32 %v5906_v52, %v5905_v62  ;;  %v5908_v5 = vpop.f32.mrb[102].mxu0  ;;  %v4270_v62 = vsel %vm4269_vm1, %v4253_v26, %v6430_v18  ;;  %v6434_v52 = vpop.permute.xlu1 %6433 }
 0xa59   : > { %v5909_v10 = vpop.f32.mrb[103].mxu0 }
 0xa5a   : > { %v5910_v7 = vadd.f32 %v5909_v10, %v5908_v5  ;;  %6448 = vrot.lane.b32.xlu0 %v6447_v9, %s7354_s18 }
 0xa5c   : > { %v6442_v1 = vpack.i.bf16 %v5910_v7, %v5907_v44  ;;  %v6426_v7 = vunpack.i.h.bf16 %v6424_v32 }
 0xa5e   : > { %v5911_v54 = vpop.f32.mrb[104].mxu0  ;;  %6443 = vrot.lane.b32.xlu1 %v6442_v1, %s7352_s8  ;;  %6458 = vrot.lane.b32.xlu0 %v6457_v33, %s7353_s23  ;;  %v6425_v1 = vunpack.i.l.bf16 %v6424_v32 }
 0xa5f   : > { %v5912_v27 = vpop.f32.mrb[105].mxu0 }
 0xa60   : > { %v5913_v55 = vadd.f32 %v5912_v27, %v5911_v54  ;;  %v5914_v60 = vpop.f32.mrb[106].mxu0  ;;  %v6436_v27 = vunpack.i.h.bf16 %v6434_v52 }
 0xa61   : > { %v5915_v36 = vpop.f32.mrb[107].mxu0 }
 0xa62   : > { %v5916_v42 = vadd.f32 %v5915_v36, %v5914_v60  ;;  %6453 = vrot.lane.b32.xlu1 %v6452_v45, %s7354_s18  ;;  %v11245_v36 = vld [vmem:[#allocation28_spill] sm:$0xff] }
 0xa64   : > { %v6467_v30 = vpack.i.bf16 %v5916_v42, %v5913_v55  ;;  %v6435_v55 = vunpack.i.l.bf16 %v6434_v52  ;;  %v4256_v42 = vsel %vm1580_vm0, %v11245_v36, %v6426_v7  ;;  %v11251_v52 = vld [vmem:[#allocation32_spill] sm:$0xff] }
 0xa66   : > { %v5917_v47 = vpop.f32.mrb[108].mxu0  ;;  %6463 = vrot.lane.b32.xlu1 %v6462_v23, %s7353_s23  ;;  %6468 = vrot.lane.b32.xlu0 %v6467_v30, %s7352_s8  ;;  %v11246_v30 = vld [vmem:[#allocation24_spill] sm:$0xff] }
 0xa67   : > { %v5918_v9 = vpop.f32.mrb[109].mxu0 }
 0xa68   : > { %v5919_v63 = vadd.f32 %v5918_v9, %v5917_v47  ;;  %v5920_v19 = vpop.f32.mrb[110].mxu0  ;;  %v4255_v47 = vsel %vm1580_vm0, %v11246_v30, %v6425_v1 }
 0xa69   : > { %v5921_v33 = vpop.f32.mrb[111].mxu0 }
 0xa6a   : > { %v5922_v28 = vadd.f32 %v5921_v33, %v5920_v19  ;;  %6478 = vrot.lane.b32.xlu0 %v6477_v13, %s7354_s18  ;;  %v4272_v19 = vsel %vm4269_vm1, %v4255_v47, %v6435_v55  ;;  %v4273_v33 = vsel %vm4269_vm1, %v4256_v42, %v6436_v27 }
 0xa6c   : > { %v6472_v37 = vpack.i.bf16 %v5922_v28, %v5919_v63 }
 0xa6e   : > { %6473 = vrot.lane.b32.xlu1 %v6472_v37, %s7352_s8  ;;  %6488 = vrot.lane.b32.xlu0 %v6487_v22, %s7353_s23 }
 0xa72   : > { %6483 = vrot.lane.b32.xlu1 %v6482_v56, %s7354_s18 }
 0xa76   : > { %6493 = vrot.lane.b32.xlu1 %v6492_v35, %s7353_s23 }
 0xa8b   : > { %v5923_v34 = vpop.f32.mrb[112].mxu0 }
 0xa8c   : > { %v5924_v45 = vpop.f32.mrb[113].mxu0 }
 0xa8d   : > { %v5925_v20 = vadd.f32 %v5924_v45, %v5923_v34  ;;  %v5926_v43 = vpop.f32.mrb[114].mxu0 }
 0xa8e   : > { %v5927_v13 = vpop.f32.mrb[115].mxu0 }
 0xa8f   : > { %v5928_v29 = vadd.f32 %v5927_v13, %v5926_v43 }
 0xa91   : > { %v6497_v4 = vpack.i.bf16 %v5928_v29, %v5925_v20 }
 0xa93   : > { %v5929_v23 = vpop.f32.mrb[116].mxu0  ;;  %6498 = vrot.lane.b32.xlu0 %v6497_v4, %s7352_s8 }
 0xa94   : > { %v5930_v11 = vpop.f32.mrb[117].mxu0 }
 0xa95   : > { %v5931_v14 = vadd.f32 %v5930_v11, %v5929_v23  ;;  %v5932_v22 = vpop.f32.mrb[118].mxu0  ;;  %v11247_v11 = vld [vmem:[#allocation29_spill] sm:$0xff] }
 0xa96   : > { %v5933_v49 = vpop.f32.mrb[119].mxu0 }
 0xa97   : > { %v5934_v38 = vadd.f32 %v5933_v49, %v5932_v22  ;;  %6508 = vrot.lane.b32.xlu0 %v6507_v51, %s7354_s18  ;;  %v11248_v22 = vld [vmem:[#allocation25_spill] sm:$0xff] }
 0xa99   : > { %v6502_v56 = vpack.i.bf16 %v5934_v38, %v5931_v14 }
 0xa9b   : > { %6503 = vrot.lane.b32.xlu1 %v6502_v56, %s7352_s8  ;;  %6518 = vrot.lane.b32.xlu0 %v6517_v24, %s7353_s23  ;;  %v5935_v16 = vpop.f32.mrb[120].mxu0 }
 0xa9c   : > { %v5936_v58 = vpop.f32.mrb[121].mxu0 }
 0xa9d   : > { %v5937_v35 = vadd.f32 %v5936_v58, %v5935_v16  ;;  %v5938_v6 = vpop.f32.mrb[122].mxu0 }
 0xa9e   : > { %v5939_v48 = vpop.f32.mrb[123].mxu0 }
 0xa9f   : > { %v5940_v59 = vadd.f32 %v5939_v48, %v5938_v6  ;;  %6513 = vrot.lane.b32.xlu1 %v6512_v53, %s7354_s18  ;;  %v6421_v53 = vunpack.i.h.bf16 %v6419_v41  ;;  %s11261_s18 = sld [smem:[#allocation113_spill]] }
 0xaa1   : > { %v6527_v40 = vpack.i.bf16 %v5940_v59, %v5937_v35 }
 0xaa3   : > { %6523 = vrot.lane.b32.xlu1 %v6522_v31, %s7353_s23  ;;  %6528 = vrot.lane.b32.xlu0 %v6527_v40, %s7352_s8  ;;  %v5941_v39 = vpop.f32.mrb[124].mxu0  ;;  %v4254_v31 = vsel %vm1580_vm0, %v11243_v21, %v6421_v53 }
 0xaa4   : > { %v5942_v51 = vpop.f32.mrb[125].mxu0  ;;  %v4271_v8 = vsel %vm4269_vm1, %v4254_v31, %v6431_v2 }
 0xaa5   : > { %v5943_v15 = vadd.f32 %v5942_v51, %v5941_v39  ;;  %v5944_v12 = vpop.f32.mrb[126].mxu0 }
 0xaa6   : > { %v5945_v24 = vpop.f32.mrb[127].mxu0 }
 0xaa7   : > { %v5946_v57 = vadd.f32 %v5945_v24, %v5944_v12  ;;  %v11249_v24 = vld [vmem:[#allocation30_spill] sm:$0xff] }
 0xaa9   : > { %v6532_v25 = vpack.i.bf16 %v5946_v57, %v5943_v15 }
 0xaab   : > { %6533 = vrot.lane.b32.xlu1 %v6532_v25, %s7352_s8  ;;  %v11250_v25 = vld [vmem:[#allocation26_spill] sm:$0xff]  ;;  %s5264_s8 = sadd.s32 %s5533_s1, %s5532_s5 }
 0xaac   : > { %s5534_s2 = sshll.u32 %s5264_s8, 7 }
 0xac8   : > { %v6439_v3 = vpop.permute.xlu0 %6438 }
 0xac9   : > { %v6441_v0 = vunpack.i.h.bf16 %v6439_v3  ;;  %v6440_v46 = vunpack.i.l.bf16 %v6439_v3 }
 0xacb   : > { %v4287_v44 = vsel %vm4286_vm2, %v4270_v62, %v6440_v46  ;;  %v4288_v5 = vsel %vm4286_vm2, %v4271_v8, %v6441_v0 }
 0xacc   : > { %v4305_v10 = vpack.c.bf16 %v4288_v5, %v4287_v44  ;;  %v6449_v54 = vpop.permute.xlu0 %6448  ;;  %v11252_v5 = vld [vmem:[#allocation31_spill] sm:$0xff] }
 0xacd   : > { %v6451_v20 = vunpack.i.h.bf16 %v6449_v54  ;;  %v6450_v43 = vunpack.i.l.bf16 %v6449_v54 }
 0xace   : > { %6091 = vmatprep.mubr.bf16.mxu1 %v4305_v10 }
 0xacf   : > { %v4258_v14 = vsel %vm1580_vm0, %v11247_v11, %v6451_v20  ;;  %v4257_v49 = vsel %vm1580_vm0, %v11248_v22, %v6450_v43 }
 0xad0   : > { %v6444_v60 = vpop.permute.xlu1 %6443  ;;  %v6459_v28 = vpop.permute.xlu0 %6458 }
 0xad1   : > { %v6446_v9 = vunpack.i.h.bf16 %v6444_v60  ;;  %v6445_v63 = vunpack.i.l.bf16 %v6444_v60  ;;  %v6461_v29 = vunpack.i.h.bf16 %v6459_v28  ;;  %v6460_v4 = vunpack.i.l.bf16 %v6459_v28  ;;  %v11253_v28 = vld [vmem:[#allocation34_spill] sm:$0xff] }
 0xad3   : > { %v4289_v37 = vsel %vm4286_vm2, %v4272_v19, %v6445_v63  ;;  %v4290_v34 = vsel %vm4286_vm2, %v4273_v33, %v6446_v9  ;;  %v4274_v16 = vsel %vm4269_vm1, %v4257_v49, %v6460_v4  ;;  %v4275_v58 = vsel %vm4269_vm1, %v4258_v14, %v6461_v29 }
 0xad4   : > { %v4306_v45 = vpack.c.bf16 %v4290_v34, %v4289_v37  ;;  %v6454_v13 = vpop.permute.xlu1 %6453  ;;  %v11254_v34 = vld [vmem:[#allocation33_spill] sm:$0xff] }
 0xad5   : > { %v6456_v40 = vunpack.i.h.bf16 %v6454_v13  ;;  %v6455_v39 = vunpack.i.l.bf16 %v6454_v13 }
 0xad6   : > { %6092 = vmatmul.mubr.bf16.vlgmr.msra.gmra.mrb[128].mxu1 %v4306_v45 }
 0xad7   : > { %v4260_v57 = vsel %vm1580_vm0, %v11249_v24, %v6456_v40  ;;  %v4259_v32 = vsel %vm1580_vm0, %v11250_v25, %v6455_v39 }
 0xad8   : > { %v6469_v23 = vpop.permute.xlu0 %6468  ;;  %v6464_v35 = vpop.permute.xlu1 %6463 }
 0xad9   : > { %v6471_v38 = vunpack.i.h.bf16 %v6469_v23  ;;  %v6470_v56 = vunpack.i.l.bf16 %v6469_v23  ;;  %v6466_v51 = vunpack.i.h.bf16 %v6464_v35  ;;  %v6465_v15 = vunpack.i.l.bf16 %v6464_v35  ;;  %v11255_v35 = vld [vmem:[#allocation35_spill] sm:$0xff] }
 0xadb   : > { %v4291_v6 = vsel %vm4286_vm2, %v4274_v16, %v6470_v56  ;;  %v4292_v48 = vsel %vm4286_vm2, %v4275_v58, %v6471_v38  ;;  %v4276_v53 = vsel %vm4269_vm1, %v4259_v32, %v6465_v15  ;;  %v4277_v17 = vsel %vm4269_vm1, %v4260_v57, %v6466_v51 }
 0xadc   : > { %v4307_v59 = vpack.c.bf16 %v4292_v48, %v4291_v6  ;;  %v6479_v21 = vpop.permute.xlu0 %6478  ;;  %v11256_v48 = vld [vmem:[#allocation37_spill] sm:$0xff] }
 0xadd   : > { %v6481_v61 = vunpack.i.h.bf16 %v6479_v21  ;;  %v6480_v26 = vunpack.i.l.bf16 %v6479_v21 }
 0xade   : > { %6095 = vmatprep.mubr.bf16.mxu1 %v4307_v59 }
 0xadf   : > { %v4262_v44 = vsel %vm1580_vm0, %v11251_v52, %v6481_v61  ;;  %v4261_v10 = vsel %vm1580_vm0, %v11252_v5, %v6480_v26  ;;  %v10406_v52 = vld [vmem:[#allocation6 + $0x4] ss:$0 sm:$0xff] }
 0xae0   : > { %v6474_v12 = vpop.permute.xlu1 %6473  ;;  %v6489_v31 = vpop.permute.xlu0 %6488  ;;  %v1519_v5 = vld [vmem:[%s10404_s6] sm:$0xff] }
 0xae1   : > { %v6476_v41 = vunpack.i.h.bf16 %v6474_v12  ;;  %v6475_v50 = vunpack.i.l.bf16 %v6474_v12  ;;  %v6491_v46 = vunpack.i.h.bf16 %v6489_v31  ;;  %v6490_v8 = vunpack.i.l.bf16 %v6489_v31 }
 0xae3   : > { %v4293_v2 = vsel %vm4286_vm2, %v4276_v53, %v6475_v50  ;;  %v4294_v18 = vsel %vm4286_vm2, %v4277_v17, %v6476_v41  ;;  %v4278_v54 = vsel %vm4269_vm1, %v4261_v10, %v6490_v8  ;;  %v4279_v27 = vsel %vm4269_vm1, %v4262_v44, %v6491_v46 }
 0xae4   : > { %v4308_v3 = vpack.c.bf16 %v4294_v18, %v4293_v2  ;;  %v6484_v0 = vpop.permute.xlu1 %6483  ;;  %v11257_v2 = vld [vmem:[#allocation36_spill] sm:$0xff] }
 0xae5   : > { %v6486_v30 = vunpack.i.h.bf16 %v6484_v0  ;;  %v6485_v47 = vunpack.i.l.bf16 %v6484_v0 }
 0xae6   : > { %6096 = vmatmul.mubr.bf16.gmra.mrb[132].mxu1 %v4308_v3  ;;  %v11258_v3 = vld [vmem:[#allocation39_spill] sm:$0xff] }
 0xae7   : > { %v4264_v37 = vsel %vm1580_vm0, %v11253_v28, %v6486_v30  ;;  %v4263_v45 = vsel %vm1580_vm0, %v11254_v34, %v6485_v47  ;;  %v1523_v28 = vld [vmem:[%s10404_s6 + $0x20] sm:$0xff] }
 0xae8   : > { %v6494_v55 = vpop.permute.xlu1 %6493 }
 0xae9   : > { %v6496_v63 = vunpack.i.h.bf16 %v6494_v55  ;;  %v6495_v19 = vunpack.i.l.bf16 %v6494_v55 }
 0xaeb   : > { %v4280_v13 = vsel %vm4269_vm1, %v4263_v45, %v6495_v19  ;;  %v4281_v29 = vsel %vm4269_vm1, %v4264_v37, %v6496_v63  ;;  %v1522_v63 = vld [vmem:[%s10404_s6 + $0x18] sm:$0xff] }
 0xb05   : > { %v6499_v62 = vpop.permute.xlu0 %6498 }
 0xb06   : > { %v6501_v7 = vunpack.i.h.bf16 %v6499_v62  ;;  %v6500_v1 = vunpack.i.l.bf16 %v6499_v62 }
 0xb08   : > { %v4295_v60 = vsel %vm4286_vm2, %v4278_v54, %v6500_v1  ;;  %v4296_v36 = vsel %vm4286_vm2, %v4279_v27, %v6501_v7  ;;  %v1520_v54 = vld [vmem:[%s10404_s6 + $0x8] sm:$0xff] }
 0xb09   : > { %v4309_v42 = vpack.c.bf16 %v4296_v36, %v4295_v60  ;;  %v6509_v9 = vpop.permute.xlu0 %6508 }
 0xb0a   : > { %v6511_v22 = vunpack.i.h.bf16 %v6509_v9  ;;  %v6510_v49 = vunpack.i.l.bf16 %v6509_v9 }
 0xb0b   : > { %6099 = vmatprep.mubr.bf16.mxu1 %v4309_v42  ;;  %v1521_v42 = vld [vmem:[%s10404_s6 + $0x10] sm:$0xff] }
 0xb0c   : > { %v4266_v6 = vsel %vm1580_vm0, %v11255_v35, %v6511_v22  ;;  %v4265_v59 = vsel %vm1580_vm0, %v11256_v48, %v6510_v49  ;;  %v1526_v22 = vld [vmem:[%s10404_s6 + $0x38] sm:$0xff]  ;;  %v1528_v48 = vld [vmem:[%s10404_s6 + $0x48] sm:$0xff] }
 0xb0d   : > { %v6504_v33 = vpop.permute.xlu1 %6503  ;;  %v6519_v4 = vpop.permute.xlu0 %6518 }
 0xb0e   : > { %v6506_v20 = vunpack.i.h.bf16 %v6504_v33  ;;  %v6505_v43 = vunpack.i.l.bf16 %v6504_v33  ;;  %v6521_v56 = vunpack.i.h.bf16 %v6519_v4  ;;  %v6520_v16 = vunpack.i.l.bf16 %v6519_v4 }
 0xb10   : > { %v4297_v23 = vsel %vm4286_vm2, %v4280_v13, %v6505_v43  ;;  %v4298_v11 = vsel %vm4286_vm2, %v4281_v29, %v6506_v20  ;;  %v4282_v51 = vsel %vm4269_vm1, %v4265_v59, %v6520_v16  ;;  %v4283_v15 = vsel %vm4269_vm1, %v4266_v6, %v6521_v56  ;;  %v1524_v20 = vld [vmem:[%s10404_s6 + $0x28] sm:$0xff]  ;;  %v1527_v16 = vld [vmem:[%s10404_s6 + $0x40] sm:$0xff] }
 0xb11   : > { %v4310_v14 = vpack.c.bf16 %v4298_v11, %v4297_v23  ;;  %v6514_v38 = vpop.permute.xlu1 %6513  ;;  %v1525_v23 = vld [vmem:[%s10404_s6 + $0x30] sm:$0xff] }
 0xb12   : > { %v6516_v32 = vunpack.i.h.bf16 %v6514_v38  ;;  %v6515_v41 = vunpack.i.l.bf16 %v6514_v38 }
 0xb13   : > { %6100 = vmatmul.mubr.bf16.gmra.mrb[136].mxu1 %v4310_v14 }
 0xb14   : > { %v4268_v18 = vsel %vm1580_vm0, %v11257_v2, %v6516_v32  ;;  %v4267_v21 = vsel %vm1580_vm0, %v11258_v3, %v6515_v41 }
 0xb15   : > { %v6529_v58 = vpop.permute.xlu0 %6528  ;;  %v6524_v12 = vpop.permute.xlu1 %6523 }
 0xb16   : > { %v6531_v40 = vunpack.i.h.bf16 %v6529_v58  ;;  %v6530_v39 = vunpack.i.l.bf16 %v6529_v58  ;;  %v6526_v50 = vunpack.i.h.bf16 %v6524_v12  ;;  %v6525_v53 = vunpack.i.l.bf16 %v6524_v12 }
 0xb18   : > { %v4299_v24 = vsel %vm4286_vm2, %v4282_v51, %v6530_v39  ;;  %v4300_v57 = vsel %vm4286_vm2, %v4283_v15, %v6531_v40  ;;  %v4284_v26 = vsel %vm4269_vm1, %v4267_v21, %v6525_v53  ;;  %v4285_v0 = vsel %vm4269_vm1, %v4268_v18, %v6526_v50  ;;  %v1529_v15 = vld [vmem:[%s10404_s6 + $0x50] sm:$0xff]  ;;  %v1531_v50 = vld [vmem:[%s10404_s6 + $0x60] sm:$0xff]  ;;  %v1532_v18 = vld [vmem:[%s10404_s6 + $0x68] sm:$0xff] }
 0xb19   : > { %v4311_v25 = vpack.c.bf16 %v4300_v57, %v4299_v24  ;;  %v1530_v57 = vld [vmem:[%s10404_s6 + $0x58] sm:$0xff] }
 0xb1b   : > { %6103 = vmatprep.mubr.bf16.mxu1 %v4311_v25 }
 0xb1d   : > { %v6534_v17 = vpop.permute.xlu1 %6533 }
 0xb1e   : > { %v6536_v31 = vunpack.i.h.bf16 %v6534_v17  ;;  %v6535_v61 = vunpack.i.l.bf16 %v6534_v17 }
 0xb20   : > { %v4301_v46 = vsel %vm4286_vm2, %v4284_v26, %v6535_v61  ;;  %v4302_v8 = vsel %vm4286_vm2, %v4285_v0, %v6536_v31  ;;  %v1533_v26 = vld [vmem:[%s10404_s6 + $0x70] sm:$0xff] }
 0xb21   : > { %v4312_v62 = vpack.c.bf16 %v4302_v8, %v4301_v46  ;;  %v1534_v8 = vld [vmem:[%s10404_s6 + $0x78] sm:$0xff]  ;;  %s10724_s6 = scalar_lea.hbm %s11261_s18, %s5534_s2 }
 0xb23   : > { %6104 = vmatmul.mubr.bf16.gmra.mrb[140].mxu1 %v4312_v62 }
 0xba9   : > { %v6093_v44 = vpop.f32.mrb[128].mxu1 }
 0xbaa   : > { %v4415_v10 = vpop.f32.mrb[129].mxu1  ;;  %v4424_v55 = vadd.f32 %v6093_v44, %v10406_v52 }
 0xbab   : > { %v4416_v7 = vadd.f32 %v10406_v52, %v4415_v10  ;;  %v6094_v1 = vpop.f32.mrb[130].mxu1  ;;  %v6547_v10 = vld [vmem:[#allocation11 + $0x4] ss:$8 sps:$4 sm:$0xff]  }
 0xbac   : > { %v4418_v27 = vpop.f32.mrb[131].mxu1  ;;  %v10419_v47 = vadd.f32 %v4424_v55, %v1521_v42  ;;  %v4427_v9 = vadd.f32 %v6094_v1, %v10406_v52  ;;  %4829 = vmatprep.subr.bf16.mxu0 %v6547_v10 }
 0xbad   : > { %v10412_v60 = vadd.f32 %v4416_v7, %v1519_v5  ;;  %v4419_v36 = vadd.f32 %v10406_v52, %v4418_v27  ;;  %v6545_v5 = vld [vmem:[#allocation11] ss:$8 sps:$4 sm:$0xff]   ;;  %v6550_v7 = vld [vmem:[#allocation11 + $0x14] ss:$8 sps:$4 sm:$0xff]  }
 0xbae   : > { %v10425_v19 = vadd.f32 %v4427_v9, %v1522_v63  ;;  %4830 = vmatpush1.bf16.msra.mxu0 %v6545_v5  ;;  %v7355_v5 = vmov 0  }
 0xbaf   : > { %v10416_v30 = vadd.f32 %v4419_v36, %v1520_v54  ;;  %4496 = vadd.xlane.f32.xlu0 %v10412_v60  ;;  %4831 = vmatprep.subr.bf16.mxu0 %v6550_v7 }
 0xbb0   : > { %4861 = vmatprep.mubr.bf16.mxu0 %v7355_v5 }
 0xbb1   : > { %4498 = vadd.xlane.f32.xlu1 %v10416_v30 }
 0xbb3   : > { %4500 = vadd.xlane.f32.xlu0 %v10419_v47 }
 0xbb7   : > { %4502 = vadd.xlane.f32.xlu0 %v10425_v19 }
 0xbb9   : > { %v6097_v33 = vpop.f32.mrb[132].mxu1 }
 0xbba   : > { %v4431_v37 = vpop.f32.mrb[133].mxu1  ;;  %v4440_v13 = vadd.f32 %v6097_v33, %v10406_v52 }
 0xbbb   : > { %v4432_v34 = vadd.f32 %v10406_v52, %v4431_v37  ;;  %v6098_v45 = vpop.f32.mrb[134].mxu1 }
 0xbbc   : > { %v4434_v43 = vpop.f32.mrb[135].mxu1  ;;  %v4443_v11 = vadd.f32 %v6098_v45, %v10406_v52  ;;  %v10441_v49 = vadd.f32 %v4440_v13, %v1525_v23 }
 0xbbd   : > { %v10432_v29 = vadd.f32 %v4432_v34, %v1523_v28  ;;  %v4435_v4 = vadd.f32 %v10406_v52, %v4434_v43 }
 0xbbe   : > { %v10444_v38 = vadd.f32 %v4443_v11, %v1526_v22 }
 0xbbf   : > { %v10437_v14 = vadd.f32 %v4435_v4, %v1524_v20  ;;  %4504 = vadd.xlane.f32.xlu0 %v10432_v29 }
 0xbc1   : > { %4506 = vadd.xlane.f32.xlu1 %v10437_v14 }
 0xbc3   : > { %4508 = vadd.xlane.f32.xlu0 %v10441_v49 }
 0xbc5   : > { %4510 = vadd.xlane.f32.xlu1 %v10444_v38 }
 0xbe6   : > { %v6101_v56 = vpop.f32.mrb[136].mxu1 }
 0xbe7   : > { %v4447_v58 = vpop.f32.mrb[137].mxu1  ;;  %v4456_v40 = vadd.f32 %v6101_v56, %v10406_v52 }
 0xbe8   : > { %v4448_v35 = vadd.f32 %v10406_v52, %v4447_v58  ;;  %v6102_v6 = vpop.f32.mrb[138].mxu1 }
 0xbe9   : > { %v4450_v59 = vpop.f32.mrb[139].mxu1  ;;  %v4459_v12 = vadd.f32 %v6102_v6, %v10406_v52  ;;  %v10461_v25 = vadd.f32 %v4456_v40, %v1529_v15  ;;  %v6553_v15 = vld [vmem:[#allocation11 + $0x24] ss:$8 sps:$4 sm:$0xff]  }
 0xbea   : > { %v10452_v39 = vadd.f32 %v4448_v35, %v1527_v16  ;;  %v4451_v51 = vadd.f32 %v10406_v52, %v4450_v59 }
 0xbeb   : > { %v10464_v32 = vadd.f32 %v4459_v12, %v1530_v57 }
 0xbec   : > { %v10457_v24 = vadd.f32 %v4451_v51, %v1528_v48  ;;  %4512 = vadd.xlane.f32.xlu0 %v10452_v39 }
 0xbee   : > { %4514 = vadd.xlane.f32.xlu1 %v10457_v24 }
 0xbf0   : > { %4516 = vadd.xlane.f32.xlu0 %v10461_v25 }
 0xbf2   : > { %4518 = vadd.xlane.f32.xlu1 %v10464_v32 }
 0xbf6   : > { %v6105_v41 = vpop.f32.mrb[140].mxu1 }
 0xbf7   : > { %v4463_v53 = vpop.f32.mrb[141].mxu1  ;;  %v4472_v21 = vadd.f32 %v6105_v41, %v10406_v52  ;;  %v6551_v41 = vld [vmem:[#allocation11 + $0x20] ss:$8 sps:$4 sm:$0xff]  }
 0xbf8   : > { %v4464_v17 = vadd.f32 %v10406_v52, %v4463_v53  ;;  %v6106_v2 = vpop.f32.mrb[142].mxu1  ;;  %v6556_v53 = vld [vmem:[#allocation11 + $0x34] ss:$8 sps:$4 sm:$0xff]  }
 0xbf9   : > { %v4466_v3 = vpop.f32.mrb[143].mxu1  ;;  %v4475_v0 = vadd.f32 %v6106_v2, %v10406_v52  ;;  %v10481_v62 = vadd.f32 %v4472_v21, %v1533_v26  ;;  %v6559_v2 = vld [vmem:[#allocation11 + $0x44] ss:$8 sps:$4 sm:$0xff]   ;;  %v6560_v21 = vld [vmem:[#allocation11 + $0x50] ss:$8 sps:$4 sm:$0xff]  }
 0xbfa   : > { %v10472_v31 = vadd.f32 %v4464_v17, %v1531_v50  ;;  %v4467_v61 = vadd.f32 %v10406_v52, %v4466_v3  ;;  %v6548_v52 = vld [vmem:[#allocation11 + $0x10] ss:$8 sps:$4 sm:$0xff]   ;;  %v6562_v3 = vld [vmem:[#allocation11 + $0x54] ss:$8 sps:$4 sm:$0xff]   ;;  %v6563_v26 = vld [vmem:[#allocation11 + $0x60] ss:$8 sps:$4 sm:$0xff]  }
 0xbfb   : > { %v10484_v44 = vadd.f32 %v4475_v0, %v1534_v8  ;;  %4832 = vmatpush1.bf16.msra.mxu0 %v6548_v52  ;;  %v6554_v17 = vld [vmem:[#allocation11 + $0x30] ss:$8 sps:$4 sm:$0xff]   ;;  %v6568_v0 = vld [vmem:[#allocation11 + $0x74] ss:$8 sps:$4 sm:$0xff]  }
 0xbfc   : > { %v10477_v46 = vadd.f32 %v4467_v61, %v1532_v18  ;;  %4520 = vadd.xlane.f32.xlu0 %v10472_v31  ;;  %4833 = vmatprep.subr.bf16.mxu0 %v6553_v15  ;;  %v6557_v18 = vld [vmem:[#allocation11 + $0x40] ss:$8 sps:$4 sm:$0xff]   ;;  %v6565_v61 = vld [vmem:[#allocation11 + $0x64] ss:$8 sps:$4 sm:$0xff]   ;;  %v6566_v8 = vld [vmem:[#allocation11 + $0x70] ss:$8 sps:$4 sm:$0xff]  }
 0xbfe   : > { %4522 = vadd.xlane.f32.xlu1 %v10477_v46 }
 0xbff   : > { %4834 = vmatpush1.bf16.msra.mxu0 %v6551_v41 }
 0xc00   : > { %4524 = vadd.xlane.f32.xlu0 %v10481_v62  ;;  %4835 = vmatprep.subr.bf16.mxu0 %v6556_v53 }
 0xc02   : > { %4526 = vadd.xlane.f32.xlu1 %v10484_v44 }
 0xc03   : > { %4836 = vmatpush1.bf16.msra.mxu0 %v6554_v17 }
 0xc04   : > { %4837 = vmatprep.subr.bf16.mxu0 %v6559_v2 }
 0xc07   : > { %4838 = vmatpush1.bf16.msra.mxu0 %v6557_v18  ;;  %v6569_v18 = vld [vmem:[#allocation12 + $0x40] sm:$0xff]  }
 0xc08   : > { %4839 = vmatprep.subr.bf16.mxu0 %v6562_v3  ;;  %v6570_v3 = vld [vmem:[#allocation12] sm:$0xff]   ;;  %5963 = vmatprep.subr.bf16.mxu1 %v6569_v18 }
 0xc09   : > { %5964 = vmatpush3.bf16.msra.mxu1 %v6570_v3 }
 0xc0b   : > { %4840 = vmatpush1.bf16.msra.mxu0 %v6560_v21  ;;  %v6571_v21 = vld [vmem:[#allocation12 + $0x48] sm:$0xff]  }
 0xc0c   : > { %4841 = vmatprep.subr.bf16.mxu0 %v6565_v61  ;;  %v6572_v61 = vld [vmem:[#allocation12 + $0x8] sm:$0xff]   ;;  %5965 = vmatprep.subr.bf16.mxu1 %v6571_v21 }
 0xc0d   : > { %5966 = vmatpush3.bf16.msra.mxu1 %v6572_v61 }
 0xc0f   : > { %4842 = vmatpush1.bf16.msra.mxu0 %v6563_v26  ;;  %v6573_v26 = vld [vmem:[#allocation12 + $0x50] sm:$0xff]  }
 0xc10   : > { %4843 = vmatprep.subr.bf16.mxu0 %v6568_v0  ;;  %v6574_v0 = vld [vmem:[#allocation12 + $0x10] sm:$0xff]   ;;  %5967 = vmatprep.subr.bf16.mxu1 %v6573_v26  ;;  %v10574_v26 = vld [vmem:[#allocation6 + $0x3] ss:$0 sm:$0xff] }
 0xc11   : > { %5968 = vmatpush3.bf16.msra.mxu1 %v6574_v0 }
 0xc13   : > { %4844 = vmatpush1.bf16.msra.mxu0 %v6566_v8  ;;  %v6575_v8 = vld [vmem:[#allocation12 + $0x58] sm:$0xff]  }
 0xc14   : > { %5969 = vmatprep.subr.bf16.mxu1 %v6575_v8 }
 0xc3c   : > { %v4497_v1 = vpop.xlane.xlu0 %4496 }
 0xc3d   : > { %v4529_v54 = vmul.f32 0.0078125, %v4497_v1 }
 0xc3e   : > { %v4499_v27 = vpop.xlane.xlu1 %4498 }
 0xc3f   : > { %v10489_v55 = vsub.f32 %v10412_v60, %v4529_v54  ;;  %v4530_v36 = vmul.f32 0.0078125, %v4499_v27 }
 0xc40   : > { %v4501_v42 = vpop.xlane.xlu0 %4500 }
 0xc41   : > { %v10492_v9 = vsub.f32 %v10416_v30, %v4530_v36  ;;  %v4531_v63 = vmul.f32 0.0078125, %v4501_v42  ;;  %v4561_v33 = vmul.f32 %v10489_v55, %v10489_v55 }
 0xc43   : > { %v10497_v28 = vsub.f32 %v10419_v47, %v4531_v63  ;;  %4577 = vadd.xlane.f32.xlu0 %v4561_v33  ;;  %v4562_v37 = vmul.f32 %v10492_v9, %v10492_v9 }
 0xc44   : > { %v4503_v34 = vpop.xlane.xlu0 %4502 }
 0xc45   : > { %v4532_v45 = vmul.f32 0.0078125, %v4503_v34  ;;  %4579 = vadd.xlane.f32.xlu1 %v4562_v37  ;;  %v4563_v20 = vmul.f32 %v10497_v28, %v10497_v28 }
 0xc47   : > { %v10504_v43 = vsub.f32 %v10425_v19, %v4532_v45  ;;  %4581 = vadd.xlane.f32.xlu0 %v4563_v20 }
 0xc49   : > { %v4564_v13 = vmul.f32 %v10504_v43, %v10504_v43 }
 0xc4b   : > { %4583 = vadd.xlane.f32.xlu1 %v4564_v13 }
 0xc4c   : > { %v4505_v4 = vpop.xlane.xlu0 %4504 }
 0xc4d   : > { %v4533_v23 = vmul.f32 0.0078125, %v4505_v4 }
 0xc4e   : > { %v4507_v11 = vpop.xlane.xlu1 %4506 }
 0xc4f   : > { %v10509_v22 = vsub.f32 %v10432_v29, %v4533_v23  ;;  %v4534_v56 = vmul.f32 0.0078125, %v4507_v11 }
 0xc50   : > { %v4509_v16 = vpop.xlane.xlu0 %4508 }
 0xc51   : > { %v10512_v58 = vsub.f32 %v10437_v14, %v4534_v56  ;;  %v4535_v35 = vmul.f32 0.0078125, %v4509_v16  ;;  %v4565_v6 = vmul.f32 %v10509_v22, %v10509_v22 }
 0xc52   : > { %v4511_v48 = vpop.xlane.xlu1 %4510 }
 0xc53   : > { %v10517_v59 = vsub.f32 %v10441_v49, %v4535_v35  ;;  %v4536_v40 = vmul.f32 0.0078125, %v4511_v48  ;;  %4585 = vadd.xlane.f32.xlu0 %v4565_v6  ;;  %v4566_v51 = vmul.f32 %v10512_v58, %v10512_v58 }
 0xc55   : > { %v10522_v12 = vsub.f32 %v10444_v38, %v4536_v40  ;;  %4587 = vadd.xlane.f32.xlu1 %v4566_v51  ;;  %v4567_v57 = vmul.f32 %v10517_v59, %v10517_v59 }
 0xc57   : > { %4589 = vadd.xlane.f32.xlu0 %v4567_v57  ;;  %v4568_v50 = vmul.f32 %v10522_v12, %v10522_v12 }
 0xc59   : > { %4591 = vadd.xlane.f32.xlu1 %v4568_v50 }
 0xc79   : > { %v4513_v10 = vpop.xlane.xlu0 %4512 }
 0xc7a   : > { %v4537_v7 = vmul.f32 0.0078125, %v4513_v10  ;;  %v6576_v10 = vld [vmem:[#allocation12 + $0x18] sm:$0xff]  }
 0xc7b   : > { %v4515_v52 = vpop.xlane.xlu1 %4514  ;;  %5970 = vmatpush3.bf16.msra.mxu1 %v6576_v10 }
 0xc7c   : > { %v10530_v1 = vsub.f32 %v10452_v39, %v4537_v7  ;;  %v4538_v54 = vmul.f32 0.0078125, %v4515_v52  ;;  %v6577_v7 = vld [vmem:[#allocation12 + $0x60] sm:$0xff]  }
 0xc7d   : > { %v4517_v27 = vpop.xlane.xlu0 %4516  ;;  %v6578_v52 = vld [vmem:[#allocation12 + $0x20] sm:$0xff]   ;;  %5971 = vmatprep.subr.bf16.mxu1 %v6577_v7 }
 0xc7e   : > { %v10533_v36 = vsub.f32 %v10457_v24, %v4538_v54  ;;  %v4539_v42 = vmul.f32 0.0078125, %v4517_v27  ;;  %v4569_v63 = vmul.f32 %v10530_v1, %v10530_v1  ;;  %v6579_v54 = vld [vmem:[#allocation12 + $0x68] sm:$0xff]  }
 0xc7f   : > { %v4519_v33 = vpop.xlane.xlu1 %4518  ;;  %5972 = vmatpush3.bf16.msra.mxu1 %v6578_v52 }
 0xc80   : > { %v10538_v37 = vsub.f32 %v10461_v25, %v4539_v42  ;;  %v4540_v34 = vmul.f32 0.0078125, %v4519_v33  ;;  %4593 = vadd.xlane.f32.xlu0 %v4569_v63  ;;  %v4570_v45 = vmul.f32 %v10533_v36, %v10533_v36  ;;  %5973 = vmatprep.subr.bf16.mxu1 %v6579_v54 }
 0xc82   : > { %v10543_v20 = vsub.f32 %v10464_v32, %v4540_v34  ;;  %4595 = vadd.xlane.f32.xlu1 %v4570_v45  ;;  %v4571_v13 = vmul.f32 %v10538_v37, %v10538_v37 }
 0xc84   : > { %4597 = vadd.xlane.f32.xlu0 %v4571_v13  ;;  %v4572_v4 = vmul.f32 %v10543_v20, %v10543_v20 }
 0xc86   : > { %4599 = vadd.xlane.f32.xlu1 %v4572_v4 }
 0xc89   : > { %v4521_v23 = vpop.xlane.xlu0 %4520 }
 0xc8a   : > { %v4541_v11 = vmul.f32 0.0078125, %v4521_v23 }
 0xc8b   : > { %v4523_v56 = vpop.xlane.xlu1 %4522 }
 0xc8c   : > { %v10550_v16 = vsub.f32 %v10472_v31, %v4541_v11  ;;  %v4542_v35 = vmul.f32 0.0078125, %v4523_v56 }
 0xc8d   : > { %v4525_v6 = vpop.xlane.xlu0 %4524 }
 0xc8e   : > { %v10553_v48 = vsub.f32 %v10477_v46, %v4542_v35  ;;  %v4543_v40 = vmul.f32 0.0078125, %v4525_v6  ;;  %v4573_v51 = vmul.f32 %v10550_v16, %v10550_v16 }
 0xc8f   : > { %v4527_v15 = vpop.xlane.xlu1 %4526 }
 0xc90   : > { %v10558_v57 = vsub.f32 %v10481_v62, %v4543_v40  ;;  %v4544_v41 = vmul.f32 0.0078125, %v4527_v15  ;;  %4601 = vadd.xlane.f32.xlu0 %v4573_v51  ;;  %v4574_v50 = vmul.f32 %v10553_v48, %v10553_v48  ;;  %v10569_v40 = vld [vmem:[#allocation6 + $0x2] ss:$0 sm:$0xff] }
 0xc92   : > { %v10563_v53 = vsub.f32 %v10484_v44, %v4544_v41  ;;  %4603 = vadd.xlane.f32.xlu1 %v4574_v50  ;;  %v4575_v17 = vmul.f32 %v10558_v57, %v10558_v57 }
 0xc94   : > { %4605 = vadd.xlane.f32.xlu0 %v4575_v17  ;;  %v4576_v2 = vmul.f32 %v10563_v53, %v10563_v53 }
 0xc96   : > { %4607 = vadd.xlane.f32.xlu1 %v4576_v2 }
 0xcd0   : > { %v4578_v27 = vpop.xlane.xlu0 %4577 }
 0xcd1   : > { %v4609_v42 = vmul.f32 0.0078125, %v4578_v27 }
 0xcd2   : > { %v4580_v63 = vpop.xlane.xlu1 %4579 }
 0xcd3   : > { %v4625_v33 = vadd.f32 1e-05, %v4609_v42  ;;  %v4610_v34 = vmul.f32 0.0078125, %v4580_v63 }
 0xcd4   : > { %v4582_v45 = vpop.xlane.xlu0 %4581 }
 0xcd5   : > { %6969 = vrsqrt.f32 %v4625_v33  ;;  %v4626_v13 = vadd.f32 1e-05, %v4610_v34  ;;  %v4611_v4 = vmul.f32 0.0078125, %v4582_v45 }
 0xcd7   : > { %6971 = vrsqrt.f32 %v4626_v13  ;;  %v4627_v23 = vadd.f32 1e-05, %v4611_v4 }
 0xcd8   : > { %v4584_v11 = vpop.xlane.xlu1 %4583 }
 0xcd9   : > { %6973 = vrsqrt.f32 %v4627_v23  ;;  %v4612_v56 = vmul.f32 0.0078125, %v4584_v11 }
 0xcdb   : > { %v4628_v35 = vadd.f32 1e-05, %v4612_v56 }
 0xcdd   : > { %6975 = vrsqrt.f32 %v4628_v35 }
 0xcdf   : > { %v6970_v6 = vpop.eup %6969 }
 0xce0   : > { %v4657_v51 = vmul.f32 %v6970_v6, %v10489_v55  ;;  %v4586_v15 = vpop.xlane.xlu0 %4585 }
 0xce1   : > { %v6972_v41 = vpop.eup %6971  ;;  %v4613_v50 = vmul.f32 0.0078125, %v4586_v15 }
 0xce2   : > { %v4677_v17 = vmul.f32 %v10569_v40, %v4657_v51  ;;  %v4658_v2 = vmul.f32 %v6972_v41, %v10492_v9  ;;  %v4588_v18 = vpop.xlane.xlu1 %4587 }
 0xce3   : > { %v6974_v3 = vpop.eup %6973  ;;  %v4629_v21 = vadd.f32 1e-05, %v4613_v50  ;;  %v4614_v61 = vmul.f32 0.0078125, %v4588_v18 }
 0xce4   : > { %v4678_v0 = vmul.f32 %v10569_v40, %v4658_v2  ;;  %v4590_v8 = vpop.xlane.xlu0 %4589  ;;  %v4697_v52 = vadd.f32 %v10574_v26, %v4677_v17  ;;  %v4659_v27 = vmul.f32 %v6974_v3, %v10497_v28 }
 0xce5   : > { %6977 = vrsqrt.f32 %v4629_v21  ;;  %v4630_v10 = vadd.f32 1e-05, %v4614_v61  ;;  %v4615_v7 = vmul.f32 0.0078125, %v4590_v8 }
 0xce6   : > { %v4592_v55 = vpop.xlane.xlu1 %4591  ;;  %v4698_v54 = vadd.f32 %v10574_v26, %v4678_v0  ;;  %v4679_v13 = vmul.f32 %v10569_v40, %v4659_v27 }
 0xce7   : > { %v6976_v9 = vpop.eup %6975  ;;  %6979 = vrsqrt.f32 %v4630_v10  ;;  %v4631_v42 = vadd.f32 1e-05, %v4615_v7  ;;  %v4616_v63 = vmul.f32 0.0078125, %v4592_v55 }
 0xce8   : > { %v4713_v33 = vpack.c.bf16 %v4698_v54, %v4697_v52  ;;  %v4660_v34 = vmul.f32 %v6976_v9, %v10504_v43  ;;  %v4699_v28 = vadd.f32 %v10574_v26, %v4679_v13 }
 0xce9   : > { %6981 = vrsqrt.f32 %v4631_v42  ;;  %v4632_v45 = vadd.f32 1e-05, %v4616_v63 }
 0xcea   : > { %4862 = vmatmul.mubr.bf16.vlgmr.msra.gmra.mrb[128].mxu0 %v4713_v33  ;;  %v4680_v4 = vmul.f32 %v10569_v40, %v4660_v34 }
 0xceb   : > { %6983 = vrsqrt.f32 %v4632_v45  ;;  %4871 = vmatprep.mubr.bf16.mxu0 %v7355_v5 }
 0xcec   : > { %v4700_v23 = vadd.f32 %v10574_v26, %v4680_v4 }
 0xcee   : > { %v4714_v56 = vpack.c.bf16 %v4700_v23, %v4699_v28 }
 0xcef   : > { %v6978_v11 = vpop.eup %6977 }
 0xcf0   : > { %v4661_v35 = vmul.f32 %v6978_v11, %v10509_v22 }
 0xcf1   : > { %v6980_v6 = vpop.eup %6979 }
 0xcf2   : > { %4872 = vmatmul.mubr.bf16.gmra.mrb[132].mxu0 %v4714_v56  ;;  %v4662_v43 = vmul.f32 %v6980_v6, %v10512_v58  ;;  %v4681_v51 = vmul.f32 %v10569_v40, %v4661_v35 }
 0xcf3   : > { %v6982_v15 = vpop.eup %6981  ;;  %4881 = vmatprep.mubr.bf16.mxu0 %v7355_v5 }
 0xcf4   : > { %v4682_v41 = vmul.f32 %v10569_v40, %v4662_v43  ;;  %v4701_v17 = vadd.f32 %v10574_v26, %v4681_v51  ;;  %v4663_v18 = vmul.f32 %v6982_v15, %v10517_v59 }
 0xcf5   : > { %v6984_v50 = vpop.eup %6983 }
 0xcf6   : > { %v4702_v2 = vadd.f32 %v10574_v26, %v4682_v41  ;;  %v4664_v22 = vmul.f32 %v6984_v50, %v10522_v12  ;;  %v4683_v58 = vmul.f32 %v10569_v40, %v4663_v18 }
 0xcf8   : > { %v4715_v3 = vpack.c.bf16 %v4702_v2, %v4701_v17  ;;  %v4684_v21 = vmul.f32 %v10569_v40, %v4664_v22  ;;  %v4703_v0 = vadd.f32 %v10574_v26, %v4683_v58 }
 0xcfa   : > { %4882 = vmatmul.mubr.bf16.gmra.mrb[136].mxu0 %v4715_v3  ;;  %v4704_v61 = vadd.f32 %v10574_v26, %v4684_v21 }
 0xcfb   : > { %4891 = vmatprep.mubr.bf16.mxu0 %v7355_v5 }
 0xcfc   : > { %v4716_v8 = vpack.c.bf16 %v4704_v61, %v4703_v0 }
 0xd02   : > { %4892 = vmatmul.mubr.bf16.gmra.mrb[140].mxu0 %v4716_v8 }
 0xd03   : > { %4901 = vmatprep.mubr.bf16.mxu0 %v7355_v5 }
 0xd0d   : > { %v4594_v10 = vpop.xlane.xlu0 %4593 }
 0xd0e   : > { %v4617_v59 = vmul.f32 0.0078125, %v4594_v10 }
 0xd0f   : > { %v4596_v7 = vpop.xlane.xlu1 %4595 }
 0xd10   : > { %v4633_v12 = vadd.f32 1e-05, %v4617_v59  ;;  %v4618_v55 = vmul.f32 0.0078125, %v4596_v7 }
 0xd11   : > { %v4598_v52 = vpop.xlane.xlu0 %4597 }
 0xd12   : > { %6985 = vrsqrt.f32 %v4633_v12  ;;  %v4634_v54 = vadd.f32 1e-05, %v4618_v55  ;;  %v4619_v27 = vmul.f32 0.0078125, %v4598_v52 }
 0xd13   : > { %v4600_v9 = vpop.xlane.xlu1 %4599 }
 0xd14   : > { %6987 = vrsqrt.f32 %v4634_v54  ;;  %v4635_v42 = vadd.f32 1e-05, %v4619_v27  ;;  %v4620_v63 = vmul.f32 0.0078125, %v4600_v9 }
 0xd16   : > { %6989 = vrsqrt.f32 %v4635_v42  ;;  %v4636_v33 = vadd.f32 1e-05, %v4620_v63 }
 0xd18   : > { %6991 = vrsqrt.f32 %v4636_v33 }
 0xd1c   : > { %v6986_v34 = vpop.eup %6985 }
 0xd1d   : > { %v4602_v45 = vpop.xlane.xlu0 %4601  ;;  %v4665_v13 = vmul.f32 %v6986_v34, %v10530_v1 }
 0xd1e   : > { %v6988_v4 = vpop.eup %6987  ;;  %v4621_v23 = vmul.f32 0.0078125, %v4602_v45 }
 0xd1f   : > { %v4604_v28 = vpop.xlane.xlu1 %4603  ;;  %v4666_v11 = vmul.f32 %v6988_v4, %v10533_v36  ;;  %v4685_v56 = vmul.f32 %v10569_v40, %v4665_v13 }
 0xd20   : > { %v6990_v35 = vpop.eup %6989  ;;  %v4637_v6 = vadd.f32 1e-05, %v4621_v23  ;;  %v4622_v43 = vmul.f32 0.0078125, %v4604_v28  ;;  %v6580_v28 = vld [vmem:[#allocation12 + $0x28] sm:$0xff]  }
 0xd21   : > { %v4606_v51 = vpop.xlane.xlu0 %4605  ;;  %v4686_v15 = vmul.f32 %v10569_v40, %v4666_v11  ;;  %v4705_v1 = vadd.f32 %v10574_v26, %v4685_v56  ;;  %v4667_v22 = vmul.f32 %v6990_v35, %v10538_v37  ;;  %5974 = vmatpush3.bf16.msra.mxu1 %v6580_v28  ;;  %v6581_v11 = vld [vmem:[#allocation12 + $0x70] sm:$0xff]   ;;  %v6584_v56 = vld [vmem:[#allocation12 + $0x38] sm:$0xff]   ;;  %v4739_v35 = vlaneseq }
 0xd22   : > { %v6992_v41 = vpop.eup %6991  ;;  %6993 = vrsqrt.f32 %v4637_v6  ;;  %v4638_v50 = vadd.f32 1e-05, %v4622_v43  ;;  %v4623_v17 = vmul.f32 0.0078125, %v4606_v51  ;;  %5975 = vmatprep.subr.bf16.mxu1 %v6581_v11 }
 0xd23   : > { %v4608_v2 = vpop.xlane.xlu1 %4607  ;;  %v4706_v18 = vadd.f32 %v10574_v26, %v4686_v15  ;;  %v4668_v36 = vmul.f32 %v6992_v41, %v10543_v20  ;;  %v4687_v8 = vmul.f32 %v10569_v40, %v4667_v22 }
 0xd24   : > { %6995 = vrsqrt.f32 %v4638_v50  ;;  %v4639_v3 = vadd.f32 1e-05, %v4623_v17  ;;  %v4624_v21 = vmul.f32 0.0078125, %v4608_v2 }
 0xd25   : > { %v4717_v58 = vpack.c.bf16 %v4706_v18, %v4705_v1  ;;  %v4688_v61 = vmul.f32 %v10569_v40, %v4668_v36  ;;  %v4707_v37 = vadd.f32 %v10574_v26, %v4687_v8 }
 0xd26   : > { %6997 = vrsqrt.f32 %v4639_v3  ;;  %v4640_v0 = vadd.f32 1e-05, %v4624_v21 }
 0xd27   : > { %4902 = vmatmul.mubr.bf16.gmra.mrb[144].mxu0 %v4717_v58  ;;  %v4708_v10 = vadd.f32 %v10574_v26, %v4688_v61 }
 0xd28   : > { %6999 = vrsqrt.f32 %v4640_v0  ;;  %4911 = vmatprep.mubr.bf16.mxu0 %v7355_v5 }
 0xd29   : > { %v4718_v20 = vpack.c.bf16 %v4708_v10, %v4707_v37 }
 0xd2c   : > { %v6994_v59 = vpop.eup %6993 }
 0xd2d   : > { %v4669_v7 = vmul.f32 %v6994_v59, %v10550_v16 }
 0xd2e   : > { %v6996_v12 = vpop.eup %6995 }
 0xd2f   : > { %4912 = vmatmul.mubr.bf16.gmra.mrb[148].mxu0 %v4718_v20  ;;  %v4670_v55 = vmul.f32 %v6996_v12, %v10553_v48  ;;  %v4689_v52 = vmul.f32 %v10569_v40, %v4669_v7 }
 0xd30   : > { %v6998_v54 = vpop.eup %6997  ;;  %4921 = vmatprep.mubr.bf16.mxu0 %v7355_v5 }
 0xd31   : > { %v4690_v27 = vmul.f32 %v10569_v40, %v4670_v55  ;;  %v4709_v42 = vadd.f32 %v10574_v26, %v4689_v52  ;;  %v4671_v33 = vmul.f32 %v6998_v54, %v10558_v57  ;;  %v6582_v57 = vld [vmem:[#allocation12 + $0x30] sm:$0xff]  }
 0xd32   : > { %v7000_v9 = vpop.eup %6999  ;;  %5976 = vmatpush3.bf16.msra.mxu1 %v6582_v57 }
 0xd33   : > { %v4710_v63 = vadd.f32 %v10574_v26, %v4690_v27  ;;  %v4672_v16 = vmul.f32 %v7000_v9, %v10563_v53  ;;  %v4691_v48 = vmul.f32 %v10569_v40, %v4671_v33  ;;  %v6583_v53 = vld [vmem:[#allocation12 + $0x78] sm:$0xff]  }
 0xd34   : > { %5977 = vmatprep.subr.bf16.mxu1 %v6583_v53 }
 0xd35   : > { %v4719_v34 = vpack.c.bf16 %v4710_v63, %v4709_v42  ;;  %v4692_v45 = vmul.f32 %v10569_v40, %v4672_v16  ;;  %v4711_v4 = vadd.f32 %v10574_v26, %v4691_v48  ;;  %v4740_v40 = vshrl.u32 %v4739_v35, 7 }
 0xd36   : > { %5978 = vmatpush3.bf16.msra.mxu1 %v6584_v56 }
 0xd37   : > { %4922 = vmatmul.mubr.bf16.gmra.mrb[152].mxu0 %v4719_v34  ;;  %v4712_v13 = vadd.f32 %v10574_v26, %v4692_v45  ;;  %v4741_v6 = vsub.s32 0, %v4740_v40  ;;  %v4745_v26 = vsub.s32 1, %v4740_v40 }
 0xd38   : > { %4931 = vmatprep.mubr.bf16.mxu0 %v7355_v5  ;;  %v4737_v5 = vld [vmem:[%s11259_s26] sm:$0x3]  ;;  %s7356_s26 = smov [#allocation14]  }
 0xd39   : > { %v4720_v23 = vpack.c.bf16 %v4712_v13, %v4711_v4  ;;  %v10631_v43 = vrot.slane %v4737_v5, %v4741_v6  ;;  %v10633_v51 = vrot.slane %v4737_v5, %v4745_v26  ;;  %s7207_s25 = sshll.u32 %s7356_s26, 4  ;;  %s7208_s25 = int_to_ptr.vmem [resolvable:$false] %s7207_s25 }
 0xd3a   : > { %s7209_s5 = scalar_lea.vmem %s7208_s25, 4096  ;;  %p7210_p8 = scmp.lt.s32.totalorder %s10717_s3, %s7208_s25 }
 0xd3b   : > { %p7211_p7 = scmp.lt.s32.totalorder %s7209_s5, %s7203_s17 }
 0xd3d   : > { %p7212_p4 = por %p7211_p7, %p7210_p8 }
 0xd3f   : > { %4932 = vmatmul.mubr.bf16.gmra.mrb[156].mxu0 %v4720_v23  ;;  %p7213_p11 = pnand %p7212_p4, %p7206_p3 }
 0xdbd   : > { %v4863_v15 = vpop.f32.mrb[128].mxu0 }
 0xdbe   : > { %v4864_v41 = vadd.f32 %v4863_v15, %v10631_v43  ;;  %v4865_v50 = vpop.f32.mrb[129].mxu0 }
 0xdbf   : > { %v4866_v17 = vadd.f32 %v4865_v50, %v10633_v51  ;;  %v4867_v2 = vpop.f32.mrb[130].mxu0 }
 0xdc0   : > { %v4868_v1 = vadd.f32 %v4867_v2, %v10631_v43  ;;  %v4869_v18 = vpop.f32.mrb[131].mxu0  ;;  %v4942_v36 = vmax.f32 %v4864_v41, 0.0 }
 0xdc1   : > { %v4870_v22 = vadd.f32 %v4869_v18, %v10633_v51  ;;  %v4943_v21 = vmax.f32 %v4866_v17, 0.0 }
 0xdc2   : > { %v4944_v3 = vmax.f32 %v4868_v1, 0.0 }
 0xdc3   : > { %v4945_v58 = vmax.f32 %v4870_v22, 0.0 }
 0xdc4   : > { %v4974_v61 = vpack.c.bf16 %v4944_v3, %v4942_v36 }
 0xdc5   : > { %v4975_v0 = vpack.c.bf16 %v4945_v58, %v4943_v21  ;;  %v4873_v8 = vpop.f32.mrb[132].mxu0 }
 0xdc6   : > { %v4874_v10 = vadd.f32 %v4873_v8, %v10631_v43  ;;  %v4875_v37 = vpop.f32.mrb[133].mxu0 }
 0xdc7   : > { %v4876_v59 = vadd.f32 %v4875_v37, %v10633_v51  ;;  %v4877_v20 = vpop.f32.mrb[134].mxu0  ;;  %5154 = vmatprep.mubr.bf16.mxu1 %v4975_v0 }
 0xdc8   : > { %v4878_v7 = vadd.f32 %v4877_v20, %v10631_v43  ;;  %v4879_v12 = vpop.f32.mrb[135].mxu0  ;;  %5155 = vmatmul.mubr.bf16.vlgmr.msra.gmra.mrb[144].mxu1 %v4974_v61  ;;  %v4946_v52 = vmax.f32 %v4874_v10, 0.0 }
 0xdc9   : > { %v4880_v55 = vadd.f32 %v4879_v12, %v10633_v51  ;;  %v4947_v27 = vmax.f32 %v4876_v59, 0.0 }
 0xdca   : > { %v4948_v54 = vmax.f32 %v4878_v7, 0.0 }
 0xdcb   : > { %v4949_v9 = vmax.f32 %v4880_v55, 0.0 }
 0xdcc   : > { %v4976_v42 = vpack.c.bf16 %v4948_v54, %v4946_v52 }
 0xdcd   : > { %v4977_v63 = vpack.c.bf16 %v4949_v9, %v4947_v27  ;;  %v4883_v33 = vpop.f32.mrb[136].mxu0 }
 0xdce   : > { %v4884_v16 = vadd.f32 %v4883_v33, %v10631_v43  ;;  %v4885_v34 = vpop.f32.mrb[137].mxu0 }
 0xdcf   : > { %v4886_v45 = vadd.f32 %v4885_v34, %v10633_v51  ;;  %v4887_v48 = vpop.f32.mrb[138].mxu0  ;;  %5162 = vmatprep.mubr.bf16.mxu1 %v4977_v63 }
 0xdd0   : > { %v4888_v13 = vadd.f32 %v4887_v48, %v10631_v43  ;;  %v4889_v4 = vpop.f32.mrb[139].mxu0  ;;  %5163 = vmatmul.mubr.bf16.gmra.mrb[148].mxu1 %v4976_v42  ;;  %v4950_v28 = vmax.f32 %v4884_v16, 0.0 }
 0xdd1   : > { %v4890_v23 = vadd.f32 %v4889_v4, %v10633_v51  ;;  %v4951_v57 = vmax.f32 %v4886_v45, 0.0 }
 0xdd2   : > { %v4952_v11 = vmax.f32 %v4888_v13, 0.0 }
 0xdd3   : > { %v4953_v53 = vmax.f32 %v4890_v23, 0.0 }
 0xdd4   : > { %v4978_v56 = vpack.c.bf16 %v4952_v11, %v4950_v28 }
 0xdd5   : > { %v4979_v35 = vpack.c.bf16 %v4953_v53, %v4951_v57  ;;  %v4893_v40 = vpop.f32.mrb[140].mxu0 }
 0xdd6   : > { %v4894_v6 = vadd.f32 %v4893_v40, %v10631_v43  ;;  %v4895_v5 = vpop.f32.mrb[141].mxu0 }
 0xdd7   : > { %v4896_v26 = vadd.f32 %v4895_v5, %v10633_v51  ;;  %v4897_v15 = vpop.f32.mrb[142].mxu0  ;;  %5170 = vmatprep.mubr.bf16.mxu1 %v4979_v35 }
 0xdd8   : > { %v4898_v41 = vadd.f32 %v4897_v15, %v10631_v43  ;;  %v4899_v50 = vpop.f32.mrb[143].mxu0  ;;  %5171 = vmatmul.mubr.bf16.gmra.mrb[152].mxu1 %v4978_v56  ;;  %v4954_v2 = vmax.f32 %v4894_v6, 0.0 }
 0xdd9   : > { %v4900_v17 = vadd.f32 %v4899_v50, %v10633_v51  ;;  %v4955_v18 = vmax.f32 %v4896_v26, 0.0 }
 0xdda   : > { %v4956_v1 = vmax.f32 %v4898_v41, 0.0 }
 0xddb   : > { %v4957_v22 = vmax.f32 %v4900_v17, 0.0 }
 0xddc   : > { %v4980_v36 = vpack.c.bf16 %v4956_v1, %v4954_v2 }
 0xddd   : > { %v4981_v3 = vpack.c.bf16 %v4957_v22, %v4955_v18 }
 0xddf   : > { %5178 = vmatprep.mubr.bf16.mxu1 %v4981_v3 }
 0xde0   : > { %5179 = vmatmul.mubr.bf16.gmra.mrb[156].mxu1 %v4980_v36 }
 0xdfa   : > { %v4903_v21 = vpop.f32.mrb[144].mxu0 }
 0xdfb   : > { %v4904_v58 = vadd.f32 %v4903_v21, %v10631_v43  ;;  %v4905_v61 = vpop.f32.mrb[145].mxu0 }
 0xdfc   : > { %v4906_v0 = vadd.f32 %v4905_v61, %v10633_v51  ;;  %v4907_v8 = vpop.f32.mrb[146].mxu0 }
 0xdfd   : > { %v4908_v10 = vadd.f32 %v4907_v8, %v10631_v43  ;;  %v4909_v37 = vpop.f32.mrb[147].mxu0  ;;  %v4958_v20 = vmax.f32 %v4904_v58, 0.0 }
 0xdfe   : > { %v4910_v59 = vadd.f32 %v4909_v37, %v10633_v51  ;;  %v4959_v12 = vmax.f32 %v4906_v0, 0.0 }
 0xdff   : > { %v4960_v7 = vmax.f32 %v4908_v10, 0.0 }
 0xe00   : > { %v4961_v55 = vmax.f32 %v4910_v59, 0.0 }
 0xe01   : > { %v4982_v52 = vpack.c.bf16 %v4960_v7, %v4958_v20 }
 0xe02   : > { %v4983_v54 = vpack.c.bf16 %v4961_v55, %v4959_v12  ;;  %v4913_v27 = vpop.f32.mrb[148].mxu0  ;;  %v10667_v55 = vld [vmem:[#allocation6 + $0x5] ss:$0 sm:$0xff] }
 0xe03   : > { %v4914_v9 = vadd.f32 %v4913_v27, %v10631_v43  ;;  %v4915_v42 = vpop.f32.mrb[149].mxu0 }
 0xe04   : > { %v4916_v63 = vadd.f32 %v4915_v42, %v10633_v51  ;;  %v4917_v33 = vpop.f32.mrb[150].mxu0  ;;  %5186 = vmatprep.mubr.bf16.mxu1 %v4983_v54 }
 0xe05   : > { %v4918_v16 = vadd.f32 %v4917_v33, %v10631_v43  ;;  %v4919_v34 = vpop.f32.mrb[151].mxu0  ;;  %5187 = vmatmul.mubr.bf16.gmra.mrb[160].mxu1 %v4982_v52  ;;  %v4962_v48 = vmax.f32 %v4914_v9, 0.0 }
 0xe06   : > { %v4920_v45 = vadd.f32 %v4919_v34, %v10633_v51  ;;  %v4963_v4 = vmax.f32 %v4916_v63, 0.0 }
 0xe07   : > { %v4964_v13 = vmax.f32 %v4918_v16, 0.0 }
 0xe08   : > { %v4965_v23 = vmax.f32 %v4920_v45, 0.0 }
 0xe09   : > { %v4984_v28 = vpack.c.bf16 %v4964_v13, %v4962_v48 }
 0xe0a   : > { %v4985_v11 = vpack.c.bf16 %v4965_v23, %v4963_v4  ;;  %v4923_v57 = vpop.f32.mrb[152].mxu0 }
 0xe0b   : > { %v4924_v53 = vadd.f32 %v4923_v57, %v10631_v43  ;;  %v4925_v56 = vpop.f32.mrb[153].mxu0 }
 0xe0c   : > { %v4926_v35 = vadd.f32 %v4925_v56, %v10633_v51  ;;  %v4927_v40 = vpop.f32.mrb[154].mxu0  ;;  %5194 = vmatprep.mubr.bf16.mxu1 %v4985_v11 }
 0xe0d   : > { %v4928_v6 = vadd.f32 %v4927_v40, %v10631_v43  ;;  %v4929_v5 = vpop.f32.mrb[155].mxu0  ;;  %5195 = vmatmul.mubr.bf16.gmra.mrb[164].mxu1 %v4984_v28  ;;  %v4966_v15 = vmax.f32 %v4924_v53, 0.0 }
 0xe0e   : > { %v4930_v26 = vadd.f32 %v4929_v5, %v10633_v51  ;;  %v4967_v50 = vmax.f32 %v4926_v35, 0.0 }
 0xe0f   : > { %v4968_v41 = vmax.f32 %v4928_v6, 0.0 }
 0xe10   : > { %v4969_v17 = vmax.f32 %v4930_v26, 0.0 }
 0xe11   : > { %v4986_v2 = vpack.c.bf16 %v4968_v41, %v4966_v15 }
 0xe12   : > { %v4987_v1 = vpack.c.bf16 %v4969_v17, %v4967_v50  ;;  %v4933_v18 = vpop.f32.mrb[156].mxu0 }
 0xe13   : > { %v4934_v22 = vadd.f32 %v4933_v18, %v10631_v43  ;;  %v4935_v36 = vpop.f32.mrb[157].mxu0 }
 0xe14   : > { %v4936_v3 = vadd.f32 %v4935_v36, %v10633_v51  ;;  %v4937_v21 = vpop.f32.mrb[158].mxu0  ;;  %5202 = vmatprep.mubr.bf16.mxu1 %v4987_v1 }
 0xe15   : > { %v4938_v58 = vadd.f32 %v4937_v21, %v10631_v43  ;;  %v4939_v61 = vpop.f32.mrb[159].mxu0  ;;  %5203 = vmatmul.mubr.bf16.gmra.mrb[168].mxu1 %v4986_v2  ;;  %v4970_v8 = vmax.f32 %v4934_v22, 0.0 }
 0xe16   : > { %v4940_v0 = vadd.f32 %v4939_v61, %v10633_v51  ;;  %v4971_v37 = vmax.f32 %v4936_v3, 0.0 }
 0xe17   : > { %v4972_v10 = vmax.f32 %v4938_v58, 0.0 }
 0xe18   : > { %v4973_v59 = vmax.f32 %v4940_v0, 0.0 }
 0xe19   : > { %v4988_v20 = vpack.c.bf16 %v4972_v10, %v4970_v8 }
 0xe1a   : > { %v4989_v7 = vpack.c.bf16 %v4973_v59, %v4971_v37 }
 0xe1c   : > { %5210 = vmatprep.mubr.bf16.mxu1 %v4989_v7 }
 0xe1d   : > { %5211 = vmatmul.mubr.bf16.gmra.mrb[172].mxu1 %v4988_v20 }
 0xe9b   : > { %v5979_v12 = vpop.f32.mrb[144].mxu1 }
 0xe9c   : > { %v5980_v52 = vpop.f32.mrb[145].mxu1 }
 0xe9d   : > { %v5981_v54 = vadd.f32 %v5980_v52, %v5979_v12  ;;  %v5982_v43 = vpop.f32.mrb[146].mxu1 }
 0xe9e   : > { %v5983_v27 = vpop.f32.mrb[147].mxu1 }
 0xe9f   : > { %v5157_v9 = vadd.f32 %v5981_v54, %v10667_v55  ;;  %v5984_v51 = vadd.f32 %v5983_v27, %v5982_v43 }
 0xea1   : > { %v5219_v42 = vadd.f32 %v5157_v9, %v10412_v60  ;;  %v5160_v63 = vadd.f32 %v5984_v51, %v10667_v55 }
 0xea3   : > { %5235 = vst [vmem:[%s7717_s24] sm:$0xff] %v5219_v42  ;;  %v5220_v33 = vadd.f32 %v5160_v63, %v10416_v30  ;;  %v5985_v16 = vpop.f32.mrb[148].mxu1 }
 0xea4   : > { %v5986_v34 = vpop.f32.mrb[149].mxu1 }
 0xea5   : > { %5236 = vst [vmem:[%s7717_s24 + $0x8] sm:$0xff] %v5220_v33  ;;  %v5987_v45 = vadd.f32 %v5986_v34, %v5985_v16  ;;  %v5988_v48 = vpop.f32.mrb[150].mxu1 }
 0xea6   : > { %v5989_v13 = vpop.f32.mrb[151].mxu1 }
 0xea7   : > { %v5165_v4 = vadd.f32 %v5987_v45, %v10667_v55  ;;  %v5990_v23 = vadd.f32 %v5989_v13, %v5988_v48 }
 0xea9   : > { %v5221_v28 = vadd.f32 %v5165_v4, %v10419_v47  ;;  %v5168_v60 = vadd.f32 %v5990_v23, %v10667_v55 }
 0xeab   : > { %5237 = vst [vmem:[%s7717_s24 + $0x10] sm:$0xff] %v5221_v28  ;;  %v5222_v11 = vadd.f32 %v5168_v60, %v10425_v19  ;;  %v5991_v57 = vpop.f32.mrb[152].mxu1 }
 0xeac   : > { %v5992_v30 = vpop.f32.mrb[153].mxu1 }
 0xead   : > { %5238 = vst [vmem:[%s7717_s24 + $0x18] sm:$0xff] %v5222_v11  ;;  %v5993_v53 = vadd.f32 %v5992_v30, %v5991_v57  ;;  %v5994_v56 = vpop.f32.mrb[154].mxu1 }
 0xeae   : > { %v5995_v35 = vpop.f32.mrb[155].mxu1 }
 0xeaf   : > { %v5173_v40 = vadd.f32 %v5993_v53, %v10667_v55  ;;  %v5996_v6 = vadd.f32 %v5995_v35, %v5994_v56 }
 0xeb1   : > { %v5223_v5 = vadd.f32 %v5173_v40, %v10432_v29  ;;  %v5176_v47 = vadd.f32 %v5996_v6, %v10667_v55 }
 0xeb3   : > { %5239 = vst [vmem:[%s7717_s24 + $0x20] sm:$0xff] %v5223_v5  ;;  %v5224_v26 = vadd.f32 %v5176_v47, %v10437_v14  ;;  %v5997_v15 = vpop.f32.mrb[156].mxu1 }
 0xeb4   : > { %v5998_v19 = vpop.f32.mrb[157].mxu1 }
 0xeb5   : > { %5240 = vst [vmem:[%s7717_s24 + $0x28] sm:$0xff] %v5224_v26  ;;  %v5999_v41 = vadd.f32 %v5998_v19, %v5997_v15  ;;  %v6000_v50 = vpop.f32.mrb[158].mxu1 }
 0xeb6   : > { %v6001_v17 = vpop.f32.mrb[159].mxu1 }
 0xeb7   : > { %v5181_v2 = vadd.f32 %v5999_v41, %v10667_v55  ;;  %v6002_v1 = vadd.f32 %v6001_v17, %v6000_v50 }
 0xeb9   : > { %v5225_v18 = vadd.f32 %v5181_v2, %v10441_v49  ;;  %v5184_v29 = vadd.f32 %v6002_v1, %v10667_v55 }
 0xebb   : > { %5241 = vst [vmem:[%s7717_s24 + $0x30] sm:$0xff] %v5225_v18  ;;  %v5226_v22 = vadd.f32 %v5184_v29, %v10444_v38 }
 0xebd   : > { %5242 = vst [vmem:[%s7717_s24 + $0x38] sm:$0xff] %v5226_v22 }
 0xed8   : > { %v6003_v14 = vpop.f32.mrb[160].mxu1 }
 0xed9   : > { %v6004_v36 = vpop.f32.mrb[161].mxu1 }
 0xeda   : > { %v6005_v3 = vadd.f32 %v6004_v36, %v6003_v14  ;;  %v6006_v21 = vpop.f32.mrb[162].mxu1 }
 0xedb   : > { %v6007_v58 = vpop.f32.mrb[163].mxu1 }
 0xedc   : > { %v5189_v61 = vadd.f32 %v6005_v3, %v10667_v55  ;;  %v6008_v0 = vadd.f32 %v6007_v58, %v6006_v21 }
 0xede   : > { %v5227_v8 = vadd.f32 %v5189_v61, %v10452_v39  ;;  %v5192_v49 = vadd.f32 %v6008_v0, %v10667_v55 }
 0xee0   : > { %5243 = vst [vmem:[%s7717_s24 + $0x40] sm:$0xff] %v5227_v8  ;;  %v5228_v10 = vadd.f32 %v5192_v49, %v10457_v24  ;;  %v6009_v37 = vpop.f32.mrb[164].mxu1 }
 0xee1   : > { %v6010_v38 = vpop.f32.mrb[165].mxu1 }
 0xee2   : > { %5244 = vst [vmem:[%s7717_s24 + $0x48] sm:$0xff] %v5228_v10  ;;  %v6011_v59 = vadd.f32 %v6010_v38, %v6009_v37  ;;  %v6012_v20 = vpop.f32.mrb[166].mxu1 }
 0xee3   : > { %v6013_v7 = vpop.f32.mrb[167].mxu1 }
 0xee4   : > { %v5197_v12 = vadd.f32 %v6011_v59, %v10667_v55  ;;  %v6014_v52 = vadd.f32 %v6013_v7, %v6012_v20 }
 0xee6   : > { %v5229_v54 = vadd.f32 %v5197_v12, %v10461_v25  ;;  %v5200_v39 = vadd.f32 %v6014_v52, %v10667_v55 }
 0xee8   : > { %5245 = vst [vmem:[%s7717_s24 + $0x50] sm:$0xff] %v5229_v54  ;;  %v5230_v43 = vadd.f32 %v5200_v39, %v10464_v32  ;;  %v6015_v24 = vpop.f32.mrb[168].mxu1 }
 0xee9   : > { %v6016_v27 = vpop.f32.mrb[169].mxu1 }
 0xeea   : > { %5246 = vst [vmem:[%s7717_s24 + $0x58] sm:$0xff] %v5230_v43  ;;  %v6017_v9 = vadd.f32 %v6016_v27, %v6015_v24  ;;  %v6018_v51 = vpop.f32.mrb[170].mxu1 }
 0xeeb   : > { %v6019_v42 = vpop.f32.mrb[171].mxu1 }
 0xeec   : > { %v5205_v63 = vadd.f32 %v6017_v9, %v10667_v55  ;;  %v6020_v33 = vadd.f32 %v6019_v42, %v6018_v51 }
 0xeee   : > { %v5231_v16 = vadd.f32 %v5205_v63, %v10472_v31  ;;  %v5208_v25 = vadd.f32 %v6020_v33, %v10667_v55 }
 0xef0   : > { %5247 = vst [vmem:[%s7717_s24 + $0x60] sm:$0xff] %v5231_v16  ;;  %v5232_v32 = vadd.f32 %v5208_v25, %v10477_v46  ;;  %v6021_v34 = vpop.f32.mrb[172].mxu1 }
 0xef1   : > { %v6022_v45 = vpop.f32.mrb[173].mxu1 }
 0xef2   : > { %5248 = vst [vmem:[%s7717_s24 + $0x68] sm:$0xff] %v5232_v32  ;;  %v6023_v48 = vadd.f32 %v6022_v45, %v6021_v34  ;;  %v6024_v13 = vpop.f32.mrb[174].mxu1 }
 0xef3   : > { %v6025_v4 = vpop.f32.mrb[175].mxu1 }
 0xef4   : > { %v5213_v31 = vadd.f32 %v6023_v48, %v10667_v55  ;;  %v6026_v23 = vadd.f32 %v6025_v4, %v6024_v13 }
 0xef6   : > { %v5233_v28 = vadd.f32 %v5213_v31, %v10481_v62  ;;  %v5216_v60 = vadd.f32 %v6026_v23, %v10667_v55 }
 0xef8   : > { %5249 = vst [vmem:[%s7717_s24 + $0x70] sm:$0xff] %v5233_v28  ;;  %v5234_v46 = vadd.f32 %v5216_v60, %v10484_v44 }
 0xefa   : > { %5250 = vst [vmem:[%s7717_s24 + $0x78] sm:$0xff] %v5234_v46 }
 0xefb   : > { %7216 = shalt.err (!%p7213_p11)
}
 0xefc   : > { %s7217_s21 = scalar_lea.hbm %s10724_s6, 2048  ;;  %s7221_s8 = scalar_lea.hbm %s11261_s18, 8192 }
 0xefd   : > { %p7218_p1 = scmp.ne.s32.totalorder %s10724_s6, %s7217_s21  ;;  %p7222_p2 = scmp.lt.u32.totalorder %s10724_s6, %s11261_s18 }
 0xefe   : > { %p7223_p5 = scmp.lt.u32.totalorder %s7221_s8, %s7217_s21  ;;  %p7225_p9 = scmp.lt.u32.totalorder %s7217_s21, %s10724_s6 }
 0xeff   : > { %p7219_p13 = pnand %p7218_p1, %p11262_p6 }
 0xf00   : > { %p7224_p10 = por %p7223_p5, %p7222_p2 }
 0xf01   : > { %p7220_p0 = pneg %p7219_p13 }
 0xf02   : > { %p7226_p12 = por %p7225_p9, %p7224_p10 }
 0xf04   : > { %p7227_p3 = pnand %p7226_p12, %p7220_p0 }
 0xf06   : > { %7230 = shalt.err (!%p7227_p3)
}
 0xf07   : > { %s7357_s23 = smov 128   ;;  %s7358_s17 = smov 8  }
 0xf08   : > { %6177 = dma.vmem_to_hbm [thread:$0]  (%p11262_p6), %s10717_s3, 2048, %s10724_s6, %s10729_s12, %s7357_s23, %s7357_s23, %s7358_s17  }
 0xf09 PF: > { %p6214_p8 = scmp.ge.s32.totalorder %s7337_s15, 2  ;;  %s5282_s26 = sand.u32 1, %s7297_s27  }
 0xf0a   : > { %p11263_p7 = scmp.ne.s32.totalorder %s10925_s11, 0  ;;  %s5283_s25 = scalar_lea.sflag [#allocation5], %s5282_s26 }
 0xf0c   : > { %p6200_p4 = pnand %p6214_p8, %p11263_p7 }
 0xf0e   : > { %7292 = dma.done.wait (!%p6200_p4), %s5283_s25, 2048  }
 0xf0f   : > { %7294 = vsyncadd (!%p6200_p4), %s5283_s25, 4294965248  ;;  %s27_s15 = sadd.s32 1, %s7337_s15   ;;  %s11264_s27 = smov %s7301_s28 }
 0xf10   : > { %p24_p11 = scmp.ge.s32.totalorder %s27_s15, 6   ;;  %s11265_s28 = smov %s7305_s29 }
 0xf11   : > { %s11266_s29 = smov %s7640_s19  ;;  %s11267_s30 = smov %s7313_s9 }
 0xf12   : > { %s11268_s9 = smov %s7317_s10  ;;  %s11269_s10 = smov %s7637_s4 }
 0xf13   : > { %s11270_s11 = smov %s7329_s13  ;;  %s11271_s12 = smov %s7333_s14 }
 0xf14   : > { %s11272_s13 = smov %s11275_s22  ;;  %s11273_s14 = smov %s11279_s16 }
 0xf15   :  { %26 = sbr.rel (!%p24_p11) target bundleno = 20 (0x14), region = 123 }
 0xf1c   :  { %5288 = vsyncpa [#allocation4], 1 }
 0xf1d   :  { %5290 = vsyncpa [#allocation4 + $0x1], 1 }
 0xf1e   :  { %5291 = vsyncpa [#allocation7], 1 }
 0xf1f   :  { %5292 = vsyncpa [#allocation10], 1 }
 0xf20   :  { %5293 = vsyncpa [#allocation13], 1 }
 0xf21   :  { %5294 = vsyncpa [#allocation5], 1 }
 0xf22   :  { %5296 = vsyncpa [#allocation5 + $0x1], 1 }

</bundles_post_ra>
